<compile_context>
chip_gen: v6e
topology: v6e:2x2x1
jax: 0.10.0
libtpu: 0.0.40
codegen_flags: <defaults>
</compile_context>

<pallas_src>
import jax
import jax.numpy as jnp
from jax import lax
from jax.experimental import pallas as pl
from jax.experimental.pallas import tpu as pltpu


def _detok_kernel(xc_ref, tw_ref, w13_ref, b2_ref, b3_ref, o_ref, acc_ref):
    i = pl.program_id(1)

    @pl.when(i == 0)
    def _init():
        acc_ref[...] = jnp.zeros_like(acc_ref)

    hd = b3_ref.shape[-1]

    # single up-front cast of the token tile; matmul operands bf16, accumulation f32
    x = xc_ref[...].astype(jnp.bfloat16)                                 # (TN, Cin)

    # fused mlp1 | mlp3 : one pass through the MXU, then lane-aligned slices
    x13 = jnp.dot(x, w13_ref[...], preferred_element_type=jnp.float32)   # (TN, 2*Hd) f32
    x1 = x13[:, :hd]                                                     # (TN, Hd)
    m3 = x13[:, hd:] + b3_ref[...]                                       # (TN, Hd) f32

    # logits: x1 @ (T_prev @ W2^T) + b2   (TW precomputed per batch in the wrapper)
    z = jnp.dot(x1.astype(jnp.bfloat16), tw_ref[...],
                preferred_element_type=jnp.float32)                      # (TN, K) f32
    z = z + b2_ref[...]

    # row softmax over K (== torch F.softmax(dim=1) after its transpose(2, 1)) in f32
    z = z - jnp.max(z, axis=-1, keepdims=True)
    p = jnp.exp(z)
    r = pl.reciprocal(jnp.sum(p, axis=-1, keepdims=True), approx=True)   # EUP, ~free
    p = p * r                                                            # (TN, K) f32

    # acc[h, k] += sum_n m3[n, h] * p[n, k] : contract the token dim directly (no m3.T)
    acc_ref[...] += lax.dot_general(
        m3.astype(jnp.bfloat16), p.astype(jnp.bfloat16),
        dimension_numbers=(((0,), (0,)), ((), ())),
        preferred_element_type=jnp.float32)                              # (Hd, K)

    @pl.when(i == pl.num_programs(1) - 1)
    def _store():
        o_ref[...] = acc_ref[...].astype(o_ref.dtype)


def detokenization_pallas(Xc, T_prev, w1, w2, b2, w3, b3, *, tn=256):
    """Xc: (B, N, Cin). T_prev: (B, Hd, K). Linear weights in torch (out, in) layout."""
    B, N, Cin = Xc.shape
    Hd = w1.shape[0]
    K = w2.shape[0]
    assert T_prev.shape == (B, Hd, K)

    # pick a token tile that divides N (keep the (8,128) rule on the second-minor dim)
    tn = min(tn, N)
    while N % tn != 0 and tn > 8:
        tn //= 2
    assert N % tn == 0 and (tn % 8 == 0 or tn == N), \
        "token count must be divisible by a multiple-of-8 token tile"

    f32 = jnp.float32
    bf16 = jnp.bfloat16

    # layout / algebra glue (pure JAX, once per call):
    #  - reassociate (x1 @ T_prev) @ W2^T -> x1 @ (T_prev @ W2^T)
    TW = jnp.einsum('bhj,kj->bhk',
                    jnp.asarray(T_prev).astype(f32),
                    jnp.asarray(w2).astype(f32)).astype(bf16)            # (B, Hd, K)
    #  - fuse mlp1/mlp3 weights into (Cin, 2*Hd) = [W1^T | W3^T], bf16 for the MXU
    w13 = jnp.concatenate([jnp.asarray(w1).T, jnp.asarray(w3).T],
                          axis=1).astype(bf16)                           # (Cin, 2*Hd)
    b2r = jnp.asarray(b2).reshape(1, K).astype(f32)
    b3r = jnp.asarray(b3).reshape(1, Hd).astype(f32)

    return pl.pallas_call(
        _detok_kernel,
        out_shape=jax.ShapeDtypeStruct((B, Hd, K), Xc.dtype),
        grid_spec=pltpu.PrefetchScalarGridSpec(
            num_scalar_prefetch=0,
            grid=(B, N // tn),
            in_specs=[
                pl.BlockSpec((None, tn, Cin), lambda b, i: (b, i, 0)),   # Xc token tile
                pl.BlockSpec((None, Hd, K), lambda b, i: (b, 0, 0)),     # TW[b]
                pl.BlockSpec((Cin, 2 * Hd), lambda b, i: (0, 0)),        # [W1^T | W3^T]
                pl.BlockSpec((1, K), lambda b, i: (0, 0)),               # b2
                pl.BlockSpec((1, Hd), lambda b, i: (0, 0)),              # b3
            ],
            out_specs=pl.BlockSpec((None, Hd, K), lambda b, i: (b, 0, 0)),
            scratch_shapes=[pltpu.VMEM((Hd, K), jnp.float32)],
        ),
        compiler_params=pltpu.CompilerParams(
            dimension_semantics=("parallel", "arbitrary"),
        ),
    )(Xc, TW, w13, b2r, b3r)


def detokenization_reference(Xc, T_prev, w1, w2, b2, w3, b3):
    """Pure-JAX f32 reference matching the PyTorch forward exactly."""
    x1 = jnp.einsum('bnc,hc->bnh', Xc, w1)                    # mlp1 (no bias)
    z = jnp.einsum('bnh,bhk->bnk', x1, T_prev)                # matmul(x_out, T_prev)
    z = jnp.einsum('bnk,jk->bnj', z, w2) + b2                 # mlp2
    z = jnp.swapaxes(z, 1, 2)                                 # (B, K, N)
    s = jax.nn.softmax(z, axis=1)                             # softmax over K
    m3 = jnp.einsum('bnc,hc->bnh', Xc, w3) + b3               # mlp3
    out = jnp.einsum('bkn,bnh->bkh', s, m3)                   # (B, K, Hd)
    return jnp.swapaxes(out, 1, 2)                            # (B, Hd, K)


if __name__ == "__main__":
    # Small shapes consistent with the module: mlp2 fixes K = 512, so T_prev is (B, Hd, K).
    # Module defaults: Cin = 64, Hd = 384. N = 512 exercises the multi-tile token reduction.
    B, N, Cin, Hd, K = 2, 512, 64, 384, 512

    key = jax.random.PRNGKey(0)
    kx, kt, k1, k2, kb2, k3, kb3 = jax.random.split(key, 7)
    Xc = jax.random.normal(kx, (B, N, Cin), dtype=jnp.float32)
    T_prev = jax.random.normal(kt, (B, Hd, K), dtype=jnp.float32) * 0.05
    w1 = jax.random.normal(k1, (Hd, Cin), dtype=jnp.float32) * 0.1    # mlp1.weight (no bias)
    w2 = jax.random.normal(k2, (K, K), dtype=jnp.float32) * 0.05      # mlp2.weight
    b2 = jax.random.normal(kb2, (K,), dtype=jnp.float32) * 0.1        # mlp2.bias
    w3 = jax.random.normal(k3, (Hd, Cin), dtype=jnp.float32) * 0.1    # mlp3.weight
    b3 = jax.random.normal(kb3, (Hd,), dtype=jnp.float32) * 0.1       # mlp3.bias

    out = detokenization_pallas(Xc, T_prev, w1, w2, b2, w3, b3)
    out = jax.block_until_ready(out)

    ref = detokenization_reference(Xc, T_prev, w1, w2, b2, w3, b3)
    assert out.shape == (B, Hd, K)
    # bf16 matmul operands + approx reciprocal: slightly looser atol than the pure-f32 path
    assert jnp.allclose(out, ref, atol=1e-2, rtol=5e-2), "mismatch vs reference"

    print("KERNEL_OK")
</pallas_src>

<mosaic_0001>
module attributes {stable_mosaic.version = 11 : i64} {
  func.func @_detok_kernel(%arg0: i32, %arg1: i32, %arg2: memref<1x256x64xf32, #tpu.memory_space<vmem>>, %arg3: memref<1x384x512xbf16, #tpu.memory_space<vmem>>, %arg4: memref<64x768xbf16, #tpu.memory_space<vmem>>, %arg5: memref<1x512xf32, #tpu.memory_space<vmem>>, %arg6: memref<1x384xf32, #tpu.memory_space<vmem>>, %arg7: memref<1x384x512xf32, #tpu.memory_space<vmem>>, %arg8: memref<384x512xf32, #tpu.memory_space<vmem>>) attributes {dimension_semantics = [#tpu.dimension_semantics<parallel>, #tpu.dimension_semantics<arbitrary>], iteration_bounds = array<i64: 2, 2>, scalar_prefetch = 0 : i64, scratch_operands = 1 : i64, tpu.core_type = #tpu.core_type<tc>, window_params = [{transform_indices = @transform_0, window_bounds = array<i64: 1, 256, 64>}, {transform_indices = @transform_1, window_bounds = array<i64: 1, 384, 512>}, {pipeline_mode = #tpu.pipeline_mode<synchronous>, transform_indices = @transform_2, window_bounds = array<i64: 64, 768>}, {pipeline_mode = #tpu.pipeline_mode<synchronous>, transform_indices = @transform_3, window_bounds = array<i64: 1, 512>}, {pipeline_mode = #tpu.pipeline_mode<synchronous>, transform_indices = @transform_4, window_bounds = array<i64: 1, 384>}, {transform_indices = @transform_5, window_bounds = array<i64: 1, 384, 512>}]} {
    %c0_i32 = arith.constant 0 : i32
    %0 = arith.cmpi eq, %arg1, %c0_i32 : i32
    %1 = arith.extui %0 : i1 to i32
    %c0_i32_0 = arith.constant 0 : i32
    %2 = arith.cmpi ne, %1, %c0_i32_0 : i32
    scf.if %2 {
      %cst_21 = arith.constant 0.000000e+00 : f32
      %39 = vector.broadcast %cst_21 : f32 to vector<384x512xf32>
      %c0_22 = arith.constant 0 : index
      %c0_23 = arith.constant 0 : index
      %40 = vector.load %arg8[%c0_22, %c0_23] : memref<384x512xf32, #tpu.memory_space<vmem>>, vector<384x512xf32>
      tpu.vector_store %arg8[%c0_22, %c0_23], %39 {strides = array<i32>} : memref<384x512xf32, #tpu.memory_space<vmem>>, vector<384x512xf32>,
    } else {
    }
    %c0 = arith.constant 0 : index
    %c0_1 = arith.constant 0 : index
    %c0_2 = arith.constant 0 : index
    %3 = vector.load %arg2[%c0, %c0_1, %c0_2] : memref<1x256x64xf32, #tpu.memory_space<vmem>>, vector<1x256x64xf32>
    %4 = vector.shape_cast %3 : vector<1x256x64xf32> to vector<256x64xf32>
    %5 = arith.truncf %4 : vector<256x64xf32> to vector<256x64xbf16>
    %c0_3 = arith.constant 0 : index
    %c0_4 = arith.constant 0 : index
    %6 = vector.load %arg4[%c0_3, %c0_4] : memref<64x768xbf16, #tpu.memory_space<vmem>>, vector<64x768xbf16>
    %cst = arith.constant dense<0.000000e+00> : vector<256x768xf32>
    %7 = tpu.matmul %5, %6, %cst {dimension_numbers = #tpu.dot_dimension_numbers<[1], [0], [0], [1], [0, 0, 1, 1], [], []>} : vector<256x64xbf16>, vector<64x768xbf16>, vector<256x768xf32> -> vector<256x768xf32>
    %8 = vector.extract_strided_slice %7 {offsets = [0, 0], sizes = [256, 384], strides = [1, 1]} : vector<256x768xf32> to vector<256x384xf32>
    %9 = vector.extract_strided_slice %7 {offsets = [0, 384], sizes = [256, 384], strides = [1, 1]} : vector<256x768xf32> to vector<256x384xf32>
    %c0_5 = arith.constant 0 : index
    %c0_6 = arith.constant 0 : index
    %10 = vector.load %arg6[%c0_5, %c0_6] : memref<1x384xf32, #tpu.memory_space<vmem>>, vector<1x384xf32>
    %11 = vector.broadcast %10 : vector<1x384xf32> to vector<256x384xf32>
    %12 = arith.addf %9, %11 : vector<256x384xf32>
    %13 = arith.truncf %8 : vector<256x384xf32> to vector<256x384xbf16>
    %c0_7 = arith.constant 0 : index
    %c0_8 = arith.constant 0 : index
    %c0_9 = arith.constant 0 : index
    %14 = vector.load %arg3[%c0_7, %c0_8, %c0_9] : memref<1x384x512xbf16, #tpu.memory_space<vmem>>, vector<1x384x512xbf16>
    %15 = vector.shape_cast %14 : vector<1x384x512xbf16> to vector<384x512xbf16>
    %cst_10 = arith.constant dense<0.000000e+00> : vector<256x512xf32>
    %16 = tpu.matmul %13, %15, %cst_10 {dimension_numbers = #tpu.dot_dimension_numbers<[1], [0], [0], [1], [0, 0, 1, 1], [], []>} : vector<256x384xbf16>, vector<384x512xbf16>, vector<256x512xf32> -> vector<256x512xf32>
    %c0_11 = arith.constant 0 : index
    %c0_12 = arith.constant 0 : index
    %17 = vector.load %arg5[%c0_11, %c0_12] : memref<1x512xf32, #tpu.memory_space<vmem>>, vector<1x512xf32>
    %18 = vector.broadcast %17 : vector<1x512xf32> to vector<256x512xf32>
    %19 = arith.addf %16, %18 : vector<256x512xf32>
    %cst_13 = arith.constant dense<0xFF800000> : vector<256xf32>
    %20 = vector.multi_reduction <maximumf>, %19, %cst_13 [1] : vector<256x512xf32> to vector<256xf32>
    %21 = vector.shape_cast %20 : vector<256xf32> to vector<256x1xf32>
    %22 = vector.broadcast %21 : vector<256x1xf32> to vector<256x512xf32>
    %23 = arith.subf %19, %22 : vector<256x512xf32>
    %24 = math.exp %23 : vector<256x512xf32>
    %cst_14 = arith.constant dense<0.000000e+00> : vector<256xf32>
    %25 = vector.multi_reduction <add>, %24, %cst_14 [1] : vector<256x512xf32> to vector<256xf32>
    %26 = vector.shape_cast %25 : vector<256xf32> to vector<256x1xf32>
    %27 = tpu.reciprocal %26 {approx = true} : vector<256x1xf32> -> vector<256x1xf32>
    %28 = vector.broadcast %27 : vector<256x1xf32> to vector<256x512xf32>
    %29 = arith.mulf %24, %28 : vector<256x512xf32>
    %c0_15 = arith.constant 0 : index
    %c0_16 = arith.constant 0 : index
    %30 = vector.load %arg8[%c0_15, %c0_16] : memref<384x512xf32, #tpu.memory_space<vmem>>, vector<384x512xf32>
    %31 = arith.truncf %12 : vector<256x384xf32> to vector<256x384xbf16>
    %32 = arith.truncf %29 : vector<256x512xf32> to vector<256x512xbf16>
    %cst_17 = arith.constant dense<0.000000e+00> : vector<384x512xf32>
    %33 = tpu.matmul %31, %32, %cst_17 {dimension_numbers = #tpu.dot_dimension_numbers<[0], [0], [1], [1], [0, 1, 1, 1], [], []>} : vector<256x384xbf16>, vector<256x512xbf16>, vector<384x512xf32> -> vector<384x512xf32>
    %34 = arith.addf %30, %33 : vector<384x512xf32>
    %c0_18 = arith.constant 0 : index
    %c0_19 = arith.constant 0 : index
    %35 = vector.load %arg8[%c0_18, %c0_19] : memref<384x512xf32, #tpu.memory_space<vmem>>, vector<384x512xf32>
    tpu.vector_store %arg8[%c0_18, %c0_19], %34 {strides = array<i32>} : memref<384x512xf32, #tpu.memory_space<vmem>>, vector<384x512xf32>,
    %c1_i32 = arith.constant 1 : i32
    %36 = arith.cmpi eq, %arg1, %c1_i32 : i32
    %37 = arith.extui %36 : i1 to i32
    %c0_i32_20 = arith.constant 0 : i32
    %38 = arith.cmpi ne, %37, %c0_i32_20 : i32
    scf.if %38 {
      %c0_21 = arith.constant 0 : index
      %c0_22 = arith.constant 0 : index
      %39 = vector.load %arg8[%c0_21, %c0_22] : memref<384x512xf32, #tpu.memory_space<vmem>>, vector<384x512xf32>
      %c0_23 = arith.constant 0 : index
      %c0_24 = arith.constant 0 : index
      %c0_25 = arith.constant 0 : index
      %40 = vector.load %arg7[%c0_23, %c0_24, %c0_25] : memref<1x384x512xf32, #tpu.memory_space<vmem>>, vector<1x384x512xf32>
      %41 = vector.shape_cast %40 : vector<1x384x512xf32> to vector<384x512xf32>
      %42 = vector.shape_cast %39 : vector<384x512xf32> to vector<1x384x512xf32>
      tpu.vector_store %arg7[%c0_23, %c0_24, %c0_25], %42 {strides = array<i32>} : memref<1x384x512xf32, #tpu.memory_space<vmem>>, vector<1x384x512xf32>,
    } else {
    }
    return
  }
  func.func @transform_0(%arg0: i32, %arg1: i32) -> (i32, i32, i32) {
    %c0_i32 = arith.constant 0 : i32
    %c0_i32_0 = arith.constant 0 : i32
    return %arg0, %arg1, %c0_i32 : i32, i32, i32
  }
  func.func @transform_1(%arg0: i32, %arg1: i32) -> (i32, i32, i32) {
    %c0_i32 = arith.constant 0 : i32
    %c0_i32_0 = arith.constant 0 : i32
    %c0_i32_1 = arith.constant 0 : i32
    return %arg0, %c0_i32, %c0_i32_0 : i32, i32, i32
  }
  func.func @transform_2(%arg0: i32, %arg1: i32) -> (i32, i32) {
    %c0_i32 = arith.constant 0 : i32
    %c0_i32_0 = arith.constant 0 : i32
    %c0_i32_1 = arith.constant 0 : i32
    return %c0_i32, %c0_i32_0 : i32, i32
  }
  func.func @transform_3(%arg0: i32, %arg1: i32) -> (i32, i32) {
    %c0_i32 = arith.constant 0 : i32
    %c0_i32_0 = arith.constant 0 : i32
    %c0_i32_1 = arith.constant 0 : i32
    return %c0_i32, %c0_i32_0 : i32, i32
  }
  func.func @transform_4(%arg0: i32, %arg1: i32) -> (i32, i32) {
    %c0_i32 = arith.constant 0 : i32
    %c0_i32_0 = arith.constant 0 : i32
    %c0_i32_1 = arith.constant 0 : i32
    return %c0_i32, %c0_i32_0 : i32, i32
  }
  func.func @transform_5(%arg0: i32, %arg1: i32) -> (i32, i32, i32) {
    %c0_i32 = arith.constant 0 : i32
    %c0_i32_0 = arith.constant 0 : i32
    %c0_i32_1 = arith.constant 0 : i32
    return %arg0, %c0_i32, %c0_i32_0 : i32, i32, i32
  }
}

</mosaic_0001>

<bundles_post_ra>
// kernel: tpu_custom_call.1
= control target key start
LH: loop header
LB: loop body
LE: loop exit
PB: predicated region body
PF: predicated region fallthrough
CT: control target
= control target key end

     0   :  { %s10152_s0 = inlined_call_operand.vmem [shape: f32[2,512,64], index: 0, kind: input, shape index: {}]   ;;  %s10153_s1 = inlined_call_operand.hbm [shape: bf16[2,384,512], index: 1, kind: input, shape index: {}]   ;;  %s10154_s2 = inlined_call_operand.hbm [shape: bf16[64,768], index: 2, kind: input, shape index: {}]   ;;  %s10155_s3 = inlined_call_operand.hbm [shape: f32[1,512], index: 3, kind: input, shape index: {}]   ;;  %s10156_s4 = inlined_call_operand.hbm [shape: f32[1,384], index: 4, kind: input, shape index: {}]   ;;  %s10157_s5 = inlined_call_operand.hbm [shape: f32[2,384,512], index: 5, kind: output, shape index: {}]  }
   0x1   :  { %10470 = sst [smem:[#allocation237_spill]] %s10154_s2 }
   0x2   :  { %10471 = sst [smem:[#allocation238_spill]] %s10155_s3 }
   0x3   :  { %10472 = sst [smem:[#allocation239_spill]] %s10156_s4 }
   0x4   :  { %10 = vsyncpa [#allocation4], 0 }
   0x5   :  { %12 = vsyncpa [#allocation4 + $0x1], 0 }
   0x6   :  { %13 = vsyncpa [#allocation7], 0 }
   0x7   :  { %14 = vsyncpa [#allocation10], 0 }
   0x8   :  { %15 = vsyncpa [#allocation5], 0 }
   0x9   :  { %17 = vsyncpa [#allocation5 + $0x1], 0  ;;  %s6679_s18 = smov 0   ;;  %s6681_s19 = smov 0  }
   0xa   :  { %s6683_s20 = smov 0   ;;  %s6685_s21 = smov 0  }
   0xb   :  { %s6687_s22 = smov 0   ;;  %s6689_s23 = smov 0  }
   0xc   :  { %s6691_s24 = smov 0   ;;  %s6693_s25 = smov 0  }
   0xd LB: > { %s5606_s26 = sadd.s32 4294967295, %s6634_s25   ;;  %s5607_s27 = sadd.s32 4294967294, %s6634_s25   ;;  %s6634_s25 = sphi %s6693_s25, %s23_s25   ;;  %s6630_s24 = sphi %s6691_s24, %s11295_s24   ;;  %s6626_s23 = sphi %s6689_s23, %s11294_s23   ;;  %s6622_s22 = sphi %s6687_s22, %s11293_s22   ;;  %s6618_s21 = sphi %s6685_s21, %s11292_s21   ;;  %s6614_s20 = sphi %s6683_s20, %s11291_s20   ;;  %s6610_s19 = sphi %s6681_s19, %s11290_s19   ;;  %s6606_s18 = sphi %s6679_s18, %s11289_s18  }
   0xe   : > { %p83_p0 = scmp.ne.s32.totalorder %s6610_s19, %s6606_s18  ;;  %p6723_p1 = scmp.eq.s32.totalorder %s5606_s26, 0 }
   0xf   : > { %p6727_p2 = scmp.eq.s32.totalorder %s5606_s26, 3  ;;  %p176_p3 = scmp.eq.s32.totalorder %s5607_s27, 3 }
  0x10   : > { %s10473_s28 = scalar_select %p6723_p1, 1, 0 }
  0x11   : > { %p6733_p4 = por %p6723_p1, %p83_p0  ;;  %p5608_p5 = scmp.ge.s32.totalorder %s6634_s25, 1 }
  0x12   : > { %p6738_p6 = por %p176_p3, %p83_p0  ;;  %p183_p7 = scmp.lt.s32.totalorder %s6634_s25, 5 }
  0x13   : > { %s10475_s30 = scalar_select %p6733_p4, 1, 0 }
  0x14   : > { %s10476_s6 = scalar_select %p6738_p6, 1, 0 }
  0x15   : > { %p6743_p8 = pnand %p5608_p5, %p183_p7  ;;  %s6636_s8 = smov [#allocation6]  }
  0x16   : > { %s195_s9 = sshll.u32 %s6636_s8, 4  ;;  %s6637_s11 = smov [#allocation8]   ;;  %s196_s9 = int_to_ptr.vmem [resolvable:$true] %s195_s9 }
  0x17   : > { %p5823_p9 = pneg %p6743_p8  ;;  %s209_s12 = sshll.u32 %s6637_s11, 4  ;;  %s210_s12 = int_to_ptr.vmem [resolvable:$true] %s209_s12 }
  0x18   : > { %s6638_s13 = smov [#allocation9]   ;;  %s6435_s15 = scalar_lea.vmem %s196_s9, 3072 }
  0x19   : > { %p6751_p10 = pnand %p5823_p9, %p6723_p1  ;;  %s220_s14 = sshll.u32 %s6638_s13, 4  ;;  %s221_s14 = int_to_ptr.vmem [resolvable:$true] %s220_s14 }
  0x1a   : > { %p6436_p12 = scmp.ne.s32.totalorder %s196_s9, %s6435_s15  ;;  %p6443_p3 = scmp.lt.s32.totalorder %s196_s9, %s196_s9 }
  0x1b   : > { %p6426_p11 = pneg %p6751_p10  ;;  %p6444_p5 = scmp.lt.s32.totalorder %s6435_s15, %s6435_s15 }
  0x1d   : > { %p6438_p13 = pnand %p6436_p12, %p6426_p11  ;;  %p6445_p7 = por %p6444_p5, %p6443_p3 }
  0x1f   : > { %p6439_p0 = pneg %p6438_p13 }
  0x21   : > { %p6446_p9 = pnand %p6445_p7, %p6439_p0 }
  0x23   : > { %6449 = shalt.err (!%p6446_p9)
}
  0x24   : > { %s6639_s16 = smov 384   ;;  %s6640_s17 = smov 24  }
  0x25   : > { %s10479_s2 = sld [smem:[#allocation237_spill]]  ;;  %s6461_s8 = scalar_lea.vmem %s210_s12, 64 }
  0x26   : > { %p6462_p6 = scmp.ne.s32.totalorder %s210_s12, %s6461_s8  ;;  %p6469_p1 = scmp.lt.s32.totalorder %s210_s12, %s210_s12 }
  0x27   : > { %p6470_p4 = scmp.lt.s32.totalorder %s6461_s8, %s6461_s8 }
  0x28   : > { %p6464_p12 = pnand %p6462_p6, %p6426_p11 }
  0x29   : > { %p6471_p3 = por %p6470_p4, %p6469_p1 }
  0x2a   : > { %p6465_p13 = pneg %p6464_p12 }
  0x2b   : > { %5826 = dma.hbm_to_vmem [thread:$0]  (!%p6751_p10), %s10479_s2, 3072, %s196_s9, [#allocation7], %s6639_s16, %s6639_s16, %s6640_s17  }
  0x2c   : > { %p6472_p0 = pnand %p6471_p3, %p6465_p13 }
  0x2e   : > { %6475 = shalt.err (!%p6472_p0)
}
  0x2f   : > { %s10480_s3 = sld [smem:[#allocation238_spill]]  ;;  %s6487_s9 = scalar_lea.vmem %s221_s14, 48 }
  0x30   : > { %p6488_p5 = scmp.ne.s32.totalorder %s221_s14, %s6487_s9  ;;  %s6494_s15 = scalar_lea.vmem %s221_s14, 64 }
  0x31   : > { %p6495_p9 = scmp.lt.s32.totalorder %s221_s14, %s221_s14  ;;  %p6496_p12 = scmp.lt.s32.totalorder %s6494_s15, %s6487_s9 }
  0x32   : > { %p6490_p7 = pnand %p6488_p5, %p6426_p11 }
  0x33   : > { %p6497_p1 = por %p6496_p12, %p6495_p9 }
  0x34   : > { %p6491_p6 = pneg %p6490_p7 }
  0x35   : > { %5829 = dma.hbm_to_vmem [thread:$0]  (!%p6751_p10), %s10480_s3, 64, %s210_s12, [#allocation7]  }
  0x36   : > { %p6498_p4 = pnand %p6497_p1, %p6491_p6 }
  0x38   : > { %6501 = shalt.err (!%p6498_p4)
}
  0x39   : > { %s10481_s4 = sld [smem:[#allocation239_spill]]  ;;  %s32_s12 = sadd.s32 1, %s6626_s23 }
  0x3a   : > { %p33_p11 = scmp.ge.s32.totalorder %s32_s12, 2  ;;  %s35_s26 = sadd.s32 1, %s6630_s24 }
  0x3b   : > { %s70_s10 = sadd.s32 1, %s6614_s20  ;;  %p77_p13 = scmp.ne.s32.totalorder %s6614_s20, %s6610_s19 }
  0x3c   : > { %s11297_s12 = smov (%p33_p11, %s32_s12), 0  ;;  %s11299_s26 = smov (!%p33_p11, %s35_s26), %s6630_s24 }
  0x3d   : > { %p78_p3 = scmp.eq.s32.totalorder %s6634_s25, 0  ;;  %p6792_p0 = por %p6727_p2, %p77_p13 }
  0x3e   : > { %p37_p5 = scmp.ge.s32.totalorder %s11299_s26, 2  ;;  %s5803_s13 = smul.u32 12288, %s6630_s24 }
  0x3f   : > { %5832 = dma.hbm_to_vmem [thread:$0]  (!%p6751_p10), %s10481_s4, 48, %s221_s14, [#allocation10]  }
  0x40   : > { %p5844_p10 = scmp.lt.s32.totalorder %s6634_s25, 4  ;;  %p79_p7 = por %p78_p3, %p77_p13 }
  0x41   : > { %s244_s14 = sand.u32 1, %s6614_s20   ;;  %s11301_s26 = smov (%p37_p5, %s11299_s26), 0 }
  0x42   : > { %10483 = sst [smem:[#allocation16_spill]] %s11301_s26  ;;  %s5802_s8 = smul.u32 768, %s244_s14 }
  0x43   : > { %s67_s11 = ssub.s32 %s6630_s24, %s11301_s26  ;;  %s254_s29 = scalar_lea.hbm %s10153_s1, %s5803_s13 }
  0x44   : > { %p68_p6 = scmp.eq.s32.totalorder %s67_s11, 0  ;;  %s248_s16 = scalar_lea.vmem [#allocation3], %s5802_s8 }
  0x45   : > { %s255_s17 = sshll.u32 %s248_s16, 4  ;;  %p6811_p2 = pnand %p5844_p10, %p79_p7  ;;  %s256_s17 = int_to_ptr.vmem [resolvable:$true] %s255_s17 }
  0x46   : > { %s6807_s2 = scalar_select %p68_p6, %s6614_s20, %s70_s10  }
  0x47   : > { %s245_s4 = scalar_lea.sflag [#allocation4], %s244_s14  ;;  %p6504_p9 = pneg %p6811_p2 }
  0x48   : > { %s6515_s26 = scalar_lea.vmem %s256_s17, 12288  ;;  %s6641_s11 = smov [#allocation3]  }
  0x49   : > { %p6516_p12 = scmp.ne.s32.totalorder %s256_s17, %s6515_s26  ;;  %s6520_s13 = sshll.u32 %s6641_s11, 4  ;;  %s6521_s13 = int_to_ptr.vmem [resolvable:$false] %s6520_s13 }
  0x4a   : > { %s6522_s8 = scalar_lea.vmem %s6521_s13, 24576  ;;  %p6523_p11 = scmp.lt.s32.totalorder %s256_s17, %s6521_s13 }
  0x4b   : > { %p6518_p1 = pnand %p6516_p12, %p6504_p9  ;;  %p6524_p13 = scmp.lt.s32.totalorder %s6522_s8, %s6515_s26 }
  0x4d   : > { %p6519_p4 = pneg %p6518_p1  ;;  %p6525_p3 = por %p6524_p13, %p6523_p11 }
  0x4f   : > { %p6526_p5 = pnand %p6525_p3, %p6519_p4 }
  0x51   : > { %6529 = shalt.err (!%p6526_p5)
}
  0x52   : > { %s6642_s10 = smov 256   ;;  %s6643_s9 = smov 16  }
  0x53   : > { %5836 = dma.hbm_to_vmem [thread:$0]  (!%p6811_p2), %s254_s29, 12288, %s256_s17, %s245_s4, %s6642_s10, %s6642_s10, %s6643_s9  }
  0x54   : > { %267 = sbr.rel (%p6743_p8) target bundleno = 1843 (0x733), region = 40 }
  0x59   : > { %s6822_s14 = sand.u32 1, %s6610_s19   ;;  %p10485_p10 = scmp.ne.s32.totalorder %s10475_s30, 0 }
  0x5a   : > { %s5804_s15 = smul.u32 768, %s6822_s14  ;;  %s270_s16 = scalar_lea.sflag [#allocation4], %s6822_s14 }
  0x5c   : > { %s6826_s26 = scalar_lea.vmem [#allocation3], %s5804_s15 }
  0x5d   : > { %6589 = dma.done.wait (%p10485_p10), %s270_s16, 12288  }
  0x5e   : > { %6591 = vsyncadd (%p10485_p10), %s270_s16, 4294955008  ;;  %p10486_p7 = scmp.ne.s32.totalorder %s10473_s28, 0 }
  0x60   : > { %6593 = dma.done.wait (%p10486_p7), [#allocation7], 3136  }
  0x61   : > { %6595 = vsyncadd (%p10486_p7), [#allocation7], 4294964160 }
  0x62   : > { %6597 = dma.done.wait (%p10486_p7), [#allocation10], 48  }
  0x63   : > { %6599 = vsyncadd (%p10486_p7), [#allocation10], 4294967248  ;;  %s5805_s3 = smul.u32 1536, %s6822_s14  ;;  %s5618_s4 = sshll.u32 %s6618_s21, 5 }
  0x64   : > { %p322_p8 = scmp.lt.s32.totalorder %s6622_s22, 1  ;;  %p324_p6 = scmp.lt.s32.totalorder %s5618_s4, 63 }
  0x65   : > { %s6849_s28 = scalar_lea.vmem [#allocation11], %s5805_s3  ;;  %p5621_p2 = scmp.ne.s32.totalorder %s6618_s21, 0 }
  0x66   : > { %s323_s30 = scalar_select %p322_p8, %s6622_s22, 1 }
  0x67   : > { %s11303_s4 = smov (!%p324_p6, %s5618_s4), 63  ;;  %335 = sbr.rel (%p5621_p2) target bundleno = 205 (0xcd), region = 60 }
  0x68   : > { %s5619_s7 = sshll.u32 %s323_s30, 6 }
  0x69   : > { %s327_s29 = sadd.s32 %s5619_s7, %s11303_s4 }
  0x6a   : > { %s5620_s17 = sshll.u32 %s327_s29, 3 }
  0x6b   : > { %s6847_s8 = scalar_lea.vmem %s10152_s0, %s5620_s17 }
  0x6c   : > { %v6644_v0 = vmov 0.0  }
  0x6d   : > { %336 = vst [vmem:[#allocation2 + $0x2b0] sm:$0xff] %v6644_v0  ;;  %337 = vst [vmem:[#allocation2 + $0x3b0] sm:$0xff] %v6644_v0 }
  0x6e   : > { %338 = vst [vmem:[#allocation2 + $0x4d8] sm:$0xff] %v6644_v0  ;;  %339 = vst [vmem:[#allocation2 + $0x18] sm:$0xff] %v6644_v0 }
  0x6f   : > { %340 = vst [vmem:[#allocation2 + $0x450] sm:$0xff] %v6644_v0  ;;  %341 = vst [vmem:[#allocation2 + $0x328] sm:$0xff] %v6644_v0 }
  0x70   : > { %342 = vst [vmem:[#allocation2 + $0x440] sm:$0xff] %v6644_v0  ;;  %343 = vst [vmem:[#allocation2 + $0x378] sm:$0xff] %v6644_v0 }
  0x71   : > { %344 = vst [vmem:[#allocation2 + $0x108] sm:$0xff] %v6644_v0  ;;  %345 = vst [vmem:[#allocation2 + $0x510] sm:$0xff] %v6644_v0 }
  0x72   : > { %346 = vst [vmem:[#allocation2 + $0x490] sm:$0xff] %v6644_v0  ;;  %347 = vst [vmem:[#allocation2 + $0x318] sm:$0xff] %v6644_v0 }
  0x73   : > { %348 = vst [vmem:[#allocation2 + $0x548] sm:$0xff] %v6644_v0  ;;  %349 = vst [vmem:[#allocation2 + $0x500] sm:$0xff] %v6644_v0 }
  0x74   : > { %350 = vst [vmem:[#allocation2 + $0x58] sm:$0xff] %v6644_v0  ;;  %351 = vst [vmem:[#allocation2 + $0x2b8] sm:$0xff] %v6644_v0 }
  0x75   : > { %352 = vst [vmem:[#allocation2 + $0x580] sm:$0xff] %v6644_v0  ;;  %353 = vst [vmem:[#allocation2 + $0x590] sm:$0xff] %v6644_v0 }
  0x76   : > { %354 = vst [vmem:[#allocation2 + $0x540] sm:$0xff] %v6644_v0  ;;  %355 = vst [vmem:[#allocation2 + $0x3c0] sm:$0xff] %v6644_v0 }
  0x77   : > { %356 = vst [vmem:[#allocation2 + $0x330] sm:$0xff] %v6644_v0  ;;  %357 = vst [vmem:[#allocation2 + $0x100] sm:$0xff] %v6644_v0 }
  0x78   : > { %358 = vst [vmem:[#allocation2 + $0x8] sm:$0xff] %v6644_v0  ;;  %359 = vst [vmem:[#allocation2 + $0x188] sm:$0xff] %v6644_v0 }
  0x79   : > { %360 = vst [vmem:[#allocation2 + $0x248] sm:$0xff] %v6644_v0  ;;  %361 = vst [vmem:[#allocation2 + $0xc8] sm:$0xff] %v6644_v0 }
  0x7a   : > { %362 = vst [vmem:[#allocation2 + $0x388] sm:$0xff] %v6644_v0  ;;  %363 = vst [vmem:[#allocation2 + $0x520] sm:$0xff] %v6644_v0 }
  0x7b   : > { %364 = vst [vmem:[#allocation2 + $0x3a8] sm:$0xff] %v6644_v0  ;;  %365 = vst [vmem:[#allocation2 + $0x5e0] sm:$0xff] %v6644_v0 }
  0x7c   : > { %366 = vst [vmem:[#allocation2 + $0x488] sm:$0xff] %v6644_v0  ;;  %367 = vst [vmem:[#allocation2 + $0x4d0] sm:$0xff] %v6644_v0 }
  0x7d   : > { %368 = vst [vmem:[#allocation2 + $0x98] sm:$0xff] %v6644_v0  ;;  %369 = vst [vmem:[#allocation2 + $0xb0] sm:$0xff] %v6644_v0 }
  0x7e   : > { %370 = vst [vmem:[#allocation2 + $0x2a0] sm:$0xff] %v6644_v0  ;;  %371 = vst [vmem:[#allocation2 + $0x570] sm:$0xff] %v6644_v0 }
  0x7f   : > { %372 = vst [vmem:[#allocation2 + $0x598] sm:$0xff] %v6644_v0  ;;  %373 = vst [vmem:[#allocation2 + $0x5a8] sm:$0xff] %v6644_v0 }
  0x80   : > { %374 = vst [vmem:[#allocation2 + $0x4c8] sm:$0xff] %v6644_v0  ;;  %375 = vst [vmem:[#allocation2 + $0x5e8] sm:$0xff] %v6644_v0 }
  0x81   : > { %376 = vst [vmem:[#allocation2 + $0x1f8] sm:$0xff] %v6644_v0  ;;  %377 = vst [vmem:[#allocation2 + $0x2f0] sm:$0xff] %v6644_v0 }
  0x82   : > { %378 = vst [vmem:[#allocation2 + $0x3c8] sm:$0xff] %v6644_v0  ;;  %379 = vst [vmem:[#allocation2 + $0x5c0] sm:$0xff] %v6644_v0 }
  0x83   : > { %380 = vst [vmem:[#allocation2 + $0x338] sm:$0xff] %v6644_v0  ;;  %381 = vst [vmem:[#allocation2 + $0x480] sm:$0xff] %v6644_v0 }
  0x84   : > { %382 = vst [vmem:[#allocation2 + $0x2a8] sm:$0xff] %v6644_v0  ;;  %383 = vst [vmem:[#allocation2 + $0x3e0] sm:$0xff] %v6644_v0 }
  0x85   : > { %384 = vst [vmem:[#allocation2 + $0x3d8] sm:$0xff] %v6644_v0  ;;  %385 = vst [vmem:[#allocation2 + $0x4b0] sm:$0xff] %v6644_v0 }
  0x86   : > { %386 = vst [vmem:[#allocation2 + $0x28] sm:$0xff] %v6644_v0  ;;  %387 = vst [vmem:[#allocation2 + $0xf8] sm:$0xff] %v6644_v0 }
  0x87   : > { %388 = vst [vmem:[#allocation2 + $0x4e8] sm:$0xff] %v6644_v0  ;;  %389 = vst [vmem:[#allocation2 + $0x120] sm:$0xff] %v6644_v0 }
  0x88   : > { %390 = vst [vmem:[#allocation2 + $0x2f8] sm:$0xff] %v6644_v0  ;;  %391 = vst [vmem:[#allocation2 + $0x268] sm:$0xff] %v6644_v0 }
  0x89   : > { %392 = vst [vmem:[#allocation2 + $0x560] sm:$0xff] %v6644_v0  ;;  %393 = vst [vmem:[#allocation2 + $0x4f8] sm:$0xff] %v6644_v0 }
  0x8a   : > { %394 = vst [vmem:[#allocation2 + $0x2e8] sm:$0xff] %v6644_v0  ;;  %395 = vst [vmem:[#allocation2 + $0x370] sm:$0xff] %v6644_v0 }
  0x8b   : > { %396 = vst [vmem:[#allocation2 + $0x138] sm:$0xff] %v6644_v0  ;;  %397 = vst [vmem:[#allocation2 + $0x308] sm:$0xff] %v6644_v0 }
  0x8c   : > { %398 = vst [vmem:[#allocation2 + $0x528] sm:$0xff] %v6644_v0  ;;  %399 = vst [vmem:[#allocation2 + $0x1c0] sm:$0xff] %v6644_v0 }
  0x8d   : > { %400 = vst [vmem:[#allocation2 + $0x5d0] sm:$0xff] %v6644_v0  ;;  %401 = vst [vmem:[#allocation2 + $0x260] sm:$0xff] %v6644_v0 }
  0x8e   : > { %402 = vst [vmem:[#allocation2 + $0x438] sm:$0xff] %v6644_v0  ;;  %403 = vst [vmem:[#allocation2 + $0xf0] sm:$0xff] %v6644_v0 }
  0x8f   : > { %404 = vst [vmem:[#allocation2 + $0x60] sm:$0xff] %v6644_v0  ;;  %405 = vst [vmem:[#allocation2 + $0x200] sm:$0xff] %v6644_v0 }
  0x90   : > { %406 = vst [vmem:[#allocation2 + $0x80] sm:$0xff] %v6644_v0  ;;  %407 = vst [vmem:[#allocation2 + $0x5a0] sm:$0xff] %v6644_v0 }
  0x91   : > { %408 = vst [vmem:[#allocation2 + $0x4b8] sm:$0xff] %v6644_v0  ;;  %409 = vst [vmem:[#allocation2 + $0x310] sm:$0xff] %v6644_v0 }
  0x92   : > { %410 = vst [vmem:[#allocation2 + $0x1e8] sm:$0xff] %v6644_v0  ;;  %411 = vst [vmem:[#allocation2 + $0x258] sm:$0xff] %v6644_v0 }
  0x93   : > { %412 = vst [vmem:[#allocation2 + $0x40] sm:$0xff] %v6644_v0  ;;  %413 = vst [vmem:[#allocation2 + $0x4e0] sm:$0xff] %v6644_v0 }
  0x94   : > { %414 = vst [vmem:[#allocation2 + $0x198] sm:$0xff] %v6644_v0  ;;  %415 = vst [vmem:[#allocation2 + $0x550] sm:$0xff] %v6644_v0 }
  0x95   : > { %416 = vst [vmem:[#allocation2 + $0x418] sm:$0xff] %v6644_v0  ;;  %417 = vst [vmem:[#allocation2 + $0x5c8] sm:$0xff] %v6644_v0 }
  0x96   : > { %418 = vst [vmem:[#allocation2 + $0x340] sm:$0xff] %v6644_v0  ;;  %419 = vst [vmem:[#allocation2 + $0x360] sm:$0xff] %v6644_v0 }
  0x97   : > { %420 = vst [vmem:[#allocation2 + $0x3b8] sm:$0xff] %v6644_v0  ;;  %421 = vst [vmem:[#allocation2 + $0x530] sm:$0xff] %v6644_v0 }
  0x98   : > { %422 = vst [vmem:[#allocation2 + $0x1f0] sm:$0xff] %v6644_v0  ;;  %423 = vst [vmem:[#allocation2 + $0x3a0] sm:$0xff] %v6644_v0 }
  0x99   : > { %424 = vst [vmem:[#allocation2 + $0x460] sm:$0xff] %v6644_v0  ;;  %425 = vst [vmem:[#allocation2 + $0x2c8] sm:$0xff] %v6644_v0 }
  0x9a   : > { %426 = vst [vmem:[#allocation2 + $0x1d0] sm:$0xff] %v6644_v0  ;;  %427 = vst [vmem:[#allocation2 + $0x4f0] sm:$0xff] %v6644_v0 }
  0x9b   : > { %428 = vst [vmem:[#allocation2 + $0x50] sm:$0xff] %v6644_v0  ;;  %429 = vst [vmem:[#allocation2 + $0x4a0] sm:$0xff] %v6644_v0 }
  0x9c   : > { %430 = vst [vmem:[#allocation2 + $0x468] sm:$0xff] %v6644_v0  ;;  %431 = vst [vmem:[#allocation2 + $0x278] sm:$0xff] %v6644_v0 }
  0x9d   : > { %432 = vst [vmem:[#allocation2 + $0x458] sm:$0xff] %v6644_v0  ;;  %433 = vst [vmem:[#allocation2 + $0x498] sm:$0xff] %v6644_v0 }
  0x9e   : > { %434 = vst [vmem:[#allocation2 + $0x400] sm:$0xff] %v6644_v0  ;;  %435 = vst [vmem:[#allocation2 + $0x5d8] sm:$0xff] %v6644_v0 }
  0x9f   : > { %436 = vst [vmem:[#allocation2 + $0xe8] sm:$0xff] %v6644_v0  ;;  %437 = vst [vmem:[#allocation2 + $0x160] sm:$0xff] %v6644_v0 }
  0xa0   : > { %438 = vst [vmem:[#allocation2 + $0x178] sm:$0xff] %v6644_v0  ;;  %439 = vst [vmem:[#allocation2 + $0x538] sm:$0xff] %v6644_v0 }
  0xa1   : > { %440 = vst [vmem:[#allocation2 + $0x1e0] sm:$0xff] %v6644_v0  ;;  %441 = vst [vmem:[#allocation2 + $0x390] sm:$0xff] %v6644_v0 }
  0xa2   : > { %442 = vst [vmem:[#allocation2 + $0x2c0] sm:$0xff] %v6644_v0  ;;  %443 = vst [vmem:[#allocation2 + $0x228] sm:$0xff] %v6644_v0 }
  0xa3   : > { %444 = vst [vmem:[#allocation2 + $0x5b0] sm:$0xff] %v6644_v0  ;;  %445 = vst [vmem:[#allocation2 + $0xc0] sm:$0xff] %v6644_v0 }
  0xa4   : > { %446 = vst [vmem:[#allocation2 + $0xd8] sm:$0xff] %v6644_v0  ;;  %447 = vst [vmem:[#allocation2 + $0x428] sm:$0xff] %v6644_v0 }
  0xa5   : > { %448 = vst [vmem:[#allocation2 + $0x30] sm:$0xff] %v6644_v0  ;;  %449 = vst [vmem:[#allocation2 + $0x410] sm:$0xff] %v6644_v0 }
  0xa6   : > { %450 = vst [vmem:[#allocation2 + $0x208] sm:$0xff] %v6644_v0  ;;  %451 = vst [vmem:[#allocation2 + $0x4a8] sm:$0xff] %v6644_v0 }
  0xa7   : > { %452 = vst [vmem:[#allocation2 + $0x5b8] sm:$0xff] %v6644_v0  ;;  %453 = vst [vmem:[#allocation2 + $0x218] sm:$0xff] %v6644_v0 }
  0xa8   : > { %454 = vst [vmem:[#allocation2 + $0x368] sm:$0xff] %v6644_v0  ;;  %455 = vst [vmem:[#allocation2 + $0x298] sm:$0xff] %v6644_v0 }
  0xa9   : > { %456 = vst [vmem:[#allocation2 + $0x420] sm:$0xff] %v6644_v0  ;;  %457 = vst [vmem:[#allocation2 + $0x88] sm:$0xff] %v6644_v0 }
  0xaa   : > { %458 = vst [vmem:[#allocation2 + $0x130] sm:$0xff] %v6644_v0  ;;  %459 = vst [vmem:[#allocation2 + $0x5f0] sm:$0xff] %v6644_v0 }
  0xab   : > { %460 = vst [vmem:[#allocation2 + $0x230] sm:$0xff] %v6644_v0  ;;  %461 = vst [vmem:[#allocation2 + $0x2e0] sm:$0xff] %v6644_v0 }
  0xac   : > { %462 = vst [vmem:[#allocation2 + $0x110] sm:$0xff] %v6644_v0  ;;  %463 = vst [vmem:[#allocation2 + $0xa8] sm:$0xff] %v6644_v0 }
  0xad   : > { %464 = vst [vmem:[#allocation2 + $0x190] sm:$0xff] %v6644_v0  ;;  %465 = vst [vmem:[#allocation2 + $0x1a8] sm:$0xff] %v6644_v0 }
  0xae   : > { %466 = vst [vmem:[#allocation2 + $0x398] sm:$0xff] %v6644_v0  ;;  %467 = vst [vmem:[#allocation2 + $0x470] sm:$0xff] %v6644_v0 }
  0xaf   : > { %468 = vst [vmem:[#allocation2 + $0xe0] sm:$0xff] %v6644_v0  ;;  %469 = vst [vmem:[#allocation2 + $0xd0] sm:$0xff] %v6644_v0 }
  0xb0   : > { %470 = vst [vmem:[#allocation2 + $0x38] sm:$0xff] %v6644_v0  ;;  %471 = vst [vmem:[#allocation2 + $0x240] sm:$0xff] %v6644_v0 }
  0xb1   : > { %472 = vst [vmem:[#allocation2 + $0x280] sm:$0xff] %v6644_v0  ;;  %473 = vst [vmem:[#allocation2 + $0x518] sm:$0xff] %v6644_v0 }
  0xb2   : > { %474 = vst [vmem:[#allocation2 + $0x148] sm:$0xff] %v6644_v0  ;;  %475 = vst [vmem:[#allocation2 + $0x508] sm:$0xff] %v6644_v0 }
  0xb3   : > { %476 = vst [vmem:[#allocation2 + $0x3d0] sm:$0xff] %v6644_v0  ;;  %477 = vst [vmem:[#allocation2 + $0x68] sm:$0xff] %v6644_v0 }
  0xb4   : > { %478 = vst [vmem:[#allocation2 + $0x358] sm:$0xff] %v6644_v0  ;;  %479 = vst [vmem:[#allocation2 + $0x70] sm:$0xff] %v6644_v0 }
  0xb5   : > { %480 = vst [vmem:[#allocation2 + $0xb8] sm:$0xff] %v6644_v0  ;;  %481 = vst [vmem:[#allocation2 + $0x10] sm:$0xff] %v6644_v0 }
  0xb6   : > { %482 = vst [vmem:[#allocation2 + $0x20] sm:$0xff] %v6644_v0  ;;  %483 = vst [vmem:[#allocation2 + $0x78] sm:$0xff] %v6644_v0 }
  0xb7   : > { %484 = vst [vmem:[#allocation2 + $0x210] sm:$0xff] %v6644_v0  ;;  %485 = vst [vmem:[#allocation2 + $0x558] sm:$0xff] %v6644_v0 }
  0xb8   : > { %486 = vst [vmem:[#allocation2 + $0x588] sm:$0xff] %v6644_v0  ;;  %487 = vst [vmem:[#allocation2 + $0x48] sm:$0xff] %v6644_v0 }
  0xb9   : > { %488 = vst [vmem:[#allocation2 + $0x118] sm:$0xff] %v6644_v0  ;;  %489 = vst [vmem:[#allocation2 + $0x478] sm:$0xff] %v6644_v0 }
  0xba   : > { %490 = vst [vmem:[#allocation2 + $0x3f8] sm:$0xff] %v6644_v0  ;;  %491 = vst [vmem:[#allocation2 + $0x380] sm:$0xff] %v6644_v0 }
  0xbb   : > { %492 = vst [vmem:[#allocation2 + $0x578] sm:$0xff] %v6644_v0  ;;  %493 = vst [vmem:[#allocation2 + $0x170] sm:$0xff] %v6644_v0 }
  0xbc   : > { %494 = vst [vmem:[#allocation2 + $0x1a0] sm:$0xff] %v6644_v0  ;;  %495 = vst [vmem:[#allocation2 + $0x288] sm:$0xff] %v6644_v0 }
  0xbd   : > { %496 = vst [vmem:[#allocation2 + $0x140] sm:$0xff] %v6644_v0  ;;  %497 = vst [vmem:[#allocation2 + $0x300] sm:$0xff] %v6644_v0 }
  0xbe   : > { %498 = vst [vmem:[#allocation2] sm:$0xff] %v6644_v0  ;;  %499 = vst [vmem:[#allocation2 + $0x320] sm:$0xff] %v6644_v0 }
  0xbf   : > { %500 = vst [vmem:[#allocation2 + $0x158] sm:$0xff] %v6644_v0  ;;  %501 = vst [vmem:[#allocation2 + $0x348] sm:$0xff] %v6644_v0 }
  0xc0   : > { %502 = vst [vmem:[#allocation2 + $0x2d8] sm:$0xff] %v6644_v0  ;;  %503 = vst [vmem:[#allocation2 + $0x168] sm:$0xff] %v6644_v0 }
  0xc1   : > { %504 = vst [vmem:[#allocation2 + $0x1c8] sm:$0xff] %v6644_v0  ;;  %505 = vst [vmem:[#allocation2 + $0xa0] sm:$0xff] %v6644_v0 }
  0xc2   : > { %506 = vst [vmem:[#allocation2 + $0x408] sm:$0xff] %v6644_v0  ;;  %507 = vst [vmem:[#allocation2 + $0x5f8] sm:$0xff] %v6644_v0 }
  0xc3   : > { %508 = vst [vmem:[#allocation2 + $0x270] sm:$0xff] %v6644_v0  ;;  %509 = vst [vmem:[#allocation2 + $0x250] sm:$0xff] %v6644_v0 }
  0xc4   : > { %510 = vst [vmem:[#allocation2 + $0x2d0] sm:$0xff] %v6644_v0  ;;  %511 = vst [vmem:[#allocation2 + $0x1b8] sm:$0xff] %v6644_v0 }
  0xc5   : > { %512 = vst [vmem:[#allocation2 + $0x150] sm:$0xff] %v6644_v0  ;;  %513 = vst [vmem:[#allocation2 + $0x1b0] sm:$0xff] %v6644_v0 }
  0xc6   : > { %514 = vst [vmem:[#allocation2 + $0x220] sm:$0xff] %v6644_v0  ;;  %515 = vst [vmem:[#allocation2 + $0x1d8] sm:$0xff] %v6644_v0 }
  0xc7   : > { %516 = vst [vmem:[#allocation2 + $0x3e8] sm:$0xff] %v6644_v0  ;;  %517 = vst [vmem:[#allocation2 + $0x448] sm:$0xff] %v6644_v0 }
  0xc8   : > { %518 = vst [vmem:[#allocation2 + $0x430] sm:$0xff] %v6644_v0  ;;  %519 = vst [vmem:[#allocation2 + $0x180] sm:$0xff] %v6644_v0 }
  0xc9   : > { %520 = vst [vmem:[#allocation2 + $0x350] sm:$0xff] %v6644_v0  ;;  %521 = vst [vmem:[#allocation2 + $0x4c0] sm:$0xff] %v6644_v0 }
  0xca   : > { %522 = vst [vmem:[#allocation2 + $0x128] sm:$0xff] %v6644_v0  ;;  %523 = vst [vmem:[#allocation2 + $0x3f0] sm:$0xff] %v6644_v0 }
  0xcb   : > { %524 = vst [vmem:[#allocation2 + $0x238] sm:$0xff] %v6644_v0  ;;  %525 = vst [vmem:[#allocation2 + $0x290] sm:$0xff] %v6644_v0 }
  0xcc   : > { %526 = vst [vmem:[#allocation2 + $0x568] sm:$0xff] %v6644_v0  ;;  %527 = vst [vmem:[#allocation2 + $0x90] sm:$0xff] %v6644_v0 }
  0xcd PF: > { %v5924_v1 = vld [vmem:[#allocation6 + $0x94] ss:$24 sps:$4 sm:$0xff]   ;;  %v5926_v2 = vld [vmem:[#allocation6 + $0x90] ss:$24 sps:$4 sm:$0xff]   ;;  %v10165_v3 = vmov 0   ;;  %v528_v10 = vld [vmem:[%s6847_s8] sm:$0xff] }
  0xce   : > { %801 = vmatprep.mubr.bf16.mxu0 %v10165_v3  ;;  %881 = vmatprep.mubr.bf16.mxu1 %v10165_v3  ;;  %v5927_v4 = vld [vmem:[#allocation6 + $0x64] ss:$24 sps:$4 sm:$0xff]   ;;  %v5929_v5 = vld [vmem:[#allocation6 + $0x60] ss:$24 sps:$4 sm:$0xff]   ;;  %v5930_v6 = vld [vmem:[#allocation6 + $0x34] ss:$24 sps:$4 sm:$0xff]  }
  0xcf   : > { %777 = vmatprep.subr.bf16.mxu0 %v5924_v1  ;;  %5794 = vmatprep.subr.bf16.mxu1 %v5924_v1  ;;  %v5932_v7 = vld [vmem:[#allocation6 + $0x30] ss:$24 sps:$4 sm:$0xff]   ;;  %v5933_v8 = vld [vmem:[#allocation6 + $0x4] ss:$24 sps:$4 sm:$0xff]   ;;  %v5935_v9 = vld [vmem:[#allocation6] ss:$24 sps:$4 sm:$0xff]  }
  0xd0   : > { %778 = vmatpush1.bf16.msra.mxu0 %v5926_v2  ;;  %5798 = vmatpush1.bf16.msra.mxu1 %v5926_v2  ;;  %v529_v11 = vld [vmem:[%s6847_s8 + $0x8] sm:$0xff]  ;;  %v544_v12 = vld [vmem:[%s6847_s8 + $0x80] sm:$0xff]  ;;  %v5938_v14 = vld [vmem:[#allocation6 + $0x9c] ss:$24 sps:$4 sm:$0xff]   ;;  %vm720_vm0 = vcmask 523264   ;;  %p5790_p9 = scmp.ne.s32.totalorder %s6618_s21, 1 }
  0xd1   : > { %779 = vmatprep.subr.bf16.mxu0 %v5927_v4  ;;  %5795 = vmatprep.subr.bf16.mxu1 %v5927_v4  ;;  %v545_v13 = vld [vmem:[%s6847_s8 + $0x88] sm:$0xff]  ;;  %v7050_v15 = vpack.c.bf16 %v529_v11, %v528_v10  ;;  %v5936_v17 = vld [vmem:[#allocation6 + $0x98] ss:$24 sps:$4 sm:$0xff]   ;;  %v5944_v24 = vld [vmem:[#allocation6 + $0x3c] ss:$24 sps:$4 sm:$0xff]  }
  0xd2   : > { %v7052_v16 = vpack.c.bf16 %v545_v13, %v544_v12  ;;  %v5941_v18 = vld [vmem:[#allocation6 + $0x6c] ss:$24 sps:$4 sm:$0xff]   ;;  %v530_v19 = vld [vmem:[%s6847_s8 + $0x10] sm:$0xff]  ;;  %v531_v20 = vld [vmem:[%s6847_s8 + $0x18] sm:$0xff] }
  0xd3   : > { %v546_v21 = vld [vmem:[%s6847_s8 + $0x90] sm:$0xff]  ;;  %v547_v22 = vld [vmem:[%s6847_s8 + $0x98] sm:$0xff]  ;;  %v5939_v23 = vld [vmem:[#allocation6 + $0x68] ss:$24 sps:$4 sm:$0xff]   ;;  %v7064_v25 = vpack.c.bf16 %v531_v20, %v530_v19 }
  0xd4   : > { %780 = vmatpush1.bf16.msra.mxu0 %v5929_v5  ;;  %5799 = vmatpush1.bf16.msra.mxu1 %v5929_v5  ;;  %v7066_v26 = vpack.c.bf16 %v547_v22, %v546_v21  ;;  %v5948_v27 = vld [vmem:[#allocation6 + $0xa0] ss:$24 sps:$4 sm:$0xff]   ;;  %v5950_v28 = vld [vmem:[#allocation6 + $0xa4] ss:$24 sps:$4 sm:$0xff]   ;;  %v5953_v31 = vld [vmem:[#allocation6 + $0x74] ss:$24 sps:$4 sm:$0xff]  }
  0xd5   : > { %781 = vmatprep.subr.bf16.mxu0 %v5930_v6  ;;  %5796 = vmatprep.subr.bf16.mxu1 %v5930_v6  ;;  %v5942_v29 = vld [vmem:[#allocation6 + $0x38] ss:$24 sps:$4 sm:$0xff]   ;;  %v5947_v30 = vld [vmem:[#allocation6 + $0xc] ss:$24 sps:$4 sm:$0xff]   ;;  %v5945_v38 = vld [vmem:[#allocation6 + $0x8] ss:$24 sps:$4 sm:$0xff]  }
  0xd6   : > { %v532_v32 = vld [vmem:[%s6847_s8 + $0x20] sm:$0xff]  ;;  %v533_v33 = vld [vmem:[%s6847_s8 + $0x28] sm:$0xff]  ;;  %v534_v45 = vld [vmem:[%s6847_s8 + $0x30] sm:$0xff] }
  0xd7   : > { %v5951_v34 = vld [vmem:[#allocation6 + $0x70] ss:$24 sps:$4 sm:$0xff]   ;;  %v548_v35 = vld [vmem:[%s6847_s8 + $0xa0] sm:$0xff]  ;;  %v7079_v41 = vpack.c.bf16 %v533_v33, %v532_v32  ;;  %v5959_v43 = vld [vmem:[#allocation6 + $0x14] ss:$24 sps:$4 sm:$0xff]  }
  0xd8   : > { %782 = vmatpush1.bf16.msra.mxu0 %v5932_v7  ;;  %5800 = vmatpush1.bf16.msra.mxu1 %v5932_v7  ;;  %v5956_v36 = vld [vmem:[#allocation6 + $0x44] ss:$24 sps:$4 sm:$0xff]   ;;  %v549_v37 = vld [vmem:[%s6847_s8 + $0xa8] sm:$0xff]  ;;  %v5954_v39 = vld [vmem:[#allocation6 + $0x40] ss:$24 sps:$4 sm:$0xff]  }
  0xd9   : > { %783 = vmatprep.subr.bf16.mxu0 %v5933_v8  ;;  %5797 = vmatprep.subr.bf16.mxu1 %v5933_v8  ;;  %v5962_v40 = vld [vmem:[%s6826_s26 + $0xe4] ss:$16 sps:$4 sm:$0xff]   ;;  %v7081_v42 = vpack.c.bf16 %v549_v37, %v548_v35  ;;  %v5957_v44 = vld [vmem:[#allocation6 + $0x10] ss:$24 sps:$4 sm:$0xff]   ;;  %v535_v46 = vld [vmem:[%s6847_s8 + $0x38] sm:$0xff] }
  0xda   : > { %v550_v47 = vld [vmem:[%s6847_s8 + $0xb0] sm:$0xff]  ;;  %v551_v48 = vld [vmem:[%s6847_s8 + $0xb8] sm:$0xff]  ;;  %v7093_v49 = vpack.c.bf16 %v535_v46, %v534_v45  ;;  %v536_v51 = vld [vmem:[%s6847_s8 + $0x40] sm:$0xff] }
  0xdb   : > { %v7095_v50 = vpack.c.bf16 %v551_v48, %v550_v47  ;;  %v537_v52 = vld [vmem:[%s6847_s8 + $0x48] sm:$0xff]  ;;  %v552_v53 = vld [vmem:[%s6847_s8 + $0xc0] sm:$0xff]  ;;  %v538_v57 = vld [vmem:[%s6847_s8 + $0x50] sm:$0xff] }
  0xdc   : > { %784 = vmatpush1.bf16.msra.mxu0 %v5935_v9  ;;  %5801 = vmatpush1.bf16.msra.mxu1 %v5935_v9  ;;  %v553_v54 = vld [vmem:[%s6847_s8 + $0xc8] sm:$0xff]  ;;  %v7107_v55 = vpack.c.bf16 %v537_v52, %v536_v51  ;;  %v539_v58 = vld [vmem:[%s6847_s8 + $0x58] sm:$0xff]  ;;  %v554_v59 = vld [vmem:[%s6847_s8 + $0xd0] sm:$0xff] }
  0xdd   : > { %970 = vmatprep.subr.bf16.mxu1 %v5938_v14  ;;  %1163 = vmatprep.subr.bf16.mxu0 %v5950_v28  ;;  %v7109_v56 = vpack.c.bf16 %v553_v54, %v552_v53  ;;  %v555_v60 = vld [vmem:[%s6847_s8 + $0xd8] sm:$0xff]  ;;  %v5986_v61 = vld [vmem:[%s6826_s26 + $0x2e4] ss:$16 sps:$4 sm:$0xff]   ;;  %v7122_v62 = vpack.c.bf16 %v539_v58, %v538_v57  ;;  %v541_v1 = vld [vmem:[%s6847_s8 + $0x68] sm:$0xff] }
  0xde   : > { %v7124_v63 = vpack.c.bf16 %v555_v60, %v554_v59  ;;  %v540_v0 = vld [vmem:[%s6847_s8 + $0x60] sm:$0xff]  ;;  %v557_v4 = vld [vmem:[%s6847_s8 + $0xe8] sm:$0xff]  ;;  %v542_v7 = vld [vmem:[%s6847_s8 + $0x70] sm:$0xff] }
  0xdf   : > { %5646 = vmatmul.mubr.msk.bf16.vlgmr.msra.gmra.mxu0 %vm720_vm0, %v7050_v15  ;;  %5654 = vmatmul.mubr.msk.bf16.vlgmr.msra.gmra.mxu1 %vm720_vm0, %v7052_v16  ;;  %v556_v2 = vld [vmem:[%s6847_s8 + $0xe0] sm:$0xff]  ;;  %v7136_v5 = vpack.c.bf16 %v541_v1, %v540_v0  ;;  %v543_v8 = vld [vmem:[%s6847_s8 + $0x78] sm:$0xff]  ;;  %v558_v9 = vld [vmem:[%s6847_s8 + $0xf0] sm:$0xff] }
  0xe0   : > { %811 = vmatprep.mubr.bf16.mxu0 %v10165_v3  ;;  %891 = vmatprep.mubr.bf16.mxu1 %v10165_v3  ;;  %v7138_v6 = vpack.c.bf16 %v557_v4, %v556_v2  ;;  %v559_v10 = vld [vmem:[%s6847_s8 + $0xf8] sm:$0xff]  ;;  %v7150_v11 = vpack.c.bf16 %v543_v8, %v542_v7  ;;  %v5960_v13 = vld [vmem:[%s6826_s26 + $0xe0] ss:$16 sps:$4 sm:$0xff]   ;;  %v5968_v21 = vld [vmem:[%s6826_s26 + $0xa4] ss:$16 sps:$4 sm:$0xff]  }
  0xe1   : > { %971 = vmatpush1.bf16.msra.mxu1 %v5936_v17  ;;  %1164 = vmatpush1.bf16.msra.mxu0 %v5948_v27  ;;  %v7152_v12 = vpack.c.bf16 %v559_v10, %v558_v9  ;;  %v5984_v14 = vld [vmem:[%s6826_s26 + $0x2e0] ss:$16 sps:$4 sm:$0xff]   ;;  %v5965_v17 = vld [vmem:[%s6826_s26 + $0xc4] ss:$16 sps:$4 sm:$0xff]   ;;  %v6034_v1 = vld [vmem:[%s6826_s26 + $0xec] ss:$16 sps:$4 sm:$0xff]  }
  0xe2   : > { %972 = vmatprep.subr.bf16.mxu1 %v5941_v18  ;;  %1165 = vmatprep.subr.bf16.mxu0 %v5953_v31  ;;  %v6001_v18 = vld [vmem:[%s6826_s26 + $0x2c4] ss:$16 sps:$4 sm:$0xff]   ;;  %v5963_v19 = vld [vmem:[%s6826_s26 + $0xc0] ss:$16 sps:$4 sm:$0xff]   ;;  %v6032_v9 = vld [vmem:[%s6826_s26 + $0xe8] ss:$16 sps:$4 sm:$0xff]  }
  0xe3   : > { %v5999_v20 = vld [vmem:[%s6826_s26 + $0x2c0] ss:$16 sps:$4 sm:$0xff]   ;;  %v5974_v28 = vld [vmem:[%s6826_s26 + $0x64] ss:$16 sps:$4 sm:$0xff]  }
  0xe4   : > { %v5966_v22 = vld [vmem:[%s6826_s26 + $0xa0] ss:$16 sps:$4 sm:$0xff]   ;;  %v5980_v31 = vld [vmem:[%s6826_s26 + $0x24] ss:$16 sps:$4 sm:$0xff]  }
  0xe5   : > { %973 = vmatpush1.bf16.msra.mxu1 %v5939_v23  ;;  %1166 = vmatpush1.bf16.msra.mxu0 %v5951_v34  ;;  %v6014_v23 = vld [vmem:[%s6826_s26 + $0x2a0] ss:$16 sps:$4 sm:$0xff]   ;;  %v5983_v33 = vld [vmem:[%s6826_s26 + $0x4] ss:$16 sps:$4 sm:$0xff]  }
  0xe6   : > { %974 = vmatprep.subr.bf16.mxu1 %v5944_v24  ;;  %1167 = vmatprep.subr.bf16.mxu0 %v5956_v36  ;;  %v6016_v24 = vld [vmem:[%s6826_s26 + $0x2a4] ss:$16 sps:$4 sm:$0xff]   ;;  %v5969_v27 = vld [vmem:[%s6826_s26 + $0x80] ss:$16 sps:$4 sm:$0xff]  }
  0xe7   : > { %5647 = vmatmul.mubr.msk.bf16.gmra.mxu0 %vm720_vm0, %v7064_v25  ;;  %5655 = vmatmul.mubr.msk.bf16.gmra.mxu1 %vm720_vm0, %v7066_v26  ;;  %v5978_v32 = vld [vmem:[%s6826_s26 + $0x20] ss:$16 sps:$4 sm:$0xff]   ;;  %v6019_v35 = vld [vmem:[%s6826_s26 + $0x284] ss:$16 sps:$4 sm:$0xff]  }
  0xe8   : > { %821 = vmatprep.mubr.bf16.mxu0 %v10165_v3  ;;  %901 = vmatprep.mubr.bf16.mxu1 %v10165_v3  ;;  %v6017_v34 = vld [vmem:[%s6826_s26 + $0x280] ss:$16 sps:$4 sm:$0xff]   ;;  %v5989_v37 = vld [vmem:[%s6826_s26 + $0x1e4] ss:$16 sps:$4 sm:$0xff]  }
  0xe9   : > { %975 = vmatpush1.bf16.msra.mxu1 %v5942_v29  ;;  %1168 = vmatpush1.bf16.msra.mxu0 %v5954_v39  ;;  %v5972_v29 = vld [vmem:[%s6826_s26 + $0x60] ss:$16 sps:$4 sm:$0xff]   ;;  %v5992_v39 = vld [vmem:[%s6826_s26 + $0x1c4] ss:$16 sps:$4 sm:$0xff]  }
  0xea   : > { %976 = vmatprep.subr.bf16.mxu1 %v5947_v30  ;;  %1169 = vmatprep.subr.bf16.mxu0 %v5959_v43  ;;  %v5975_v30 = vld [vmem:[%s6826_s26 + $0x40] ss:$16 sps:$4 sm:$0xff]   ;;  %v6022_v46 = vld [vmem:[%s6826_s26 + $0x264] ss:$16 sps:$4 sm:$0xff]  }
  0xeb   : > { %v5981_v36 = vld [vmem:[%s6826_s26] ss:$16 sps:$4 sm:$0xff]   ;;  %v6004_v48 = vld [vmem:[%s6826_s26 + $0x164] ss:$16 sps:$4 sm:$0xff]  }
  0xec   : > { %v5993_v43 = vld [vmem:[%s6826_s26 + $0x1a0] ss:$16 sps:$4 sm:$0xff]   ;;  %v6007_v51 = vld [vmem:[%s6826_s26 + $0x144] ss:$16 sps:$4 sm:$0xff]  }
  0xed   : > { %977 = vmatpush1.bf16.msra.mxu1 %v5945_v38  ;;  %1170 = vmatpush1.bf16.msra.mxu0 %v5957_v44  ;;  %v5987_v38 = vld [vmem:[%s6826_s26 + $0x1e0] ss:$16 sps:$4 sm:$0xff]   ;;  %v5998_v44 = vld [vmem:[%s6826_s26 + $0x184] ss:$16 sps:$4 sm:$0xff]  }
  0xee   : > { %2107 = vmatprep.subr.bf16.mxu1 %v5962_v40  ;;  %2300 = vmatprep.subr.bf16.mxu0 %v5986_v61  ;;  %v5990_v40 = vld [vmem:[%s6826_s26 + $0x1c0] ss:$16 sps:$4 sm:$0xff]   ;;  %v6010_v53 = vld [vmem:[%s6826_s26 + $0x124] ss:$16 sps:$4 sm:$0xff]  }
  0xef   : > { %5648 = vmatmul.mubr.msk.bf16.gmra.mxu0 %vm720_vm0, %v7079_v41  ;;  %5656 = vmatmul.mubr.msk.bf16.gmra.mxu1 %vm720_vm0, %v7081_v42  ;;  %v6020_v45 = vld [vmem:[%s6826_s26 + $0x260] ss:$16 sps:$4 sm:$0xff]   ;;  %v6025_v58 = vld [vmem:[%s6826_s26 + $0x244] ss:$16 sps:$4 sm:$0xff]  }
  0xf0   : > { %831 = vmatprep.mubr.bf16.mxu0 %v10165_v3  ;;  %911 = vmatprep.mubr.bf16.mxu1 %v10165_v3  ;;  %v5996_v47 = vld [vmem:[%s6826_s26 + $0x180] ss:$16 sps:$4 sm:$0xff]   ;;  %v6028_v60 = vld [vmem:[%s6826_s26 + $0x224] ss:$16 sps:$4 sm:$0xff]  }
  0xf1   : > { %v6005_v52 = vld [vmem:[%s6826_s26 + $0x140] ss:$16 sps:$4 sm:$0xff]  }
  0xf2   : > { %v6008_v54 = vld [vmem:[%s6826_s26 + $0x120] ss:$16 sps:$4 sm:$0xff]  }
  0xf3   : > { %v6023_v57 = vld [vmem:[%s6826_s26 + $0x240] ss:$16 sps:$4 sm:$0xff]  }
  0xf4   : > { %v6011_v59 = vld [vmem:[%s6826_s26 + $0x100] ss:$16 sps:$4 sm:$0xff]  }
  0xf5   : > { %v6026_v61 = vld [vmem:[%s6826_s26 + $0x220] ss:$16 sps:$4 sm:$0xff]  }
  0xf6   : > { %v6029_v0 = vld [vmem:[%s6826_s26 + $0x200] ss:$16 sps:$4 sm:$0xff]  }
  0xf7   : > { %5649 = vmatmul.mubr.msk.bf16.gmra.mxu0 %vm720_vm0, %v7093_v49  ;;  %5657 = vmatmul.mubr.msk.bf16.gmra.mxu1 %vm720_vm0, %v7095_v50 }
  0xf8   : > { %841 = vmatprep.mubr.bf16.mxu0 %v10165_v3  ;;  %921 = vmatprep.mubr.bf16.mxu1 %v10165_v3 }
  0xff   : > { %5650 = vmatmul.mubr.msk.bf16.gmra.mxu0 %vm720_vm0, %v7107_v55  ;;  %5658 = vmatmul.mubr.msk.bf16.gmra.mxu1 %vm720_vm0, %v7109_v56 }
 0x100   : > { %851 = vmatprep.mubr.bf16.mxu0 %v10165_v3  ;;  %931 = vmatprep.mubr.bf16.mxu1 %v10165_v3 }
 0x107   : > { %5651 = vmatmul.mubr.msk.bf16.gmra.mxu0 %vm720_vm0, %v7122_v62  ;;  %5659 = vmatmul.mubr.msk.bf16.gmra.mxu1 %vm720_vm0, %v7124_v63 }
 0x108   : > { %861 = vmatprep.mubr.bf16.mxu0 %v10165_v3  ;;  %941 = vmatprep.mubr.bf16.mxu1 %v10165_v3 }
 0x10f   : > { %5652 = vmatmul.mubr.msk.bf16.gmra.mxu0 %vm720_vm0, %v7136_v5  ;;  %5660 = vmatmul.mubr.msk.bf16.gmra.mxu1 %vm720_vm0, %v7138_v6 }
 0x110   : > { %871 = vmatprep.mubr.bf16.mxu0 %v10165_v3  ;;  %951 = vmatprep.mubr.bf16.mxu1 %v10165_v3 }
 0x117   : > { %5653 = vmatmul.mubr.msk.bf16.gmra.mxu0 %vm720_vm0, %v7150_v11  ;;  %5661 = vmatmul.mubr.msk.bf16.gmra.mxu1 %vm720_vm0, %v7152_v12 }
 0x118   : > { %994 = vmatprep.mubr.bf16.mxu1 %v10165_v3  ;;  %1187 = vmatprep.mubr.bf16.mxu0 %v10165_v3 }
 0x11f   : > { %5662 = vmatmul.mubr.msk.bf16.vlgmr.msra.gmra.mxu1 %vm720_vm0, %v7050_v15  ;;  %5678 = vmatmul.mubr.msk.bf16.vlgmr.msra.gmra.mxu0 %vm720_vm0, %v7050_v15  ;;  %v5971_v15 = vld [vmem:[%s6826_s26 + $0x84] ss:$16 sps:$4 sm:$0xff]  }
 0x120   : > { %1004 = vmatprep.mubr.bf16.mxu1 %v10165_v3  ;;  %1197 = vmatprep.mubr.bf16.mxu0 %v10165_v3 }
 0x121   : > { %2108 = vmatpush1.bf16.msra.mxu1 %v5960_v13  ;;  %2301 = vmatpush1.bf16.msra.mxu0 %v5984_v14 }
 0x122   : > { %2109 = vmatprep.subr.bf16.mxu1 %v5965_v17  ;;  %2302 = vmatprep.subr.bf16.mxu0 %v6001_v18  ;;  %v6035_v17 = vld [vmem:[%s6826_s26 + $0xc8] ss:$16 sps:$4 sm:$0xff]  }
 0x125   : > { %2110 = vmatpush1.bf16.msra.mxu1 %v5963_v19  ;;  %2303 = vmatpush1.bf16.msra.mxu0 %v5999_v20  ;;  %v6040_v20 = vld [vmem:[%s6826_s26 + $0xac] ss:$16 sps:$4 sm:$0xff]  }
 0x126   : > { %2111 = vmatprep.subr.bf16.mxu1 %v5968_v21  ;;  %2304 = vmatprep.subr.bf16.mxu0 %v6016_v24 }
 0x127   : > { %5663 = vmatmul.mubr.msk.bf16.gmra.mxu1 %vm720_vm0, %v7064_v25  ;;  %5679 = vmatmul.mubr.msk.bf16.gmra.mxu0 %vm720_vm0, %v7064_v25  ;;  %v5977_v25 = vld [vmem:[%s6826_s26 + $0x44] ss:$16 sps:$4 sm:$0xff]  }
 0x128   : > { %1014 = vmatprep.mubr.bf16.mxu1 %v10165_v3  ;;  %1207 = vmatprep.mubr.bf16.mxu0 %v10165_v3 }
 0x129   : > { %2112 = vmatpush1.bf16.msra.mxu1 %v5966_v22  ;;  %2305 = vmatpush1.bf16.msra.mxu0 %v6014_v23 }
 0x12a   : > { %2113 = vmatprep.subr.bf16.mxu1 %v5971_v15  ;;  %2306 = vmatprep.subr.bf16.mxu0 %v6019_v35  ;;  %v6046_v35 = vld [vmem:[%s6826_s26 + $0x6c] ss:$16 sps:$4 sm:$0xff]  }
 0x12d   : > { %2114 = vmatpush1.bf16.msra.mxu1 %v5969_v27  ;;  %2307 = vmatpush1.bf16.msra.mxu0 %v6017_v34  ;;  %v6038_v27 = vld [vmem:[%s6826_s26 + $0xa8] ss:$16 sps:$4 sm:$0xff]  }
 0x12e   : > { %2115 = vmatprep.subr.bf16.mxu1 %v5974_v28  ;;  %2308 = vmatprep.subr.bf16.mxu0 %v6022_v46 }
 0x12f   : > { %5664 = vmatmul.mubr.msk.bf16.gmra.mxu1 %vm720_vm0, %v7079_v41  ;;  %5680 = vmatmul.mubr.msk.bf16.gmra.mxu0 %vm720_vm0, %v7079_v41  ;;  %v5995_v41 = vld [vmem:[%s6826_s26 + $0x1a4] ss:$16 sps:$4 sm:$0xff]  }
 0x130   : > { %1024 = vmatprep.mubr.bf16.mxu1 %v10165_v3  ;;  %1217 = vmatprep.mubr.bf16.mxu0 %v10165_v3 }
 0x131   : > { %2116 = vmatpush1.bf16.msra.mxu1 %v5972_v29  ;;  %2309 = vmatpush1.bf16.msra.mxu0 %v6020_v45  ;;  %v6049_v45 = vld [vmem:[%s6826_s26 + $0x4c] ss:$16 sps:$4 sm:$0xff]  }
 0x132   : > { %2117 = vmatprep.subr.bf16.mxu1 %v5977_v25  ;;  %2310 = vmatprep.subr.bf16.mxu0 %v6025_v58  ;;  %v6043_v25 = vld [vmem:[%s6826_s26 + $0x8c] ss:$16 sps:$4 sm:$0xff]  }
 0x135   : > { %2118 = vmatpush1.bf16.msra.mxu1 %v5975_v30  ;;  %2311 = vmatpush1.bf16.msra.mxu0 %v6023_v57 }
 0x136   : > { %2119 = vmatprep.subr.bf16.mxu1 %v5980_v31  ;;  %2312 = vmatprep.subr.bf16.mxu0 %v6028_v60 }
 0x137   : > { %5665 = vmatmul.mubr.msk.bf16.gmra.mxu1 %vm720_vm0, %v7093_v49  ;;  %5681 = vmatmul.mubr.msk.bf16.gmra.mxu0 %vm720_vm0, %v7093_v49  ;;  %v6002_v49 = vld [vmem:[%s6826_s26 + $0x160] ss:$16 sps:$4 sm:$0xff]  }
 0x138   : > { %1034 = vmatprep.mubr.bf16.mxu1 %v10165_v3  ;;  %1227 = vmatprep.mubr.bf16.mxu0 %v10165_v3 }
 0x139   : > { %2120 = vmatpush1.bf16.msra.mxu1 %v5978_v32  ;;  %2313 = vmatpush1.bf16.msra.mxu0 %v6026_v61  ;;  %v6041_v32 = vld [vmem:[%s6826_s26 + $0x88] ss:$16 sps:$4 sm:$0xff]  }
 0x13a   : > { %2121 = vmatprep.subr.bf16.mxu1 %v5983_v33 }
 0x13d   : > { %2122 = vmatpush1.bf16.msra.mxu1 %v5981_v36 }
 0x13e   : > { %2123 = vmatprep.subr.bf16.mxu1 %v5989_v37 }
 0x13f   : > { %5666 = vmatmul.mubr.msk.bf16.gmra.mxu1 %vm720_vm0, %v7107_v55  ;;  %5682 = vmatmul.mubr.msk.bf16.gmra.mxu0 %vm720_vm0, %v7107_v55  ;;  %v6013_v55 = vld [vmem:[%s6826_s26 + $0x104] ss:$16 sps:$4 sm:$0xff]  }
 0x140   : > { %1044 = vmatprep.mubr.bf16.mxu1 %v10165_v3  ;;  %1237 = vmatprep.mubr.bf16.mxu0 %v10165_v3 }
 0x141   : > { %2124 = vmatpush2.bf16.msra.mxu1 %v5987_v38 }
 0x142   : > { %2125 = vmatprep.subr.bf16.mxu1 %v5992_v39 }
 0x145   : > { %2126 = vmatpush2.bf16.msra.mxu1 %v5990_v40 }
 0x146   : > { %2127 = vmatprep.subr.bf16.mxu1 %v5995_v41  ;;  %v6044_v41 = vld [vmem:[%s6826_s26 + $0x68] ss:$16 sps:$4 sm:$0xff]  }
 0x147   : > { %5667 = vmatmul.mubr.msk.bf16.gmra.mxu1 %vm720_vm0, %v7122_v62  ;;  %5683 = vmatmul.mubr.msk.bf16.gmra.mxu0 %vm720_vm0, %v7122_v62  ;;  %v6031_v62 = vld [vmem:[%s6826_s26 + $0x204] ss:$16 sps:$4 sm:$0xff]  }
 0x148   : > { %1054 = vmatprep.mubr.bf16.mxu1 %v10165_v3  ;;  %1247 = vmatprep.mubr.bf16.mxu0 %v10165_v3 }
 0x149   : > { %2128 = vmatpush2.bf16.msra.mxu1 %v5993_v43  ;;  %2314 = vmatprep.subr.bf16.mxu0 %v6031_v62  ;;  %v6055_v62 = vld [vmem:[%s6826_s26 + $0xc] ss:$16 sps:$4 sm:$0xff]  }
 0x14a   : > { %2129 = vmatprep.subr.bf16.mxu1 %v5998_v44  ;;  %2315 = vmatpush1.bf16.msra.mxu0 %v6029_v0 }
 0x14d   : > { %2130 = vmatpush2.bf16.msra.mxu1 %v5996_v47 }
 0x14e   : > { %2131 = vmatprep.subr.bf16.mxu1 %v6004_v48  ;;  %v6047_v48 = vld [vmem:[%s6826_s26 + $0x48] ss:$16 sps:$4 sm:$0xff]  }
 0x14f   : > { %5668 = vmatmul.mubr.msk.bf16.gmra.mxu1 %vm720_vm0, %v7136_v5  ;;  %5684 = vmatmul.mubr.msk.bf16.gmra.mxu0 %vm720_vm0, %v7136_v5 }
 0x150   : > { %1064 = vmatprep.mubr.bf16.mxu1 %v10165_v3  ;;  %1257 = vmatprep.mubr.bf16.mxu0 %v10165_v3 }
 0x151   : > { %2132 = vmatpush2.bf16.msra.mxu1 %v6002_v49 }
 0x152   : > { %2133 = vmatprep.subr.bf16.mxu1 %v6007_v51 }
 0x155   : > { %2134 = vmatpush2.bf16.msra.mxu1 %v6005_v52  ;;  %v6052_v52 = vld [vmem:[%s6826_s26 + $0x2c] ss:$16 sps:$4 sm:$0xff]  }
 0x156   : > { %2135 = vmatprep.subr.bf16.mxu1 %v6010_v53 }
 0x157   : > { %5669 = vmatmul.mubr.msk.bf16.gmra.mxu1 %vm720_vm0, %v7150_v11  ;;  %5685 = vmatmul.mubr.msk.bf16.gmra.mxu0 %vm720_vm0, %v7150_v11 }
 0x158   : > { %1074 = vmatprep.mubr.bf16.mxu1 %v10165_v3  ;;  %1267 = vmatprep.mubr.bf16.mxu0 %v10165_v3 }
 0x159   : > { %2136 = vmatpush2.bf16.msra.mxu1 %v6008_v54 }
 0x15a   : > { %2137 = vmatprep.subr.bf16.mxu1 %v6013_v55 }
 0x15d   : > { %2138 = vmatpush2.bf16.msra.mxu1 %v6011_v59  ;;  %v6050_v59 = vld [vmem:[%s6826_s26 + $0x28] ss:$16 sps:$4 sm:$0xff]  }
 0x15e   : > { %2493 = vmatprep.subr.bf16.mxu1 %v6034_v1 }
 0x15f   : > { %5670 = vmatmul.mubr.msk.bf16.gmra.mxu1 %vm720_vm0, %v7052_v16  ;;  %5686 = vmatmul.mubr.msk.bf16.gmra.mxu0 %vm720_vm0, %v7052_v16  ;;  %v6058_v16 = vld [vmem:[%s6826_s26 + $0x2ec] ss:$16 sps:$4 sm:$0xff]  }
 0x160   : > { %1084 = vmatprep.mubr.bf16.mxu1 %v10165_v3  ;;  %1277 = vmatprep.mubr.bf16.mxu0 %v10165_v3 }
 0x161   : > { %2686 = vmatprep.subr.bf16.mxu0 %v6058_v16  ;;  %v6053_v16 = vld [vmem:[%s6826_s26 + $0x8] ss:$16 sps:$4 sm:$0xff]  }
 0x167   : > { %5671 = vmatmul.mubr.msk.bf16.gmra.mxu1 %vm720_vm0, %v7066_v26  ;;  %5687 = vmatmul.mubr.msk.bf16.gmra.mxu0 %vm720_vm0, %v7066_v26 }
 0x168   : > { %1094 = vmatprep.mubr.bf16.mxu1 %v10165_v3  ;;  %1287 = vmatprep.mubr.bf16.mxu0 %v10165_v3 }
 0x16f   : > { %5672 = vmatmul.mubr.msk.bf16.gmra.mxu1 %vm720_vm0, %v7081_v42  ;;  %5688 = vmatmul.mubr.msk.bf16.gmra.mxu0 %vm720_vm0, %v7081_v42 }
 0x170   : > { %1104 = vmatprep.mubr.bf16.mxu1 %v10165_v3  ;;  %1297 = vmatprep.mubr.bf16.mxu0 %v10165_v3 }
 0x177   : > { %5673 = vmatmul.mubr.msk.bf16.gmra.mxu1 %vm720_vm0, %v7095_v50  ;;  %5689 = vmatmul.mubr.msk.bf16.gmra.mxu0 %vm720_vm0, %v7095_v50 }
 0x178   : > { %1114 = vmatprep.mubr.bf16.mxu1 %v10165_v3  ;;  %1307 = vmatprep.mubr.bf16.mxu0 %v10165_v3 }
 0x17f   : > { %5674 = vmatmul.mubr.msk.bf16.gmra.mxu1 %vm720_vm0, %v7109_v56  ;;  %5690 = vmatmul.mubr.msk.bf16.gmra.mxu0 %vm720_vm0, %v7109_v56 }
 0x180   : > { %1124 = vmatprep.mubr.bf16.mxu1 %v10165_v3  ;;  %1317 = vmatprep.mubr.bf16.mxu0 %v10165_v3 }
 0x187   : > { %5675 = vmatmul.mubr.msk.bf16.gmra.mxu1 %vm720_vm0, %v7124_v63  ;;  %5691 = vmatmul.mubr.msk.bf16.gmra.mxu0 %vm720_vm0, %v7124_v63 }
 0x188   : > { %1134 = vmatprep.mubr.bf16.mxu1 %v10165_v3  ;;  %1327 = vmatprep.mubr.bf16.mxu0 %v10165_v3 }
 0x18f   : > { %5676 = vmatmul.mubr.msk.bf16.gmra.mxu1 %vm720_vm0, %v7138_v6  ;;  %5692 = vmatmul.mubr.msk.bf16.gmra.mxu0 %vm720_vm0, %v7138_v6 }
 0x190   : > { %1144 = vmatprep.mubr.bf16.mxu1 %v10165_v3  ;;  %1337 = vmatprep.mubr.bf16.mxu0 %v10165_v3 }
 0x197   : > { %5677 = vmatmul.mubr.msk.bf16.gmra.mxu1 %vm720_vm0, %v7152_v12  ;;  %5693 = vmatmul.mubr.msk.bf16.gmra.mxu0 %vm720_vm0, %v7152_v12  ;;  %v6037_v12 = vld [vmem:[%s6826_s26 + $0xcc] ss:$16 sps:$4 sm:$0xff]  }
 0x198   : > { %2332 = vmatprep.mubr.bf16.mxu0 %v10165_v3 }
 0x19f   : > { %v803_v26 = vpop.f32.mrf.mxu0  ;;  %v883_v42 = vpop.f32.mrf.mxu1 }
 0x1a1   : > { %v805_v50 = vpop.f32.mrf.mxu0  ;;  %v7303_v56 = vpop.f32.mrf.mxu1 }
 0x1a3   : > { %v807_v63 = vpop.f32.mrf.mxu0  ;;  %v887_v2 = vpop.f32.mrf.mxu1 }
 0x1a4   : > { %v7305_v4 = vpack.c.bf16 %v887_v2, %v883_v42  ;;  %v7307_v5 = vpack.c.bf16 %v807_v63, %v803_v26 }
 0x1a5   : > { %v809_v6 = vpop.f32.mrf.mxu0  ;;  %v7309_v7 = vpop.f32.mrf.mxu1 }
 0x1a6   : > { %v7311_v8 = vpack.c.bf16 %v809_v6, %v805_v50  ;;  %v6061_v50 = vld [vmem:[%s6826_s26 + $0x1ec] ss:$16 sps:$4 sm:$0xff]  }
 0x1a7   : > { %v813_v10 = vpop.f32.mrf.mxu0  ;;  %v893_v11 = vpop.f32.mrf.mxu1 }
 0x1a8   : > { %2139 = vmatprep.mubr.bf16.mxu1 %v7311_v8 }
 0x1a9   : > { %v815_v13 = vpop.f32.mrf.mxu0  ;;  %v7316_v14 = vpop.f32.mrf.mxu1  ;;  %2140 = vmatmul.mubr.bf16.vlgmr.msra.gmra.mxu1 %v7307_v5 }
 0x1aa   : > { %2494 = vmatpush1.bf16.msra.mxu1 %v6032_v9 }
 0x1ab   : > { %v817_v18 = vpop.f32.mrf.mxu0  ;;  %v897_v19 = vpop.f32.mrf.mxu1  ;;  %2495 = vmatprep.subr.bf16.mxu1 %v6037_v12 }
 0x1ac   : > { %v7321_v21 = vpack.c.bf16 %v897_v19, %v893_v11  ;;  %v7323_v22 = vpack.c.bf16 %v817_v18, %v813_v10  ;;  %v6059_v11 = vld [vmem:[%s6826_s26 + $0x1e8] ss:$16 sps:$4 sm:$0xff]  }
 0x1ad   : > { %v819_v15 = vpop.f32.mrf.mxu0  ;;  %v7325_v23 = vpop.f32.mrf.mxu1 }
 0x1ae   : > { %v7327_v24 = vpack.c.bf16 %v819_v15, %v815_v13  ;;  %2496 = vmatpush1.bf16.msra.mxu1 %v6035_v17  ;;  %v6064_v17 = vld [vmem:[%s6826_s26 + $0x1cc] ss:$16 sps:$4 sm:$0xff]  }
 0x1af   : > { %v823_v28 = vpop.f32.mrf.mxu0  ;;  %v903_v29 = vpop.f32.mrf.mxu1  ;;  %2497 = vmatprep.subr.bf16.mxu1 %v6040_v20  ;;  %v6062_v20 = vld [vmem:[%s6826_s26 + $0x1c8] ss:$16 sps:$4 sm:$0xff]  }
 0x1b0   : > { %2149 = vmatprep.mubr.bf16.mxu1 %v7327_v24 }
 0x1b1   : > { %v825_v30 = vpop.f32.mrf.mxu0  ;;  %v7332_v31 = vpop.f32.mrf.mxu1  ;;  %2150 = vmatmul.mubr.bf16.gmra.mxu1 %v7323_v22 }
 0x1b2   : > { %2498 = vmatpush1.bf16.msra.mxu1 %v6038_v27 }
 0x1b3   : > { %v827_v33 = vpop.f32.mrf.mxu0  ;;  %v907_v34 = vpop.f32.mrf.mxu1  ;;  %2499 = vmatprep.subr.bf16.mxu1 %v6043_v25 }
 0x1b4   : > { %v7337_v36 = vpack.c.bf16 %v907_v34, %v903_v29  ;;  %v7339_v37 = vpack.c.bf16 %v827_v33, %v823_v28  ;;  %v6067_v28 = vld [vmem:[%s6826_s26 + $0x1ac] ss:$16 sps:$4 sm:$0xff]   ;;  %v6065_v34 = vld [vmem:[%s6826_s26 + $0x1a8] ss:$16 sps:$4 sm:$0xff]  }
 0x1b5   : > { %v829_v38 = vpop.f32.mrf.mxu0  ;;  %v7341_v39 = vpop.f32.mrf.mxu1 }
 0x1b6   : > { %v7343_v40 = vpack.c.bf16 %v829_v38, %v825_v30  ;;  %2500 = vmatpush1.bf16.msra.mxu1 %v6041_v32 }
 0x1b7   : > { %v833_v43 = vpop.f32.mrf.mxu0  ;;  %v913_v44 = vpop.f32.mrf.mxu1  ;;  %2501 = vmatprep.subr.bf16.mxu1 %v6046_v35 }
 0x1b8   : > { %2159 = vmatprep.mubr.bf16.mxu1 %v7343_v40 }
 0x1b9   : > { %v835_v46 = vpop.f32.mrf.mxu0  ;;  %v7348_v47 = vpop.f32.mrf.mxu1  ;;  %2160 = vmatmul.mubr.bf16.gmra.mxu1 %v7339_v37 }
 0x1ba   : > { %2502 = vmatpush1.bf16.msra.mxu1 %v6044_v41  ;;  %v6070_v41 = vld [vmem:[%s6826_s26 + $0x18c] ss:$16 sps:$4 sm:$0xff]  }
 0x1bb   : > { %v837_v49 = vpop.f32.mrf.mxu0  ;;  %v917_v51 = vpop.f32.mrf.mxu1  ;;  %2503 = vmatprep.subr.bf16.mxu1 %v6049_v45  ;;  %v6068_v45 = vld [vmem:[%s6826_s26 + $0x188] ss:$16 sps:$4 sm:$0xff]  }
 0x1bc   : > { %v7353_v53 = vpack.c.bf16 %v917_v51, %v913_v44  ;;  %v7355_v54 = vpack.c.bf16 %v837_v49, %v833_v43  ;;  %v6076_v49 = vld [vmem:[%s6826_s26 + $0x16c] ss:$16 sps:$4 sm:$0xff]  }
 0x1bd   : > { %v839_v55 = vpop.f32.mrf.mxu0  ;;  %v7357_v57 = vpop.f32.mrf.mxu1 }
 0x1be   : > { %v7359_v58 = vpack.c.bf16 %v839_v55, %v835_v46  ;;  %2504 = vmatpush1.bf16.msra.mxu1 %v6047_v48 }
 0x1bf   : > { %v843_v60 = vpop.f32.mrf.mxu0  ;;  %v923_v61 = vpop.f32.mrf.mxu1  ;;  %2505 = vmatprep.subr.bf16.mxu1 %v6052_v52  ;;  %v1350_v52 = vlaneseq }
 0x1c0   : > { %2169 = vmatprep.mubr.bf16.mxu1 %v7359_v58 }
 0x1c1   : > { %v845_v0 = vpop.f32.mrf.mxu0  ;;  %v7364_v1 = vpop.f32.mrf.mxu1  ;;  %2170 = vmatmul.mubr.bf16.gmra.mxu1 %v7355_v54 }
 0x1c2   : > { %2506 = vmatpush1.bf16.msra.mxu1 %v6050_v59 }
 0x1c3   : > { %v847_v26 = vpop.f32.mrf.mxu0  ;;  %v927_v42 = vpop.f32.mrf.mxu1  ;;  %2507 = vmatprep.subr.bf16.mxu1 %v6055_v62  ;;  %v6074_v62 = vld [vmem:[%s6826_s26 + $0x168] ss:$16 sps:$4 sm:$0xff]  }
 0x1c4   : > { %v7369_v63 = vpack.c.bf16 %v927_v42, %v923_v61  ;;  %v7371_v2 = vpack.c.bf16 %v847_v26, %v843_v60  ;;  %v6079_v26 = vld [vmem:[%s6826_s26 + $0x14c] ss:$16 sps:$4 sm:$0xff]   ;;  %v7412_v42 = vshrl.u32 %v1350_v52, 7  ;;  %v7442_v52 = vpack.c.bf16 %v7309_v7, %v7303_v56  ;;  %v6083_v56 = vld [vmem:[%s6826_s26 + $0x108] ss:$16 sps:$4 sm:$0xff]  }
 0x1c5   : > { %v849_v6 = vpop.f32.mrf.mxu0  ;;  %v7373_v9 = vpop.f32.mrf.mxu1 }
 0x1c6   : > { %v7375_v10 = vpack.c.bf16 %v849_v6, %v845_v0  ;;  %2508 = vmatpush1.bf16.msra.mxu1 %v6053_v16 }
 0x1c7   : > { %v853_v12 = vpop.f32.mrf.mxu0  ;;  %v933_v13 = vpop.f32.mrf.mxu1  ;;  %2509 = vmatprep.subr.bf16.mxu1 %v6061_v50 }
 0x1c8   : > { %2179 = vmatprep.mubr.bf16.mxu1 %v7375_v10 }
 0x1c9   : > { %v855_v18 = vpop.f32.mrf.mxu0  ;;  %v7380_v19 = vpop.f32.mrf.mxu1  ;;  %2180 = vmatmul.mubr.bf16.gmra.mxu1 %v7371_v2 }
 0x1ca   : > { %2510 = vmatpush2.bf16.msra.mxu1 %v6059_v11  ;;  %v6077_v11 = vld [vmem:[%s6826_s26 + $0x148] ss:$16 sps:$4 sm:$0xff]  }
 0x1cb   : > { %v857_v15 = vpop.f32.mrf.mxu0  ;;  %v937_v27 = vpop.f32.mrf.mxu1  ;;  %2511 = vmatprep.subr.bf16.mxu1 %v6064_v17 }
 0x1cc   : > { %v7385_v29 = vpack.c.bf16 %v937_v27, %v933_v13  ;;  %v7387_v25 = vpack.c.bf16 %v857_v15, %v853_v12  ;;  %v10163_v12 = vsub.s32 1, %v7412_v42  ;;  %v10162_v13 = vsub.s32 2, %v7412_v42 }
 0x1cd   : > { %v859_v30 = vpop.f32.mrf.mxu0  ;;  %v7389_v32 = vpop.f32.mrf.mxu1 }
 0x1ce   : > { %v7391_v33 = vpack.c.bf16 %v859_v30, %v855_v18  ;;  %2512 = vmatpush2.bf16.msra.mxu1 %v6062_v20  ;;  %v6082_v20 = vld [vmem:[%s6826_s26 + $0x12c] ss:$16 sps:$4 sm:$0xff]  }
 0x1cf   : > { %v863_v35 = vpop.f32.mrf.mxu0  ;;  %v943_v38 = vpop.f32.mrf.mxu1  ;;  %2513 = vmatprep.subr.bf16.mxu1 %v6067_v28 }
 0x1d0   : > { %2189 = vmatprep.mubr.bf16.mxu1 %v7391_v33 }
 0x1d1   : > { %v865_v43 = vpop.f32.mrf.mxu0  ;;  %v7396_v44 = vpop.f32.mrf.mxu1  ;;  %2190 = vmatmul.mubr.bf16.gmra.mxu1 %v7387_v25 }
 0x1d2   : > { %2514 = vmatpush2.bf16.msra.mxu1 %v6065_v34  ;;  %v1348_v34 = vld [vmem:[#allocation9] sm:$0x7] }
 0x1d3   : > { %v867_v46 = vpop.f32.mrf.mxu0  ;;  %v947_v48 = vpop.f32.mrf.mxu1  ;;  %2515 = vmatprep.subr.bf16.mxu1 %v6070_v41  ;;  %v7432_v41 = vrot.slane %v1348_v34, %v10163_v12 }
 0x1d4   : > { %v7401_v51 = vpack.c.bf16 %v947_v48, %v943_v38  ;;  %v7403_v55 = vpack.c.bf16 %v867_v46, %v863_v35  ;;  %v10164_v35 = vsub.s32 0, %v7412_v42 }
 0x1d5   : > { %v869_v59 = vpop.f32.mrf.mxu0  ;;  %v7405_v60 = vpop.f32.mrf.mxu1 }
 0x1d6   : > { %v7407_v61 = vpack.c.bf16 %v869_v59, %v865_v43  ;;  %2516 = vmatpush2.bf16.msra.mxu1 %v6068_v45  ;;  %v6080_v43 = vld [vmem:[%s6826_s26 + $0x128] ss:$16 sps:$4 sm:$0xff]   ;;  %v7437_v45 = vrot.slane %v1348_v34, %v10162_v13 }
 0x1d7   : > { %v873_v0 = vpop.f32.mrf.mxu0  ;;  %v953_v16 = vpop.f32.mrf.mxu1  ;;  %2517 = vmatprep.subr.bf16.mxu1 %v6076_v49  ;;  %v6085_v49 = vld [vmem:[%s6826_s26 + $0x10c] ss:$16 sps:$4 sm:$0xff]  }
 0x1d8   : > { %2199 = vmatprep.mubr.bf16.mxu1 %v7407_v61 }
 0x1d9   : > { %v875_v50 = vpop.f32.mrf.mxu0  ;;  %v7414_v6 = vpop.f32.mrf.mxu1  ;;  %2200 = vmatmul.mubr.bf16.gmra.mxu1 %v7403_v55 }
 0x1da   : > { %2518 = vmatpush2.bf16.msra.mxu1 %v6074_v62  ;;  %v7447_v62 = vrot.slane %v1348_v34, %v10164_v35  ;;  %v6091_v35 = vld [vmem:[%s6826_s26 + $0x28c] ss:$16 sps:$4 sm:$0xff]  }
 0x1db   : > { %v877_v17 = vpop.f32.mrf.mxu0  ;;  %v957_v18 = vpop.f32.mrf.mxu1  ;;  %2519 = vmatprep.subr.bf16.mxu1 %v6079_v26 }
 0x1dc   : > { %v7421_v15 = vpack.c.bf16 %v957_v18, %v953_v16  ;;  %v7423_v27 = vpack.c.bf16 %v877_v17, %v873_v0  ;;  %v6073_v18 = vld [vmem:[%s6826_s26 + $0x2cc] ss:$16 sps:$4 sm:$0xff]  }
 0x1dd   : > { %v879_v28 = vpop.f32.mrf.mxu0  ;;  %v7425_v30 = vpop.f32.mrf.mxu1 }
 0x1de   : > { %v7428_v38 = vpack.c.bf16 %v879_v28, %v875_v50  ;;  %2520 = vmatpush2.bf16.msra.mxu1 %v6077_v11  ;;  %v6056_v50 = vld [vmem:[%s6826_s26 + $0x2e8] ss:$16 sps:$4 sm:$0xff]  }
 0x1df   : > { %v996_v46 = vpop.f32.mrf.mxu1  ;;  %v1189_v48 = vpop.f32.mrf.mxu0  ;;  %2521 = vmatprep.subr.bf16.mxu1 %v6082_v20 }
 0x1e0   : > { %2209 = vmatprep.mubr.bf16.mxu1 %v7428_v38  ;;  %v7452_v16 = vadd.f32 %v7432_v41, %v1189_v48 }
 0x1e1   : > { %v998_v59 = vpop.f32.mrf.mxu1  ;;  %2210 = vmatmul.mubr.bf16.gmra.mxu1 %v7423_v27  ;;  %v1191_v0 = vpop.f32.mrf.mxu0 }
 0x1e2   : > { %2219 = vmatprep.mubr.bf16.mxu1 %v7442_v52  ;;  %10487 = vst [vmem:[#allocation17_spill] sm:$0xff] %v7452_v16  ;;  %v7455_v26 = vadd.f32 %v7437_v45, %v1191_v0  ;;  %2522 = vmatpush2.bf16.msra.mxu1 %v6080_v43  ;;  %v7466_v28 = vadd.f32 %v7447_v62, %v998_v59  ;;  %v6071_v59 = vld [vmem:[%s6826_s26 + $0x2c8] ss:$16 sps:$4 sm:$0xff]  }
 0x1e3   : > { %v1000_v7 = vpop.f32.mrf.mxu1  ;;  %v1193_v11 = vpop.f32.mrf.mxu0  ;;  %2523 = vmatprep.subr.bf16.mxu1 %v6085_v49  ;;  %v6092_v16 = vld [vmem:[%s6826_s26 + $0x268] ss:$16 sps:$4 sm:$0xff]  }
 0x1e4   : > { %10488 = vst [vmem:[#allocation18_spill] sm:$0xff] %v7455_v26  ;;  %v7459_v17 = vpack.c.bf16 %v1000_v7, %v996_v46  ;;  %v7463_v20 = vadd.f32 %v7432_v41, %v1193_v11  ;;  %10490 = vst [vmem:[#allocation20_spill] sm:$0xff] %v7466_v28  ;;  %v7481_v11 = vpack.c.bf16 %v7325_v23, %v7316_v14 }
 0x1e5   : > { %v1002_v34 = vpop.f32.mrf.mxu1  ;;  %v1195_v48 = vpop.f32.mrf.mxu0 }
 0x1e6   : > { %10489 = vst [vmem:[#allocation19_spill] sm:$0xff] %v7463_v20  ;;  %v7469_v43 = vadd.f32 %v7447_v62, %v1002_v34  ;;  %2333 = vmatmul.mubr.bf16.vlgmr.msra.gmra.mxu0 %v7459_v17  ;;  %v7473_v0 = vadd.f32 %v7437_v45, %v1195_v48  ;;  %2524 = vmatpush2.bf16.msra.mxu1 %v6083_v56  ;;  %v6088_v56 = vld [vmem:[%s6826_s26 + $0x2ac] ss:$16 sps:$4 sm:$0xff]  }
 0x1e7   : > { %v1006_v49 = vpop.f32.mrf.mxu1  ;;  %2342 = vmatprep.mubr.bf16.mxu0 %v10165_v3  ;;  %2687 = vmatpush1.bf16.msra.mxu0 %v6056_v50  ;;  %v1199_v7 = vpop.f32.mrf.mxu0 }
 0x1e8   : > { %10491 = vst [vmem:[#allocation21_spill] sm:$0xff] %v7469_v43  ;;  %10492 = vst [vmem:[#allocation22_spill] sm:$0xff] %v7473_v0  ;;  %2688 = vmatprep.subr.bf16.mxu0 %v6073_v18  ;;  %v7491_v13 = vadd.f32 %v7432_v41, %v1199_v7  ;;  %v6086_v18 = vld [vmem:[%s6826_s26 + $0x2a8] ss:$16 sps:$4 sm:$0xff]  }
 0x1e9   : > { %v1008_v46 = vpop.f32.mrf.mxu1  ;;  %2220 = vmatmul.mubr.bf16.gmra.mxu1 %v7305_v4  ;;  %v1201_v50 = vpop.f32.mrf.mxu0  ;;  %v6089_v0 = vld [vmem:[%s6826_s26 + $0x288] ss:$16 sps:$4 sm:$0xff]  }
 0x1ea   : > { %2229 = vmatprep.mubr.bf16.mxu1 %v7481_v11  ;;  %10493 = vst [vmem:[#allocation23_spill] sm:$0xff] %v7491_v13  ;;  %v7494_v14 = vadd.f32 %v7437_v45, %v1201_v50  ;;  %v7504_v7 = vadd.f32 %v7447_v62, %v1008_v46  ;;  %v7519_v46 = vpack.c.bf16 %v7341_v39, %v7332_v31 }
 0x1eb   : > { %v1010_v23 = vpop.f32.mrf.mxu1  ;;  %2689 = vmatpush1.bf16.msra.mxu0 %v6071_v59  ;;  %v1203_v34 = vpop.f32.mrf.mxu0 }
 0x1ec   : > { %10494 = vst [vmem:[#allocation24_spill] sm:$0xff] %v7494_v14  ;;  %v7497_v12 = vpack.c.bf16 %v1010_v23, %v1006_v49  ;;  %2690 = vmatprep.subr.bf16.mxu0 %v6088_v56  ;;  %v7500_v48 = vadd.f32 %v7432_v41, %v1203_v34  ;;  %10496 = vst [vmem:[#allocation26_spill] sm:$0xff] %v7504_v7  ;;  %v10499_v56 = vmov 0   ;;  %v6097_v14 = vld [vmem:[%s6826_s26 + $0x24c] ss:$16 sps:$4 sm:$0xff]  }
 0x1ed   : > { %v1012_v3 = vpop.f32.mrf.mxu1  ;;  %v1205_v26 = vpop.f32.mrf.mxu0 }
 0x1ee   : > { %10495 = vst [vmem:[#allocation25_spill] sm:$0xff] %v7500_v48  ;;  %v7507_v50 = vadd.f32 %v7447_v62, %v1012_v3  ;;  %2343 = vmatmul.mubr.bf16.gmra.mxu0 %v7497_v12  ;;  %v7513_v59 = vadd.f32 %v7437_v45, %v1205_v26  ;;  %v6094_v26 = vld [vmem:[%s6826_s26 + $0x26c] ss:$16 sps:$4 sm:$0xff]  }
 0x1ef   : > { %v1016_v34 = vpop.f32.mrf.mxu1  ;;  %2352 = vmatprep.mubr.bf16.mxu0 %v10499_v56  ;;  %2691 = vmatpush1.bf16.msra.mxu0 %v6086_v18  ;;  %v1209_v23 = vpop.f32.mrf.mxu0 }
 0x1f0   : > { %10497 = vst [vmem:[#allocation27_spill] sm:$0xff] %v7507_v50  ;;  %10498 = vst [vmem:[#allocation28_spill] sm:$0xff] %v7513_v59  ;;  %2692 = vmatprep.subr.bf16.mxu0 %v6091_v35  ;;  %v7529_v48 = vadd.f32 %v7432_v41, %v1209_v23 }
 0x1f1   : > { %v1018_v13 = vpop.f32.mrf.mxu1  ;;  %2230 = vmatmul.mubr.bf16.gmra.mxu1 %v7321_v21  ;;  %v1211_v18 = vpop.f32.mrf.mxu0 }
 0x1f2   : > { %2239 = vmatprep.mubr.bf16.mxu1 %v7519_v46  ;;  %10500 = vst [vmem:[#allocation29_spill] sm:$0xff] %v7529_v48  ;;  %v7532_v31 = vadd.f32 %v7437_v45, %v1211_v18  ;;  %v7542_v23 = vadd.f32 %v7447_v62, %v1018_v13  ;;  %v7557_v13 = vpack.c.bf16 %v7357_v57, %v7348_v47 }
 0x1f3   : > { %v1020_v39 = vpop.f32.mrf.mxu1  ;;  %v1213_v3 = vpop.f32.mrf.mxu0  ;;  %2693 = vmatpush1.bf16.msra.mxu0 %v6089_v0 }
 0x1f4   : > { %10501 = vst [vmem:[#allocation30_spill] sm:$0xff] %v7532_v31  ;;  %v7535_v49 = vpack.c.bf16 %v1020_v39, %v1016_v34  ;;  %v7538_v35 = vadd.f32 %v7432_v41, %v1213_v3  ;;  %2694 = vmatprep.subr.bf16.mxu0 %v6094_v26  ;;  %10503 = vst [vmem:[#allocation32_spill] sm:$0xff] %v7542_v23  ;;  %v6095_v39 = vld [vmem:[%s6826_s26 + $0x248] ss:$16 sps:$4 sm:$0xff]   ;;  %v6103_v31 = vld [vmem:[%s6826_s26 + $0x20c] ss:$16 sps:$4 sm:$0xff]  }
 0x1f5   : > { %v1022_v59 = vpop.f32.mrf.mxu1  ;;  %v1215_v20 = vpop.f32.mrf.mxu0  ;;  %v6098_v23 = vld [vmem:[%s6826_s26 + $0x228] ss:$16 sps:$4 sm:$0xff]  }
 0x1f6   : > { %10502 = vst [vmem:[#allocation31_spill] sm:$0xff] %v7538_v35  ;;  %v7545_v18 = vadd.f32 %v7447_v62, %v1022_v59  ;;  %2353 = vmatmul.mubr.bf16.gmra.mxu0 %v7535_v49  ;;  %v7551_v34 = vadd.f32 %v7437_v45, %v1215_v20  ;;  %v6100_v20 = vld [vmem:[%s6826_s26 + $0x22c] ss:$16 sps:$4 sm:$0xff]  }
 0x1f7   : > { %v1026_v3 = vpop.f32.mrf.mxu1  ;;  %2362 = vmatprep.mubr.bf16.mxu0 %v10499_v56  ;;  %v1219_v26 = vpop.f32.mrf.mxu0  ;;  %2695 = vmatpush1.bf16.msra.mxu0 %v6092_v16 }
 0x1f8   : > { %10504 = vst [vmem:[#allocation33_spill] sm:$0xff] %v7545_v18  ;;  %10505 = vst [vmem:[#allocation34_spill] sm:$0xff] %v7551_v34  ;;  %2696 = vmatprep.subr.bf16.mxu0 %v6097_v14  ;;  %v7567_v16 = vadd.f32 %v7432_v41, %v1219_v26 }
 0x1f9   : > { %v1028_v48 = vpop.f32.mrf.mxu1  ;;  %2240 = vmatmul.mubr.bf16.gmra.mxu1 %v7337_v36  ;;  %v1221_v35 = vpop.f32.mrf.mxu0 }
 0x1fa   : > { %2249 = vmatprep.mubr.bf16.mxu1 %v7557_v13  ;;  %10506 = vst [vmem:[#allocation35_spill] sm:$0xff] %v7567_v16  ;;  %v7570_v47 = vadd.f32 %v7437_v45, %v1221_v35  ;;  %v7580_v26 = vadd.f32 %v7447_v62, %v1028_v48  ;;  %v7595_v48 = vpack.c.bf16 %v7373_v9, %v7364_v1 }
 0x1fb   : > { %v1030_v57 = vpop.f32.mrf.mxu1  ;;  %v1223_v59 = vpop.f32.mrf.mxu0  ;;  %2697 = vmatpush1.bf16.msra.mxu0 %v6095_v39 }
 0x1fc   : > { %10507 = vst [vmem:[#allocation36_spill] sm:$0xff] %v7570_v47  ;;  %v7573_v0 = vpack.c.bf16 %v1030_v57, %v1026_v3  ;;  %v7576_v14 = vadd.f32 %v7432_v41, %v1223_v59  ;;  %2698 = vmatprep.subr.bf16.mxu0 %v6100_v20  ;;  %10509 = vst [vmem:[#allocation38_spill] sm:$0xff] %v7580_v26  ;;  %v6101_v57 = vld [vmem:[%s6826_s26 + $0x208] ss:$16 sps:$4 sm:$0xff]  }
 0x1fd   : > { %v1032_v34 = vpop.f32.mrf.mxu1  ;;  %v1225_v18 = vpop.f32.mrf.mxu0 }
 0x1fe   : > { %10508 = vst [vmem:[#allocation37_spill] sm:$0xff] %v7576_v14  ;;  %v7583_v35 = vadd.f32 %v7447_v62, %v1032_v34  ;;  %2363 = vmatmul.mubr.bf16.gmra.mxu0 %v7573_v0  ;;  %v7589_v3 = vadd.f32 %v7437_v45, %v1225_v18 }
 0x1ff   : > { %v1036_v59 = vpop.f32.mrf.mxu1  ;;  %2372 = vmatprep.mubr.bf16.mxu0 %v10499_v56  ;;  %v1229_v20 = vpop.f32.mrf.mxu0  ;;  %2699 = vmatpush1.bf16.msra.mxu0 %v6098_v23 }
 0x200   : > { %10510 = vst [vmem:[#allocation39_spill] sm:$0xff] %v7583_v35  ;;  %10511 = vst [vmem:[#allocation40_spill] sm:$0xff] %v7589_v3  ;;  %2700 = vmatprep.subr.bf16.mxu0 %v6103_v31  ;;  %v7604_v23 = vadd.f32 %v7432_v41, %v1229_v20 }
 0x201   : > { %v1038_v39 = vpop.f32.mrf.mxu1  ;;  %2250 = vmatmul.mubr.bf16.gmra.mxu1 %v7353_v53  ;;  %v1231_v18 = vpop.f32.mrf.mxu0 }
 0x202   : > { %2259 = vmatprep.mubr.bf16.mxu1 %v7595_v48  ;;  %10512 = vst [vmem:[#allocation41_spill] sm:$0xff] %v7604_v23  ;;  %v7607_v16 = vadd.f32 %v7437_v45, %v1231_v18  ;;  %v7615_v3 = vadd.f32 %v7447_v62, %v1038_v39 }
 0x203   : > { %v1040_v1 = vpop.f32.mrf.mxu1  ;;  %v1233_v9 = vpop.f32.mrf.mxu0  ;;  %2701 = vmatpush1.bf16.msra.mxu0 %v6101_v57 }
 0x204   : > { %10513 = vst [vmem:[#allocation42_spill] sm:$0xff] %v7607_v16  ;;  %v7609_v34 = vpack.c.bf16 %v1040_v1, %v1036_v59  ;;  %v7612_v7 = vadd.f32 %v7432_v41, %v1233_v9  ;;  %10515 = vst [vmem:[#allocation44_spill] sm:$0xff] %v7615_v3  ;;  %v7629_v1 = vpack.c.bf16 %v7389_v32, %v7380_v19 }
 0x205   : > { %v1042_v31 = vpop.f32.mrf.mxu1  ;;  %v1235_v47 = vpop.f32.mrf.mxu0 }
 0x206   : > { %10514 = vst [vmem:[#allocation43_spill] sm:$0xff] %v7612_v7  ;;  %v7618_v14 = vadd.f32 %v7447_v62, %v1042_v31  ;;  %2373 = vmatmul.mubr.bf16.gmra.mxu0 %v7609_v34  ;;  %v7624_v57 = vadd.f32 %v7437_v45, %v1235_v47 }
 0x207   : > { %v1046_v59 = vpop.f32.mrf.mxu1  ;;  %2382 = vmatprep.mubr.bf16.mxu0 %v10499_v56  ;;  %v1239_v18 = vpop.f32.mrf.mxu0 }
 0x208   : > { %10516 = vst [vmem:[#allocation45_spill] sm:$0xff] %v7618_v14  ;;  %10517 = vst [vmem:[#allocation46_spill] sm:$0xff] %v7624_v57  ;;  %v7638_v47 = vadd.f32 %v7432_v41, %v1239_v18 }
 0x209   : > { %v1048_v31 = vpop.f32.mrf.mxu1  ;;  %2260 = vmatmul.mubr.bf16.gmra.mxu1 %v7369_v63  ;;  %v1241_v20 = vpop.f32.mrf.mxu0 }
 0x20a   : > { %2269 = vmatprep.mubr.bf16.mxu1 %v7629_v1  ;;  %10518 = vst [vmem:[#allocation47_spill] sm:$0xff] %v7638_v47  ;;  %v7641_v23 = vadd.f32 %v7437_v45, %v1241_v20  ;;  %v7649_v57 = vadd.f32 %v7447_v62, %v1048_v31 }
 0x20b   : > { %v1050_v19 = vpop.f32.mrf.mxu1  ;;  %v1243_v32 = vpop.f32.mrf.mxu0 }
 0x20c   : > { %10519 = vst [vmem:[#allocation48_spill] sm:$0xff] %v7641_v23  ;;  %v7643_v7 = vpack.c.bf16 %v1050_v19, %v1046_v59  ;;  %v7646_v39 = vadd.f32 %v7432_v41, %v1243_v32  ;;  %10521 = vst [vmem:[#allocation50_spill] sm:$0xff] %v7649_v57  ;;  %v7663_v32 = vpack.c.bf16 %v7405_v60, %v7396_v44 }
 0x20d   : > { %v1052_v9 = vpop.f32.mrf.mxu1  ;;  %v1245_v16 = vpop.f32.mrf.mxu0 }
 0x20e   : > { %10520 = vst [vmem:[#allocation49_spill] sm:$0xff] %v7646_v39  ;;  %v7652_v3 = vadd.f32 %v7447_v62, %v1052_v9  ;;  %2383 = vmatmul.mubr.bf16.gmra.mxu0 %v7643_v7  ;;  %v7658_v18 = vadd.f32 %v7437_v45, %v1245_v16 }
 0x20f   : > { %v1056_v59 = vpop.f32.mrf.mxu1  ;;  %2392 = vmatprep.mubr.bf16.mxu0 %v10499_v56  ;;  %v1249_v19 = vpop.f32.mrf.mxu0 }
 0x210   : > { %10522 = vst [vmem:[#allocation51_spill] sm:$0xff] %v7652_v3  ;;  %10523 = vst [vmem:[#allocation52_spill] sm:$0xff] %v7658_v18  ;;  %v7672_v16 = vadd.f32 %v7432_v41, %v1249_v19 }
 0x211   : > { %v1058_v14 = vpop.f32.mrf.mxu1  ;;  %2270 = vmatmul.mubr.bf16.gmra.mxu1 %v7385_v29  ;;  %v1251_v20 = vpop.f32.mrf.mxu0 }
 0x212   : > { %2279 = vmatprep.mubr.bf16.mxu1 %v7663_v32  ;;  %10524 = vst [vmem:[#allocation53_spill] sm:$0xff] %v7672_v16  ;;  %v7675_v47 = vadd.f32 %v7437_v45, %v1251_v20  ;;  %v7683_v18 = vadd.f32 %v7447_v62, %v1058_v14 }
 0x213   : > { %v1060_v44 = vpop.f32.mrf.mxu1  ;;  %v1253_v60 = vpop.f32.mrf.mxu0 }
 0x214   : > { %10525 = vst [vmem:[#allocation54_spill] sm:$0xff] %v7675_v47  ;;  %v7677_v39 = vpack.c.bf16 %v1060_v44, %v1056_v59  ;;  %v7680_v9 = vadd.f32 %v7432_v41, %v1253_v60  ;;  %10527 = vst [vmem:[#allocation56_spill] sm:$0xff] %v7683_v18  ;;  %v7697_v60 = vpack.c.bf16 %v7425_v30, %v7414_v6 }
 0x215   : > { %v1062_v31 = vpop.f32.mrf.mxu1  ;;  %v1255_v23 = vpop.f32.mrf.mxu0 }
 0x216   : > { %10526 = vst [vmem:[#allocation55_spill] sm:$0xff] %v7680_v9  ;;  %v7686_v57 = vadd.f32 %v7447_v62, %v1062_v31  ;;  %2393 = vmatmul.mubr.bf16.gmra.mxu0 %v7677_v39  ;;  %v7692_v19 = vadd.f32 %v7437_v45, %v1255_v23 }
 0x217   : > { %v1066_v59 = vpop.f32.mrf.mxu1  ;;  %2402 = vmatprep.mubr.bf16.mxu0 %v10499_v56  ;;  %v1259_v44 = vpop.f32.mrf.mxu0 }
 0x218   : > { %10528 = vst [vmem:[#allocation57_spill] sm:$0xff] %v7686_v57  ;;  %10529 = vst [vmem:[#allocation58_spill] sm:$0xff] %v7692_v19  ;;  %v7706_v23 = vadd.f32 %v7432_v41, %v1259_v44 }
 0x219   : > { %v1068_v3 = vpop.f32.mrf.mxu1  ;;  %2280 = vmatmul.mubr.bf16.gmra.mxu1 %v7401_v51  ;;  %v1261_v20 = vpop.f32.mrf.mxu0 }
 0x21a   : > { %2289 = vmatprep.mubr.bf16.mxu1 %v7697_v60  ;;  %10530 = vst [vmem:[#allocation59_spill] sm:$0xff] %v7706_v23  ;;  %v7709_v16 = vadd.f32 %v7437_v45, %v1261_v20  ;;  %v7717_v19 = vadd.f32 %v7447_v62, %v1068_v3 }
 0x21b   : > { %v1070_v6 = vpop.f32.mrf.mxu1  ;;  %v1263_v30 = vpop.f32.mrf.mxu0 }
 0x21c   : > { %10531 = vst [vmem:[#allocation60_spill] sm:$0xff] %v7709_v16  ;;  %v7711_v9 = vpack.c.bf16 %v1070_v6, %v1066_v59  ;;  %v7714_v14 = vadd.f32 %v7432_v41, %v1263_v30  ;;  %10533 = vst [vmem:[#allocation62_spill] sm:$0xff] %v7717_v19 }
 0x21d   : > { %v1072_v31 = vpop.f32.mrf.mxu1  ;;  %v1265_v47 = vpop.f32.mrf.mxu0 }
 0x21e   : > { %10532 = vst [vmem:[#allocation61_spill] sm:$0xff] %v7714_v14  ;;  %v7720_v18 = vadd.f32 %v7447_v62, %v1072_v31  ;;  %2403 = vmatmul.mubr.bf16.gmra.mxu0 %v7711_v9  ;;  %v7726_v44 = vadd.f32 %v7437_v45, %v1265_v47 }
 0x21f   : > { %v1076_v59 = vpop.f32.mrf.mxu1  ;;  %2412 = vmatprep.mubr.bf16.mxu0 %v10499_v56  ;;  %v1269_v6 = vpop.f32.mrf.mxu0 }
 0x220   : > { %10534 = vst [vmem:[#allocation63_spill] sm:$0xff] %v7720_v18  ;;  %10535 = vst [vmem:[#allocation64_spill] sm:$0xff] %v7726_v44  ;;  %v7736_v20 = vadd.f32 %v7432_v41, %v1269_v6 }
 0x221   : > { %v1078_v31 = vpop.f32.mrf.mxu1  ;;  %2290 = vmatmul.mubr.bf16.gmra.mxu1 %v7421_v15  ;;  %v1271_v57 = vpop.f32.mrf.mxu0 }
 0x222   : > { %2525 = vmatprep.mubr.bf16.mxu1 %v7311_v8  ;;  %10536 = vst [vmem:[#allocation65_spill] sm:$0xff] %v7736_v20  ;;  %v7739_v47 = vadd.f32 %v7437_v45, %v1271_v57  ;;  %v7747_v44 = vadd.f32 %v7447_v62, %v1078_v31 }
 0x223   : > { %v1080_v23 = vpop.f32.mrf.mxu1  ;;  %v1273_v14 = vpop.f32.mrf.mxu0 }
 0x224   : > { %10537 = vst [vmem:[#allocation66_spill] sm:$0xff] %v7739_v47  ;;  %v7741_v26 = vpack.c.bf16 %v1080_v23, %v1076_v59  ;;  %v7744_v30 = vadd.f32 %v7432_v41, %v1273_v14  ;;  %10539 = vst [vmem:[#allocation68_spill] sm:$0xff] %v7747_v44 }
 0x225   : > { %v1082_v3 = vpop.f32.mrf.mxu1  ;;  %v1275_v16 = vpop.f32.mrf.mxu0 }
 0x226   : > { %10538 = vst [vmem:[#allocation67_spill] sm:$0xff] %v7744_v30  ;;  %v7750_v8 = vadd.f32 %v7447_v62, %v1082_v3  ;;  %2413 = vmatmul.mubr.bf16.gmra.mxu0 %v7741_v26  ;;  %v7754_v57 = vadd.f32 %v7437_v45, %v1275_v16 }
 0x227   : > { %v1086_v59 = vpop.f32.mrf.mxu1  ;;  %2422 = vmatprep.mubr.bf16.mxu0 %v10499_v56  ;;  %v1279_v14 = vpop.f32.mrf.mxu0 }
 0x228   : > { %10540 = vst [vmem:[#allocation69_spill] sm:$0xff] %v7750_v8  ;;  %10541 = vst [vmem:[#allocation70_spill] sm:$0xff] %v7754_v57  ;;  %v7766_v16 = vadd.f32 %v7432_v41, %v1279_v14 }
 0x229   : > { %v1088_v3 = vpop.f32.mrf.mxu1  ;;  %2526 = vmatmul.mubr.bf16.vlgmr.msra.gmra.mxu1 %v7307_v5  ;;  %v1281_v19 = vpop.f32.mrf.mxu0 }
 0x22a   : > { %2535 = vmatprep.mubr.bf16.mxu1 %v7327_v24  ;;  %10542 = vst [vmem:[#allocation71_spill] sm:$0xff] %v7766_v16  ;;  %v7769_v23 = vadd.f32 %v7437_v45, %v1281_v19  ;;  %v7777_v5 = vadd.f32 %v7447_v62, %v1088_v3 }
 0x22b   : > { %v1090_v20 = vpop.f32.mrf.mxu1  ;;  %v1283_v30 = vpop.f32.mrf.mxu0 }
 0x22c   : > { %10543 = vst [vmem:[#allocation72_spill] sm:$0xff] %v7769_v23  ;;  %v7771_v18 = vpack.c.bf16 %v1090_v20, %v1086_v59  ;;  %v7774_v6 = vadd.f32 %v7432_v41, %v1283_v30  ;;  %10545 = vst [vmem:[#allocation74_spill] sm:$0xff] %v7777_v5 }
 0x22d   : > { %v1092_v31 = vpop.f32.mrf.mxu1  ;;  %v1285_v47 = vpop.f32.mrf.mxu0 }
 0x22e   : > { %10544 = vst [vmem:[#allocation73_spill] sm:$0xff] %v7774_v6  ;;  %v7780_v24 = vadd.f32 %v7447_v62, %v1092_v31  ;;  %2423 = vmatmul.mubr.bf16.gmra.mxu0 %v7771_v18  ;;  %v7786_v14 = vadd.f32 %v7437_v45, %v1285_v47 }
 0x22f   : > { %v1096_v20 = vpop.f32.mrf.mxu1  ;;  %2432 = vmatprep.mubr.bf16.mxu0 %v10499_v56  ;;  %v1289_v30 = vpop.f32.mrf.mxu0 }
 0x230   : > { %10546 = vst [vmem:[#allocation75_spill] sm:$0xff] %v7780_v24  ;;  %10547 = vst [vmem:[#allocation76_spill] sm:$0xff] %v7786_v14  ;;  %v7796_v19 = vadd.f32 %v7432_v41, %v1289_v30 }
 0x231   : > { %v1098_v31 = vpop.f32.mrf.mxu1  ;;  %2536 = vmatmul.mubr.bf16.gmra.mxu1 %v7323_v22  ;;  %v1291_v57 = vpop.f32.mrf.mxu0 }
 0x232   : > { %2545 = vmatprep.mubr.bf16.mxu1 %v7343_v40  ;;  %10548 = vst [vmem:[#allocation77_spill] sm:$0xff] %v7796_v19  ;;  %v7799_v47 = vadd.f32 %v7437_v45, %v1291_v57  ;;  %v7807_v22 = vadd.f32 %v7447_v62, %v1098_v31 }
 0x233   : > { %v1100_v16 = vpop.f32.mrf.mxu1  ;;  %v1293_v6 = vpop.f32.mrf.mxu0 }
 0x234   : > { %10549 = vst [vmem:[#allocation78_spill] sm:$0xff] %v7799_v47  ;;  %v7801_v35 = vpack.c.bf16 %v1100_v16, %v1096_v20  ;;  %v7804_v59 = vadd.f32 %v7432_v41, %v1293_v6  ;;  %10551 = vst [vmem:[#allocation80_spill] sm:$0xff] %v7807_v22 }
 0x235   : > { %v1102_v3 = vpop.f32.mrf.mxu1  ;;  %v1295_v23 = vpop.f32.mrf.mxu0 }
 0x236   : > { %10550 = vst [vmem:[#allocation79_spill] sm:$0xff] %v7804_v59  ;;  %v7810_v40 = vadd.f32 %v7447_v62, %v1102_v3  ;;  %2433 = vmatmul.mubr.bf16.gmra.mxu0 %v7801_v35  ;;  %v7816_v30 = vadd.f32 %v7437_v45, %v1295_v23 }
 0x237   : > { %v1106_v16 = vpop.f32.mrf.mxu1  ;;  %2442 = vmatprep.mubr.bf16.mxu0 %v10499_v56  ;;  %v1299_v6 = vpop.f32.mrf.mxu0 }
 0x238   : > { %10552 = vst [vmem:[#allocation81_spill] sm:$0xff] %v7810_v40  ;;  %10553 = vst [vmem:[#allocation82_spill] sm:$0xff] %v7816_v30  ;;  %v7826_v57 = vadd.f32 %v7432_v41, %v1299_v6 }
 0x239   : > { %v1108_v3 = vpop.f32.mrf.mxu1  ;;  %2546 = vmatmul.mubr.bf16.gmra.mxu1 %v7339_v37  ;;  %v1301_v14 = vpop.f32.mrf.mxu0 }
 0x23a   : > { %2555 = vmatprep.mubr.bf16.mxu1 %v7359_v58  ;;  %10554 = vst [vmem:[#allocation83_spill] sm:$0xff] %v7826_v57  ;;  %v7829_v23 = vadd.f32 %v7437_v45, %v1301_v14  ;;  %v7837_v37 = vadd.f32 %v7447_v62, %v1108_v3 }
 0x23b   : > { %v1110_v19 = vpop.f32.mrf.mxu1  ;;  %v1303_v59 = vpop.f32.mrf.mxu0 }
 0x23c   : > { %10555 = vst [vmem:[#allocation84_spill] sm:$0xff] %v7829_v23  ;;  %v7831_v50 = vpack.c.bf16 %v1110_v19, %v1106_v16  ;;  %v7834_v20 = vadd.f32 %v7432_v41, %v1303_v59  ;;  %10557 = vst [vmem:[#allocation86_spill] sm:$0xff] %v7837_v37 }
 0x23d   : > { %v1112_v31 = vpop.f32.mrf.mxu1  ;;  %v1305_v47 = vpop.f32.mrf.mxu0 }
 0x23e   : > { %10556 = vst [vmem:[#allocation85_spill] sm:$0xff] %v7834_v20  ;;  %v7840_v58 = vadd.f32 %v7447_v62, %v1112_v31  ;;  %2443 = vmatmul.mubr.bf16.gmra.mxu0 %v7831_v50  ;;  %v7846_v6 = vadd.f32 %v7437_v45, %v1305_v47 }
 0x23f   : > { %v1116_v19 = vpop.f32.mrf.mxu1  ;;  %2452 = vmatprep.mubr.bf16.mxu0 %v10499_v56  ;;  %v1309_v59 = vpop.f32.mrf.mxu0 }
 0x240   : > { %10558 = vst [vmem:[#allocation87_spill] sm:$0xff] %v7840_v58  ;;  %10559 = vst [vmem:[#allocation88_spill] sm:$0xff] %v7846_v6  ;;  %v7856_v14 = vadd.f32 %v7432_v41, %v1309_v59 }
 0x241   : > { %v1118_v31 = vpop.f32.mrf.mxu1  ;;  %2556 = vmatmul.mubr.bf16.gmra.mxu1 %v7355_v54  ;;  %v1311_v30 = vpop.f32.mrf.mxu0 }
 0x242   : > { %2565 = vmatprep.mubr.bf16.mxu1 %v7375_v10  ;;  %10560 = vst [vmem:[#allocation89_spill] sm:$0xff] %v7856_v14  ;;  %v7859_v47 = vadd.f32 %v7437_v45, %v1311_v30  ;;  %v7867_v54 = vadd.f32 %v7447_v62, %v1118_v31 }
 0x243   : > { %v1120_v57 = vpop.f32.mrf.mxu1  ;;  %v1313_v20 = vpop.f32.mrf.mxu0 }
 0x244   : > { %10561 = vst [vmem:[#allocation90_spill] sm:$0xff] %v7859_v47  ;;  %v7861_v22 = vpack.c.bf16 %v1120_v57, %v1116_v19  ;;  %v7864_v16 = vadd.f32 %v7432_v41, %v1313_v20  ;;  %10563 = vst [vmem:[#allocation92_spill] sm:$0xff] %v7867_v54 }
 0x245   : > { %v1122_v3 = vpop.f32.mrf.mxu1  ;;  %v1315_v23 = vpop.f32.mrf.mxu0 }
 0x246   : > { %10562 = vst [vmem:[#allocation91_spill] sm:$0xff] %v7864_v16  ;;  %v7870_v10 = vadd.f32 %v7447_v62, %v1122_v3  ;;  %2453 = vmatmul.mubr.bf16.gmra.mxu0 %v7861_v22  ;;  %v7876_v59 = vadd.f32 %v7437_v45, %v1315_v23 }
 0x247   : > { %v1126_v57 = vpop.f32.mrf.mxu1  ;;  %2462 = vmatprep.mubr.bf16.mxu0 %v10499_v56  ;;  %v1319_v20 = vpop.f32.mrf.mxu0 }
 0x248   : > { %10564 = vst [vmem:[#allocation93_spill] sm:$0xff] %v7870_v10  ;;  %10565 = vst [vmem:[#allocation94_spill] sm:$0xff] %v7876_v59  ;;  %v7886_v30 = vadd.f32 %v7432_v41, %v1319_v20 }
 0x249   : > { %v1128_v3 = vpop.f32.mrf.mxu1  ;;  %2566 = vmatmul.mubr.bf16.gmra.mxu1 %v7371_v2  ;;  %v1321_v6 = vpop.f32.mrf.mxu0 }
 0x24a   : > { %2575 = vmatprep.mubr.bf16.mxu1 %v7391_v33  ;;  %10566 = vst [vmem:[#allocation95_spill] sm:$0xff] %v7886_v30  ;;  %v7889_v23 = vadd.f32 %v7437_v45, %v1321_v6  ;;  %v7897_v2 = vadd.f32 %v7447_v62, %v1128_v3 }
 0x24b   : > { %v1130_v14 = vpop.f32.mrf.mxu1  ;;  %v1323_v16 = vpop.f32.mrf.mxu0 }
 0x24c   : > { %10567 = vst [vmem:[#allocation96_spill] sm:$0xff] %v7889_v23  ;;  %v7891_v37 = vpack.c.bf16 %v1130_v14, %v1126_v57  ;;  %v7894_v19 = vadd.f32 %v7432_v41, %v1323_v16  ;;  %10569 = vst [vmem:[#allocation98_spill] sm:$0xff] %v7897_v2 }
 0x24d   : > { %v1132_v31 = vpop.f32.mrf.mxu1  ;;  %v1325_v47 = vpop.f32.mrf.mxu0 }
 0x24e   : > { %10568 = vst [vmem:[#allocation97_spill] sm:$0xff] %v7894_v19  ;;  %v7900_v33 = vadd.f32 %v7447_v62, %v1132_v31  ;;  %2463 = vmatmul.mubr.bf16.gmra.mxu0 %v7891_v37  ;;  %v7906_v20 = vadd.f32 %v7437_v45, %v1325_v47 }
 0x24f   : > { %v1136_v14 = vpop.f32.mrf.mxu1  ;;  %2472 = vmatprep.mubr.bf16.mxu0 %v10499_v56  ;;  %v1329_v16 = vpop.f32.mrf.mxu0 }
 0x250   : > { %10570 = vst [vmem:[#allocation99_spill] sm:$0xff] %v7900_v33  ;;  %10571 = vst [vmem:[#allocation100_spill] sm:$0xff] %v7906_v20  ;;  %v7916_v6 = vadd.f32 %v7432_v41, %v1329_v16 }
 0x251   : > { %v1138_v31 = vpop.f32.mrf.mxu1  ;;  %2576 = vmatmul.mubr.bf16.gmra.mxu1 %v7387_v25  ;;  %v1331_v59 = vpop.f32.mrf.mxu0 }
 0x252   : > { %2585 = vmatprep.mubr.bf16.mxu1 %v7407_v61  ;;  %10572 = vst [vmem:[#allocation101_spill] sm:$0xff] %v7916_v6  ;;  %v7919_v47 = vadd.f32 %v7437_v45, %v1331_v59  ;;  %v7927_v25 = vadd.f32 %v7447_v62, %v1138_v31 }
 0x253   : > { %v1140_v30 = vpop.f32.mrf.mxu1  ;;  %v1333_v19 = vpop.f32.mrf.mxu0 }
 0x254   : > { %10573 = vst [vmem:[#allocation102_spill] sm:$0xff] %v7919_v47  ;;  %v7921_v54 = vpack.c.bf16 %v1140_v30, %v1136_v14  ;;  %v7924_v57 = vadd.f32 %v7432_v41, %v1333_v19  ;;  %10575 = vst [vmem:[#allocation104_spill] sm:$0xff] %v7927_v25 }
 0x255   : > { %v1142_v3 = vpop.f32.mrf.mxu1  ;;  %v1335_v23 = vpop.f32.mrf.mxu0 }
 0x256   : > { %10574 = vst [vmem:[#allocation103_spill] sm:$0xff] %v7924_v57  ;;  %v7930_v61 = vadd.f32 %v7447_v62, %v1142_v3  ;;  %2473 = vmatmul.mubr.bf16.gmra.mxu0 %v7921_v54  ;;  %v7936_v16 = vadd.f32 %v7437_v45, %v1335_v23 }
 0x257   : > { %v1146_v30 = vpop.f32.mrf.mxu1  ;;  %2482 = vmatprep.mubr.bf16.mxu0 %v10499_v56  ;;  %v1339_v19 = vpop.f32.mrf.mxu0 }
 0x258   : > { %10576 = vst [vmem:[#allocation105_spill] sm:$0xff] %v7930_v61  ;;  %10577 = vst [vmem:[#allocation106_spill] sm:$0xff] %v7936_v16  ;;  %v7946_v59 = vadd.f32 %v7432_v41, %v1339_v19 }
 0x259   : > { %v1148_v3 = vpop.f32.mrf.mxu1  ;;  %2586 = vmatmul.mubr.bf16.gmra.mxu1 %v7403_v55  ;;  %v1341_v20 = vpop.f32.mrf.mxu0 }
 0x25a   : > { %2595 = vmatprep.mubr.bf16.mxu1 %v7428_v38  ;;  %10578 = vst [vmem:[#allocation107_spill] sm:$0xff] %v7946_v59  ;;  %v7949_v23 = vadd.f32 %v7437_v45, %v1341_v20  ;;  %v7957_v55 = vadd.f32 %v7447_v62, %v1148_v3 }
 0x25b   : > { %v1150_v6 = vpop.f32.mrf.mxu1  ;;  %v1343_v57 = vpop.f32.mrf.mxu0 }
 0x25c   : > { %10579 = vst [vmem:[#allocation108_spill] sm:$0xff] %v7949_v23  ;;  %v7951_v2 = vpack.c.bf16 %v1150_v6, %v1146_v30  ;;  %v7954_v14 = vadd.f32 %v7432_v41, %v1343_v57  ;;  %10581 = vst [vmem:[#allocation110_spill] sm:$0xff] %v7957_v55 }
 0x25d   : > { %v1152_v31 = vpop.f32.mrf.mxu1  ;;  %v1345_v47 = vpop.f32.mrf.mxu0 }
 0x25e   : > { %10580 = vst [vmem:[#allocation109_spill] sm:$0xff] %v7954_v14  ;;  %v7960_v38 = vadd.f32 %v7447_v62, %v1152_v31  ;;  %2483 = vmatmul.mubr.bf16.gmra.mxu0 %v7951_v2  ;;  %v7966_v19 = vadd.f32 %v7437_v45, %v1345_v47 }
 0x25f   : > { %2718 = vmatprep.mubr.bf16.mxu0 %v10499_v56 }
 0x260   : > { %10582 = vst [vmem:[#allocation111_spill] sm:$0xff] %v7960_v38  ;;  %10583 = vst [vmem:[#allocation112_spill] sm:$0xff] %v7966_v19 }
 0x261   : > { %2596 = vmatmul.mubr.bf16.gmra.mxu1 %v7423_v27 }
 0x262   : > { %2605 = vmatprep.mubr.bf16.mxu1 %v7442_v52 }
 0x266   : > { %2719 = vmatmul.mubr.bf16.vlgmr.msra.gmra.mxu0 %v7459_v17 }
 0x267   : > { %2728 = vmatprep.mubr.bf16.mxu0 %v10499_v56 }
 0x269   : > { %v2141_v62 = vpop.f32.mrf.mxu1  ;;  %2606 = vmatmul.mubr.bf16.gmra.mxu1 %v7305_v4 }
 0x26a   : > { %2615 = vmatprep.mubr.bf16.mxu1 %v7481_v11 }
 0x26b   : > { %v7979_v45 = vpop.f32.mrf.mxu1 }
 0x26d   : > { %v7981_v57 = vpop.f32.mrf.mxu1 }
 0x26e   : > { %2729 = vmatmul.mubr.bf16.gmra.mxu0 %v7497_v12 }
 0x26f   : > { %v7984_v47 = vpop.f32.mrf.mxu1  ;;  %2738 = vmatprep.mubr.bf16.mxu0 %v10499_v56 }
 0x271   : > { %v7987_v27 = vpop.f32.mrf.mxu1  ;;  %2616 = vmatmul.mubr.bf16.gmra.mxu1 %v7321_v21 }
 0x272   : > { %2625 = vmatprep.mubr.bf16.mxu1 %v7519_v46 }
 0x273   : > { %v7991_v52 = vpop.f32.mrf.mxu1 }
 0x275   : > { %v7993_v4 = vpop.f32.mrf.mxu1 }
 0x276   : > { %2739 = vmatmul.mubr.bf16.gmra.mxu0 %v7535_v49 }
 0x277   : > { %v7996_v17 = vpop.f32.mrf.mxu1  ;;  %2748 = vmatprep.mubr.bf16.mxu0 %v10499_v56 }
 0x279   : > { %v7999_v12 = vpop.f32.mrf.mxu1  ;;  %2626 = vmatmul.mubr.bf16.gmra.mxu1 %v7337_v36 }
 0x27a   : > { %2635 = vmatprep.mubr.bf16.mxu1 %v7557_v13 }
 0x27b   : > { %v8003_v11 = vpop.f32.mrf.mxu1 }
 0x27d   : > { %v8005_v21 = vpop.f32.mrf.mxu1 }
 0x27e   : > { %2749 = vmatmul.mubr.bf16.gmra.mxu0 %v7573_v0 }
 0x27f   : > { %v8008_v46 = vpop.f32.mrf.mxu1  ;;  %2758 = vmatprep.mubr.bf16.mxu0 %v10499_v56 }
 0x281   : > { %v8011_v49 = vpop.f32.mrf.mxu1  ;;  %2636 = vmatmul.mubr.bf16.gmra.mxu1 %v7353_v53 }
 0x282   : > { %2645 = vmatprep.mubr.bf16.mxu1 %v7595_v48 }
 0x283   : > { %v8015_v30 = vpop.f32.mrf.mxu1 }
 0x285   : > { %v8017_v36 = vpop.f32.mrf.mxu1 }
 0x286   : > { %2759 = vmatmul.mubr.bf16.gmra.mxu0 %v7609_v34 }
 0x287   : > { %v8020_v13 = vpop.f32.mrf.mxu1  ;;  %2768 = vmatprep.mubr.bf16.mxu0 %v10499_v56 }
 0x289   : > { %v8023_v0 = vpop.f32.mrf.mxu1  ;;  %2646 = vmatmul.mubr.bf16.gmra.mxu1 %v7369_v63 }
 0x28a   : > { %2655 = vmatprep.mubr.bf16.mxu1 %v7629_v1 }
 0x28b   : > { %v8027_v31 = vpop.f32.mrf.mxu1 }
 0x28d   : > { %v8029_v53 = vpop.f32.mrf.mxu1 }
 0x28e   : > { %2769 = vmatmul.mubr.bf16.gmra.mxu0 %v7643_v7 }
 0x28f   : > { %v8032_v48 = vpop.f32.mrf.mxu1  ;;  %2778 = vmatprep.mubr.bf16.mxu0 %v10499_v56 }
 0x291   : > { %v8035_v34 = vpop.f32.mrf.mxu1  ;;  %2656 = vmatmul.mubr.bf16.gmra.mxu1 %v7385_v29 }
 0x292   : > { %2665 = vmatprep.mubr.bf16.mxu1 %v7663_v32  ;;  %v8055_v32 = vld [vmem:[#allocation8] sm:$0xf] }
 0x293   : > { %v8039_v3 = vpop.f32.mrf.mxu1 }
 0x295   : > { %v8041_v63 = vpop.f32.mrf.mxu1 }
 0x296   : > { %2779 = vmatmul.mubr.bf16.gmra.mxu0 %v7677_v39  ;;  %v10584_v39 = vsub.s32 0, %v7412_v42 }
 0x297   : > { %v8044_v1 = vpop.f32.mrf.mxu1  ;;  %2788 = vmatprep.mubr.bf16.mxu0 %v10499_v56 }
 0x298   : > { %v8064_v41 = vrot.slane %v8055_v32, %v10584_v39 }
 0x299   : > { %v8047_v7 = vpop.f32.mrf.mxu1  ;;  %2666 = vmatmul.mubr.bf16.gmra.mxu1 %v7401_v51 }
 0x29a   : > { %2675 = vmatprep.mubr.bf16.mxu1 %v7697_v60  ;;  %v10585_v60 = vsub.s32 1, %v7412_v42  ;;  %v2146_v55 = vadd.f32 %v7981_v57, %v8064_v41 }
 0x29b   : > { %v8051_v6 = vpop.f32.mrf.mxu1 }
 0x29c   : > { %v8072_v23 = vrot.slane %v8055_v32, %v10585_v60 }
 0x29d   : > { %v8053_v29 = vpop.f32.mrf.mxu1 }
 0x29e   : > { %2789 = vmatmul.mubr.bf16.gmra.mxu0 %v7711_v9  ;;  %v2142_v9 = vadd.f32 %v2141_v62, %v8064_v41  ;;  %v2144_v39 = vadd.f32 %v7979_v45, %v8072_v23 }
 0x29f   : > { %v8058_v20 = vpop.f32.mrf.mxu1  ;;  %2798 = vmatprep.mubr.bf16.mxu0 %v10499_v56 }
 0x2a1   : > { %v8066_v51 = vpop.f32.mrf.mxu1  ;;  %2676 = vmatmul.mubr.bf16.gmra.mxu1 %v7421_v15 }
 0x2a3   : > { %v8074_v19 = vpop.f32.mrf.mxu1 }
 0x2a5   : > { %v8077_v16 = vpop.f32.mrf.mxu1 }
 0x2a6   : > { %v2334_v59 = vpop.f32.mrf.mxu0  ;;  %2799 = vmatmul.mubr.bf16.gmra.mxu0 %v7741_v26  ;;  %v2148_v26 = vadd.f32 %v7984_v47, %v8072_v23  ;;  %v2156_v47 = vadd.f32 %v7993_v4, %v8064_v41 }
 0x2a7   : > { %v8082_v14 = vadd.f32 %v2334_v59, %v2142_v9  ;;  %v8084_v15 = vpop.f32.mrf.mxu1  ;;  %2808 = vmatprep.mubr.bf16.mxu0 %v10499_v56  ;;  %v2152_v9 = vadd.f32 %v7987_v27, %v8064_v41 }
 0x2a8   : > { %v2336_v60 = vpop.f32.mrf.mxu0 }
 0x2a9   : > { %10586 = vst [vmem:[#allocation113_spill] sm:$0xff] %v8082_v14  ;;  %v8089_v38 = vadd.f32 %v2336_v60, %v2144_v39  ;;  %v8091_v62 = vpop.f32.mrf.mxu1  ;;  %v2154_v39 = vadd.f32 %v7991_v52, %v8072_v23 }
 0x2aa   : > { %v2338_v25 = vpop.f32.mrf.mxu0 }
 0x2ab   : > { %10587 = vst [vmem:[#allocation114_spill] sm:$0xff] %v8089_v38  ;;  %v8095_v61 = vadd.f32 %v2338_v25, %v2146_v55  ;;  %v8097_v59 = vpop.f32.mrf.mxu1 }
 0x2ac   : > { %v2340_v45 = vpop.f32.mrf.mxu0 }
 0x2ad   : > { %10588 = vst [vmem:[#allocation115_spill] sm:$0xff] %v8095_v61  ;;  %v8101_v33 = vadd.f32 %v2340_v45, %v2148_v26  ;;  %v8103_v10 = vpop.f32.mrf.mxu1 }
 0x2ae   : > { %v2344_v57 = vpop.f32.mrf.mxu0  ;;  %2809 = vmatmul.mubr.bf16.gmra.mxu0 %v7771_v18  ;;  %v2158_v18 = vadd.f32 %v7996_v17, %v8072_v23 }
 0x2af   : > { %10589 = vst [vmem:[#allocation116_spill] sm:$0xff] %v8101_v33  ;;  %v8108_v60 = vadd.f32 %v2344_v57, %v2152_v9  ;;  %v8110_v25 = vpop.f32.mrf.mxu1  ;;  %2818 = vmatprep.mubr.bf16.mxu0 %v10499_v56  ;;  %v2162_v57 = vadd.f32 %v7999_v12, %v8064_v41  ;;  %v2166_v12 = vadd.f32 %v8005_v21, %v8064_v41 }
 0x2b0   : > { %10591 = vst [vmem:[#allocation118_spill] sm:$0xff] %v8110_v25  ;;  %v2346_v55 = vpop.f32.mrf.mxu0 }
 0x2b1   : > { %10590 = vst [vmem:[#allocation117_spill] sm:$0xff] %v8108_v60  ;;  %v8115_v27 = vadd.f32 %v2346_v55, %v2154_v39  ;;  %v8117_v26 = vpop.f32.mrf.mxu1  ;;  %v2164_v39 = vadd.f32 %v8003_v11, %v8072_v23 }
 0x2b2   : > { %v2348_v45 = vpop.f32.mrf.mxu0 }
 0x2b3   : > { %10592 = vst [vmem:[#allocation119_spill] sm:$0xff] %v8115_v27  ;;  %v8121_v58 = vadd.f32 %v2348_v45, %v2156_v47  ;;  %v8123_v52 = vpop.f32.mrf.mxu1 }
 0x2b4   : > { %v2350_v9 = vpop.f32.mrf.mxu0 }
 0x2b5   : > { %10593 = vst [vmem:[#allocation120_spill] sm:$0xff] %v8121_v58  ;;  %v8127_v40 = vadd.f32 %v2350_v9, %v2158_v18  ;;  %v8129_v5 = vpop.f32.mrf.mxu1 }
 0x2b6   : > { %v2354_v4 = vpop.f32.mrf.mxu0  ;;  %2819 = vmatmul.mubr.bf16.gmra.mxu0 %v7801_v35  ;;  %v2168_v35 = vadd.f32 %v8008_v46, %v8072_v23 }
 0x2b7   : > { %10594 = vst [vmem:[#allocation121_spill] sm:$0xff] %v8127_v40  ;;  %v8134_v55 = vadd.f32 %v2354_v4, %v2162_v57  ;;  %v8136_v17 = vpop.f32.mrf.mxu1  ;;  %2828 = vmatprep.mubr.bf16.mxu0 %v10499_v56  ;;  %v2172_v4 = vadd.f32 %v8011_v49, %v8064_v41  ;;  %v2176_v49 = vadd.f32 %v8017_v36, %v8064_v41 }
 0x2b8   : > { %10596 = vst [vmem:[#allocation123_spill] sm:$0xff] %v8136_v17  ;;  %v2356_v47 = vpop.f32.mrf.mxu0 }
 0x2b9   : > { %10595 = vst [vmem:[#allocation122_spill] sm:$0xff] %v8134_v55  ;;  %v8141_v45 = vadd.f32 %v2356_v47, %v2164_v39  ;;  %v8143_v18 = vpop.f32.mrf.mxu1  ;;  %v2174_v39 = vadd.f32 %v8015_v30, %v8072_v23 }
 0x2ba   : > { %v2358_v9 = vpop.f32.mrf.mxu0 }
 0x2bb   : > { %10597 = vst [vmem:[#allocation124_spill] sm:$0xff] %v8141_v45  ;;  %v8147_v24 = vadd.f32 %v2358_v9, %v2166_v12  ;;  %v8149_v11 = vpop.f32.mrf.mxu1 }
 0x2bc   : > { %v2360_v57 = vpop.f32.mrf.mxu0 }
 0x2bd   : > { %10598 = vst [vmem:[#allocation125_spill] sm:$0xff] %v8147_v24  ;;  %v8153_v28 = vadd.f32 %v2360_v57, %v2168_v35  ;;  %v8155_v43 = vpop.f32.mrf.mxu1 }
 0x2be   : > { %v2364_v21 = vpop.f32.mrf.mxu0  ;;  %2829 = vmatmul.mubr.bf16.gmra.mxu0 %v7831_v50  ;;  %v2178_v50 = vadd.f32 %v8020_v13, %v8072_v23 }
 0x2bf   : > { %10599 = vst [vmem:[#allocation126_spill] sm:$0xff] %v8153_v28  ;;  %v8160_v47 = vadd.f32 %v2364_v21, %v2172_v4  ;;  %v8162_v46 = vpop.f32.mrf.mxu1  ;;  %2838 = vmatprep.mubr.bf16.mxu0 %v10499_v56  ;;  %v2182_v21 = vadd.f32 %v8023_v0, %v8064_v41  ;;  %v2186_v0 = vadd.f32 %v8029_v53, %v8064_v41 }
 0x2c0   : > { %10601 = vst [vmem:[#allocation128_spill] sm:$0xff] %v8162_v46  ;;  %v2366_v12 = vpop.f32.mrf.mxu0  ;;  %v2194_v53 = vadd.f32 %v8039_v3, %v8072_v23 }
 0x2c1   : > { %10600 = vst [vmem:[#allocation127_spill] sm:$0xff] %v8160_v47  ;;  %v8167_v9 = vadd.f32 %v2366_v12, %v2174_v39  ;;  %v8169_v35 = vpop.f32.mrf.mxu1  ;;  %v2184_v39 = vadd.f32 %v8027_v31, %v8072_v23 }
 0x2c2   : > { %v2368_v57 = vpop.f32.mrf.mxu0 }
 0x2c3   : > { %10602 = vst [vmem:[#allocation129_spill] sm:$0xff] %v8167_v9  ;;  %v8173_v44 = vadd.f32 %v2368_v57, %v2176_v49  ;;  %v8175_v30 = vpop.f32.mrf.mxu1 }
 0x2c4   : > { %v2370_v4 = vpop.f32.mrf.mxu0 }
 0x2c5   : > { %10603 = vst [vmem:[#allocation130_spill] sm:$0xff] %v8173_v44  ;;  %v8179_v8 = vadd.f32 %v2370_v4, %v2178_v50  ;;  %v8181_v25 = vpop.f32.mrf.mxu1 }
 0x2c6   : > { %v2374_v36 = vpop.f32.mrf.mxu0  ;;  %2839 = vmatmul.mubr.bf16.gmra.mxu0 %v7861_v22 }
 0x2c7   : > { %10604 = vst [vmem:[#allocation131_spill] sm:$0xff] %v8179_v8  ;;  %v8186_v12 = vadd.f32 %v2374_v36, %v2182_v21  ;;  %v8188_v13 = vpop.f32.mrf.mxu1  ;;  %2848 = vmatprep.mubr.bf16.mxu0 %v10499_v56  ;;  %v2192_v21 = vadd.f32 %v8035_v34, %v8064_v41 }
 0x2c8   : > { %10606 = vst [vmem:[#allocation133_spill] sm:$0xff] %v8188_v13  ;;  %v2376_v49 = vpop.f32.mrf.mxu0 }
 0x2c9   : > { %10605 = vst [vmem:[#allocation132_spill] sm:$0xff] %v8186_v12  ;;  %v8193_v57 = vadd.f32 %v2376_v49, %v2184_v39  ;;  %v8195_v50 = vpop.f32.mrf.mxu1 }
 0x2ca   : > { %v2378_v4 = vpop.f32.mrf.mxu0 }
 0x2cb   : > { %10607 = vst [vmem:[#allocation134_spill] sm:$0xff] %v8193_v57  ;;  %v8197_v17 = vadd.f32 %v2378_v4, %v2186_v0  ;;  %v8199_v22 = vpop.f32.mrf.mxu1  ;;  %v2196_v4 = vadd.f32 %v8041_v63, %v8064_v41  ;;  %v2204_v63 = vadd.f32 %v8051_v6, %v8072_v23 }
 0x2cc   : > { %v8201_v31 = vpop.f32.mrf.mxu0 }
 0x2cd   : > { %10608 = vst [vmem:[#allocation135_spill] sm:$0xff] %v8197_v17  ;;  %v8205_v36 = vpop.f32.mrf.mxu1 }
 0x2ce   : > { %v2384_v13 = vpop.f32.mrf.mxu0  ;;  %2849 = vmatmul.mubr.bf16.gmra.mxu0 %v7891_v37 }
 0x2cf   : > { %v8210_v39 = vadd.f32 %v2384_v13, %v2192_v21  ;;  %v8212_v49 = vpop.f32.mrf.mxu1  ;;  %2858 = vmatprep.mubr.bf16.mxu0 %v10499_v56  ;;  %v2202_v13 = vadd.f32 %v8047_v7, %v8064_v41 }
 0x2d0   : > { %10610 = vst [vmem:[#allocation137_spill] sm:$0xff] %v8212_v49  ;;  %v2386_v0 = vpop.f32.mrf.mxu0 }
 0x2d1   : > { %10609 = vst [vmem:[#allocation136_spill] sm:$0xff] %v8210_v39  ;;  %v8217_v46 = vadd.f32 %v2386_v0, %v2194_v53  ;;  %v8219_v34 = vpop.f32.mrf.mxu1 }
 0x2d2   : > { %v2388_v14 = vpop.f32.mrf.mxu0 }
 0x2d3   : > { %10611 = vst [vmem:[#allocation138_spill] sm:$0xff] %v8217_v46  ;;  %v8221_v38 = vadd.f32 %v2388_v14, %v2196_v4  ;;  %v8223_v37 = vpop.f32.mrf.mxu1  ;;  %v2206_v4 = vadd.f32 %v8053_v29, %v8064_v41  ;;  %v2214_v29 = vadd.f32 %v8074_v19, %v8072_v23  ;;  %v2222_v19 = vadd.f32 %v8091_v62, %v8064_v41 }
 0x2d4   : > { %v8225_v3 = vpop.f32.mrf.mxu0 }
 0x2d5   : > { %10612 = vst [vmem:[#allocation139_spill] sm:$0xff] %v8221_v38  ;;  %v8229_v21 = vpop.f32.mrf.mxu1 }
 0x2d6   : > { %v2394_v49 = vpop.f32.mrf.mxu0  ;;  %2859 = vmatmul.mubr.bf16.gmra.mxu0 %v7921_v54 }
 0x2d7   : > { %v8234_v53 = vadd.f32 %v2394_v49, %v2202_v13  ;;  %v8236_v0 = vpop.f32.mrf.mxu1  ;;  %2868 = vmatprep.mubr.bf16.mxu0 %v10499_v56  ;;  %v2212_v49 = vadd.f32 %v8066_v51, %v8064_v41 }
 0x2d8   : > { %10614 = vst [vmem:[#allocation141_spill] sm:$0xff] %v8236_v0  ;;  %v2396_v14 = vpop.f32.mrf.mxu0 }
 0x2d9   : > { %10613 = vst [vmem:[#allocation140_spill] sm:$0xff] %v8234_v53  ;;  %v8241_v60 = vadd.f32 %v2396_v14, %v2204_v63  ;;  %v8243_v7 = vpop.f32.mrf.mxu1 }
 0x2da   : > { %v2398_v27 = vpop.f32.mrf.mxu0 }
 0x2db   : > { %10615 = vst [vmem:[#allocation142_spill] sm:$0xff] %v8241_v60  ;;  %v8245_v55 = vadd.f32 %v2398_v27, %v2206_v4  ;;  %v8247_v54 = vpop.f32.mrf.mxu1  ;;  %v2216_v4 = vadd.f32 %v8077_v16, %v8064_v41  ;;  %v2224_v16 = vadd.f32 %v8097_v59, %v8072_v23  ;;  %v2232_v59 = vadd.f32 %v8117_v26, %v8064_v41 }
 0x2dc   : > { %v8249_v6 = vpop.f32.mrf.mxu0 }
 0x2dd   : > { %10616 = vst [vmem:[#allocation143_spill] sm:$0xff] %v8245_v55  ;;  %v8253_v13 = vpop.f32.mrf.mxu1 }
 0x2de   : > { %v2404_v56 = vpop.f32.mrf.mxu0  ;;  %2869 = vmatmul.mubr.bf16.gmra.mxu0 %v7951_v2 }
 0x2df   : > { %v8258_v63 = vadd.f32 %v2404_v56, %v2212_v49  ;;  %v8260_v14 = vpop.f32.mrf.mxu1 }
 0x2e0   : > { %10618 = vst [vmem:[#allocation145_spill] sm:$0xff] %v8260_v14  ;;  %v2406_v27 = vpop.f32.mrf.mxu0 }
 0x2e1   : > { %10617 = vst [vmem:[#allocation144_spill] sm:$0xff] %v8258_v63  ;;  %v8264_v0 = vadd.f32 %v2406_v27, %v2214_v29  ;;  %v8266_v45 = vpop.f32.mrf.mxu1 }
 0x2e2   : > { %v2408_v51 = vpop.f32.mrf.mxu0 }
 0x2e3   : > { %10619 = vst [vmem:[#allocation146_spill] sm:$0xff] %v8264_v0  ;;  %v8268_v61 = vadd.f32 %v2408_v51, %v2216_v4  ;;  %v8270_v33 = vpop.f32.mrf.mxu1  ;;  %v2226_v4 = vadd.f32 %v8103_v10, %v8064_v41  ;;  %v2234_v10 = vadd.f32 %v8123_v52, %v8072_v23  ;;  %v2242_v52 = vadd.f32 %v8143_v18, %v8064_v41 }
 0x2e4   : > { %v8272_v2 = vpop.f32.mrf.mxu0 }
 0x2e5   : > { %10620 = vst [vmem:[#allocation147_spill] sm:$0xff] %v8268_v61  ;;  %v8276_v49 = vpop.f32.mrf.mxu1 }
 0x2e6   : > { %v2414_v56 = vpop.f32.mrf.mxu0 }
 0x2e7   : > { %v8280_v29 = vadd.f32 %v2414_v56, %v2222_v19  ;;  %v8282_v27 = vpop.f32.mrf.mxu1 }
 0x2e8   : > { %10622 = vst [vmem:[#allocation149_spill] sm:$0xff] %v8282_v27  ;;  %v2416_v14 = vpop.f32.mrf.mxu0 }
 0x2e9   : > { %10621 = vst [vmem:[#allocation148_spill] sm:$0xff] %v8280_v29  ;;  %v8286_v51 = vadd.f32 %v2416_v14, %v2224_v16  ;;  %v8288_v47 = vpop.f32.mrf.mxu1 }
 0x2ea   : > { %v2418_v9 = vpop.f32.mrf.mxu0 }
 0x2eb   : > { %10623 = vst [vmem:[#allocation150_spill] sm:$0xff] %v8286_v51  ;;  %v8290_v62 = vadd.f32 %v2418_v9, %v2226_v4  ;;  %v8292_v58 = vpop.f32.mrf.mxu1  ;;  %v2236_v9 = vadd.f32 %v8129_v5, %v8064_v41  ;;  %v2244_v5 = vadd.f32 %v8149_v11, %v8072_v23  ;;  %v2252_v11 = vadd.f32 %v8169_v35, %v8064_v41 }
 0x2ec   : > { %v8294_v40 = vpop.f32.mrf.mxu0 }
 0x2ed   : > { %10624 = vst [vmem:[#allocation151_spill] sm:$0xff] %v8290_v62  ;;  %10625 = vst [vmem:[#allocation152_spill] sm:$0xff] %v8294_v40  ;;  %v8298_v19 = vpop.f32.mrf.mxu1 }
 0x2ee   : > { %v2424_v56 = vpop.f32.mrf.mxu0 }
 0x2ef   : > { %v8302_v14 = vadd.f32 %v2424_v56, %v2232_v59  ;;  %v8304_v16 = vpop.f32.mrf.mxu1 }
 0x2f0   : > { %10627 = vst [vmem:[#allocation154_spill] sm:$0xff] %v8304_v16  ;;  %v2426_v29 = vpop.f32.mrf.mxu0 }
 0x2f1   : > { %10626 = vst [vmem:[#allocation153_spill] sm:$0xff] %v8302_v14  ;;  %v8308_v4 = vadd.f32 %v2426_v29, %v2234_v10  ;;  %v8310_v62 = vpop.f32.mrf.mxu1 }
 0x2f2   : > { %v2428_v40 = vpop.f32.mrf.mxu0 }
 0x2f3   : > { %10628 = vst [vmem:[#allocation155_spill] sm:$0xff] %v8308_v4  ;;  %v8312_v26 = vadd.f32 %v2428_v40, %v2236_v9  ;;  %v8314_v51 = vpop.f32.mrf.mxu1  ;;  %v2246_v40 = vadd.f32 %v8155_v43, %v8064_v41  ;;  %v2254_v43 = vadd.f32 %v8175_v30, %v8072_v23  ;;  %v2262_v30 = vadd.f32 %v8195_v50, %v8064_v41 }
 0x2f4   : > { %v8316_v27 = vpop.f32.mrf.mxu0 }
 0x2f5   : > { %10629 = vst [vmem:[#allocation156_spill] sm:$0xff] %v8312_v26  ;;  %10630 = vst [vmem:[#allocation157_spill] sm:$0xff] %v8316_v27  ;;  %v8320_v59 = vpop.f32.mrf.mxu1 }
 0x2f6   : > { %v2434_v56 = vpop.f32.mrf.mxu0 }
 0x2f7   : > { %v8324_v29 = vadd.f32 %v2434_v56, %v2242_v52  ;;  %v8326_v10 = vpop.f32.mrf.mxu1 }
 0x2f8   : > { %10632 = vst [vmem:[#allocation159_spill] sm:$0xff] %v8326_v10  ;;  %v2436_v14 = vpop.f32.mrf.mxu0 }
 0x2f9   : > { %10631 = vst [vmem:[#allocation158_spill] sm:$0xff] %v8324_v29  ;;  %v8330_v9 = vadd.f32 %v2436_v14, %v2244_v5  ;;  %v8332_v26 = vpop.f32.mrf.mxu1 }
 0x2fa   : > { %10634 = vst [vmem:[#allocation161_spill] sm:$0xff] %v8332_v26  ;;  %v2438_v27 = vpop.f32.mrf.mxu0 }
 0x2fb   : > { %10633 = vst [vmem:[#allocation160_spill] sm:$0xff] %v8330_v9  ;;  %v8334_v18 = vadd.f32 %v2438_v27, %v2246_v40  ;;  %v8336_v4 = vpop.f32.mrf.mxu1  ;;  %v2256_v27 = vadd.f32 %v8181_v25, %v8064_v41  ;;  %v2264_v25 = vadd.f32 %v8199_v22, %v8072_v23  ;;  %v2272_v22 = vadd.f32 %v8219_v34, %v8064_v41 }
 0x2fc   : > { %10636 = vst [vmem:[#allocation163_spill] sm:$0xff] %v8336_v4  ;;  %v8338_v16 = vpop.f32.mrf.mxu0 }
 0x2fd   : > { %10635 = vst [vmem:[#allocation162_spill] sm:$0xff] %v8334_v18  ;;  %10637 = vst [vmem:[#allocation164_spill] sm:$0xff] %v8338_v16  ;;  %v8342_v52 = vpop.f32.mrf.mxu1 }
 0x2fe   : > { %v2444_v56 = vpop.f32.mrf.mxu0 }
 0x2ff   : > { %v8346_v14 = vadd.f32 %v2444_v56, %v2252_v11  ;;  %v8348_v5 = vpop.f32.mrf.mxu1 }
 0x300   : > { %10639 = vst [vmem:[#allocation166_spill] sm:$0xff] %v8348_v5  ;;  %v2446_v29 = vpop.f32.mrf.mxu0  ;;  %v2198_v5 = vadd.f32 %v8044_v1, %v8072_v23  ;;  %v2218_v1 = vadd.f32 %v8084_v15, %v8072_v23  ;;  %v2914_v15 = vmax.f32 %v8173_v44, %v8179_v8  ;;  %v2929_v8 = vmax.f32 %v8210_v39, %v8217_v46 }
 0x301   : > { %10638 = vst [vmem:[#allocation165_spill] sm:$0xff] %v8346_v14  ;;  %v8352_v40 = vadd.f32 %v2446_v29, %v2254_v43  ;;  %v8354_v18 = vpop.f32.mrf.mxu1 }
 0x302   : > { %10641 = vst [vmem:[#allocation168_spill] sm:$0xff] %v8354_v18  ;;  %v2448_v16 = vpop.f32.mrf.mxu0  ;;  %v2188_v18 = vadd.f32 %v8032_v48, %v8072_v23  ;;  %v2939_v48 = vmax.f32 %v8234_v53, %v8241_v60 }
 0x303   : > { %10640 = vst [vmem:[#allocation167_spill] sm:$0xff] %v8352_v40  ;;  %v8356_v35 = vadd.f32 %v2448_v16, %v2256_v27  ;;  %v8358_v9 = vpop.f32.mrf.mxu1  ;;  %v2266_v16 = vadd.f32 %v8205_v36, %v8064_v41  ;;  %v2274_v36 = vadd.f32 %v8223_v37, %v8072_v23  ;;  %v2282_v37 = vadd.f32 %v8243_v7, %v8064_v41 }
 0x304   : > { %10643 = vst [vmem:[#allocation170_spill] sm:$0xff] %v8358_v9  ;;  %v8360_v4 = vpop.f32.mrf.mxu0 }
 0x305   : > { %10642 = vst [vmem:[#allocation169_spill] sm:$0xff] %v8356_v35  ;;  %10644 = vst [vmem:[#allocation171_spill] sm:$0xff] %v8360_v4  ;;  %v8364_v11 = vpop.f32.mrf.mxu1 }
 0x306   : > { %v2454_v56 = vpop.f32.mrf.mxu0 }
 0x307   : > { %v8368_v29 = vadd.f32 %v2454_v56, %v2262_v30  ;;  %v8370_v43 = vpop.f32.mrf.mxu1 }
 0x308   : > { %v2456_v14 = vpop.f32.mrf.mxu0 }
 0x309   : > { %10645 = vst [vmem:[#allocation172_spill] sm:$0xff] %v8368_v29  ;;  %v8374_v27 = vadd.f32 %v2456_v14, %v2264_v25  ;;  %v8376_v35 = vpop.f32.mrf.mxu1 }
 0x30a   : > { %v2458_v4 = vpop.f32.mrf.mxu0 }
 0x30b   : > { %10646 = vst [vmem:[#allocation173_spill] sm:$0xff] %v8374_v27  ;;  %v8378_v50 = vadd.f32 %v2458_v4, %v2266_v16  ;;  %v8380_v40 = vpop.f32.mrf.mxu1  ;;  %v2276_v4 = vadd.f32 %v8229_v21, %v8064_v41  ;;  %v2284_v21 = vadd.f32 %v8247_v54, %v8072_v23  ;;  %v2292_v54 = vadd.f32 %v8266_v45, %v8064_v41 }
 0x30c   : > { %10648 = vst [vmem:[#allocation175_spill] sm:$0xff] %v8380_v40  ;;  %v8382_v9 = vpop.f32.mrf.mxu0 }
 0x30d   : > { %10647 = vst [vmem:[#allocation174_spill] sm:$0xff] %v8378_v50  ;;  %10649 = vst [vmem:[#allocation176_spill] sm:$0xff] %v8382_v9  ;;  %v8386_v30 = vpop.f32.mrf.mxu1 }
 0x30e   : > { %v2464_v56 = vpop.f32.mrf.mxu0 }
 0x30f   : > { %v8390_v14 = vadd.f32 %v2464_v56, %v2272_v22  ;;  %v8392_v25 = vpop.f32.mrf.mxu1 }
 0x310   : > { %v2466_v29 = vpop.f32.mrf.mxu0 }
 0x311   : > { %10650 = vst [vmem:[#allocation177_spill] sm:$0xff] %v8390_v14  ;;  %v8396_v16 = vadd.f32 %v2466_v29, %v2274_v36  ;;  %v8398_v50 = vpop.f32.mrf.mxu1 }
 0x312   : > { %v2468_v9 = vpop.f32.mrf.mxu0 }
 0x313   : > { %10651 = vst [vmem:[#allocation178_spill] sm:$0xff] %v8396_v16  ;;  %v8400_v34 = vadd.f32 %v2468_v9, %v2276_v4  ;;  %v8402_v27 = vpop.f32.mrf.mxu1  ;;  %v2286_v9 = vadd.f32 %v8253_v13, %v8064_v41  ;;  %v2294_v13 = vadd.f32 %v8270_v33, %v8072_v23 }
 0x314   : > { %v8404_v26 = vpop.f32.mrf.mxu0 }
 0x315   : > { %10652 = vst [vmem:[#allocation179_spill] sm:$0xff] %v8400_v34  ;;  %10653 = vst [vmem:[#allocation180_spill] sm:$0xff] %v8404_v26  ;;  %v8408_v22 = vpop.f32.mrf.mxu1 }
 0x316   : > { %v2474_v56 = vpop.f32.mrf.mxu0 }
 0x317   : > { %v8412_v29 = vadd.f32 %v2474_v56, %v2282_v37  ;;  %v8414_v36 = vpop.f32.mrf.mxu1 }
 0x318   : > { %v2476_v14 = vpop.f32.mrf.mxu0 }
 0x319   : > { %10654 = vst [vmem:[#allocation181_spill] sm:$0xff] %v8412_v29  ;;  %v8418_v4 = vadd.f32 %v2476_v14, %v2284_v21  ;;  %v8420_v34 = vpop.f32.mrf.mxu1  ;;  %v1621_v14 = vsub.s32 3, %v7412_v42 }
 0x31a   : > { %v2478_v26 = vpop.f32.mrf.mxu0 }
 0x31b   : > { %10655 = vst [vmem:[#allocation182_spill] sm:$0xff] %v8418_v4  ;;  %v8422_v7 = vadd.f32 %v2478_v26, %v2286_v9  ;;  %v8424_v16 = vpop.f32.mrf.mxu1  ;;  %v2296_v9 = vadd.f32 %v8276_v49, %v8064_v41  ;;  %v8451_v40 = vrot.slane %v8055_v32, %v1621_v14 }
 0x31c   : > { %v8426_v10 = vpop.f32.mrf.mxu0 }
 0x31d   : > { %10656 = vst [vmem:[#allocation183_spill] sm:$0xff] %v8422_v7  ;;  %10657 = vst [vmem:[#allocation184_spill] sm:$0xff] %v8426_v10  ;;  %v8430_v37 = vpop.f32.mrf.mxu1  ;;  %v10659_v7 = vsub.s32 2, %v7412_v42 }
 0x31e   : > { %v2484_v56 = vpop.f32.mrf.mxu0 }
 0x31f   : > { %v8435_v21 = vadd.f32 %v2484_v56, %v2292_v54  ;;  %v8437_v29 = vpop.f32.mrf.mxu1  ;;  %v8444_v45 = vrot.slane %v8055_v32, %v10659_v7  ;;  %v2530_v7 = vadd.f32 %v8292_v58, %v8451_v40 }
 0x320   : > { %v2486_v26 = vpop.f32.mrf.mxu0 }
 0x321   : > { %10658 = vst [vmem:[#allocation185_spill] sm:$0xff] %v8435_v21  ;;  %v8446_v10 = vadd.f32 %v2486_v26, %v2294_v13  ;;  %v8448_v4 = vpop.f32.mrf.mxu1  ;;  %v2528_v42 = vadd.f32 %v8288_v47, %v8444_v45  ;;  %v2532_v14 = vadd.f32 %v8298_v19, %v8444_v45  ;;  %v2538_v58 = vadd.f32 %v8310_v62, %v8444_v45 }
 0x322   : > { %v2488_v33 = vpop.f32.mrf.mxu0  ;;  %v2540_v19 = vadd.f32 %v8314_v51, %v8451_v40  ;;  %v2542_v46 = vadd.f32 %v8320_v59, %v8444_v45  ;;  %v2562_v59 = vadd.f32 %v8364_v11, %v8444_v45 }
 0x323   : > { %10660 = vst [vmem:[#allocation186_spill] sm:$0xff] %v8446_v10  ;;  %v8453_v54 = vadd.f32 %v2488_v33, %v2296_v9  ;;  %v8455_v56 = vpop.f32.mrf.mxu1 }
 0x324   : > { %v8457_v21 = vpop.f32.mrf.mxu0 }
 0x325   : > { %10661 = vst [vmem:[#allocation187_spill] sm:$0xff] %v8453_v54  ;;  %10662 = vst [vmem:[#allocation188_spill] sm:$0xff] %v8457_v21  ;;  %v8461_v41 = vpop.f32.mrf.mxu1 }
 0x326   : > { %v2720_v49 = vpop.f32.mrf.mxu0 }
 0x327   : > { %v8465_v13 = vadd.f32 %v2720_v49, %v2528_v42  ;;  %v8467_v26 = vpop.f32.mrf.mxu1 }
 0x328   : > { %v2722_v32 = vpop.f32.mrf.mxu0  ;;  %v2604_v11 = vadd.f32 %v8467_v26, %v8451_v40 }
 0x329   : > { %10663 = vst [vmem:[#allocation189_spill] sm:$0xff] %v8465_v13  ;;  %v8471_v9 = vadd.f32 %v2722_v32, %v2530_v7  ;;  %v8473_v33 = vpop.f32.mrf.mxu1 }
 0x32a   : > { %v2724_v54 = vpop.f32.mrf.mxu0 }
 0x32b   : > { %10664 = vst [vmem:[#allocation190_spill] sm:$0xff] %v8471_v9  ;;  %v8475_v47 = vadd.f32 %v2724_v54, %v2532_v14  ;;  %v8477_v10 = vpop.f32.mrf.mxu1 }
 0x32c   : > { %v8479_v21 = vpop.f32.mrf.mxu0 }
 0x32d   : > { %10665 = vst [vmem:[#allocation191_spill] sm:$0xff] %v8475_v47  ;;  %10666 = vst [vmem:[#allocation192_spill] sm:$0xff] %v8479_v21  ;;  %v8483_v42 = vpop.f32.mrf.mxu1 }
 0x32e   : > { %10667 = vst [vmem:[#allocation193_spill] sm:$0xff] %v8483_v42  ;;  %v2730_v49 = vpop.f32.mrf.mxu0 }
 0x32f   : > { %v8487_v7 = vadd.f32 %v2730_v49, %v2538_v58  ;;  %v8489_v32 = vpop.f32.mrf.mxu1 }
 0x330   : > { %10669 = vst [vmem:[#allocation195_spill] sm:$0xff] %v8489_v32  ;;  %v2732_v9 = vpop.f32.mrf.mxu0 }
 0x331   : > { %10668 = vst [vmem:[#allocation194_spill] sm:$0xff] %v8487_v7  ;;  %v8491_v54 = vadd.f32 %v2732_v9, %v2540_v19  ;;  %v8495_v13 = vpop.f32.mrf.mxu1 }
 0x332   : > { %v8493_v14 = vpop.f32.mrf.mxu0  ;;  %10672 = vst [vmem:[#allocation198_spill] sm:$0xff] %v8495_v13 }
 0x333   : > { %10670 = vst [vmem:[#allocation196_spill] sm:$0xff] %v8491_v54  ;;  %10671 = vst [vmem:[#allocation197_spill] sm:$0xff] %v8493_v14  ;;  %v8501_v47 = vpop.f32.mrf.mxu1 }
 0x334   : > { %v8497_v21 = vpop.f32.mrf.mxu0  ;;  %10675 = vst [vmem:[#allocation201_spill] sm:$0xff] %v8501_v47 }
 0x335   : > { %10673 = vst [vmem:[#allocation199_spill] sm:$0xff] %v8497_v21  ;;  %v8507_v58 = vpop.f32.mrf.mxu1 }
 0x336   : > { %v8499_v62 = vpop.f32.mrf.mxu0  ;;  %10677 = vst [vmem:[#allocation203_spill] sm:$0xff] %v8507_v58 }
 0x337   : > { %10674 = vst [vmem:[#allocation200_spill] sm:$0xff] %v8499_v62  ;;  %v8513_v19 = vpop.f32.mrf.mxu1 }
 0x338   : > { %v8503_v42 = vpop.f32.mrf.mxu0  ;;  %10680 = vst [vmem:[#allocation206_spill] sm:$0xff] %v8513_v19 }
 0x339   : > { %10676 = vst [vmem:[#allocation202_spill] sm:$0xff] %v8503_v42  ;;  %v8519_v7 = vpop.f32.mrf.mxu1 }
 0x33a   : > { %v8505_v51 = vpop.f32.mrf.mxu0  ;;  %10682 = vst [vmem:[#allocation208_spill] sm:$0xff] %v8519_v7 }
 0x33b   : > { %v8525_v42 = vpop.f32.mrf.mxu1 }
 0x33c   : > { %v8509_v49 = vpop.f32.mrf.mxu0  ;;  %10683 = vst [vmem:[#allocation209_spill] sm:$0xff] %v8525_v42  ;;  %v2208_v42 = vadd.f32 %v8058_v20, %v8072_v23  ;;  %v2590_v20 = vadd.f32 %v8424_v16, %v8451_v40  ;;  %v2592_v16 = vadd.f32 %v8430_v37, %v8444_v45  ;;  %v2594_v37 = vadd.f32 %v8437_v29, %v8451_v40 }
 0x33d   : > { %10678 = vst [vmem:[#allocation204_spill] sm:$0xff] %v8509_v49  ;;  %v8529_v13 = vpop.f32.mrf.mxu1  ;;  %v2572_v29 = vadd.f32 %v8386_v30, %v8444_v45  ;;  %v2600_v30 = vadd.f32 %v8455_v56, %v8451_v40  ;;  %v2564_v56 = vadd.f32 %v8370_v43, %v8451_v40 }
 0x33e   : > { %v8511_v9 = vpop.f32.mrf.mxu0  ;;  %10685 = vst [vmem:[#allocation211_spill] sm:$0xff] %v8529_v13  ;;  %v2588_v13 = vadd.f32 %v8420_v34, %v8444_v45  ;;  %v8553_v12 = vadd.f32 %v8249_v6, %v2208_v42  ;;  %v8568_v6 = vadd.f32 %v8225_v3, %v2198_v5  ;;  %v2582_v34 = vadd.f32 %v8408_v22, %v8444_v45 }
 0x33f   : > { %10679 = vst [vmem:[#allocation205_spill] sm:$0xff] %v8511_v9  ;;  %v8584_v5 = vadd.f32 %v8272_v2, %v2218_v1  ;;  %v2949_v2 = vmax.f32 %v8258_v63, %v8264_v0  ;;  %v10773_v0 = vld [vmem:[#allocation133_spill] sm:$0xff] }
 0x340   : > { %v8515_v32 = vpop.f32.mrf.mxu0  ;;  %10690 = vst [vmem:[#allocation216_spill] sm:$0xff] %v8553_v12  ;;  %10692 = vst [vmem:[#allocation218_spill] sm:$0xff] %v8568_v6  ;;  %v2944_v3 = vmax.f32 %v8245_v55, %v8553_v12  ;;  %v2934_v44 = vmax.f32 %v8221_v38, %v8568_v6  ;;  %v8835_v63 = vadd.f32 %v10773_v0, %v8072_v23  ;;  %v10775_v55 = vld [vmem:[#allocation141_spill] sm:$0xff] }
 0x341   : > { %10681 = vst [vmem:[#allocation207_spill] sm:$0xff] %v8515_v32  ;;  %v8535_v32 = vpop.f32.mrf.mxu1  ;;  %10694 = vst [vmem:[#allocation220_spill] sm:$0xff] %v8584_v5  ;;  %v10779_v0 = vld [vmem:[#allocation177_spill] sm:$0xff] }
 0x342   : > { %v8517_v54 = vpop.f32.mrf.mxu0  ;;  %10686 = vst [vmem:[#allocation212_spill] sm:$0xff] %v8535_v32  ;;  %v8550_v32 = vadd.f32 %v8201_v31, %v2188_v18 }
 0x343   : > { %v8539_v14 = vpop.f32.mrf.mxu1  ;;  %v8644_v43 = vadd.f32 %v8517_v54, %v2562_v59  ;;  %v2568_v54 = vadd.f32 %v8376_v35, %v8444_v45 }
 0x344   : > { %v8521_v62 = vpop.f32.mrf.mxu0  ;;  %10688 = vst [vmem:[#allocation214_spill] sm:$0xff] %v8539_v14  ;;  %10689 = vst [vmem:[#allocation215_spill] sm:$0xff] %v8550_v32 }
 0x345   : > { %v8559_v57 = vpop.f32.mrf.mxu1  ;;  %10702 = vst [vmem:[#allocation228_spill] sm:$0xff] %v8644_v43  ;;  %v2915_v35 = vmax.f32 %v2914_v15, %v8644_v43 }
 0x346   : > { %v8523_v21 = vpop.f32.mrf.mxu0 }
 0x348   : > { %v8527_v47 = vpop.f32.mrf.mxu0 }
 0x349   : > { %10684 = vst [vmem:[#allocation210_spill] sm:$0xff] %v8527_v47 }
 0x34a   : > { %v2764_v58 = vpop.f32.mrf.mxu0 }
 0x34b   : > { %v8616_v39 = vadd.f32 %v2764_v58, %v2572_v29  ;;  %v2574_v58 = vadd.f32 %v8392_v25, %v8451_v40 }
 0x34c   : > { %v8531_v9 = vpop.f32.mrf.mxu0 }
 0x34d   : > { %10698 = vst [vmem:[#allocation224_spill] sm:$0xff] %v8616_v39 }
 0x34e   : > { %v8533_v19 = vpop.f32.mrf.mxu0 }
 0x350   : > { %v8537_v49 = vpop.f32.mrf.mxu0 }
 0x351   : > { %10687 = vst [vmem:[#allocation213_spill] sm:$0xff] %v8537_v49 }
 0x352   : > { %v2774_v7 = vpop.f32.mrf.mxu0 }
 0x354   : > { %v2776_v47 = vpop.f32.mrf.mxu0 }
 0x356   : > { %v2780_v14 = vpop.f32.mrf.mxu0 }
 0x357   : > { %v8561_v49 = vadd.f32 %v2780_v14, %v2588_v13  ;;  %v2924_v14 = vmax.f32 %v8197_v17, %v8550_v32 }
 0x358   : > { %v2782_v18 = vpop.f32.mrf.mxu0 }
 0x359   : > { %10691 = vst [vmem:[#allocation217_spill] sm:$0xff] %v8561_v49  ;;  %v8574_v42 = vadd.f32 %v2782_v18, %v2590_v20  ;;  %v2940_v13 = vmax.f32 %v2939_v48, %v8561_v49  ;;  %v8588_v20 = vpop.f32.mrf.mxu1  ;;  %v8590_v18 = vadd.f32 %v2774_v7, %v2582_v34  ;;  %v2584_v7 = vadd.f32 %v8414_v36, %v8451_v40  ;;  %v10777_v49 = vld [vmem:[#allocation188_spill] sm:$0xff] }
 0x35a   : > { %v2784_v22 = vpop.f32.mrf.mxu0  ;;  %v2598_v34 = vadd.f32 %v8448_v4, %v8444_v45  ;;  %v2925_v25 = vmax.f32 %v2924_v14, %v8616_v39  ;;  %v2580_v14 = vadd.f32 %v8402_v27, %v8451_v40  ;;  %v8675_v27 = vadd.f32 %v8521_v62, %v2564_v56  ;;  %v10714_v62 = vld [vmem:[#allocation132_spill] sm:$0xff] }
 0x35b   : > { %10693 = vst [vmem:[#allocation219_spill] sm:$0xff] %v8574_v42  ;;  %10695 = vst [vmem:[#allocation221_spill] sm:$0xff] %v8590_v18  ;;  %v8592_v48 = vadd.f32 %v2784_v22, %v2592_v16  ;;  %v2941_v31 = vmax.f32 %v2940_v13, %v8574_v42  ;;  %v2954_v22 = vmax.f32 %v8268_v61, %v8584_v5  ;;  %v8618_v32 = vpop.f32.mrf.mxu1 }
 0x35c   : > { %v2786_v1 = vpop.f32.mrf.mxu0  ;;  %v2935_v4 = vmax.f32 %v2934_v44, %v8590_v18  ;;  %v2578_v44 = vadd.f32 %v8398_v50, %v8444_v45  ;;  %10708 = vst [vmem:[#allocation234_spill] sm:$0xff] %v8675_v27  ;;  %v2278_v42 = vadd.f32 %v10775_v55, %v8072_v23  ;;  %v10782_v55 = vld [vmem:[#allocation182_spill] sm:$0xff] }
 0x35d   : > { %10696 = vst [vmem:[#allocation222_spill] sm:$0xff] %v8592_v48  ;;  %v2945_v16 = vmax.f32 %v2944_v3, %v8592_v48  ;;  %v8608_v13 = vadd.f32 %v2786_v1, %v2594_v37  ;;  %2942 = vmax.xlane.f32.xlu1 %v2941_v31  ;;  %v8621_v3 = vadd.f32 %v2776_v47, %v2584_v7 }
 0x35e   : > { %v2790_v36 = vpop.f32.mrf.mxu0  ;;  %v2552_v1 = vadd.f32 %v8342_v52, %v8444_v45  ;;  %v2602_v47 = vadd.f32 %v8461_v41, %v8444_v45  ;;  %v8653_v41 = vadd.f32 %v8533_v19, %v2578_v44 }
 0x35f   : > { %10697 = vst [vmem:[#allocation223_spill] sm:$0xff] %v8608_v13  ;;  %10699 = vst [vmem:[#allocation225_spill] sm:$0xff] %v8621_v3  ;;  %v8623_v37 = vadd.f32 %v2790_v36, %v2598_v34  ;;  %v2946_v31 = vmax.f32 %v2945_v16, %v8608_v13  ;;  %v8648_v34 = vadd.f32 %v8531_v9, %v2574_v58  ;;  %v8650_v16 = vpop.f32.mrf.mxu1  ;;  %v10774_v13 = vld [vmem:[#allocation137_spill] sm:$0xff] }
 0x360   : > { %v2792_v29 = vpop.f32.mrf.mxu0  ;;  %10704 = vst [vmem:[#allocation230_spill] sm:$0xff] %v8653_v41  ;;  %v2936_v26 = vmax.f32 %v2935_v4, %v8621_v3  ;;  %v2608_v9 = vadd.f32 %v8473_v33, %v8444_v45  ;;  %v2610_v36 = vadd.f32 %v8477_v10, %v8451_v40  ;;  %v8678_v33 = vadd.f32 %v8523_v21, %v2568_v54  ;;  %v10715_v21 = vld [vmem:[#allocation166_spill] sm:$0xff]  ;;  %v10771_v3 = vld [vmem:[#allocation149_spill] sm:$0xff] }
 0x361   : > { %10700 = vst [vmem:[#allocation226_spill] sm:$0xff] %v8623_v37  ;;  %v8638_v7 = vadd.f32 %v2792_v29, %v2600_v30  ;;  %2947 = vmax.xlane.f32.xlu1 %v2946_v31  ;;  %v2950_v52 = vmax.f32 %v2949_v2, %v8623_v37  ;;  %10703 = vst [vmem:[#allocation229_spill] sm:$0xff] %v8648_v34  ;;  %v8668_v31 = vadd.f32 %v8505_v51, %v2552_v1  ;;  %v8681_v29 = vpop.f32.mrf.mxu1 }
 0x362   : > { %v2794_v50 = vpop.f32.mrf.mxu0  ;;  %10709 = vst [vmem:[#allocation235_spill] sm:$0xff] %v8678_v33  ;;  %v2926_v10 = vmax.f32 %v2925_v25, %v8648_v34  ;;  %v2930_v51 = vmax.f32 %v2929_v8, %v8653_v41  ;;  %v2298_v18 = vadd.f32 %v10771_v3, %v8072_v23  ;;  %v2268_v48 = vadd.f32 %v10774_v13, %v8072_v23  ;;  %v10776_v3 = vld [vmem:[#allocation145_spill] sm:$0xff] }
 0x363   : > { %10701 = vst [vmem:[#allocation227_spill] sm:$0xff] %v8638_v7  ;;  %v8655_v30 = vadd.f32 %v2794_v50, %v2602_v47  ;;  %v2951_v2 = vmax.f32 %v2950_v52, %v8638_v7  ;;  %10706 = vst [vmem:[#allocation232_spill] sm:$0xff] %v8668_v31  ;;  %v10713_v47 = vld [vmem:[#allocation134_spill] sm:$0xff]  ;;  %v2554_v52 = vadd.f32 %v10715_v21, %v8451_v40  ;;  %v10717_v50 = vld [vmem:[#allocation175_spill] sm:$0xff] }
 0x364   : > { %v2796_v19 = vpop.f32.mrf.mxu0  ;;  %v2919_v56 = vmax.f32 %v10714_v62, %v10713_v47  ;;  %v10772_v7 = vld [vmem:[#allocation128_spill] sm:$0xff]  ;;  %v8845_v60 = vadd.f32 %v10777_v49, %v2298_v18 }
 0x365   : > { %10705 = vst [vmem:[#allocation231_spill] sm:$0xff] %v8655_v30  ;;  %v2955_v59 = vmax.f32 %v2954_v22, %v8655_v30  ;;  %v8671_v58 = vadd.f32 %v2796_v19, %v2604_v11  ;;  %2952 = vmax.xlane.f32.xlu0 %v2951_v2  ;;  %2937 = vmax.xlane.f32.xlu1 %v2936_v26  ;;  %v10710_v22 = vld [vmem:[#allocation213_spill] sm:$0xff]  ;;  %v10716_v11 = vld [vmem:[#allocation168_spill] sm:$0xff] }
 0x366   : > { %v2800_v4 = vpop.f32.mrf.mxu0  ;;  %v8685_v1 = vadd.f32 %v10710_v22, %v2580_v14  ;;  %v2558_v25 = vadd.f32 %v10716_v11, %v8444_v45  ;;  %v2570_v2 = vadd.f32 %v10717_v50, %v8451_v40  ;;  %v10718_v26 = vld [vmem:[#allocation193_spill] sm:$0xff]  ;;  %v10723_v22 = vld [vmem:[#allocation204_spill] sm:$0xff]  ;;  %v8831_v37 = vadd.f32 %v10772_v7, %v8072_v23 }
 0x367   : > { %10707 = vst [vmem:[#allocation233_spill] sm:$0xff] %v8671_v58  ;;  %v8687_v44 = vadd.f32 %v2800_v4, %v2608_v9  ;;  %v2956_v15 = vmax.f32 %v2955_v59, %v8671_v58  ;;  %v2612_v54 = vadd.f32 %v10718_v26, %v8444_v45  ;;  %v10719_v14 = vld [vmem:[#allocation197_spill] sm:$0xff]  ;;  %v10722_v59 = vmax.f32 %v8147_v24, %v8153_v28  ;;  %v10734_v28 = vld [vmem:[#allocation159_spill] sm:$0xff] }
 0x368   : > { %10711 = vst [vmem:[#allocation213_spill] sm:$0xff] %v8685_v1  ;;  %v2802_v8 = vpop.f32.mrf.mxu0  ;;  %v8701_v9 = vadd.f32 %v10719_v14, %v2542_v46  ;;  %v8710_v21 = vadd.f32 %v10723_v22, %v2554_v52  ;;  %v10725_v11 = vld [vmem:[#allocation205_spill] sm:$0xff]  ;;  %v2916_v26 = vmax.f32 %v2915_v35, %v8675_v27  ;;  %v2920_v46 = vmax.f32 %v2919_v56, %v8678_v33  ;;  %v10731_v52 = vld [vmem:[#allocation120_spill] sm:$0xff]  ;;  %v10744_v27 = vld [vmem:[#allocation207_spill] sm:$0xff] }
 0x369   : > { %10712 = vst [vmem:[#allocation236_spill] sm:$0xff] %v8687_v44  ;;  %v8703_v19 = vadd.f32 %v2802_v8, %v2610_v36  ;;  %2957 = vmax.xlane.f32.xlu0 %v2956_v15  ;;  %2927 = vmax.xlane.f32.xlu1 %v2926_v10  ;;  %v2905_v4 = vmax.f32 %v10722_v59, %v8668_v31  ;;  %v10727_v36 = vld [vmem:[#allocation210_spill] sm:$0xff]  ;;  %v8720_v10 = vpop.f32.mrf.mxu1  ;;  %v10730_v59 = vld [vmem:[#allocation121_spill] sm:$0xff] }
 0x36a   : > { %10720 = vst [vmem:[#allocation166_spill] sm:$0xff] %v8701_v9  ;;  %10724 = vst [vmem:[#allocation175_spill] sm:$0xff] %v8710_v21  ;;  %v8713_v50 = vadd.f32 %v10725_v11, %v2558_v25  ;;  %v2804_v47 = vpop.f32.mrf.mxu0  ;;  %v8718_v8 = vadd.f32 %v10727_v36, %v2570_v2  ;;  %v2931_v14 = vmax.f32 %v2930_v51, %v8685_v1  ;;  %v10732_v31 = vld [vmem:[#allocation129_spill] sm:$0xff]  ;;  %v10733_v25 = vld [vmem:[#allocation127_spill] sm:$0xff] }
 0x36b   : > { %10721 = vst [vmem:[#allocation168_spill] sm:$0xff] %v8703_v19  ;;  %v8722_v15 = vadd.f32 %v2804_v47, %v2612_v54  ;;  %v2894_v22 = vmax.f32 %v10731_v52, %v10730_v59  ;;  %v2909_v11 = vmax.f32 %v10733_v25, %v10732_v31  ;;  %v2544_v35 = vadd.f32 %v10734_v28, %v8451_v40  ;;  %v10735_v56 = vld [vmem:[#allocation161_spill] sm:$0xff]  ;;  %v10737_v36 = vld [vmem:[#allocation170_spill] sm:$0xff]  ;;  %v10740_v31 = vld [vmem:[#allocation199_spill] sm:$0xff]  ;;  %v8753_v41 = vpop.f32.mrf.mxu1 }
 0x36c   : > { %10726 = vst [vmem:[#allocation193_spill] sm:$0xff] %v8713_v50  ;;  %10728 = vst [vmem:[#allocation197_spill] sm:$0xff] %v8718_v8  ;;  %v2548_v24 = vadd.f32 %v10735_v56, %v8444_v45  ;;  %v8733_v2 = vpop.f32.mrf.mxu0  ;;  %v2560_v47 = vadd.f32 %v10737_v36, %v8451_v40  ;;  %v10738_v54 = vld [vmem:[#allocation198_spill] sm:$0xff]  ;;  %v10739_v33 = vld [vmem:[#allocation201_spill] sm:$0xff]  ;;  %v2906_v1 = vmax.f32 %v2905_v4, %v8710_v21 }
 0x36d   : > { %10729 = vst [vmem:[#allocation204_spill] sm:$0xff] %v8722_v15  ;;  %10736 = vst [vmem:[#allocation205_spill] sm:$0xff] %v8733_v2  ;;  %v2618_v51 = vadd.f32 %v10738_v54, %v8444_v45  ;;  %v2620_v59 = vadd.f32 %v10739_v33, %v8451_v40  ;;  %2932 = vmax.xlane.f32.xlu0 %v2931_v14  ;;  %2917 = vmax.xlane.f32.xlu1 %v2916_v26  ;;  %v10742_v25 = vld [vmem:[#allocation200_spill] sm:$0xff]  ;;  %v10778_v19 = vld [vmem:[#allocation178_spill] sm:$0xff] }
 0x36e   : > { %v2895_v52 = vmax.f32 %v2894_v22, %v8701_v9  ;;  %v8743_v28 = vadd.f32 %v10740_v31, %v2544_v35  ;;  %v8746_v56 = vadd.f32 %v10742_v25, %v2548_v24  ;;  %v2810_v62 = vpop.f32.mrf.mxu0  ;;  %v2910_v36 = vmax.f32 %v2909_v11, %v8713_v50  ;;  %v10747_v14 = vld [vmem:[#allocation116_spill] sm:$0xff]  ;;  %v10748_v31 = vld [vmem:[#allocation115_spill] sm:$0xff]  ;;  %v10750_v24 = vld [vmem:[#allocation122_spill] sm:$0xff] }
 0x36f   : > { %v8751_v54 = vadd.f32 %v10744_v27, %v2560_v47  ;;  %v8755_v33 = vadd.f32 %v2810_v62, %v2618_v51  ;;  %v2921_v26 = vmax.f32 %v2920_v46, %v8718_v8  ;;  %v2884_v22 = vmax.f32 %v10748_v31, %v10747_v14  ;;  %v10749_v35 = vld [vmem:[#allocation124_spill] sm:$0xff]  ;;  %v10751_v9 = vld [vmem:[#allocation154_spill] sm:$0xff]  ;;  %v10752_v11 = vld [vmem:[#allocation163_spill] sm:$0xff] }
 0x370   : > { %10741 = vst [vmem:[#allocation210_spill] sm:$0xff] %v8743_v28  ;;  %10743 = vst [vmem:[#allocation159_spill] sm:$0xff] %v8746_v56  ;;  %v2899_v25 = vmax.f32 %v10750_v24, %v10749_v35  ;;  %v2534_v4 = vadd.f32 %v10751_v9, %v8451_v40  ;;  %v2812_v21 = vpop.f32.mrf.mxu0  ;;  %v2550_v27 = vadd.f32 %v10752_v11, %v8451_v40  ;;  %v10753_v47 = vld [vmem:[#allocation203_spill] sm:$0xff]  ;;  %v10756_v14 = vld [vmem:[#allocation192_spill] sm:$0xff]  ;;  %v8779_v11 = vpop.f32.mrf.mxu1 }
 0x371   : > { %10745 = vst [vmem:[#allocation161_spill] sm:$0xff] %v8751_v54  ;;  %10746 = vst [vmem:[#allocation170_spill] sm:$0xff] %v8755_v33  ;;  %v2622_v50 = vadd.f32 %v10753_v47, %v8444_v45  ;;  %v8768_v62 = vadd.f32 %v2812_v21, %v2620_v59  ;;  %2922 = vmax.xlane.f32.xlu0 %v2921_v26  ;;  %2907 = vmax.xlane.f32.xlu1 %v2906_v1  ;;  %v10755_v46 = vld [vmem:[#allocation191_spill] sm:$0xff]  ;;  %v10758_v8 = vld [vmem:[#allocation202_spill] sm:$0xff] }
 0x372   : > { %v2885_v51 = vmax.f32 %v2884_v22, %v10755_v46  ;;  %v8772_v31 = vadd.f32 %v10756_v14, %v2534_v4  ;;  %v2814_v35 = vpop.f32.mrf.mxu0  ;;  %v2896_v24 = vmax.f32 %v2895_v52, %v8743_v28  ;;  %v2900_v9 = vmax.f32 %v2899_v25, %v8746_v56  ;;  %v10762_v59 = vld [vmem:[#allocation119_spill] sm:$0xff]  ;;  %v10763_v26 = vld [vmem:[#allocation117_spill] sm:$0xff]  ;;  %v10764_v52 = vld [vmem:[#allocation194_spill] sm:$0xff]  ;;  %v8791_v4 = vpop.f32.mrf.mxu1 }
 0x373   : > { %10754 = vst [vmem:[#allocation198_spill] sm:$0xff] %v8768_v62  ;;  %v8777_v43 = vadd.f32 %v10758_v8, %v2550_v27  ;;  %v8781_v47 = vadd.f32 %v2814_v35, %v2622_v50  ;;  %v2911_v21 = vmax.f32 %v2910_v36, %v8751_v54  ;;  %v2889_v14 = vmax.f32 %v10763_v26, %v10762_v59  ;;  %v10765_v36 = vld [vmem:[#allocation114_spill] sm:$0xff]  ;;  %v10766_v27 = vld [vmem:[#allocation113_spill] sm:$0xff] }
 0x374   : > { %10757 = vst [vmem:[#allocation201_spill] sm:$0xff] %v8772_v31  ;;  %v8784_v1 = vpop.f32.mrf.mxu0  ;;  %v2886_v50 = vmax.f32 %v2885_v51, %v8772_v31  ;;  %v2879_v56 = vmax.f32 %v10766_v27, %v10765_v36  ;;  %v8802_v26 = vpop.f32.mrf.mxu1  ;;  %v10770_v31 = vld [vmem:[#allocation190_spill] sm:$0xff]  ;;  %v3009_v2 = vmax.f32 %v10779_v0, %v10778_v19  ;;  %v10781_v62 = vld [vmem:[#allocation185_spill] sm:$0xff] }
 0x375   : > { %10759 = vst [vmem:[#allocation199_spill] sm:$0xff] %v8777_v43  ;;  %10760 = vst [vmem:[#allocation200_spill] sm:$0xff] %v8781_v47  ;;  %2912 = vmax.xlane.f32.xlu0 %v2911_v21  ;;  %2897 = vmax.xlane.f32.xlu1 %v2896_v24  ;;  %v2890_v25 = vmax.f32 %v2889_v14, %v10764_v52  ;;  %v2901_v8 = vmax.f32 %v2900_v9, %v8777_v43  ;;  %v10767_v24 = vld [vmem:[#allocation189_spill] sm:$0xff]  ;;  %v10768_v14 = vld [vmem:[#allocation196_spill] sm:$0xff] }
 0x376   : > { %10761 = vst [vmem:[#allocation207_spill] sm:$0xff] %v8784_v1  ;;  %v8788_v22 = vpop.f32.mrf.mxu0  ;;  %v2880_v21 = vmax.f32 %v2879_v56, %v10767_v24  ;;  %v8809_v51 = vpop.f32.mrf.mxu1  ;;  %v10780_v15 = vld [vmem:[#allocation186_spill] sm:$0xff]  ;;  %v10783_v44 = vld [vmem:[#allocation181_spill] sm:$0xff] }
 0x377   : > { %v2891_v52 = vmax.f32 %v2890_v25, %v10768_v14  ;;  %v3029_v13 = vmax.f32 %v10781_v62, %v10780_v15 }
 0x378   : > { %v8795_v35 = vpop.f32.mrf.mxu0  ;;  %v2881_v43 = vmax.f32 %v2880_v21, %v10770_v31 }
 0x379   : > { %2902 = vmax.xlane.f32.xlu0 %v2901_v8  ;;  %2887 = vmax.xlane.f32.xlu1 %v2886_v50  ;;  %v2667_v50 = vpop.f32.mrf.mxu1 }
 0x37a   : > { %v8799_v59 = vpop.f32.mrf.mxu0  ;;  %v2668_v6 = vadd.f32 %v2667_v50, %v8444_v45  ;;  %v2288_v50 = vadd.f32 %v10776_v3, %v8072_v23  ;;  %v3019_v3 = vmax.f32 %v10783_v44, %v10782_v55 }
 0x37b   : > { %v2669_v27 = vpop.f32.mrf.mxu1 }
 0x37c   : > { %v8805_v46 = vpop.f32.mrf.mxu0 }
 0x37d   : > { %10769 = vst [vmem:[#allocation154_spill] sm:$0xff] %v8805_v46  ;;  %2892 = vmax.xlane.f32.xlu0 %v2891_v52  ;;  %v2671_v52 = vpop.f32.mrf.mxu1  ;;  %v10784_v46 = vld [vmem:[#allocation184_spill] sm:$0xff] }
 0x37e   : > { %v8807_v9 = vpop.f32.mrf.mxu0  ;;  %v8859_v49 = vadd.f32 %v10784_v46, %v2288_v50  ;;  %v2672_v19 = vadd.f32 %v2671_v52, %v8444_v45 }
 0x37f   : > { %v2673_v34 = vpop.f32.mrf.mxu1 }
 0x380   : > { %v8812_v36 = vpop.f32.mrf.mxu0 }
 0x381   : > { %2882 = vmax.xlane.f32.xlu0 %v2881_v43  ;;  %v2677_v39 = vpop.f32.mrf.mxu1 }
 0x382   : > { %v8814_v8 = vpop.f32.mrf.mxu0  ;;  %v2678_v12 = vadd.f32 %v2677_v39, %v8444_v45 }
 0x383   : > { %v2679_v58 = vpop.f32.mrf.mxu1 }
 0x384   : > { %v8816_v56 = vpop.f32.mrf.mxu0  ;;  %v2680_v39 = vadd.f32 %v2679_v58, %v8451_v40 }
 0x385   : > { %v2681_v61 = vpop.f32.mrf.mxu1 }
 0x386   : > { %v2840_v24 = vpop.f32.mrf.mxu0  ;;  %v2682_v0 = vadd.f32 %v2681_v61, %v8444_v45 }
 0x387   : > { %v2683_v1 = vpop.f32.mrf.mxu1 }
 0x388   : > { %v8818_v25 = vpop.f32.mrf.mxu0  ;;  %v2684_v46 = vadd.f32 %v2683_v1, %v8451_v40  ;;  %v2662_v1 = vadd.f32 %v8802_v26, %v8444_v45 }
 0x38a   : > { %v8820_v14 = vpop.f32.mrf.mxu0 }
 0x38c   : > { %v8822_v28 = vpop.f32.mrf.mxu0 }
 0x38e   : > { %v2850_v54 = vpop.f32.mrf.mxu0 }
 0x390   : > { %v2852_v21 = vpop.f32.mrf.mxu0 }
 0x392   : > { %v2854_v31 = vpop.f32.mrf.mxu0 }
 0x394   : > { %v8824_v43 = vpop.f32.mrf.mxu0 }
 0x396   : > { %v2860_v17 = vpop.f32.mrf.mxu0 }
 0x397   : > { %v8847_v7 = vadd.f32 %v2860_v17, %v2668_v6  ;;  %v2658_v17 = vadd.f32 %v8779_v11, %v8444_v45  ;;  %v2670_v6 = vadd.f32 %v2669_v27, %v8451_v40 }
 0x398   : > { %v2862_v30 = vpop.f32.mrf.mxu0 }
 0x399   : > { %v8872_v50 = vadd.f32 %v2850_v54, %v2658_v17  ;;  %v3020_v11 = vmax.f32 %v3019_v3, %v8847_v7  ;;  %v8875_v27 = vadd.f32 %v2862_v30, %v2670_v6  ;;  %v2660_v54 = vadd.f32 %v8791_v4, %v8451_v40 }
 0x39a   : > { %v2864_v5 = vpop.f32.mrf.mxu0  ;;  %v8902_v4 = vadd.f32 %v2854_v31, %v2662_v1  ;;  %v2652_v31 = vadd.f32 %v8720_v10, %v8444_v45 }
 0x39b   : > { %10786 = vst [vmem:[#allocation163_spill] sm:$0xff] %v8872_v50  ;;  %v8877_v15 = vadd.f32 %v2864_v5, %v2672_v19  ;;  %v10789_v5 = vld [vmem:[#allocation183_spill] sm:$0xff]  ;;  %v8900_v17 = vadd.f32 %v2852_v21, %v2660_v54  ;;  %v10797_v21 = vld [vmem:[#allocation176_spill] sm:$0xff] }
 0x39c   : > { %v2866_v38 = vpop.f32.mrf.mxu0  ;;  %v3024_v19 = vmax.f32 %v10789_v5, %v8859_v49  ;;  %10792 = vst [vmem:[#allocation149_spill] sm:$0xff] %v8902_v4  ;;  %v8932_v10 = vadd.f32 %v8820_v14, %v2652_v31  ;;  %v2642_v14 = vadd.f32 %v8588_v20, %v8444_v45 }
 0x39d   : > { %10791 = vst [vmem:[#allocation202_spill] sm:$0xff] %v8900_v17 }
 0x39e   : > { %v2870_v53 = vpop.f32.mrf.mxu0  ;;  %v3025_v26 = vmax.f32 %v3024_v19, %v8877_v15  ;;  %10802 = vst [vmem:[#allocation145_spill] sm:$0xff] %v8932_v10  ;;  %v8964_v20 = vadd.f32 %v8814_v8, %v2642_v14  ;;  %v10818_v8 = vld [vmem:[#allocation164_spill] sm:$0xff] }
 0x39f   : > { %v8854_v47 = vadd.f32 %v2870_v53, %v2678_v12  ;;  %v10785_v53 = vld [vmem:[#allocation187_spill] sm:$0xff] }
 0x3a0   : > { %v2872_v18 = vpop.f32.mrf.mxu0  ;;  %v3034_v55 = vmax.f32 %v10785_v53, %v8845_v60 }
 0x3a1   : > { %v3030_v58 = vmax.f32 %v3029_v13, %v8854_v47  ;;  %v8867_v12 = vadd.f32 %v2872_v18, %v2680_v39  ;;  %v10787_v13 = vld [vmem:[#allocation180_spill] sm:$0xff]  ;;  %v2648_v18 = vadd.f32 %v8650_v16, %v8444_v45  ;;  %v3010_v16 = vmax.f32 %v3009_v2, %v8872_v50 }
 0x3a2   : > { %v2874_v44 = vpop.f32.mrf.mxu0  ;;  %v8883_v39 = vadd.f32 %v10787_v13, %v2278_v42  ;;  %v2650_v2 = vadd.f32 %v8681_v29, %v8451_v40  ;;  %10812 = vst [vmem:[#allocation180_spill] sm:$0xff] %v8964_v20 }
 0x3a3   : > { %v8879_v52 = vadd.f32 %v2874_v44, %v2682_v0  ;;  %v3031_v61 = vmax.f32 %v3030_v58, %v8867_v12  ;;  %v2674_v44 = vadd.f32 %v2673_v34, %v8451_v40  ;;  %v8897_v42 = vadd.f32 %v2840_v24, %v2648_v18  ;;  %v10796_v24 = vld [vmem:[#allocation214_spill] sm:$0xff] }
 0x3a4   : > { %10788 = vst [vmem:[#allocation203_spill] sm:$0xff] %v8883_v39  ;;  %v2876_v30 = vpop.f32.mrf.mxu0  ;;  %v3021_v34 = vmax.f32 %v3020_v11, %v8875_v27  ;;  %v8918_v18 = vadd.f32 %v10797_v21, %v2268_v48  ;;  %v2664_v11 = vadd.f32 %v8809_v51, %v8451_v40  ;;  %v8929_v29 = vadd.f32 %v8818_v25, %v2650_v2 }
 0x3a5   : > { %v3035_v0 = vmax.f32 %v3034_v55, %v8879_v52  ;;  %v8895_v3 = vadd.f32 %v2876_v30, %v2684_v46  ;;  %3032 = vmax.xlane.f32.xlu0 %v3031_v61  ;;  %10790 = vst [vmem:[#allocation192_spill] sm:$0xff] %v8897_v42  ;;  %v8905_v6 = vadd.f32 %v2866_v38, %v2674_v44  ;;  %v10794_v55 = vld [vmem:[#allocation173_spill] sm:$0xff]  ;;  %v10795_v46 = vld [vmem:[#allocation172_spill] sm:$0xff]  ;;  %v10799_v38 = vld [vmem:[#allocation179_spill] sm:$0xff] }
 0x3a6   : > { %v2999_v13 = vmax.f32 %v10795_v46, %v10794_v55  ;;  %v2638_v61 = vadd.f32 %v10796_v24, %v8444_v45  ;;  %10798 = vst [vmem:[#allocation133_spill] sm:$0xff] %v8918_v18  ;;  %v3014_v54 = vmax.f32 %v10799_v38, %v8883_v39  ;;  %10801 = vst [vmem:[#allocation141_spill] sm:$0xff] %v8929_v29  ;;  %v10807_v24 = vld [vmem:[#allocation171_spill] sm:$0xff] }
 0x3a7   : > { %10793 = vst [vmem:[#allocation128_spill] sm:$0xff] %v8905_v6  ;;  %v3036_v58 = vmax.f32 %v3035_v0, %v8895_v3  ;;  %v8936_v19 = vadd.f32 %v8824_v43, %v2664_v11  ;;  %v3026_v51 = vmax.f32 %v3025_v26, %v8905_v6  ;;  %v3011_v44 = vmax.f32 %v3010_v16, %v8900_v17  ;;  %v10804_v0 = vld [vmem:[#allocation167_spill] sm:$0xff]  ;;  %v10809_v26 = vld [vmem:[#allocation174_spill] sm:$0xff]  ;;  %v10814_v11 = vld [vmem:[#allocation160_spill] sm:$0xff] }
 0x3a8   : > { %v8925_v1 = vadd.f32 %v8807_v9, %v2638_v61  ;;  %v3000_v30 = vmax.f32 %v2999_v13, %v8897_v42  ;;  %v3015_v48 = vmax.f32 %v3014_v54, %v8902_v4  ;;  %v10805_v9 = vld [vmem:[#allocation165_spill] sm:$0xff]  ;;  %v2640_v25 = vadd.f32 %v8559_v57, %v8451_v40 }
 0x3a9   : > { %3037 = vmax.xlane.f32.xlu1 %v3036_v58  ;;  %3022 = vmax.xlane.f32.xlu0 %v3021_v34  ;;  %10803 = vst [vmem:[#allocation188_spill] sm:$0xff] %v8936_v19  ;;  %v2989_v58 = vmax.f32 %v10805_v9, %v10804_v0  ;;  %v10806_v34 = vld [vmem:[#allocation208_spill] sm:$0xff]  ;;  %v8950_v43 = vadd.f32 %v10807_v24, %v8835_v63 }
 0x3aa   : > { %10800 = vst [vmem:[#allocation137_spill] sm:$0xff] %v8925_v1  ;;  %v2628_v13 = vadd.f32 %v10806_v34, %v8444_v45  ;;  %v3004_v61 = vmax.f32 %v10809_v26, %v8918_v18  ;;  %v2654_v16 = vadd.f32 %v8753_v41, %v8451_v40  ;;  %v8961_v31 = vadd.f32 %v8812_v36, %v2640_v25  ;;  %v10817_v36 = vld [vmem:[#allocation211_spill] sm:$0xff] }
 0x3ab   : > { %10808 = vst [vmem:[#allocation185_spill] sm:$0xff] %v8950_v43  ;;  %v2990_v57 = vmax.f32 %v2989_v58, %v8925_v1  ;;  %v3016_v41 = vmax.f32 %v3015_v48, %v8936_v19  ;;  %v3001_v54 = vmax.f32 %v3000_v30, %v8929_v29  ;;  %v2632_v34 = vadd.f32 %v10817_v36, %v8444_v45  ;;  %v10821_v30 = vld [vmem:[#allocation123_spill] sm:$0xff] }
 0x3ac   : > { %v8957_v2 = vadd.f32 %v8788_v22, %v2628_v13  ;;  %10811 = vst [vmem:[#allocation187_spill] sm:$0xff] %v8961_v31  ;;  %v3005_v63 = vmax.f32 %v3004_v61, %v8932_v10  ;;  %v8968_v21 = vadd.f32 %v8822_v28, %v2654_v16  ;;  %v10815_v22 = vld [vmem:[#allocation158_spill] sm:$0xff]  ;;  %v8980_v13 = vadd.f32 %v10818_v8, %v8831_v37  ;;  %v10820_v28 = vld [vmem:[#allocation169_spill] sm:$0xff] }
 0x3ad   : > { %3027 = vmax.xlane.f32.xlu1 %v3026_v51  ;;  %3012 = vmax.xlane.f32.xlu0 %v3011_v44  ;;  %v2979_v51 = vmax.f32 %v10815_v22, %v10814_v11  ;;  %v10816_v44 = vld [vmem:[#allocation209_spill] sm:$0xff]  ;;  %v2994_v25 = vmax.f32 %v10820_v28, %v8950_v43  ;;  %v2644_v48 = vadd.f32 %v8618_v32, %v8451_v40 }
 0x3ae   : > { %10810 = vst [vmem:[#allocation184_spill] sm:$0xff] %v8957_v2  ;;  %10813 = vst [vmem:[#allocation183_spill] sm:$0xff] %v8968_v21  ;;  %v2630_v58 = vadd.f32 %v10816_v44, %v8451_v40  ;;  %v2238_v14 = vadd.f32 %v10821_v30, %v8072_v23  ;;  %v8993_v45 = vadd.f32 %v8799_v59, %v2632_v34  ;;  %v10826_v44 = vld [vmem:[#allocation153_spill] sm:$0xff]  ;;  %v10830_v59 = vld [vmem:[#allocation212_spill] sm:$0xff] }
 0x3af   : > { %10819 = vst [vmem:[#allocation214_spill] sm:$0xff] %v8980_v13  ;;  %v2980_v24 = vmax.f32 %v2979_v51, %v8957_v2  ;;  %v2995_v37 = vmax.f32 %v2994_v25, %v8964_v20  ;;  %v8997_v16 = vadd.f32 %v8816_v56, %v2644_v48  ;;  %v3006_v32 = vmax.f32 %v3005_v63, %v8968_v21  ;;  %v10827_v8 = vld [vmem:[#allocation157_spill] sm:$0xff]  ;;  %v10831_v56 = vld [vmem:[#allocation118_spill] sm:$0xff] }
 0x3b0   : > { %v8990_v61 = vadd.f32 %v8795_v35, %v2630_v58  ;;  %10823 = vst [vmem:[#allocation208_spill] sm:$0xff] %v8993_v45  ;;  %v9004_v51 = vadd.f32 %v10827_v8, %v2238_v14  ;;  %v10829_v35 = vld [vmem:[#allocation162_spill] sm:$0xff]  ;;  %v2634_v34 = vadd.f32 %v10830_v59, %v8451_v40  ;;  %v2228_v25 = vadd.f32 %v10831_v56, %v8072_v23  ;;  %v10836_v59 = vld [vmem:[#allocation152_spill] sm:$0xff] }
 0x3b1   : > { %3017 = vmax.xlane.f32.xlu1 %v3016_v41  ;;  %3002 = vmax.xlane.f32.xlu0 %v3001_v54  ;;  %10824 = vst [vmem:[#allocation171_spill] sm:$0xff] %v8997_v16  ;;  %v2991_v41 = vmax.f32 %v2990_v57, %v8961_v31  ;;  %v10825_v54 = vld [vmem:[#allocation155_spill] sm:$0xff]  ;;  %v2984_v58 = vmax.f32 %v10829_v35, %v8980_v13  ;;  %v10832_v48 = vld [vmem:[#allocation154_spill] sm:$0xff]  ;;  %v10865_v35 = vld [vmem:[#allocation221_spill] sm:$0xff] }
 0x3b2   : > { %10822 = vst [vmem:[#allocation176_spill] sm:$0xff] %v8990_v61  ;;  %v2969_v36 = vmax.f32 %v10826_v44, %v10825_v54  ;;  %10828 = vst [vmem:[#allocation209_spill] sm:$0xff] %v9004_v51  ;;  %v9015_v30 = vadd.f32 %v10832_v48, %v2634_v34  ;;  %v2996_v14 = vmax.f32 %v2995_v37, %v8997_v16  ;;  %v10834_v54 = vld [vmem:[#allocation150_spill] sm:$0xff]  ;;  %v10835_v44 = vld [vmem:[#allocation148_spill] sm:$0xff] }
 0x3b3   : > { %v2985_v57 = vmax.f32 %v2984_v58, %v8993_v45  ;;  %v2981_v8 = vmax.f32 %v2980_v24, %v8990_v61  ;;  %v2959_v13 = vmax.f32 %v10835_v44, %v10834_v54  ;;  %v10840_v58 = vld [vmem:[#allocation236_spill] sm:$0xff]  ;;  %v10844_v44 = vld [vmem:[#allocation198_spill] sm:$0xff] }
 0x3b4   : > { %v2970_v63 = vmax.f32 %v2969_v36, %v8755_v33  ;;  %10833 = vst [vmem:[#allocation211_spill] sm:$0xff] %v9015_v30  ;;  %v10839_v36 = vld [vmem:[#allocation206_spill] sm:$0xff]  ;;  %v10841_v48 = vld [vmem:[#allocation200_spill] sm:$0xff]  ;;  %v10842_v33 = vld [vmem:[#allocation207_spill] sm:$0xff] }
 0x3b5   : > { %3007 = vmax.xlane.f32.xlu1 %v3006_v32  ;;  %2992 = vmax.xlane.f32.xlu0 %v2991_v41  ;;  %v9022_v32 = vadd.f32 %v10836_v59, %v2228_v25  ;;  %v10838_v41 = vld [vmem:[#allocation156_spill] sm:$0xff]  ;;  %v2624_v56 = vadd.f32 %v10839_v36, %v8451_v40  ;;  %v2960_v34 = vmax.f32 %v2959_v13, %v10840_v58  ;;  %v10845_v59 = vld [vmem:[#allocation151_spill] sm:$0xff]  ;;  %v10848_v13 = vld [vmem:[#allocation205_spill] sm:$0xff] }
 0x3b6   : > { %v2974_v23 = vmax.f32 %v10838_v41, %v9004_v51  ;;  %v2986_v54 = vmax.f32 %v2985_v57, %v9015_v30  ;;  %v2971_v25 = vmax.f32 %v2970_v63, %v10844_v44  ;;  %v10846_v51 = vld [vmem:[#allocation195_spill] sm:$0xff]  ;;  %v10859_v44 = vld [vmem:[#allocation144_spill] sm:$0xff]  ;;  %v10861_v30 = vld [vmem:[#allocation226_spill] sm:$0xff] }
 0x3b7   : > { %10837 = vst [vmem:[#allocation164_spill] sm:$0xff] %v9022_v32  ;;  %v9031_v24 = vadd.f32 %v10842_v33, %v2624_v56  ;;  %v2964_v45 = vmax.f32 %v10845_v59, %v9022_v32  ;;  %v2614_v41 = vadd.f32 %v10846_v51, %v8451_v40  ;;  %v10851_v32 = vld [vmem:[#allocation140_spill] sm:$0xff]  ;;  %v10852_v40 = vld [vmem:[#allocation142_spill] sm:$0xff]  ;;  %v10853_v51 = vld [vmem:[#allocation217_spill] sm:$0xff] }
 0x3b8   : > { %v2975_v37 = vmax.f32 %v2974_v23, %v10841_v48  ;;  %v10850_v23 = vld [vmem:[#allocation168_spill] sm:$0xff] }
 0x3b9   : > { %2997 = vmax.xlane.f32.xlu1 %v2996_v14  ;;  %2982 = vmax.xlane.f32.xlu0 %v2981_v8  ;;  %10843 = vst [vmem:[#allocation123_spill] sm:$0xff] %v9031_v24  ;;  %v10847_v14 = vld [vmem:[#allocation204_spill] sm:$0xff]  ;;  %v9041_v36 = vadd.f32 %v10848_v13, %v2614_v41  ;;  %v2961_v56 = vmax.f32 %v2960_v34, %v10850_v23  ;;  %v10857_v23 = vld [vmem:[#allocation222_spill] sm:$0xff] }
 0x3ba   : > { %v2965_v8 = vmax.f32 %v2964_v45, %v10847_v14  ;;  %v2976_v33 = vmax.f32 %v2975_v37, %v9031_v24  ;;  %v10854_v45 = vld [vmem:[#allocation219_spill] sm:$0xff]  ;;  %v10856_v34 = vld [vmem:[#allocation216_spill] sm:$0xff] }
 0x3bb   : > { %10849 = vst [vmem:[#allocation157_spill] sm:$0xff] %v9041_v36  ;;  %v10855_v37 = vld [vmem:[#allocation143_spill] sm:$0xff] }
 0x3bc   : > { %v2966_v63 = vmax.f32 %v2965_v8, %v9041_v36  ;;  %v10858_v36 = vld [vmem:[#allocation223_spill] sm:$0xff] }
 0x3bd   : > { %2987 = vmax.xlane.f32.xlu1 %v2986_v54  ;;  %2972 = vmax.xlane.f32.xlu0 %v2971_v25 }
 0x3c1   : > { %2977 = vmax.xlane.f32.xlu1 %v2976_v33  ;;  %2962 = vmax.xlane.f32.xlu0 %v2961_v56 }
 0x3c5   : > { %2967 = vmax.xlane.f32.xlu1 %v2966_v63 }
 0x3e6   : > { %v2943_v57 = vpop.xlane.xlu1 %2942 }
 0x3e7   : > { %v3087_v59 = vsub.f32 %v10851_v32, %v2943_v57  ;;  %v3088_v54 = vsub.f32 %v10852_v40, %v2943_v57  ;;  %v3089_v25 = vsub.f32 %v10853_v51, %v2943_v57  ;;  %v3090_v14 = vsub.f32 %v10854_v45, %v2943_v57 }
 0x3e9   : > { %v3263_v41 = vmul.f32 1.442695, %v3087_v59  ;;  %v3265_v58 = vmul.f32 1.442695, %v3088_v54  ;;  %v3267_v56 = vmul.f32 1.442695, %v3089_v25 }
 0x3ea   : > { %v2948_v13 = vpop.xlane.xlu1 %2947  ;;  %v3269_v63 = vmul.f32 1.442695, %v3090_v14  ;;  %v10860_v59 = vld [vmem:[#allocation146_spill] sm:$0xff] }
 0x3eb   : > { %v3091_v24 = vsub.f32 %v10855_v37, %v2948_v13  ;;  %v3092_v33 = vsub.f32 %v10856_v34, %v2948_v13  ;;  %v3093_v8 = vsub.f32 %v10857_v23, %v2948_v13  ;;  %v3094_v48 = vsub.f32 %v10858_v36, %v2948_v13  ;;  %v10862_v23 = vld [vmem:[#allocation227_spill] sm:$0xff]  ;;  %v10864_v13 = vld [vmem:[#allocation218_spill] sm:$0xff] }
 0x3ec   : > { %6104 = vpow2.f32 %v3263_v41  ;;  %v10863_v41 = vld [vmem:[#allocation139_spill] sm:$0xff] }
 0x3ed   : > { %v3271_v32 = vmul.f32 1.442695, %v3091_v24  ;;  %6106 = vpow2.f32 %v3265_v58  ;;  %v3273_v51 = vmul.f32 1.442695, %v3092_v33  ;;  %v3275_v37 = vmul.f32 1.442695, %v3093_v8 }
 0x3ee   : > { %v2953_v40 = vpop.xlane.xlu0 %2952  ;;  %v2938_v54 = vpop.xlane.xlu1 %2937  ;;  %6108 = vpow2.f32 %v3267_v56  ;;  %v3277_v25 = vmul.f32 1.442695, %v3094_v48 }
 0x3ef   : > { %v3095_v57 = vsub.f32 %v10859_v44, %v2953_v40  ;;  %v3096_v45 = vsub.f32 %v10860_v59, %v2953_v40  ;;  %v3097_v34 = vsub.f32 %v10861_v30, %v2953_v40  ;;  %6110 = vpow2.f32 %v3269_v63  ;;  %v10866_v30 = vld [vmem:[#allocation225_spill] sm:$0xff] }
 0x3f0   : > { %v3098_v14 = vsub.f32 %v10862_v23, %v2953_v40  ;;  %6112 = vpow2.f32 %v3271_v32  ;;  %v3083_v24 = vsub.f32 %v10863_v41, %v2938_v54  ;;  %v3084_v33 = vsub.f32 %v10864_v13, %v2938_v54  ;;  %v10867_v40 = vld [vmem:[#allocation147_spill] sm:$0xff] }
 0x3f1   : > { %v3279_v36 = vmul.f32 1.442695, %v3095_v57  ;;  %6114 = vpow2.f32 %v3273_v51  ;;  %v3281_v58 = vmul.f32 1.442695, %v3096_v45  ;;  %v3283_v59 = vmul.f32 1.442695, %v3097_v34 }
 0x3f2   : > { %v2958_v44 = vpop.xlane.xlu0 %2957  ;;  %6116 = vpow2.f32 %v3275_v37  ;;  %v3085_v56 = vsub.f32 %v10865_v35, %v2938_v54  ;;  %v3285_v8 = vmul.f32 1.442695, %v3098_v14  ;;  %v3086_v63 = vsub.f32 %v10866_v30, %v2938_v54  ;;  %v2928_v57 = vpop.xlane.xlu1 %2927  ;;  %v10868_v51 = vld [vmem:[#allocation220_spill] sm:$0xff]  ;;  %v10869_v13 = vld [vmem:[#allocation231_spill] sm:$0xff]  ;;  %v10870_v35 = vld [vmem:[#allocation233_spill] sm:$0xff] }
 0x3f3   : > { %6118 = vpow2.f32 %v3277_v25  ;;  %v3255_v48 = vmul.f32 1.442695, %v3083_v24  ;;  %v3099_v32 = vsub.f32 %v10867_v40, %v2958_v44  ;;  %v3257_v23 = vmul.f32 1.442695, %v3084_v33  ;;  %v10871_v54 = vld [vmem:[#allocation135_spill] sm:$0xff] }
 0x3f4   : > { %6120 = vpow2.f32 %v3279_v36  ;;  %v3100_v45 = vsub.f32 %v10868_v51, %v2958_v44  ;;  %v3259_v41 = vmul.f32 1.442695, %v3085_v56  ;;  %v3101_v37 = vsub.f32 %v10869_v13, %v2958_v44  ;;  %v10874_v56 = vld [vmem:[#allocation224_spill] sm:$0xff] }
 0x3f5   : > { %6122 = vpow2.f32 %v3281_v58  ;;  %v3261_v34 = vmul.f32 1.442695, %v3086_v63  ;;  %v3102_v25 = vsub.f32 %v10870_v35, %v2958_v44  ;;  %v3287_v14 = vmul.f32 1.442695, %v3099_v32  ;;  %v10873_v58 = vld [vmem:[#allocation215_spill] sm:$0xff] }
 0x3f6   : > { %6124 = vpow2.f32 %v3283_v59  ;;  %v3075_v36 = vsub.f32 %v10871_v54, %v2928_v57  ;;  %v3289_v30 = vmul.f32 1.442695, %v3100_v45  ;;  %v3076_v33 = vsub.f32 %v10873_v58, %v2928_v57  ;;  %v2933_v40 = vpop.xlane.xlu0 %2932  ;;  %v2918_v63 = vpop.xlane.xlu1 %2917  ;;  %v10878_v45 = vld [vmem:[#allocation136_spill] sm:$0xff] }
 0x3f7   : > { %6126 = vpow2.f32 %v3285_v8  ;;  %v3291_v59 = vmul.f32 1.442695, %v3101_v37  ;;  %v3077_v8 = vsub.f32 %v10874_v56, %v2928_v57  ;;  %v3293_v44 = vmul.f32 1.442695, %v3102_v25  ;;  %v10880_v37 = vld [vmem:[#allocation130_spill] sm:$0xff] }
 0x3f8   : > { %6128 = vpow2.f32 %v3255_v48  ;;  %v10876_v48 = vld [vmem:[#allocation229_spill] sm:$0xff]  ;;  %v3079_v54 = vsub.f32 %v10878_v45, %v2933_v40  ;;  %v3067_v61 = vsub.f32 %v10880_v37, %v2918_v63 }
 0x3f9   : > { %v9067_v24 = vpop.eup %6104  ;;  %6130 = vpow2.f32 %v3257_v23  ;;  %v3078_v32 = vsub.f32 %v10876_v48, %v2928_v57  ;;  %v3239_v23 = vmul.f32 1.442695, %v3075_v36  ;;  %v3243_v2 = vmul.f32 1.442695, %v3077_v8 }
 0x3fa   : > { %10872 = vst [vmem:[#allocation212_spill] sm:$0xff] %v9067_v24  ;;  %v9070_v51 = vpop.eup %6106  ;;  %6132 = vpow2.f32 %v3259_v41  ;;  %v3241_v41 = vmul.f32 1.442695, %v3076_v33  ;;  %v3247_v45 = vmul.f32 1.442695, %v3079_v54  ;;  %v2923_v22 = vpop.xlane.xlu0 %2922 }
 0x3fb   : > { %v9073_v13 = vpop.eup %6108  ;;  %6134 = vpow2.f32 %v3261_v34  ;;  %v10882_v34 = vld [vmem:[#allocation131_spill] sm:$0xff]  ;;  %v3245_v57 = vmul.f32 1.442695, %v3078_v32  ;;  %v3223_v16 = vmul.f32 1.442695, %v3067_v61 }
 0x3fc   : > { %10875 = vst [vmem:[#allocation118_spill] sm:$0xff] %v9073_v13  ;;  %v9076_v35 = vpop.eup %6110  ;;  %6136 = vpow2.f32 %v3287_v14  ;;  %v3068_v25 = vsub.f32 %v10882_v34, %v2918_v63  ;;  %v10884_v14 = vld [vmem:[#allocation138_spill] sm:$0xff] }
 0x3fd   : > { %10877 = vst [vmem:[#allocation154_spill] sm:$0xff] %v9076_v35  ;;  %v9079_v58 = vpop.eup %6112  ;;  %6138 = vpow2.f32 %v3289_v30  ;;  %v3080_v36 = vsub.f32 %v10884_v14, %v2933_v40  ;;  %v10886_v30 = vld [vmem:[#allocation228_spill] sm:$0xff] }
 0x3fe   : > { %10879 = vst [vmem:[#allocation152_spill] sm:$0xff] %v9079_v58  ;;  %v9082_v56 = vpop.eup %6114  ;;  %6140 = vpow2.f32 %v3291_v59  ;;  %v3069_v33 = vsub.f32 %v10886_v30, %v2918_v63  ;;  %v10887_v59 = vld [vmem:[#allocation230_spill] sm:$0xff]  ;;  %v3225_v21 = vmul.f32 1.442695, %v3068_v25 }
 0x3ff   : > { %10881 = vst [vmem:[#allocation206_spill] sm:$0xff] %v9082_v56  ;;  %v9085_v11 = vpop.eup %6116  ;;  %6142 = vpow2.f32 %v3293_v44  ;;  %v3081_v8 = vsub.f32 %v10887_v59, %v2933_v40  ;;  %v10888_v44 = vld [vmem:[#allocation234_spill] sm:$0xff]  ;;  %v3249_v20 = vmul.f32 1.442695, %v3080_v36 }
 0x400   : > { %10883 = vst [vmem:[#allocation207_spill] sm:$0xff] %v9085_v11  ;;  %v9088_v48 = vpop.eup %6118  ;;  %6144 = vpow2.f32 %v3239_v23  ;;  %v3070_v32 = vsub.f32 %v10888_v44, %v2918_v63  ;;  %v10889_v23 = vld [vmem:[#allocation213_spill] sm:$0xff]  ;;  %v3227_v10 = vmul.f32 1.442695, %v3069_v33  ;;  %v9106_v63 = vpop.xlane.xlu1 %2907 }
 0x401   : > { %10885 = vst [vmem:[#allocation195_spill] sm:$0xff] %v9088_v48  ;;  %v9091_v37 = vpop.eup %6120  ;;  %6146 = vpow2.f32 %v3241_v41  ;;  %v3082_v54 = vsub.f32 %v10889_v23, %v2933_v40  ;;  %v10890_v41 = vld [vmem:[#allocation132_spill] sm:$0xff]  ;;  %v3251_v61 = vmul.f32 1.442695, %v3081_v8  ;;  %v10894_v40 = vld [vmem:[#allocation235_spill] sm:$0xff]  ;;  %v2913_v44 = vpop.xlane.xlu0 %2912  ;;  %v10896_v33 = vld [vmem:[#allocation197_spill] sm:$0xff] }
 0x402   : > { %v9094_v34 = vpop.eup %6122  ;;  %6148 = vpow2.f32 %v3243_v2  ;;  %v3071_v43 = vsub.f32 %v10890_v41, %v2923_v22  ;;  %v10892_v2 = vld [vmem:[#allocation134_spill] sm:$0xff]  ;;  %v3073_v36 = vsub.f32 %v10894_v40, %v2923_v22  ;;  %v3074_v41 = vsub.f32 %v10896_v33, %v2923_v22  ;;  %v10898_v8 = vld [vmem:[#allocation125_spill] sm:$0xff] }
 0x403   : > { %v9097_v14 = vpop.eup %6124  ;;  %6150 = vpow2.f32 %v3245_v57  ;;  %v3072_v28 = vsub.f32 %v10892_v2, %v2923_v22  ;;  %v3229_v57 = vmul.f32 1.442695, %v3070_v32  ;;  %v3059_v2 = vsub.f32 %v10898_v8, %v9106_v63  ;;  %v10899_v32 = vld [vmem:[#allocation127_spill] sm:$0xff] }
 0x404   : > { %v9100_v30 = vpop.eup %6126  ;;  %6152 = vpow2.f32 %v3247_v45  ;;  %v3253_v45 = vmul.f32 1.442695, %v3082_v54  ;;  %v3063_v40 = vsub.f32 %v10899_v32, %v2913_v44  ;;  %v10900_v54 = vld [vmem:[#allocation129_spill] sm:$0xff]  ;;  %v9131_v32 = vpop.xlane.xlu1 %2897 }
 0x405   : > { %v9103_v59 = vpop.eup %6128  ;;  %6154 = vpow2.f32 %v3223_v16  ;;  %v3231_v16 = vmul.f32 1.442695, %v3071_v43  ;;  %v3064_v9 = vsub.f32 %v10900_v54, %v2913_v44  ;;  %v10901_v43 = vld [vmem:[#allocation126_spill] sm:$0xff]  ;;  %v9144_v55 = vpop.xlane.xlu0 %2902 }
 0x406   : > { %10891 = vst [vmem:[#allocation205_spill] sm:$0xff] %v9103_v59  ;;  %v9108_v25 = vpop.eup %6130  ;;  %6156 = vpow2.f32 %v3225_v21  ;;  %v3233_v21 = vmul.f32 1.442695, %v3072_v28  ;;  %v3060_v33 = vsub.f32 %v10901_v43, %v9106_v63  ;;  %v10902_v28 = vld [vmem:[#allocation193_spill] sm:$0xff]  ;;  %v3215_v54 = vmul.f32 1.442695, %v3063_v40 }
 0x407   : > { %10893 = vst [vmem:[#allocation140_spill] sm:$0xff] %v9108_v25  ;;  %v9111_v23 = vpop.eup %6132  ;;  %6158 = vpow2.f32 %v3249_v20  ;;  %v3235_v20 = vmul.f32 1.442695, %v3073_v36  ;;  %v3065_v18 = vsub.f32 %v10902_v28, %v2913_v44  ;;  %v3217_v29 = vmul.f32 1.442695, %v3064_v9  ;;  %v10910_v40 = vld [vmem:[#allocation121_spill] sm:$0xff] }
 0x408   : > { %10895 = vst [vmem:[#allocation142_spill] sm:$0xff] %v9111_v23  ;;  %v9114_v31 = vpop.eup %6134  ;;  %6160 = vpow2.f32 %v3227_v10  ;;  %v3237_v10 = vmul.f32 1.442695, %v3074_v41  ;;  %v10906_v41 = vld [vmem:[#allocation161_spill] sm:$0xff]  ;;  %v3052_v46 = vsub.f32 %v10910_v40, %v9131_v32  ;;  %v10912_v9 = vld [vmem:[#allocation175_spill] sm:$0xff]  ;;  %v9158_v4 = vpop.xlane.xlu1 %2887  ;;  %v10916_v40 = vld [vmem:[#allocation122_spill] sm:$0xff] }
 0x409   : > { %10897 = vst [vmem:[#allocation217_spill] sm:$0xff] %v9114_v31  ;;  %v9118_v1 = vpop.eup %6136  ;;  %6162 = vpow2.f32 %v3251_v61  ;;  %v3207_v61 = vmul.f32 1.442695, %v3059_v2  ;;  %v3066_v43 = vsub.f32 %v10906_v41, %v2913_v44  ;;  %v10908_v2 = vld [vmem:[#allocation120_spill] sm:$0xff]  ;;  %v3062_v44 = vsub.f32 %v10912_v9, %v9106_v63  ;;  %v9176_v38 = vpop.xlane.xlu0 %2892 }
 0x40a   : > { %v9121_v0 = vpop.eup %6138  ;;  %6164 = vpow2.f32 %v3229_v57  ;;  %v10904_v57 = vld [vmem:[#allocation232_spill] sm:$0xff]  ;;  %v3051_v28 = vsub.f32 %v10908_v2, %v9131_v32  ;;  %v10914_v2 = vld [vmem:[#allocation166_spill] sm:$0xff]  ;;  %v3055_v39 = vsub.f32 %v10916_v40, %v9144_v55 }
 0x40b   : > { %v9124_v22 = vpop.eup %6140  ;;  %6166 = vpow2.f32 %v3253_v45  ;;  %v3061_v36 = vsub.f32 %v10904_v57, %v9106_v63  ;;  %v3219_v57 = vmul.f32 1.442695, %v3065_v18  ;;  %v3053_v19 = vsub.f32 %v10914_v2, %v9131_v32  ;;  %v10917_v63 = vld [vmem:[#allocation124_spill] sm:$0xff] }
 0x40c   : > { %v9128_v8 = vpop.eup %6142  ;;  %6168 = vpow2.f32 %v3231_v16  ;;  %v3209_v16 = vmul.f32 1.442695, %v3060_v33  ;;  %v3221_v33 = vmul.f32 1.442695, %v3066_v43 }
 0x40d   : > { %v9133_v26 = vpop.eup %6144  ;;  %6170 = vpow2.f32 %v3233_v21  ;;  %v3211_v41 = vmul.f32 1.442695, %v3061_v36  ;;  %v3056_v36 = vsub.f32 %v10917_v63, %v9144_v55 }
 0x40e   : > { %10903 = vst [vmem:[#allocation219_spill] sm:$0xff] %v9133_v26  ;;  %v9137_v45 = vpop.eup %6146  ;;  %6172 = vpow2.f32 %v3235_v20 }
 0x40f   : > { %10905 = vst [vmem:[#allocation143_spill] sm:$0xff] %v9137_v45  ;;  %v9140_v42 = vpop.eup %6148  ;;  %6174 = vpow2.f32 %v3237_v10  ;;  %v3468_v9 = vadd.f32 %v9137_v45, %v9133_v26  ;;  %v10924_v26 = vld [vmem:[#allocation210_spill] sm:$0xff]  ;;  %v3201_v45 = vmul.f32 1.442695, %v3056_v36 }
 0x410   : > { %10907 = vst [vmem:[#allocation216_spill] sm:$0xff] %v9140_v42  ;;  %v9146_v21 = vpop.eup %6150  ;;  %6176 = vpow2.f32 %v3207_v61  ;;  %v3191_v61 = vmul.f32 1.442695, %v3051_v28  ;;  %v10920_v28 = vld [vmem:[#allocation115_spill] sm:$0xff] }
 0x411   : > { %10909 = vst [vmem:[#allocation222_spill] sm:$0xff] %v9146_v21  ;;  %v9150_v20 = vpop.eup %6152  ;;  %6178 = vpow2.f32 %v3215_v54  ;;  %v3043_v40 = vsub.f32 %v10920_v28, %v9158_v4 }
 0x412   : > { %10911 = vst [vmem:[#allocation223_spill] sm:$0xff] %v9150_v20  ;;  %v9154_v10 = vpop.eup %6154  ;;  %6180 = vpow2.f32 %v3217_v29  ;;  %v3193_v29 = vmul.f32 1.442695, %v3052_v46  ;;  %v10922_v46 = vld [vmem:[#allocation116_spill] sm:$0xff] }
 0x413   : > { %10913 = vst [vmem:[#allocation144_spill] sm:$0xff] %v9154_v10  ;;  %v9160_v18 = vpop.eup %6156  ;;  %6182 = vpow2.f32 %v3209_v16  ;;  %v3213_v16 = vmul.f32 1.442695, %v3062_v44  ;;  %v3044_v17 = vsub.f32 %v10922_v46, %v9158_v4  ;;  %v3199_v44 = vmul.f32 1.442695, %v3055_v39  ;;  %v10929_v39 = vld [vmem:[#allocation159_spill] sm:$0xff] }
 0x414   : > { %10915 = vst [vmem:[#allocation146_spill] sm:$0xff] %v9160_v18  ;;  %v9166_v54 = vpop.eup %6158  ;;  %6184 = vpow2.f32 %v3219_v57  ;;  %v3458_v43 = vadd.f32 %v9160_v18, %v9154_v10  ;;  %v3195_v57 = vmul.f32 1.442695, %v3053_v19  ;;  %v3469_v19 = vadd.f32 %v9140_v42, %v3468_v9  ;;  %v9207_v42 = vpop.xlane.xlu0 %2882 }
 0x415   : > { %10918 = vst [vmem:[#allocation226_spill] sm:$0xff] %v9166_v54  ;;  %v9172_v2 = vpop.eup %6160  ;;  %6186 = vpow2.f32 %v3211_v41  ;;  %v3054_v41 = vsub.f32 %v10924_v26, %v9131_v32  ;;  %v3175_v26 = vmul.f32 1.442695, %v3043_v40  ;;  %v3177_v36 = vmul.f32 1.442695, %v3044_v17 }
 0x416   : > { %10919 = vst [vmem:[#allocation227_spill] sm:$0xff] %v9172_v2  ;;  %v9178_v63 = vpop.eup %6162  ;;  %6188 = vpow2.f32 %v3221_v33  ;;  %v3459_v10 = vadd.f32 %v9172_v2, %v3458_v43  ;;  %v3478_v33 = vadd.f32 %v9108_v25, %v9103_v59  ;;  %v10927_v43 = vld [vmem:[#allocation191_spill] sm:$0xff]  ;;  %v3488_v40 = vadd.f32 %v9082_v56, %v9079_v58 }
 0x417   : > { %10921 = vst [vmem:[#allocation139_spill] sm:$0xff] %v9178_v63  ;;  %v9183_v18 = vpop.eup %6164  ;;  %6190 = vpow2.f32 %v3191_v61  ;;  %v3045_v2 = vsub.f32 %v10927_v43, %v9158_v4  ;;  %v3057_v61 = vsub.f32 %v10929_v39, %v9144_v55  ;;  %v3197_v43 = vmul.f32 1.442695, %v3054_v41 }
 0x418   : > { %10923 = vst [vmem:[#allocation218_spill] sm:$0xff] %v9183_v18  ;;  %v9187_v28 = vpop.eup %6166  ;;  %6192 = vpow2.f32 %v3193_v29  ;;  %v3460_v50 = vadd.f32 %v9183_v18, %v3459_v10  ;;  %v10930_v10 = vld [vmem:[#allocation117_spill] sm:$0xff]  ;;  %v3470_v17 = vadd.f32 %v9146_v21, %v3469_v19  ;;  %v3479_v39 = vadd.f32 %v9111_v23, %v3478_v33  ;;  %v10940_v23 = vld [vmem:[#allocation114_spill] sm:$0xff] }
 0x419   : > { %10925 = vst [vmem:[#allocation221_spill] sm:$0xff] %v9187_v28  ;;  %v9193_v46 = vpop.eup %6168  ;;  %6194 = vpow2.f32 %v3213_v16  ;;  %v3047_v29 = vsub.f32 %v10930_v10, %v9176_v38  ;;  %v10932_v16 = vld [vmem:[#allocation119_spill] sm:$0xff]  ;;  %v3179_v25 = vmul.f32 1.442695, %v3045_v2  ;;  %v3203_v58 = vmul.f32 1.442695, %v3057_v61 }
 0x41a   : > { %10926 = vst [vmem:[#allocation225_spill] sm:$0xff] %v9193_v46  ;;  %v9197_v32 = vpop.eup %6170  ;;  %6196 = vpow2.f32 %v3195_v57  ;;  %3461 = vadd.xlane.f32.xlu1 %v3460_v50  ;;  %v3048_v18 = vsub.f32 %v10932_v16, %v9176_v38  ;;  %v10936_v16 = vld [vmem:[#allocation201_spill] sm:$0xff] }
 0x41b   : > { %10928 = vst [vmem:[#allocation147_spill] sm:$0xff] %v9197_v32  ;;  %v9203_v9 = vpop.eup %6172  ;;  %6198 = vpow2.f32 %v3199_v44  ;;  %v10935_v44 = vld [vmem:[#allocation199_spill] sm:$0xff]  ;;  %v3046_v59 = vsub.f32 %v10936_v16, %v9158_v4  ;;  %v3183_v41 = vmul.f32 1.442695, %v3047_v29  ;;  %v3498_v4 = vadd.f32 %v9121_v0, %v9118_v1 }
 0x41c   : > { %10931 = vst [vmem:[#allocation220_spill] sm:$0xff] %v9203_v9  ;;  %v9211_v57 = vpop.eup %6174  ;;  %6200 = vpow2.f32 %v3201_v45  ;;  %v3058_v10 = vsub.f32 %v10935_v44, %v9144_v55  ;;  %v10938_v45 = vld [vmem:[#allocation113_spill] sm:$0xff]  ;;  %v3185_v21 = vmul.f32 1.442695, %v3048_v18  ;;  %v3040_v55 = vsub.f32 %v10940_v23, %v9207_v42 }
 0x41d   : > { %10933 = vst [vmem:[#allocation231_spill] sm:$0xff] %v9211_v57  ;;  %v9215_v50 = vpop.eup %6176  ;;  %6202 = vpow2.f32 %v3175_v26  ;;  %v3039_v19 = vsub.f32 %v10938_v45, %v9207_v42  ;;  %v3489_v44 = vadd.f32 %v9085_v11, %v3488_v40  ;;  %v3480_v26 = vadd.f32 %v9114_v31, %v3479_v39  ;;  %v10943_v40 = vld [vmem:[#allocation194_spill] sm:$0xff] }
 0x41e   : > { %10934 = vst [vmem:[#allocation233_spill] sm:$0xff] %v9215_v50  ;;  %v9221_v6 = vpop.eup %6178  ;;  %6204 = vpow2.f32 %v3177_v36  ;;  %3471 = vadd.xlane.f32.xlu1 %v3470_v17  ;;  %v3463_v36 = vadd.f32 %v9197_v32, %v9193_v46  ;;  %v3205_v29 = vmul.f32 1.442695, %v3058_v10  ;;  %v3181_v23 = vmul.f32 1.442695, %v3046_v59 }
 0x41f   : > { %10937 = vst [vmem:[#allocation135_spill] sm:$0xff] %v9221_v6  ;;  %v9225_v33 = vpop.eup %6180  ;;  %6206 = vpow2.f32 %v3197_v43  ;;  %v3049_v17 = vsub.f32 %v10943_v40, %v9176_v38  ;;  %v3167_v43 = vmul.f32 1.442695, %v3039_v19  ;;  %v3473_v45 = vadd.f32 %v9166_v54, %v9150_v20 }
 0x420   : > { %10939 = vst [vmem:[#allocation215_spill] sm:$0xff] %v9225_v33  ;;  %v9232_v2 = vpop.eup %6182  ;;  %v3453_v61 = vadd.f32 %v9225_v33, %v9221_v6  ;;  %6208 = vpow2.f32 %v3179_v25  ;;  %v3169_v46 = vmul.f32 1.442695, %v3040_v55  ;;  %v3490_v25 = vadd.f32 %v9088_v48, %v3489_v44 }
 0x421   : > { %10941 = vst [vmem:[#allocation224_spill] sm:$0xff] %v9232_v2  ;;  %v9239_v18 = vpop.eup %6184  ;;  %6210 = vpow2.f32 %v3183_v41  ;;  %v3499_v59 = vadd.f32 %v9124_v22, %v3498_v4  ;;  %v3464_v19 = vadd.f32 %v9203_v9, %v3463_v36  ;;  %v3187_v40 = vmul.f32 1.442695, %v3049_v17  ;;  %v10950_v4 = vld [vmem:[#allocation189_spill] sm:$0xff] }
 0x422   : > { %10942 = vst [vmem:[#allocation229_spill] sm:$0xff] %v9239_v18  ;;  %v9243_v16 = vpop.eup %6186  ;;  %3481 = vadd.xlane.f32.xlu1 %v3480_v26  ;;  %v3454_v39 = vadd.f32 %v9239_v18, %v3453_v61  ;;  %6212 = vpow2.f32 %v3185_v21  ;;  %v3448_v26 = vadd.f32 %v9232_v2, %v9215_v50  ;;  %v10948_v21 = vld [vmem:[#allocation196_spill] sm:$0xff]  ;;  %v3474_v36 = vadd.f32 %v9178_v63, %v3473_v45 }
 0x423   : > { %10944 = vst [vmem:[#allocation136_spill] sm:$0xff] %v9243_v16  ;;  %v9248_v6 = vpop.eup %6188  ;;  %6214 = vpow2.f32 %v3203_v58  ;;  %v3050_v55 = vsub.f32 %v10948_v21, %v9176_v38  ;;  %v3041_v58 = vsub.f32 %v10950_v4, %v9207_v42  ;;  %v3500_v50 = vadd.f32 %v9128_v8, %v3499_v59  ;;  %v10955_v21 = vld [vmem:[#allocation190_spill] sm:$0xff] }
 0x424   : > { %10945 = vst [vmem:[#allocation130_spill] sm:$0xff] %v9248_v6  ;;  %v9252_v10 = vpop.eup %6190  ;;  %v3455_v41 = vadd.f32 %v9248_v6, %v3454_v39  ;;  %6216 = vpow2.f32 %v3205_v29  ;;  %v3483_v29 = vadd.f32 %v9070_v51, %v9067_v24  ;;  %v3493_v38 = vadd.f32 %v9094_v34, %v9091_v37 }
 0x425   : > { %10946 = vst [vmem:[#allocation131_spill] sm:$0xff] %v9252_v10  ;;  %v9258_v61 = vpop.eup %6192  ;;  %6218 = vpow2.f32 %v3181_v23  ;;  %v3465_v23 = vadd.f32 %v9211_v57, %v3464_v19  ;;  %v3042_v4 = vsub.f32 %v10955_v21, %v9207_v42  ;;  %v3171_v2 = vmul.f32 1.442695, %v3041_v58  ;;  %v10958_v58 = vld [vmem:[#allocation186_spill] sm:$0xff]  ;;  %v11001_v57 = vld [vmem:[#allocation160_spill] sm:$0xff] }
 0x426   : > { %10947 = vst [vmem:[#allocation138_spill] sm:$0xff] %v9258_v61  ;;  %v9262_v44 = vpop.eup %6194  ;;  %3456 = vadd.xlane.f32.xlu0 %v3455_v41  ;;  %3491 = vadd.xlane.f32.xlu1 %v3490_v25  ;;  %6220 = vpow2.f32 %v3167_v43  ;;  %v3449_v25 = vadd.f32 %v9243_v16, %v3448_v26  ;;  %v3438_v45 = vadd.f32 %v9258_v61, %v9252_v10  ;;  %v3189_v43 = vmul.f32 1.442695, %v3050_v55 }
 0x427   : > { %10949 = vst [vmem:[#allocation228_spill] sm:$0xff] %v9262_v44  ;;  %v9267_v39 = vpop.eup %6196  ;;  %6222 = vpow2.f32 %v3169_v46  ;;  %v3475_v19 = vadd.f32 %v9187_v28, %v3474_v36  ;;  %v3484_v26 = vadd.f32 %v9073_v13, %v3483_v29  ;;  %v3494_v55 = vadd.f32 %v9097_v14, %v3493_v38  ;;  %v11012_v28 = vld [vmem:[#allocation155_spill] sm:$0xff] }
 0x428   : > { %10951 = vst [vmem:[#allocation230_spill] sm:$0xff] %v9267_v39  ;;  %v9274_v17 = vpop.eup %6198  ;;  %6224 = vpow2.f32 %v3187_v40  ;;  %v3450_v10 = vadd.f32 %v9262_v44, %v3449_v25  ;;  %v3439_v61 = vadd.f32 %v9267_v39, %v3438_v45  ;;  %v3173_v25 = vmul.f32 1.442695, %v3042_v4 }
 0x429   : > { %10952 = vst [vmem:[#allocation234_spill] sm:$0xff] %v9274_v17  ;;  %v9280_v41 = vpop.eup %6200  ;;  %6226 = vpow2.f32 %v3189_v43  ;;  %v3485_v43 = vadd.f32 %v9076_v35, %v3484_v26  ;;  %v11025_v35 = vld [vmem:[#allocation150_spill] sm:$0xff] }
 0x42a   : > { %10953 = vst [vmem:[#allocation213_spill] sm:$0xff] %v9280_v41  ;;  %v9282_v59 = vpop.eup %6202  ;;  %3466 = vadd.xlane.f32.xlu0 %v3465_v23  ;;  %3501 = vadd.xlane.f32.xlu1 %v3500_v50  ;;  %6228 = vpow2.f32 %v3171_v2  ;;  %v3443_v38 = vadd.f32 %v9280_v41, %v9274_v17 }
 0x42b   : > { %10954 = vst [vmem:[#allocation132_spill] sm:$0xff] %v9282_v59  ;;  %v9286_v46 = vpop.eup %6204  ;;  %6230 = vpow2.f32 %v3173_v25 }
 0x42c   : > { %10956 = vst [vmem:[#allocation134_spill] sm:$0xff] %v9286_v46  ;;  %v3428_v40 = vadd.f32 %v9286_v46, %v9282_v59  ;;  %v9295_v42 = vpop.eup %6206 }
 0x42d   : > { %10957 = vst [vmem:[#allocation235_spill] sm:$0xff] %v9295_v42  ;;  %v9300_v29 = vpop.eup %6208 }
 0x42e   : > { %v3033_v16 = vpop.xlane.xlu0 %3032  ;;  %10959 = vst [vmem:[#allocation197_spill] sm:$0xff] %v9300_v29  ;;  %3476 = vadd.xlane.f32.xlu0 %v3475_v19  ;;  %3451 = vadd.xlane.f32.xlu1 %v3450_v10  ;;  %v9305_v21 = vpop.eup %6210  ;;  %v3429_v2 = vadd.f32 %v9300_v29, %v3428_v40 }
 0x42f   : > { %v3159_v50 = vsub.f32 %v10781_v62, %v3033_v16  ;;  %v3160_v23 = vsub.f32 %v10958_v58, %v3033_v16  ;;  %v3161_v36 = vsub.f32 %v8854_v47, %v3033_v16  ;;  %v3162_v45 = vsub.f32 %v8867_v12, %v3033_v16  ;;  %10960 = vst [vmem:[#allocation125_spill] sm:$0xff] %v9305_v21  ;;  %v9308_v59 = vpop.eup %6212 }
 0x430   : > { %10961 = vst [vmem:[#allocation127_spill] sm:$0xff] %v9308_v59  ;;  %v3440_v47 = vadd.f32 %v9295_v42, %v3439_v61  ;;  %v3495_v58 = vadd.f32 %v9100_v30, %v3494_v55  ;;  %v9313_v46 = vpop.eup %6214 }
 0x431   : > { %v3407_v62 = vmul.f32 1.442695, %v3159_v50  ;;  %v3409_v4 = vmul.f32 1.442695, %v3160_v23  ;;  %10962 = vst [vmem:[#allocation129_spill] sm:$0xff] %v9313_v46  ;;  %v9318_v50 = vpop.eup %6216  ;;  %v3444_v61 = vadd.f32 %v9313_v46, %v3443_v38 }
 0x432   : > { %v3038_v10 = vpop.xlane.xlu1 %3037  ;;  %v3023_v19 = vpop.xlane.xlu0 %3022  ;;  %v3411_v39 = vmul.f32 1.442695, %v3161_v36  ;;  %10963 = vst [vmem:[#allocation126_spill] sm:$0xff] %v9318_v50  ;;  %3486 = vadd.xlane.f32.xlu0 %v3485_v43  ;;  %3441 = vadd.xlane.f32.xlu1 %v3440_v47  ;;  %v3413_v55 = vmul.f32 1.442695, %v3162_v45  ;;  %v10967_v47 = vld [vmem:[#allocation182_spill] sm:$0xff] }
 0x433   : > { %v3163_v12 = vsub.f32 %v10785_v53, %v3038_v10  ;;  %v3164_v16 = vsub.f32 %v8845_v60, %v3038_v10  ;;  %v3165_v26 = vsub.f32 %v8879_v52, %v3038_v10  ;;  %v3166_v40 = vsub.f32 %v8895_v3, %v3038_v10  ;;  %v9322_v23 = vpop.eup %6218  ;;  %v10965_v60 = vld [vmem:[#allocation181_spill] sm:$0xff] }
 0x434   : > { %10964 = vst [vmem:[#allocation193_spill] sm:$0xff] %v9322_v23  ;;  %6232 = vpow2.f32 %v3407_v62  ;;  %v3433_v53 = vadd.f32 %v9308_v59, %v9305_v21  ;;  %v3151_v29 = vsub.f32 %v10965_v60, %v3023_v19  ;;  %v9327_v52 = vpop.eup %6220  ;;  %v3430_v25 = vadd.f32 %v9322_v23, %v3429_v2 }
 0x435   : > { %v3415_v36 = vmul.f32 1.442695, %v3163_v12  ;;  %10966 = vst [vmem:[#allocation232_spill] sm:$0xff] %v9327_v52  ;;  %6234 = vpow2.f32 %v3409_v4  ;;  %v3417_v43 = vmul.f32 1.442695, %v3164_v16  ;;  %v3152_v38 = vsub.f32 %v10967_v47, %v3023_v19  ;;  %v9331_v42 = vpop.eup %6222 }
 0x436   : > { %v3028_v45 = vpop.xlane.xlu1 %3027  ;;  %10968 = vst [vmem:[#allocation161_spill] sm:$0xff] %v9331_v42  ;;  %6236 = vpow2.f32 %v3411_v39  ;;  %v3419_v3 = vmul.f32 1.442695, %v3165_v26  ;;  %v3153_v62 = vsub.f32 %v8847_v7, %v3023_v19  ;;  %v9334_v10 = vpop.eup %6224  ;;  %3496 = vadd.xlane.f32.xlu0 %v3495_v58  ;;  %3431 = vadd.xlane.f32.xlu1 %v3430_v25  ;;  %v3445_v12 = vadd.f32 %v9318_v50, %v3444_v61  ;;  %v10973_v25 = vld [vmem:[#allocation177_spill] sm:$0xff] }
 0x437   : > { %10969 = vst [vmem:[#allocation120_spill] sm:$0xff] %v9334_v10  ;;  %6238 = vpow2.f32 %v3413_v55  ;;  %v3421_v60 = vmul.f32 1.442695, %v3166_v40  ;;  %v3154_v2 = vsub.f32 %v8875_v27, %v3023_v19  ;;  %v3434_v4 = vadd.f32 %v9334_v10, %v3433_v53  ;;  %v3013_v26 = vpop.xlane.xlu0 %3012  ;;  %v9344_v40 = vpop.eup %6226 }
 0x438   : > { %6240 = vpow2.f32 %v3415_v36  ;;  %v3391_v16 = vmul.f32 1.442695, %v3151_v29  ;;  %v3155_v47 = vsub.f32 %v10789_v5, %v3028_v45  ;;  %v3393_v39 = vmul.f32 1.442695, %v3152_v38  ;;  %10970 = vst [vmem:[#allocation121_spill] sm:$0xff] %v9344_v40  ;;  %v10971_v29 = vld [vmem:[#allocation128_spill] sm:$0xff]  ;;  %v9347_v5 = vpop.eup %6228 }
 0x439   : > { %6242 = vpow2.f32 %v3417_v43  ;;  %v3423_v7 = vadd.f32 %v9331_v42, %v9327_v52  ;;  %v3156_v58 = vsub.f32 %v8859_v49, %v3028_v45  ;;  %v3395_v61 = vmul.f32 1.442695, %v3153_v62  ;;  %10972 = vst [vmem:[#allocation175_spill] sm:$0xff] %v9347_v5 }
 0x43a   : > { %6244 = vpow2.f32 %v3419_v3  ;;  %v3157_v55 = vsub.f32 %v8877_v15, %v3028_v45  ;;  %3446 = vadd.xlane.f32.xlu0 %v3445_v12  ;;  %v3397_v27 = vmul.f32 1.442695, %v3154_v2  ;;  %v3158_v19 = vsub.f32 %v10971_v29, %v3028_v45  ;;  %v10974_v15 = vld [vmem:[#allocation178_spill] sm:$0xff]  ;;  %v3018_v62 = vpop.xlane.xlu1 %3017 }
 0x43b   : > { %6246 = vpow2.f32 %v3421_v60  ;;  %v3435_v53 = vadd.f32 %v9344_v40, %v3434_v4  ;;  %v3399_v36 = vmul.f32 1.442695, %v3155_v47  ;;  %v3143_v49 = vsub.f32 %v10973_v25, %v3013_v26  ;;  %v10975_v60 = vld [vmem:[#allocation163_spill] sm:$0xff]  ;;  %v10976_v29 = vld [vmem:[#allocation202_spill] sm:$0xff] }
 0x43c   : > { %6248 = vpow2.f32 %v3391_v16  ;;  %v3424_v43 = vadd.f32 %v9347_v5, %v3423_v7  ;;  %v3401_v38 = vmul.f32 1.442695, %v3156_v58  ;;  %v3144_v3 = vsub.f32 %v10974_v15, %v3013_v26  ;;  %v9355_v16 = vpop.eup %6230 }
 0x43d   : > { %6250 = vpow2.f32 %v3393_v39  ;;  %v3403_v12 = vmul.f32 1.442695, %v3157_v55  ;;  %v3145_v2 = vsub.f32 %v10975_v60, %v3013_v26  ;;  %v3405_v45 = vmul.f32 1.442695, %v3158_v19  ;;  %10977 = vst [vmem:[#allocation166_spill] sm:$0xff] %v9355_v16  ;;  %v10978_v39 = vld [vmem:[#allocation179_spill] sm:$0xff]  ;;  %v3003_v60 = vpop.xlane.xlu0 %3002 }
 0x43e   : > { %6252 = vpow2.f32 %v3395_v61  ;;  %3436 = vadd.xlane.f32.xlu0 %v3435_v53  ;;  %v3146_v4 = vsub.f32 %v10976_v29, %v3013_v26  ;;  %v3375_v47 = vmul.f32 1.442695, %v3143_v49  ;;  %v3147_v25 = vsub.f32 %v10978_v39, %v3018_v62  ;;  %v10979_v55 = vld [vmem:[#allocation203_spill] sm:$0xff]  ;;  %v10980_v26 = vld [vmem:[#allocation149_spill] sm:$0xff]  ;;  %v10981_v49 = vld [vmem:[#allocation188_spill] sm:$0xff] }
 0x43f   : > { %6254 = vpow2.f32 %v3397_v27  ;;  %v3425_v58 = vadd.f32 %v9355_v16, %v3424_v43  ;;  %v3377_v61 = vmul.f32 1.442695, %v3144_v3  ;;  %v3148_v15 = vsub.f32 %v10979_v55, %v3018_v62 }
 0x440   : > { %6256 = vpow2.f32 %v3399_v36  ;;  %v3379_v27 = vmul.f32 1.442695, %v3145_v2  ;;  %v3149_v19 = vsub.f32 %v10980_v26, %v3018_v62  ;;  %v3381_v36 = vmul.f32 1.442695, %v3146_v4  ;;  %v10983_v2 = vld [vmem:[#allocation173_spill] sm:$0xff]  ;;  %v9374_v26 = vpop.xlane.xlu1 %3007  ;;  %v10984_v4 = vld [vmem:[#allocation192_spill] sm:$0xff] }
 0x441   : > { %v9358_v7 = vpop.eup %6232  ;;  %6258 = vpow2.f32 %v3401_v38  ;;  %v3150_v39 = vsub.f32 %v10981_v49, %v3018_v62  ;;  %v3383_v43 = vmul.f32 1.442695, %v3147_v25  ;;  %v10982_v38 = vld [vmem:[#allocation172_spill] sm:$0xff]  ;;  %v3136_v52 = vsub.f32 %v10983_v2, %v3003_v60  ;;  %v10985_v25 = vld [vmem:[#allocation141_spill] sm:$0xff] }
 0x442   : > { %v9362_v53 = vpop.eup %6234  ;;  %6260 = vpow2.f32 %v3403_v12  ;;  %3426 = vadd.xlane.f32.xlu0 %v3425_v58  ;;  %v3135_v3 = vsub.f32 %v10982_v38, %v3003_v60  ;;  %v3385_v12 = vmul.f32 1.442695, %v3148_v15  ;;  %v3137_v62 = vsub.f32 %v10984_v4, %v3003_v60  ;;  %v2993_v38 = vpop.xlane.xlu0 %2992  ;;  %v10986_v15 = vld [vmem:[#allocation174_spill] sm:$0xff] }
 0x443   : > { %v9365_v29 = vpop.eup %6236  ;;  %6262 = vpow2.f32 %v3405_v45  ;;  %v3387_v45 = vmul.f32 1.442695, %v3149_v19  ;;  %v3138_v49 = vsub.f32 %v10985_v25, %v3003_v60  ;;  %v3139_v2 = vsub.f32 %v10986_v15, %v9374_v26  ;;  %v10987_v19 = vld [vmem:[#allocation133_spill] sm:$0xff] }
 0x444   : > { %v9368_v5 = vpop.eup %6238  ;;  %6264 = vpow2.f32 %v3375_v47  ;;  %v3389_v47 = vmul.f32 1.442695, %v3150_v39  ;;  %v3140_v4 = vsub.f32 %v10987_v19, %v9374_v26  ;;  %v10988_v60 = vld [vmem:[#allocation165_spill] sm:$0xff]  ;;  %v2998_v15 = vpop.xlane.xlu1 %2997 }
 0x445   : > { %v9371_v55 = vpop.eup %6240  ;;  %6266 = vpow2.f32 %v3377_v61  ;;  %v3359_v61 = vmul.f32 1.442695, %v3135_v3  ;;  %v3127_v39 = vsub.f32 %v10988_v60, %v2993_v38  ;;  %v10989_v3 = vld [vmem:[#allocation167_spill] sm:$0xff] }
 0x446   : > { %v9376_v23 = vpop.eup %6242  ;;  %6268 = vpow2.f32 %v3379_v27  ;;  %v3361_v27 = vmul.f32 1.442695, %v3136_v52  ;;  %v3128_v21 = vsub.f32 %v10989_v3, %v2993_v38  ;;  %v3367_v52 = vmul.f32 1.442695, %v3139_v2 }
 0x447   : > { %v9379_v58 = vpop.eup %6244  ;;  %6270 = vpow2.f32 %v3381_v36  ;;  %v3363_v36 = vmul.f32 1.442695, %v3137_v62  ;;  %v10991_v62 = vld [vmem:[#allocation187_spill] sm:$0xff] }
 0x448   : > { %v9382_v16 = vpop.eup %6246  ;;  %6272 = vpow2.f32 %v3383_v43  ;;  %v3365_v43 = vmul.f32 1.442695, %v3138_v49  ;;  %v3130_v46 = vsub.f32 %v10991_v62, %v2993_v38  ;;  %v10992_v49 = vld [vmem:[#allocation169_spill] sm:$0xff]  ;;  %v3345_v44 = vmul.f32 1.442695, %v3128_v21  ;;  %v10997_v21 = vld [vmem:[#allocation183_spill] sm:$0xff] }
 0x449   : > { %v9386_v42 = vpop.eup %6248  ;;  %6274 = vpow2.f32 %v3385_v12  ;;  %v10990_v12 = vld [vmem:[#allocation137_spill] sm:$0xff]  ;;  %v3131_v17 = vsub.f32 %v10992_v49, %v2998_v15  ;;  %v2983_v49 = vpop.xlane.xlu0 %2982 }
 0x44a   : > { %v9390_v10 = vpop.eup %6250  ;;  %6276 = vpow2.f32 %v3387_v45  ;;  %v3129_v59 = vsub.f32 %v10990_v12, %v2993_v38  ;;  %v3369_v45 = vmul.f32 1.442695, %v3140_v4  ;;  %v10994_v12 = vld [vmem:[#allocation145_spill] sm:$0xff] }
 0x44b   : > { %v9393_v25 = vpop.eup %6252  ;;  %6278 = vpow2.f32 %v3389_v47  ;;  %v3343_v47 = vmul.f32 1.442695, %v3127_v39  ;;  %v10996_v39 = vld [vmem:[#allocation180_spill] sm:$0xff] }
 0x44c   : > { %v9396_v40 = vpop.eup %6254  ;;  %6280 = vpow2.f32 %v3359_v61  ;;  %v10993_v61 = vld [vmem:[#allocation185_spill] sm:$0xff]  ;;  %v3347_v4 = vmul.f32 1.442695, %v3129_v59  ;;  %v3133_v62 = vsub.f32 %v10996_v39, %v2998_v15 }
 0x44d   : > { %v9399_v19 = vpop.eup %6256  ;;  %6282 = vpow2.f32 %v3361_v27  ;;  %v3132_v2 = vsub.f32 %v10993_v61, %v2998_v15  ;;  %v3141_v27 = vsub.f32 %v10994_v12, %v9374_v26  ;;  %v3351_v61 = vmul.f32 1.442695, %v3131_v17  ;;  %v10999_v12 = vld [vmem:[#allocation171_spill] sm:$0xff] }
 0x44e   : > { %v9402_v60 = vpop.eup %6258  ;;  %6284 = vpow2.f32 %v3363_v36  ;;  %v3349_v36 = vmul.f32 1.442695, %v3130_v46  ;;  %v11000_v46 = vld [vmem:[#allocation158_spill] sm:$0xff]  ;;  %v3355_v33 = vmul.f32 1.442695, %v3133_v62 }
 0x44f   : > { %v9405_v3 = vpop.eup %6260  ;;  %6286 = vpow2.f32 %v3365_v43  ;;  %v3142_v43 = vsub.f32 %v10997_v21, %v9374_v26  ;;  %v3353_v59 = vmul.f32 1.442695, %v3132_v2  ;;  %v3119_v39 = vsub.f32 %v11000_v46, %v2983_v49  ;;  %v11004_v62 = vld [vmem:[#allocation162_spill] sm:$0xff] }
 0x450   : > { %v9408_v50 = vpop.eup %6262  ;;  %6288 = vpow2.f32 %v3367_v52  ;;  %v3134_v52 = vsub.f32 %v10999_v12, %v2998_v15  ;;  %v3120_v26 = vsub.f32 %v11001_v57, %v2983_v49  ;;  %v2973_v57 = vpop.xlane.xlu0 %2972 }
 0x451   : > { %v9412_v38 = vpop.eup %6264  ;;  %6290 = vpow2.f32 %v3369_v45  ;;  %v3371_v45 = vmul.f32 1.442695, %v3141_v27  ;;  %v3373_v21 = vmul.f32 1.442695, %v3142_v43  ;;  %v3112_v54 = vsub.f32 %v11012_v28, %v2973_v57  ;;  %v11016_v28 = vld [vmem:[#allocation156_spill] sm:$0xff] }
 0x452   : > { %10995 = vst [vmem:[#allocation122_spill] sm:$0xff] %v9412_v38  ;;  %v9415_v41 = vpop.eup %6266  ;;  %6292 = vpow2.f32 %v3343_v47  ;;  %v2988_v47 = vpop.xlane.xlu1 %2987  ;;  %v3357_v27 = vmul.f32 1.442695, %v3134_v52  ;;  %v3329_v43 = vmul.f32 1.442695, %v3120_v26  ;;  %v11008_v52 = vld [vmem:[#allocation208_spill] sm:$0xff] }
 0x453   : > { %v9419_v18 = vpop.eup %6268  ;;  %6294 = vpow2.f32 %v3345_v44  ;;  %v11002_v44 = vld [vmem:[#allocation184_spill] sm:$0xff]  ;;  %v3123_v63 = vsub.f32 %v11004_v62, %v2988_v47  ;;  %v3125_v31 = vsub.f32 %v11008_v52, %v2988_v47  ;;  %v11015_v52 = vld [vmem:[#allocation198_spill] sm:$0xff] }
 0x454   : > { %10998 = vst [vmem:[#allocation124_spill] sm:$0xff] %v9419_v18  ;;  %v9422_v6 = vpop.eup %6270  ;;  %6296 = vpow2.f32 %v3347_v4  ;;  %v3121_v15 = vsub.f32 %v11002_v44, %v2983_v49  ;;  %v11003_v4 = vld [vmem:[#allocation176_spill] sm:$0xff] }
 0x455   : > { %v9425_v9 = vpop.eup %6272  ;;  %6298 = vpow2.f32 %v3349_v36  ;;  %v3122_v12 = vsub.f32 %v11003_v4, %v2983_v49  ;;  %v3327_v36 = vmul.f32 1.442695, %v3119_v39  ;;  %v11009_v49 = vld [vmem:[#allocation211_spill] sm:$0xff]  ;;  %v11011_v39 = vld [vmem:[#allocation153_spill] sm:$0xff] }
 0x456   : > { %v9428_v17 = vpop.eup %6274  ;;  %6300 = vpow2.f32 %v3351_v61  ;;  %v11006_v61 = vld [vmem:[#allocation214_spill] sm:$0xff]  ;;  %v3126_v4 = vsub.f32 %v11009_v49, %v2988_v47  ;;  %v3111_v62 = vsub.f32 %v11011_v39, %v2973_v57  ;;  %v3114_v49 = vsub.f32 %v11015_v52, %v2973_v57 }
 0x457   : > { %v9431_v2 = vpop.eup %6276  ;;  %6302 = vpow2.f32 %v3353_v59  ;;  %v3124_v32 = vsub.f32 %v11006_v61, %v2988_v47  ;;  %v3331_v59 = vmul.f32 1.442695, %v3121_v15  ;;  %v3335_v61 = vmul.f32 1.442695, %v3123_v63 }
 0x458   : > { %v9434_v46 = vpop.eup %6278  ;;  %6304 = vpow2.f32 %v3371_v45  ;;  %v3333_v45 = vmul.f32 1.442695, %v3122_v12  ;;  %v3339_v12 = vmul.f32 1.442695, %v3125_v31  ;;  %v3341_v39 = vmul.f32 1.442695, %v3126_v4 }
 0x459   : > { %v9437_v20 = vpop.eup %6280  ;;  %6306 = vpow2.f32 %v3355_v33  ;;  %v9448_v33 = vpop.xlane.xlu1 %2977  ;;  %v3337_v47 = vmul.f32 1.442695, %v3124_v32  ;;  %v3311_v63 = vmul.f32 1.442695, %v3111_v62  ;;  %v11020_v31 = vld [vmem:[#allocation200_spill] sm:$0xff] }
 0x45a   : > { %11005 = vst [vmem:[#allocation115_spill] sm:$0xff] %v9437_v20  ;;  %v9440_v44 = vpop.eup %6282  ;;  %6308 = vpow2.f32 %v3373_v21  ;;  %v11013_v21 = vld [vmem:[#allocation170_spill] sm:$0xff]  ;;  %v3115_v24 = vsub.f32 %v11016_v28, %v9448_v33 }
 0x45b   : > { %11007 = vst [vmem:[#allocation116_spill] sm:$0xff] %v9440_v44  ;;  %v9444_v11 = vpop.eup %6284  ;;  %6310 = vpow2.f32 %v3357_v27  ;;  %v3113_v15 = vsub.f32 %v11013_v21, %v2973_v57  ;;  %v11018_v21 = vld [vmem:[#allocation209_spill] sm:$0xff]  ;;  %v3543_v4 = vadd.f32 %v9440_v44, %v9437_v20 }
 0x45c   : > { %11010 = vst [vmem:[#allocation210_spill] sm:$0xff] %v9444_v11  ;;  %v9450_v26 = vpop.eup %6286  ;;  %6312 = vpow2.f32 %v3327_v36  ;;  %v3313_v36 = vmul.f32 1.442695, %v3112_v54  ;;  %v3116_v56 = vsub.f32 %v11018_v21, %v9448_v33  ;;  %v11022_v54 = vld [vmem:[#allocation123_spill] sm:$0xff] }
 0x45d   : > { %v9453_v13 = vpop.eup %6288  ;;  %6314 = vpow2.f32 %v3329_v43  ;;  %v9464_v43 = vpop.xlane.xlu0 %2962  ;;  %v3315_v57 = vmul.f32 1.442695, %v3113_v15  ;;  %v3118_v62 = vsub.f32 %v11022_v54, %v9448_v33  ;;  %v11024_v15 = vld [vmem:[#allocation148_spill] sm:$0xff] }
 0x45e   : > { %11014 = vst [vmem:[#allocation191_spill] sm:$0xff] %v9453_v13  ;;  %v9456_v27 = vpop.eup %6290  ;;  %6316 = vpow2.f32 %v3331_v59  ;;  %v3117_v59 = vsub.f32 %v11020_v31, %v9448_v33  ;;  %v3103_v31 = vsub.f32 %v11024_v15, %v9464_v43  ;;  %v3104_v20 = vsub.f32 %v11025_v35, %v9464_v43  ;;  %v9488_v54 = vpop.xlane.xlu1 %2967 }
 0x45f   : > { %v9460_v48 = vpop.eup %6292  ;;  %6318 = vpow2.f32 %v3333_v45  ;;  %v3317_v45 = vmul.f32 1.442695, %v3114_v49  ;;  %v11027_v49 = vld [vmem:[#allocation236_spill] sm:$0xff]  ;;  %v3553_v35 = vadd.f32 %v9415_v41, %v9412_v38 }
 0x460   : > { %11017 = vst [vmem:[#allocation159_spill] sm:$0xff] %v9460_v48  ;;  %v9466_v32 = vpop.eup %6294  ;;  %6320 = vpow2.f32 %v3335_v61  ;;  %v3319_v61 = vmul.f32 1.442695, %v3115_v24  ;;  %v3105_v33 = vsub.f32 %v11027_v49, %v9464_v43  ;;  %v3323_v24 = vmul.f32 1.442695, %v3117_v59 }
 0x461   : > { %11019 = vst [vmem:[#allocation117_spill] sm:$0xff] %v9466_v32  ;;  %v9472_v52 = vpop.eup %6296  ;;  %6322 = vpow2.f32 %v3337_v47  ;;  %v3533_v28 = vadd.f32 %v9466_v32, %v9460_v48  ;;  %v3321_v47 = vmul.f32 1.442695, %v3116_v56  ;;  %v3297_v59 = vmul.f32 1.442695, %v3104_v20 }
 0x462   : > { %11021 = vst [vmem:[#allocation119_spill] sm:$0xff] %v9472_v52  ;;  %v9478_v21 = vpop.eup %6298  ;;  %6324 = vpow2.f32 %v3339_v12  ;;  %v3544_v12 = vadd.f32 %v9444_v11, %v3543_v4  ;;  %v11030_v4 = vld [vmem:[#allocation151_spill] sm:$0xff]  ;;  %v3558_v20 = vadd.f32 %v9428_v17, %v9425_v9 }
 0x463   : > { %11023 = vst [vmem:[#allocation199_spill] sm:$0xff] %v9478_v21  ;;  %v9484_v44 = vpop.eup %6300  ;;  %6326 = vpow2.f32 %v3341_v39  ;;  %v3534_v48 = vadd.f32 %v9472_v52, %v3533_v28  ;;  %v3548_v28 = vadd.f32 %v9456_v27, %v9453_v13  ;;  %v3107_v52 = vsub.f32 %v11030_v4, %v9488_v54 }
 0x464   : > { %11026 = vst [vmem:[#allocation201_spill] sm:$0xff] %v9484_v44  ;;  %v9491_v32 = vpop.eup %6302  ;;  %6328 = vpow2.f32 %v3311_v63  ;;  %v3295_v63 = vmul.f32 1.442695, %v3103_v31  ;;  %v3563_v31 = vadd.f32 %v9390_v10, %v9386_v42  ;;  %v3325_v13 = vmul.f32 1.442695, %v3118_v62 }
 0x465   : > { %11028 = vst [vmem:[#allocation113_spill] sm:$0xff] %v9491_v32  ;;  %v9496_v15 = vpop.eup %6304  ;;  %6330 = vpow2.f32 %v3313_v36  ;;  %v3535_v56 = vadd.f32 %v9478_v21, %v3534_v48  ;;  %v3538_v39 = vadd.f32 %v9491_v32, %v9484_v44  ;;  %v3299_v36 = vmul.f32 1.442695, %v3105_v33  ;;  %v11031_v48 = vld [vmem:[#allocation164_spill] sm:$0xff] }
 0x466   : > { %v9503_v49 = vpop.eup %6306  ;;  %6332 = vpow2.f32 %v3315_v57  ;;  %v3108_v21 = vsub.f32 %v11031_v48, %v9488_v54  ;;  %v3554_v57 = vadd.f32 %v9419_v18, %v3553_v35  ;;  %v3545_v33 = vadd.f32 %v9450_v26, %v3544_v12  ;;  %v11035_v18 = vld [vmem:[#allocation204_spill] sm:$0xff] }
 0x467   : > { %11029 = vst [vmem:[#allocation114_spill] sm:$0xff] %v9503_v49  ;;  %v9507_v11 = vpop.eup %6308  ;;  %6334 = vpow2.f32 %v3317_v45  ;;  %3536 = vadd.xlane.f32.xlu0 %v3535_v56  ;;  %v3539_v44 = vadd.f32 %v9503_v49, %v3538_v39  ;;  %v3549_v56 = vadd.f32 %v9496_v15, %v3548_v28  ;;  %v3303_v48 = vmul.f32 1.442695, %v3107_v52 }
 0x468   : > { %v9512_v32 = vpop.eup %6310  ;;  %6336 = vpow2.f32 %v3319_v61  ;;  %v11033_v61 = vld [vmem:[#allocation168_spill] sm:$0xff]  ;;  %v3305_v38 = vmul.f32 1.442695, %v3108_v21  ;;  %v3559_v12 = vadd.f32 %v9431_v2, %v3558_v20  ;;  %v3564_v28 = vadd.f32 %v9393_v25, %v3563_v31  ;;  %v11038_v20 = vld [vmem:[#allocation157_spill] sm:$0xff] }
 0x469   : > { %v9519_v4 = vpop.eup %6312  ;;  %6338 = vpow2.f32 %v3321_v47  ;;  %v3540_v45 = vadd.f32 %v9512_v32, %v3539_v44  ;;  %v3106_v35 = vsub.f32 %v11033_v61, %v9464_v43  ;;  %v3109_v47 = vsub.f32 %v11035_v18, %v9488_v54 }
 0x46a   : > { %11032 = vst [vmem:[#allocation194_spill] sm:$0xff] %v9519_v4  ;;  %v9524_v39 = vpop.eup %6314  ;;  %6340 = vpow2.f32 %v3295_v63  ;;  %v3568_v43 = vadd.f32 %v9402_v60, %v9399_v19  ;;  %v3550_v62 = vadd.f32 %v9507_v11, %v3549_v56  ;;  %v3555_v18 = vadd.f32 %v9422_v6, %v3554_v57 }
 0x46b   : > { %v9528_v49 = vpop.eup %6316  ;;  %6342 = vpow2.f32 %v3297_v59  ;;  %3541 = vadd.xlane.f32.xlu1 %v3540_v45  ;;  %3546 = vadd.xlane.f32.xlu0 %v3545_v33  ;;  %v3573_v21 = vadd.f32 %v9362_v53, %v9358_v7  ;;  %v3110_v31 = vsub.f32 %v11038_v20, %v9488_v54  ;;  %v3307_v45 = vmul.f32 1.442695, %v3109_v47 }
 0x46c   : > { %11034 = vst [vmem:[#allocation196_spill] sm:$0xff] %v9528_v49  ;;  %v9532_v44 = vpop.eup %6318  ;;  %6344 = vpow2.f32 %v3323_v24  ;;  %v3301_v24 = vmul.f32 1.442695, %v3106_v35  ;;  %v3560_v57 = vadd.f32 %v9434_v46, %v3559_v12  ;;  %v3565_v33 = vadd.f32 %v9396_v40, %v3564_v28 }
 0x46d   : > { %v9538_v52 = vpop.eup %6320  ;;  %6346 = vpow2.f32 %v3299_v36  ;;  %v3578_v56 = vadd.f32 %v9376_v23, %v9371_v55  ;;  %v3569_v35 = vadd.f32 %v9405_v3, %v3568_v43  ;;  %v3574_v54 = vadd.f32 %v9365_v29, %v3573_v21 }
 0x46e   : > { %11036 = vst [vmem:[#allocation189_spill] sm:$0xff] %v9538_v52  ;;  %v9544_v63 = vpop.eup %6322  ;;  %6348 = vpow2.f32 %v3303_v48  ;;  %v3309_v12 = vmul.f32 1.442695, %v3110_v31 }
 0x46f   : > { %v9546_v59 = vpop.eup %6324  ;;  %6350 = vpow2.f32 %v3305_v38  ;;  %3551 = vadd.xlane.f32.xlu1 %v3550_v62  ;;  %3556 = vadd.xlane.f32.xlu0 %v3555_v18  ;;  %v3523_v38 = vadd.f32 %v9524_v39, %v9519_v4  ;;  %v3528_v43 = vadd.f32 %v9544_v63, %v9538_v52  ;;  %v3570_v18 = vadd.f32 %v9408_v50, %v3569_v35  ;;  %v11068_v4 = vld [vmem:[#allocation80_spill] sm:$0xff] }
 0x470   : > { %11037 = vst [vmem:[#allocation190_spill] sm:$0xff] %v9546_v59  ;;  %v9550_v36 = vpop.eup %6326  ;;  %6352 = vpow2.f32 %v3325_v13  ;;  %v3579_v13 = vadd.f32 %v9379_v58, %v3578_v56  ;;  %v3575_v21 = vadd.f32 %v9368_v5, %v3574_v54 }
 0x471   : > { %v9556_v61 = vpop.eup %6328  ;;  %6354 = vpow2.f32 %v3301_v24  ;;  %v3524_v24 = vadd.f32 %v9528_v49, %v3523_v38  ;;  %v3529_v56 = vadd.f32 %v9546_v59, %v3528_v43  ;;  %v11067_v49 = vld [vmem:[#allocation81_spill] sm:$0xff]  ;;  %v11108_v59 = vld [vmem:[#allocation195_spill] sm:$0xff] }
 0x472   : > { %11039 = vst [vmem:[#allocation186_spill] sm:$0xff] %v9556_v61  ;;  %v9562_v48 = vpop.eup %6330  ;;  %6356 = vpow2.f32 %v3307_v45 }
 0x473   : > { %11040 = vst [vmem:[#allocation181_spill] sm:$0xff] %v9562_v48  ;;  %v9564_v47 = vpop.eup %6332  ;;  %3561 = vadd.xlane.f32.xlu1 %v3560_v57  ;;  %3566 = vadd.xlane.f32.xlu0 %v3565_v33  ;;  %v3513_v20 = vadd.f32 %v9562_v48, %v9556_v61  ;;  %6358 = vpow2.f32 %v3309_v12  ;;  %v3580_v33 = vadd.f32 %v9382_v16, %v3579_v13  ;;  %v11059_v48 = vld [vmem:[#allocation20_spill] sm:$0xff] }
 0x474   : > { %11041 = vst [vmem:[#allocation182_spill] sm:$0xff] %v9564_v47  ;;  %v9566_v28 = vpop.eup %6334  ;;  %v3525_v54 = vadd.f32 %v9532_v44, %v3524_v24  ;;  %v3530_v43 = vadd.f32 %v9550_v36, %v3529_v56 }
 0x475   : > { %11042 = vst [vmem:[#allocation128_spill] sm:$0xff] %v9566_v28  ;;  %v9571_v62 = vpop.eup %6336  ;;  %v3514_v38 = vadd.f32 %v9564_v47, %v3513_v20 }
 0x476   : > { %11043 = vst [vmem:[#allocation177_spill] sm:$0xff] %v9571_v62  ;;  %v9578_v31 = vpop.eup %6338 }
 0x477   : > { %11044 = vst [vmem:[#allocation178_spill] sm:$0xff] %v9578_v31  ;;  %v9580_v45 = vpop.eup %6340  ;;  %3571 = vadd.xlane.f32.xlu1 %v3570_v18  ;;  %3576 = vadd.xlane.f32.xlu0 %v3575_v21  ;;  %v3518_v61 = vadd.f32 %v9578_v31, %v9571_v62  ;;  %v3515_v24 = vadd.f32 %v9566_v28, %v3514_v38  ;;  %v11071_v31 = vld [vmem:[#allocation32_spill] sm:$0xff] }
 0x478   : > { %11045 = vst [vmem:[#allocation163_spill] sm:$0xff] %v9580_v45  ;;  %v9582_v57 = vpop.eup %6342 }
 0x479   : > { %11046 = vst [vmem:[#allocation202_spill] sm:$0xff] %v9582_v57  ;;  %v9586_v35 = vpop.eup %6344  ;;  %v3503_v12 = vadd.f32 %v9582_v57, %v9580_v45 }
 0x47a   : > { %11047 = vst [vmem:[#allocation179_spill] sm:$0xff] %v9586_v35  ;;  %v9594_v18 = vpop.eup %6346  ;;  %v3519_v20 = vadd.f32 %v9586_v35, %v3518_v61 }
 0x47b   : > { %11048 = vst [vmem:[#allocation203_spill] sm:$0xff] %v9594_v18  ;;  %v9596_v21 = vpop.eup %6348  ;;  %3581 = vadd.xlane.f32.xlu1 %v3580_v33  ;;  %3526 = vadd.xlane.f32.xlu0 %v3525_v54  ;;  %v3504_v47 = vadd.f32 %v9594_v18, %v3503_v12 }
 0x47c   : > { %11049 = vst [vmem:[#allocation149_spill] sm:$0xff] %v9596_v21  ;;  %v9598_v13 = vpop.eup %6350 }
 0x47d   : > { %11050 = vst [vmem:[#allocation188_spill] sm:$0xff] %v9598_v13  ;;  %v3508_v62 = vadd.f32 %v9598_v13, %v9596_v21  ;;  %v9606_v45 = vpop.eup %6352 }
 0x47e   : > { %11051 = vst [vmem:[#allocation172_spill] sm:$0xff] %v9606_v45  ;;  %v9608_v57 = vpop.eup %6354  ;;  %v3520_v54 = vadd.f32 %v9606_v45, %v3519_v20  ;;  %v11058_v20 = vld [vmem:[#allocation21_spill] sm:$0xff]  ;;  %v11069_v45 = vpack.c.bf16 %v11067_v49, %v11068_v4  ;;  %v11080_v49 = vld [vmem:[#allocation92_spill] sm:$0xff] }
 0x47f   : > { %11052 = vst [vmem:[#allocation173_spill] sm:$0xff] %v9608_v57  ;;  %3531 = vadd.xlane.f32.xlu1 %v3530_v43  ;;  %3516 = vadd.xlane.f32.xlu0 %v3515_v24  ;;  %v9610_v33 = vpop.eup %6356  ;;  %v3505_v56 = vadd.f32 %v9608_v57, %v3504_v47  ;;  %v11055_v43 = vld [vmem:[#allocation69_spill] sm:$0xff]  ;;  %v11056_v24 = vld [vmem:[#allocation68_spill] sm:$0xff]  ;;  %v11060_v47 = vpack.c.bf16 %v11058_v20, %v11059_v48  ;;  %v11073_v20 = vld [vmem:[#allocation87_spill] sm:$0xff] }
 0x480   : > { %11053 = vst [vmem:[#allocation192_spill] sm:$0xff] %v9610_v33  ;;  %v3509_v38 = vadd.f32 %v9610_v33, %v3508_v62  ;;  %v9615_v61 = vpop.eup %6358  ;;  %v11057_v35 = vpack.c.bf16 %v11055_v43, %v11056_v24  ;;  %v11061_v62 = vld [vmem:[#allocation75_spill] sm:$0xff]  ;;  %v11070_v24 = vld [vmem:[#allocation33_spill] sm:$0xff] }
 0x481   : > { %11054 = vst [vmem:[#allocation141_spill] sm:$0xff] %v9615_v61  ;;  %v11072_v48 = vpack.c.bf16 %v11070_v24, %v11071_v31  ;;  %v11082_v31 = vld [vmem:[#allocation45_spill] sm:$0xff]  ;;  %v11083_v24 = vld [vmem:[#allocation44_spill] sm:$0xff] }
 0x482   : > { %v3510_v12 = vadd.f32 %v9615_v61, %v3509_v38  ;;  %v11064_v38 = vld [vmem:[#allocation27_spill] sm:$0xff] }
 0x483   : > { %3521 = vadd.xlane.f32.xlu1 %v3520_v54  ;;  %3506 = vadd.xlane.f32.xlu0 %v3505_v56  ;;  %v11062_v54 = vld [vmem:[#allocation74_spill] sm:$0xff] }
 0x484   : > { %v11063_v56 = vpack.c.bf16 %v11061_v62, %v11062_v54 }
 0x487   : > { %3511 = vadd.xlane.f32.xlu1 %v3510_v12  ;;  %v11065_v12 = vld [vmem:[#allocation26_spill] sm:$0xff] }
 0x488   : > { %v11066_v61 = vpack.c.bf16 %v11064_v38, %v11065_v12  ;;  %v11077_v38 = vld [vmem:[#allocation38_spill] sm:$0xff]  ;;  %v11079_v12 = vld [vmem:[#allocation93_spill] sm:$0xff] }
 0x489   : > { %v11081_v4 = vpack.c.bf16 %v11079_v12, %v11080_v49 }
 0x4a3   : > { %v3462_v18 = vpop.xlane.xlu1 %3461 }
 0x4a7   : > { %v3472_v21 = vpop.xlane.xlu1 %3471 }
 0x4ab   : > { %v3482_v13 = vpop.xlane.xlu1 %3481 }
 0x4af   : > { %v3457_v28 = vpop.xlane.xlu0 %3456  ;;  %v3492_v57 = vpop.xlane.xlu1 %3491 }
 0x4b0   : > { %4095 = vxpose.xlu0.c.b16.start [1/8] %v11057_v35, 128 }
 0x4b3   : > { %v3467_v33 = vpop.xlane.xlu0 %3466  ;;  %v3502_v43 = vpop.xlane.xlu1 %3501 }
 0x4b4   : > { %4047 = vxpose.xlu1.c.b16.start [1/8] %v11060_v47, 128  ;;  %4096 = vxpose.xlu0.c.b16.cont [2/8] %v11063_v56, 128  ;;  %v11074_v47 = vld [vmem:[#allocation86_spill] sm:$0xff]  ;;  %6360 = vrcp.f32 %v3502_v43  ;;  %v11076_v56 = vld [vmem:[#allocation39_spill] sm:$0xff] }
 0x4b5   : > { %v11075_v62 = vpack.c.bf16 %v11073_v20, %v11074_v47  ;;  %v11085_v20 = vld [vmem:[#allocation99_spill] sm:$0xff]  ;;  %v11086_v47 = vld [vmem:[#allocation98_spill] sm:$0xff] }
 0x4b6   : > { %v11087_v43 = vpack.c.bf16 %v11085_v20, %v11086_v47 }
 0x4b7   : > { %v3477_v35 = vpop.xlane.xlu0 %3476  ;;  %v3452_v49 = vpop.xlane.xlu1 %3451 }
 0x4b8   : > { %4048 = vxpose.xlu1.c.b16.cont [2/8] %v11066_v61, 128  ;;  %4097 = vxpose.xlu0.c.b16.cont [3/8] %v11069_v45, 128  ;;  %v11078_v61 = vpack.c.bf16 %v11076_v56, %v11077_v38  ;;  %v11091_v38 = vld [vmem:[#allocation105_spill] sm:$0xff] }
 0x4bb   : > { %v3487_v54 = vpop.xlane.xlu0 %3486 }
 0x4bc   : > { %4049 = vxpose.xlu1.c.b16.cont [3/8] %v11072_v48, 128  ;;  %4098 = vxpose.xlu0.c.b16.cont [4/8] %v11075_v62, 128  ;;  %6362 = vrcp.f32 %v3487_v54  ;;  %v11084_v48 = vpack.c.bf16 %v11082_v31, %v11083_v24  ;;  %v11088_v62 = vld [vmem:[#allocation51_spill] sm:$0xff]  ;;  %v11089_v54 = vld [vmem:[#allocation50_spill] sm:$0xff] }
 0x4bd   : > { %v11090_v56 = vpack.c.bf16 %v11088_v62, %v11089_v54 }
 0x4bf   : > { %v3497_v45 = vpop.xlane.xlu0 %3496 }
 0x4c0   : > { %4050 = vxpose.xlu1.c.b16.cont [4/8] %v11078_v61, 128  ;;  %4099 = vxpose.xlu0.c.b16.cont [5/8] %v11081_v4, 128  ;;  %6364 = vrcp.f32 %v3497_v45  ;;  %v11092_v61 = vld [vmem:[#allocation104_spill] sm:$0xff]  ;;  %v11094_v4 = vld [vmem:[#allocation57_spill] sm:$0xff] }
 0x4c1   : > { %6366 = vrcp.f32 %v3492_v57  ;;  %v11093_v12 = vpack.c.bf16 %v11091_v38, %v11092_v61  ;;  %v11095_v45 = vld [vmem:[#allocation56_spill] sm:$0xff] }
 0x4c2   : > { %6368 = vrcp.f32 %v3477_v35  ;;  %v6361_v35 = vpop.eup %6360  ;;  %v11096_v31 = vpack.c.bf16 %v11094_v4, %v11095_v45  ;;  %v11100_v4 = vld [vmem:[#allocation63_spill] sm:$0xff] }
 0x4c3   : > { %6370 = vrcp.f32 %v3482_v13  ;;  %v3447_v57 = vpop.xlane.xlu0 %3446  ;;  %v11097_v13 = vld [vmem:[#allocation111_spill] sm:$0xff]  ;;  %v3676_v20 = vmul.f32 %v6361_v35, %v9121_v0  ;;  %v3678_v47 = vmul.f32 %v6361_v35, %v9128_v8  ;;  %v11101_v0 = vld [vmem:[#allocation62_spill] sm:$0xff] }
 0x4c4   : > { %4051 = vxpose.xlu1.c.b16.cont [5/8] %v11084_v48, 128  ;;  %4100 = vxpose.xlu0.c.b16.cont [6/8] %v11087_v43, 128  ;;  %6372 = vrcp.f32 %v3467_v33  ;;  %v11098_v33 = vld [vmem:[#allocation110_spill] sm:$0xff]  ;;  %v11102_v45 = vpack.c.bf16 %v11100_v4, %v11101_v0  ;;  %v11103_v8 = vld [vmem:[#allocation67_spill] sm:$0xff] }
 0x4c5   : > { %6374 = vrcp.f32 %v3462_v18  ;;  %v11099_v18 = vpack.c.bf16 %v11097_v13, %v11098_v33  ;;  %v3442_v13 = vpop.xlane.xlu1 %3441 }
 0x4c6   : > { %6376 = vrcp.f32 %v3472_v21  ;;  %v3675_v21 = vmul.f32 %v6361_v35, %v9118_v1  ;;  %v11104_v1 = vld [vmem:[#allocation65_spill] sm:$0xff] }
 0x4c7   : > { %6378 = vrcp.f32 %v3457_v28  ;;  %v3677_v28 = vmul.f32 %v6361_v35, %v9124_v22  ;;  %v3437_v62 = vpop.xlane.xlu0 %3436  ;;  %v11106_v35 = vld [vmem:[#allocation154_spill] sm:$0xff] }
 0x4c8   : > { %4052 = vxpose.xlu1.c.b16.cont [6/8] %v11090_v56, 128  ;;  %4101 = vxpose.xlu0.c.b16.cont [7/8] %v11093_v12, 128  ;;  %6380 = vrcp.f32 %v3447_v57  ;;  %v11107_v57 = vld [vmem:[#allocation206_spill] sm:$0xff] }
 0x4c9   : > { %v6363_v24 = vpop.eup %6362  ;;  %6382 = vrcp.f32 %v3452_v49  ;;  %v11116_v49 = vld [vmem:[#allocation71_spill] sm:$0xff] }
 0x4ca   : > { %v3664_v22 = vmul.f32 %v6363_v24, %v9070_v51  ;;  %6384 = vrcp.f32 %v3437_v62  ;;  %v11110_v51 = vld [vmem:[#allocation118_spill] sm:$0xff] }
 0x4cb   : > { %6386 = vrcp.f32 %v3442_v13 }
 0x4cc   : > { %4053 = vxpose.xlu1.c.b16.cont [7/8] %v11096_v31, 128  ;;  %4102 = vxpose.xlu0.c.b16.end [8/8] %v11099_v18, 128  ;;  %v11105_v31 = vpack.c.bf16 %v11103_v8, %v11104_v1  ;;  %v3665_v1 = vmul.f32 %v6363_v24, %v11110_v51 }
 0x4cd   : > { %v6365_v48 = vpop.eup %6364 }
 0x4ce   : > { %v6367_v43 = vpop.eup %6366  ;;  %v3672_v54 = vmul.f32 %v6365_v48, %v9094_v34  ;;  %v3674_v56 = vmul.f32 %v6365_v48, %v9100_v30  ;;  %v3671_v38 = vmul.f32 %v6365_v48, %v9091_v37  ;;  %v3673_v61 = vmul.f32 %v6365_v48, %v9097_v14 }
 0x4cf   : > { %v6369_v12 = vpop.eup %6368  ;;  %v3666_v34 = vmul.f32 %v6363_v24, %v11106_v35  ;;  %v3668_v48 = vmul.f32 %v6367_v43, %v11107_v57  ;;  %v3670_v4 = vmul.f32 %v6367_v43, %v11108_v59  ;;  %v11120_v57 = vld [vmem:[#allocation207_spill] sm:$0xff] }
 0x4d0   : > { %4054 = vxpose.xlu1.c.b16.end [8/8] %v11102_v45, 128  ;;  %4111 = vxpose.xlu0.c.b16.start [1/8] %v11105_v31, 128  ;;  %v4012_v30 = vpack.c.bf16 %v3676_v20, %v3672_v54  ;;  %v4014_v33 = vpack.c.bf16 %v3678_v47, %v3674_v56  ;;  %v4011_v37 = vpack.c.bf16 %v3675_v21, %v3671_v38  ;;  %v6371_v14 = vpop.eup %6370  ;;  %v11109_v45 = vld [vmem:[#allocation212_spill] sm:$0xff]  ;;  %v11111_v31 = vld [vmem:[#allocation226_spill] sm:$0xff]  ;;  %v11112_v20 = vld [vmem:[#allocation19_spill] sm:$0xff] }
 0x4d1   : > { %v4013_v18 = vpack.c.bf16 %v3677_v28, %v3673_v61  ;;  %v6373_v0 = vpop.eup %6372  ;;  %v3663_v8 = vmul.f32 %v6363_v24, %v11109_v45  ;;  %v3656_v35 = vmul.f32 %v6369_v12, %v11111_v31  ;;  %v11113_v47 = vld [vmem:[#allocation17_spill] sm:$0xff]  ;;  %v4008_v56 = vpack.c.bf16 %v3668_v48, %v3664_v22  ;;  %v11119_v24 = vld [vmem:[#allocation152_spill] sm:$0xff] }
 0x4d2   : > { %4143 = vmatprep.subr.bf16.mxu1 %v4012_v30  ;;  %4416 = vmatprep.subr.bf16.mxu0 %v4014_v33  ;;  %v11114_v21 = vpack.c.bf16 %v11112_v20, %v11113_v47  ;;  %v11115_v28 = vld [vmem:[#allocation73_spill] sm:$0xff]  ;;  %v4010_v59 = vpack.c.bf16 %v3670_v4, %v3666_v34  ;;  %v9691_v61 = vpop.eup %6374  ;;  %v3427_v30 = vpop.xlane.xlu0 %3426  ;;  %v3667_v33 = vmul.f32 %v6367_v43, %v11119_v24  ;;  %v11121_v31 = vld [vmem:[#allocation140_spill] sm:$0xff]  ;;  %v11123_v34 = vld [vmem:[#allocation147_spill] sm:$0xff] }
 0x4d3   : > { %v11117_v54 = vpack.c.bf16 %v11115_v28, %v11116_v49  ;;  %v11118_v38 = vld [vmem:[#allocation221_spill] sm:$0xff]  ;;  %4144 = vmatpush1.bf16.msra.mxu1 %v4011_v37  ;;  %4417 = vmatpush1.bf16.msra.mxu0 %v4013_v18  ;;  %v3669_v45 = vmul.f32 %v6367_v43, %v11120_v57  ;;  %v6377_v51 = vpop.eup %6376  ;;  %v3660_v20 = vmul.f32 %v6371_v14, %v11121_v31  ;;  %v11124_v49 = vld [vmem:[#allocation223_spill] sm:$0xff]  ;;  %6388 = vrcp.f32 %v3427_v30 }
 0x4d4   : > { %4063 = vxpose.xlu1.c.b16.start [1/8] %v11114_v21, 128  ;;  %v3658_v62 = vmul.f32 %v6369_v12, %v11118_v38  ;;  %4145 = vmatprep.subr.bf16.mxu1 %v4008_v56  ;;  %v11122_v47 = vld [vmem:[#allocation217_spill] sm:$0xff]  ;;  %v3648_v48 = vmul.f32 %v6373_v0, %v11123_v34  ;;  %v6379_v4 = vpop.eup %6378  ;;  %v3432_v21 = vpop.xlane.xlu1 %3431  ;;  %v4007_v28 = vpack.c.bf16 %v3667_v33, %v3663_v8  ;;  %v11125_v18 = vld [vmem:[#allocation139_spill] sm:$0xff]  ;;  %v11134_v33 = vld [vmem:[#allocation142_spill] sm:$0xff] }
 0x4d5   : > { %4112 = vxpose.xlu0.c.b16.cont [2/8] %v11117_v54, 128  ;;  %4418 = vmatprep.subr.bf16.mxu0 %v4010_v59  ;;  %v3662_v22 = vmul.f32 %v6371_v14, %v11122_v47  ;;  %v4009_v13 = vpack.c.bf16 %v3669_v45, %v3665_v1  ;;  %v3655_v37 = vmul.f32 %v6369_v12, %v11124_v49  ;;  %v11126_v38 = vld [vmem:[#allocation25_spill] sm:$0xff]  ;;  %v11127_v43 = vld [vmem:[#allocation23_spill] sm:$0xff]  ;;  %6390 = vrcp.f32 %v3432_v21 }
 0x4d6   : > { %v3657_v54 = vmul.f32 %v6369_v12, %v11125_v18  ;;  %v11128_v24 = vpack.c.bf16 %v11126_v38, %v11127_v43  ;;  %v11129_v56 = vld [vmem:[#allocation79_spill] sm:$0xff]  ;;  %v11130_v59 = vld [vmem:[#allocation77_spill] sm:$0xff]  ;;  %v4004_v31 = vpack.c.bf16 %v3660_v20, %v3656_v35  ;;  %v3661_v45 = vmul.f32 %v6371_v14, %v11134_v33  ;;  %v11135_v12 = vld [vmem:[#allocation146_spill] sm:$0xff] }
 0x4d7   : > { %v11131_v57 = vpack.c.bf16 %v11129_v56, %v11130_v59  ;;  %v4006_v47 = vpack.c.bf16 %v3662_v22, %v3658_v62  ;;  %v11132_v34 = vld [vmem:[#allocation231_spill] sm:$0xff]  ;;  %4146 = vmatpush1.bf16.msra.mxu1 %v4007_v28  ;;  %4419 = vmatpush1.bf16.msra.mxu0 %v4009_v13  ;;  %v11133_v8 = vld [vmem:[#allocation205_spill] sm:$0xff]  ;;  %v3644_v30 = vmul.f32 %v9691_v61, %v11135_v12  ;;  %v11137_v38 = vld [vmem:[#allocation222_spill] sm:$0xff] }
 0x4d8   : > { %4064 = vxpose.xlu1.c.b16.cont [2/8] %v11128_v24, 128  ;;  %v3650_v52 = vmul.f32 %v6373_v0, %v11132_v34  ;;  %v3659_v1 = vmul.f32 %v6371_v14, %v11133_v8  ;;  %4147 = vmatprep.subr.bf16.mxu1 %v4004_v31  ;;  %v11136_v49 = vld [vmem:[#allocation143_spill] sm:$0xff]  ;;  %v3654_v43 = vmul.f32 %v6377_v51, %v11137_v38  ;;  %v11139_v28 = vld [vmem:[#allocation225_spill] sm:$0xff]  ;;  %v11140_v24 = vld [vmem:[#allocation220_spill] sm:$0xff] }
 0x4d9   : > { %4113 = vxpose.xlu0.c.b16.cont [3/8] %v11131_v57, 128  ;;  %4420 = vmatprep.subr.bf16.mxu0 %v4006_v47  ;;  %v3652_v18 = vmul.f32 %v6377_v51, %v11136_v49  ;;  %v11138_v35 = vld [vmem:[#allocation215_spill] sm:$0xff]  ;;  %v4005_v22 = vpack.c.bf16 %v3661_v45, %v3657_v54  ;;  %v3647_v13 = vmul.f32 %v6373_v0, %v11139_v28  ;;  %v11142_v14 = vld [vmem:[#allocation29_spill] sm:$0xff]  ;;  %v11147_v33 = vld [vmem:[#allocation130_spill] sm:$0xff]  ;;  %v6381_v49 = vpop.eup %6380 }
 0x4da   : > { %v3640_v62 = vmul.f32 %v6379_v4, %v11138_v35  ;;  %v4003_v20 = vpack.c.bf16 %v3659_v1, %v3655_v37  ;;  %v3649_v56 = vmul.f32 %v6373_v0, %v11140_v24  ;;  %v11141_v59 = vld [vmem:[#allocation31_spill] sm:$0xff]  ;;  %v11144_v34 = vld [vmem:[#allocation85_spill] sm:$0xff]  ;;  %v4002_v8 = vpack.c.bf16 %v3654_v43, %v3650_v52  ;;  %v11149_v1 = vld [vmem:[#allocation216_spill] sm:$0xff]  ;;  %v6383_v52 = vpop.eup %6382 }
 0x4db   : > { %v11143_v57 = vpack.c.bf16 %v11141_v59, %v11142_v14  ;;  %v11145_v21 = vld [vmem:[#allocation83_spill] sm:$0xff]  ;;  %v4000_v47 = vpack.c.bf16 %v3652_v18, %v3648_v48  ;;  %v3642_v12 = vmul.f32 %v6379_v4, %v11147_v33  ;;  %4421 = vmatpush1.bf16.msra.mxu0 %v4005_v22  ;;  %v3653_v45 = vmul.f32 %v6377_v51, %v11149_v1  ;;  %v11151_v35 = vld [vmem:[#allocation218_spill] sm:$0xff]  ;;  %v11152_v24 = vld [vmem:[#allocation144_spill] sm:$0xff]  ;;  %v6385_v14 = vpop.eup %6384 }
 0x4dc   : > { %v11146_v31 = vpack.c.bf16 %v11144_v34, %v11145_v21  ;;  %4148 = vmatpush1.bf16.msra.mxu1 %v4003_v20  ;;  %v11148_v37 = vld [vmem:[#allocation219_spill] sm:$0xff]  ;;  %4422 = vmatprep.subr.bf16.mxu0 %v4002_v8  ;;  %v3646_v28 = vmul.f32 %v9691_v61, %v11151_v35  ;;  %v3643_v48 = vmul.f32 %v9691_v61, %v11152_v24  ;;  %v11153_v20 = vld [vmem:[#allocation229_spill] sm:$0xff]  ;;  %v11161_v1 = vld [vmem:[#allocation126_spill] sm:$0xff] }
 0x4dd   : > { %4065 = vxpose.xlu1.c.b16.cont [3/8] %v11143_v57, 128  ;;  %v3651_v54 = vmul.f32 %v6377_v51, %v11148_v37  ;;  %v11150_v0 = vld [vmem:[#allocation135_spill] sm:$0xff]  ;;  %4149 = vmatprep.subr.bf16.mxu1 %v4000_v47  ;;  %v4001_v43 = vpack.c.bf16 %v3653_v45, %v3649_v56  ;;  %v3996_v59 = vpack.c.bf16 %v3644_v30, %v3640_v62  ;;  %v11154_v57 = vld [vmem:[#allocation37_spill] sm:$0xff]  ;;  %v6387_v62 = vpop.eup %6386  ;;  %v11163_v56 = vld [vmem:[#allocation224_spill] sm:$0xff] }
 0x4de   : > { %4114 = vxpose.xlu0.c.b16.cont [4/8] %v11146_v31, 128  ;;  %v3639_v38 = vmul.f32 %v6379_v4, %v11150_v0  ;;  %v3641_v22 = vmul.f32 %v6379_v4, %v11153_v20  ;;  %v11155_v34 = vld [vmem:[#allocation35_spill] sm:$0xff]  ;;  %v11158_v31 = vld [vmem:[#allocation89_spill] sm:$0xff]  ;;  %v3998_v8 = vpack.c.bf16 %v3646_v28, %v3642_v12  ;;  %v3634_v0 = vmul.f32 %v6381_v49, %v11161_v1  ;;  %v11164_v45 = vld [vmem:[#allocation228_spill] sm:$0xff] }
 0x4df   : > { %v3999_v18 = vpack.c.bf16 %v3651_v54, %v3647_v13  ;;  %v11156_v51 = vpack.c.bf16 %v11154_v57, %v11155_v34  ;;  %v11157_v21 = vld [vmem:[#allocation91_spill] sm:$0xff]  ;;  %v11160_v33 = vld [vmem:[#allocation213_spill] sm:$0xff]  ;;  %4423 = vmatpush1.bf16.msra.mxu0 %v4001_v43  ;;  %v3636_v54 = vmul.f32 %v6383_v52, %v11163_v56  ;;  %v3638_v35 = vmul.f32 %v6383_v52, %v11164_v45  ;;  %v11165_v24 = vld [vmem:[#allocation234_spill] sm:$0xff] }
 0x4e0   : > { %v11159_v47 = vpack.c.bf16 %v11157_v21, %v11158_v31  ;;  %v3632_v37 = vmul.f32 %v6381_v49, %v11160_v33  ;;  %v3995_v13 = vpack.c.bf16 %v3643_v48, %v3639_v38  ;;  %v11162_v30 = vld [vmem:[#allocation227_spill] sm:$0xff]  ;;  %4424 = vmatprep.subr.bf16.mxu0 %v3998_v8  ;;  %v3631_v20 = vmul.f32 %v6381_v49, %v11165_v24  ;;  %v11166_v28 = vld [vmem:[#allocation233_spill] sm:$0xff] }
 0x4e1   : > { %4066 = vxpose.xlu1.c.b16.cont [4/8] %v11156_v51, 128  ;;  %4150 = vmatpush1.bf16.msra.mxu1 %v3999_v18  ;;  %v3645_v4 = vmul.f32 %v9691_v61, %v11162_v30  ;;  %v3635_v57 = vmul.f32 %v6383_v52, %v11166_v28  ;;  %v11167_v34 = vld [vmem:[#allocation129_spill] sm:$0xff]  ;;  %v11168_v18 = vld [vmem:[#allocation127_spill] sm:$0xff]  ;;  %v3994_v8 = vpack.c.bf16 %v3638_v35, %v3634_v0  ;;  %v6389_v30 = vpop.eup %6388  ;;  %v11180_v0 = vld [vmem:[#allocation120_spill] sm:$0xff] }
 0x4e2   : > { %4115 = vxpose.xlu0.c.b16.cont [5/8] %v11159_v47, 128  ;;  %4151 = vmatprep.subr.bf16.mxu1 %v3996_v59  ;;  %v3633_v51 = vmul.f32 %v6381_v49, %v11167_v34  ;;  %v3624_v43 = vmul.f32 %v6385_v14, %v11168_v18  ;;  %v11169_v38 = vld [vmem:[#allocation43_spill] sm:$0xff]  ;;  %v11170_v48 = vld [vmem:[#allocation41_spill] sm:$0xff]  ;;  %v3992_v47 = vpack.c.bf16 %v3636_v54, %v3632_v37  ;;  %v11177_v49 = vld [vmem:[#allocation138_spill] sm:$0xff]  ;;  %v6391_v34 = vpop.eup %6390 }
 0x4e3   : > { %v3997_v12 = vpack.c.bf16 %v3645_v4, %v3641_v22  ;;  %v11171_v21 = vpack.c.bf16 %v11169_v38, %v11170_v48  ;;  %v11172_v61 = vld [vmem:[#allocation97_spill] sm:$0xff]  ;;  %v11173_v59 = vld [vmem:[#allocation95_spill] sm:$0xff]  ;;  %v11176_v22 = vld [vmem:[#allocation136_spill] sm:$0xff]  ;;  %v3628_v56 = vmul.f32 %v6387_v62, %v11177_v49  ;;  %v3991_v45 = vpack.c.bf16 %v3635_v57, %v3631_v20 }
 0x4e4   : > { %v11174_v31 = vpack.c.bf16 %v11172_v61, %v11173_v59  ;;  %v11175_v33 = vld [vmem:[#allocation121_spill] sm:$0xff]  ;;  %v3637_v4 = vmul.f32 %v6383_v52, %v11176_v22  ;;  %v11178_v24 = vld [vmem:[#allocation235_spill] sm:$0xff]  ;;  %v3625_v54 = vmul.f32 %v6385_v14, %v11180_v0  ;;  %v11188_v57 = vld [vmem:[#allocation166_spill] sm:$0xff] }
 0x4e5   : > { %4067 = vxpose.xlu1.c.b16.cont [5/8] %v11171_v21, 128  ;;  %v3626_v1 = vmul.f32 %v6385_v14, %v11175_v33  ;;  %4152 = vmatpush1.bf16.msra.mxu1 %v3995_v13  ;;  %v3630_v28 = vmul.f32 %v6387_v62, %v11178_v24  ;;  %v3988_v38 = vpack.c.bf16 %v3628_v56, %v3624_v43  ;;  %v11179_v48 = vld [vmem:[#allocation125_spill] sm:$0xff]  ;;  %v11182_v21 = vld [vmem:[#allocation47_spill] sm:$0xff] }
 0x4e6   : > { %4116 = vxpose.xlu0.c.b16.cont [6/8] %v11174_v31, 128  ;;  %4425 = vmatpush1.bf16.msra.mxu0 %v3997_v12  ;;  %v3993_v18 = vpack.c.bf16 %v3637_v4, %v3633_v51  ;;  %v3623_v37 = vmul.f32 %v6385_v14, %v11179_v48  ;;  %v11181_v35 = vld [vmem:[#allocation49_spill] sm:$0xff]  ;;  %v11184_v12 = vld [vmem:[#allocation103_spill] sm:$0xff]  ;;  %v11191_v14 = vld [vmem:[#allocation134_spill] sm:$0xff] }
 0x4e7   : > { %4153 = vmatprep.subr.bf16.mxu1 %v3992_v47  ;;  %4426 = vmatprep.subr.bf16.mxu0 %v3994_v8  ;;  %v11183_v13 = vpack.c.bf16 %v11181_v35, %v11182_v21  ;;  %v11185_v52 = vld [vmem:[#allocation101_spill] sm:$0xff]  ;;  %v3990_v59 = vpack.c.bf16 %v3630_v28, %v3626_v1  ;;  %v3618_v47 = vmul.f32 %v6389_v30, %v11188_v57  ;;  %v11189_v51 = vld [vmem:[#allocation131_spill] sm:$0xff]  ;;  %v11190_v8 = vld [vmem:[#allocation230_spill] sm:$0xff] }
 0x4e8   : > { %v11186_v61 = vpack.c.bf16 %v11184_v12, %v11185_v52  ;;  %v11187_v31 = vld [vmem:[#allocation161_spill] sm:$0xff]  ;;  %v3627_v43 = vmul.f32 %v6387_v62, %v11189_v51  ;;  %v3629_v33 = vmul.f32 %v6387_v62, %v11190_v8  ;;  %v3620_v22 = vmul.f32 %v6391_v34, %v11191_v14  ;;  %v11193_v48 = vld [vmem:[#allocation232_spill] sm:$0xff]  ;;  %v11194_v28 = vld [vmem:[#allocation175_spill] sm:$0xff] }
 0x4e9   : > { %4068 = vxpose.xlu1.c.b16.cont [6/8] %v11183_v13, 128  ;;  %v3616_v20 = vmul.f32 %v6389_v30, %v11187_v31  ;;  %4154 = vmatpush1.bf16.msra.mxu1 %v3991_v45  ;;  %v11192_v4 = vld [vmem:[#allocation193_spill] sm:$0xff]  ;;  %v3615_v1 = vmul.f32 %v6389_v30, %v11193_v48  ;;  %v3617_v0 = vmul.f32 %v6389_v30, %v11194_v28  ;;  %v11195_v35 = vld [vmem:[#allocation55_spill] sm:$0xff]  ;;  %v11201_v52 = vld [vmem:[#allocation132_spill] sm:$0xff] }
 0x4ea   : > { %4117 = vxpose.xlu0.c.b16.cont [7/8] %v11186_v61, 128  ;;  %4427 = vmatpush1.bf16.msra.mxu0 %v3993_v18  ;;  %v3622_v49 = vmul.f32 %v6391_v34, %v11192_v4  ;;  %v3987_v56 = vpack.c.bf16 %v3627_v43, %v3623_v37  ;;  %v3989_v24 = vpack.c.bf16 %v3629_v33, %v3625_v54  ;;  %v11196_v21 = vld [vmem:[#allocation53_spill] sm:$0xff]  ;;  %v11199_v13 = vld [vmem:[#allocation107_spill] sm:$0xff]  ;;  %v11206_v43 = vld [vmem:[#allocation70_spill] sm:$0xff] }
 0x4eb   : > { %4155 = vmatprep.subr.bf16.mxu1 %v3988_v38  ;;  %4428 = vmatprep.subr.bf16.mxu0 %v3990_v59  ;;  %v11197_v45 = vpack.c.bf16 %v11195_v35, %v11196_v21  ;;  %v11198_v18 = vld [vmem:[#allocation109_spill] sm:$0xff]  ;;  %v3984_v62 = vpack.c.bf16 %v3620_v22, %v3616_v20  ;;  %v3619_v61 = vmul.f32 %v6391_v34, %v11201_v52  ;;  %v11204_v57 = vld [vmem:[#allocation59_spill] sm:$0xff]  ;;  %v11207_v8 = vld [vmem:[#allocation66_spill] sm:$0xff] }
 0x4ec   : > { %v11200_v12 = vpack.c.bf16 %v11198_v18, %v11199_v13  ;;  %v3986_v38 = vpack.c.bf16 %v3622_v49, %v3618_v47  ;;  %v11202_v37 = vld [vmem:[#allocation197_spill] sm:$0xff]  ;;  %v11208_v33 = vpack.c.bf16 %v11206_v43, %v11207_v8  ;;  %v11209_v47 = vld [vmem:[#allocation22_spill] sm:$0xff]  ;;  %v11212_v4 = vld [vmem:[#allocation76_spill] sm:$0xff] }
 0x4ed   : > { %4069 = vxpose.xlu1.c.b16.cont [7/8] %v11197_v45, 128  ;;  %4156 = vmatpush1.bf16.msra.mxu1 %v3987_v56  ;;  %v3621_v54 = vmul.f32 %v6391_v34, %v11202_v37  ;;  %v3983_v59 = vpack.c.bf16 %v3619_v61, %v3615_v1  ;;  %v11203_v31 = vld [vmem:[#allocation61_spill] sm:$0xff]  ;;  %v11210_v14 = vld [vmem:[#allocation18_spill] sm:$0xff]  ;;  %v11213_v49 = vld [vmem:[#allocation72_spill] sm:$0xff] }
 0x4ee   : > { %4118 = vxpose.xlu0.c.b16.end [8/8] %v11200_v12, 128  ;;  %4429 = vmatpush1.bf16.msra.mxu0 %v3989_v24  ;;  %v11205_v51 = vpack.c.bf16 %v11203_v31, %v11204_v57  ;;  %v11211_v22 = vpack.c.bf16 %v11209_v47, %v11210_v14  ;;  %v11214_v56 = vpack.c.bf16 %v11212_v4, %v11213_v49  ;;  %v11215_v48 = vld [vmem:[#allocation28_spill] sm:$0xff]  ;;  %v11218_v35 = vld [vmem:[#allocation82_spill] sm:$0xff] }
 0x4ef   : > { %4157 = vmatprep.subr.bf16.mxu1 %v3984_v62  ;;  %4430 = vmatprep.subr.bf16.mxu0 %v3986_v38  ;;  %v3985_v30 = vpack.c.bf16 %v3621_v54, %v3617_v0  ;;  %v11216_v1 = vld [vmem:[#allocation24_spill] sm:$0xff]  ;;  %v11219_v21 = vld [vmem:[#allocation78_spill] sm:$0xff] }
 0x4f0   : > { %v3537_v20 = vpop.xlane.xlu0 %3536  ;;  %v11217_v28 = vpack.c.bf16 %v11215_v48, %v11216_v1  ;;  %v11220_v45 = vpack.c.bf16 %v11218_v35, %v11219_v21  ;;  %v11221_v13 = vld [vmem:[#allocation34_spill] sm:$0xff]  ;;  %v11224_v52 = vld [vmem:[#allocation88_spill] sm:$0xff] }
 0x4f1   : > { %4070 = vxpose.xlu1.c.b16.end [8/8] %v11205_v51, 128  ;;  %4158 = vmatpush1.bf16.msra.mxu1 %v3983_v59  ;;  %v11222_v12 = vld [vmem:[#allocation30_spill] sm:$0xff]  ;;  %v11225_v61 = vld [vmem:[#allocation84_spill] sm:$0xff] }
 0x4f2   : > { %4127 = vxpose.xlu0.c.b16.start [1/8] %v11208_v33, 128  ;;  %4431 = vmatpush1.bf16.msra.mxu0 %v3985_v30  ;;  %v11223_v62 = vpack.c.bf16 %v11221_v13, %v11222_v12  ;;  %v11226_v37 = vpack.c.bf16 %v11224_v52, %v11225_v61  ;;  %v11227_v59 = vld [vmem:[#allocation40_spill] sm:$0xff]  ;;  %v11230_v51 = vld [vmem:[#allocation94_spill] sm:$0xff] }
 0x4f3   : > { %v11228_v30 = vld [vmem:[#allocation36_spill] sm:$0xff]  ;;  %v11231_v43 = vld [vmem:[#allocation90_spill] sm:$0xff] }
 0x4f4   : > { %v3542_v34 = vpop.xlane.xlu1 %3541  ;;  %v3547_v24 = vpop.xlane.xlu0 %3546  ;;  %v11229_v31 = vpack.c.bf16 %v11227_v59, %v11228_v30  ;;  %v11232_v8 = vpack.c.bf16 %v11230_v51, %v11231_v43  ;;  %v11233_v47 = vld [vmem:[#allocation46_spill] sm:$0xff]  ;;  %v11236_v49 = vld [vmem:[#allocation100_spill] sm:$0xff] }
 0x4f5   : > { %4079 = vxpose.xlu1.c.b16.start [1/8] %v11211_v22, 128  ;;  %v11234_v14 = vld [vmem:[#allocation42_spill] sm:$0xff]  ;;  %v11240_v35 = vld [vmem:[#allocation48_spill] sm:$0xff] }
 0x4f6   : > { %4128 = vxpose.xlu0.c.b16.cont [2/8] %v11214_v56, 128  ;;  %v11235_v22 = vpack.c.bf16 %v11233_v47, %v11234_v14  ;;  %v11237_v56 = vld [vmem:[#allocation96_spill] sm:$0xff]  ;;  %v11243_v13 = vld [vmem:[#allocation102_spill] sm:$0xff] }
 0x4f7   : > { %v11238_v48 = vpack.c.bf16 %v11236_v49, %v11237_v56  ;;  %v11245_v61 = vld [vmem:[#allocation58_spill] sm:$0xff]  ;;  %v11248_v59 = vld [vmem:[#allocation112_spill] sm:$0xff] }
 0x4f8   : > { %v3552_v0 = vpop.xlane.xlu1 %3551  ;;  %v3557_v18 = vpop.xlane.xlu0 %3556  ;;  %v11249_v30 = vld [vmem:[#allocation108_spill] sm:$0xff] }
 0x4f9   : > { %4080 = vxpose.xlu1.c.b16.cont [2/8] %v11217_v28, 128  ;;  %v11239_v28 = vld [vmem:[#allocation52_spill] sm:$0xff] }
 0x4fa   : > { %4129 = vxpose.xlu0.c.b16.cont [3/8] %v11220_v45, 128  ;;  %v11241_v21 = vpack.c.bf16 %v11239_v28, %v11240_v35  ;;  %v11242_v45 = vld [vmem:[#allocation106_spill] sm:$0xff]  ;;  %v11251_v51 = vld [vmem:[#allocation64_spill] sm:$0xff] }
 0x4fb   : > { %v11244_v12 = vpack.c.bf16 %v11242_v45, %v11243_v13  ;;  %v11252_v43 = vld [vmem:[#allocation60_spill] sm:$0xff] }
 0x4fc   : > { %v3562_v38 = vpop.xlane.xlu1 %3561  ;;  %v3567_v54 = vpop.xlane.xlu0 %3566 }
 0x4fd   : > { %4081 = vxpose.xlu1.c.b16.cont [3/8] %v11223_v62, 128 }
 0x4fe   : > { %4130 = vxpose.xlu0.c.b16.cont [4/8] %v11226_v37, 128  ;;  %v11246_v37 = vld [vmem:[#allocation54_spill] sm:$0xff] }
 0x500   : > { %v3572_v57 = vpop.xlane.xlu1 %3571  ;;  %v3577_v33 = vpop.xlane.xlu0 %3576 }
 0x501   : > { %4082 = vxpose.xlu1.c.b16.cont [4/8] %v11229_v31, 128  ;;  %6392 = vrcp.f32 %v3572_v57  ;;  %v11250_v31 = vpack.c.bf16 %v11248_v59, %v11249_v30 }
 0x502   : > { %4131 = vxpose.xlu0.c.b16.cont [5/8] %v11232_v8, 128  ;;  %6394 = vrcp.f32 %v3577_v33  ;;  %v11253_v8 = vpack.c.bf16 %v11251_v51, %v11252_v43 }
 0x503   : > { %6396 = vrcp.f32 %v3567_v54  ;;  %v11247_v54 = vpack.c.bf16 %v11245_v61, %v11246_v37 }
 0x504   : > { %v3582_v4 = vpop.xlane.xlu1 %3581  ;;  %v3527_v1 = vpop.xlane.xlu0 %3526 }
 0x505   : > { %4083 = vxpose.xlu1.c.b16.cont [5/8] %v11235_v22, 128  ;;  %6398 = vrcp.f32 %v3582_v4 }
 0x506   : > { %4132 = vxpose.xlu0.c.b16.cont [6/8] %v11238_v48, 128  ;;  %6400 = vrcp.f32 %v3562_v38 }
 0x507   : > { %6402 = vrcp.f32 %v3552_v0 }
 0x508   : > { %v3517_v62 = vpop.xlane.xlu0 %3516  ;;  %6404 = vrcp.f32 %v3557_v18  ;;  %v3532_v52 = vpop.xlane.xlu1 %3531 }
 0x509   : > { %4084 = vxpose.xlu1.c.b16.cont [6/8] %v11241_v21, 128  ;;  %6406 = vrcp.f32 %v3547_v24 }
 0x50a   : > { %4133 = vxpose.xlu0.c.b16.cont [7/8] %v11244_v12, 128  ;;  %6408 = vrcp.f32 %v3542_v34 }
 0x50b   : > { %6410 = vrcp.f32 %v3537_v20 }
 0x50c   : > { %v9829_v38 = vpop.xlane.xlu0 %3506  ;;  %6412 = vrcp.f32 %v3532_v52  ;;  %v3522_v22 = vpop.xlane.xlu1 %3521 }
 0x50d   : > { %4085 = vxpose.xlu1.c.b16.cont [7/8] %v11247_v54, 128  ;;  %6414 = vrcp.f32 %v3527_v1 }
 0x50e   : > { %4134 = vxpose.xlu0.c.b16.end [8/8] %v11250_v31, 128  ;;  %v6393_v0 = vpop.eup %6392  ;;  %6416 = vrcp.f32 %v3522_v22  ;;  %v11258_v22 = vld [vmem:[#allocation113_spill] sm:$0xff] }
 0x50f   : > { %v6395_v57 = vpop.eup %6394  ;;  %v3732_v33 = vmul.f32 %v6393_v0, %v9402_v60  ;;  %v3734_v47 = vmul.f32 %v6393_v0, %v9408_v50  ;;  %6418 = vrcp.f32 %v3517_v62 }
 0x510   : > { %v6397_v18 = vpop.eup %6396  ;;  %v3736_v24 = vmul.f32 %v6395_v57, %v9362_v53  ;;  %v3738_v4 = vmul.f32 %v6395_v57, %v9368_v5  ;;  %v3735_v49 = vmul.f32 %v6395_v57, %v9358_v7  ;;  %v3737_v20 = vmul.f32 %v6395_v57, %v9365_v29  ;;  %v3512_v1 = vpop.xlane.xlu1 %3511 }
 0x511   : > { %4086 = vxpose.xlu1.c.b16.end [8/8] %v11253_v8, 128  ;;  %v3728_v53 = vmul.f32 %v6397_v18, %v9390_v10  ;;  %v3730_v5 = vmul.f32 %v6397_v18, %v9396_v40  ;;  %v3727_v12 = vmul.f32 %v6397_v18, %v9386_v42  ;;  %v3729_v52 = vmul.f32 %v6397_v18, %v9393_v25 }
 0x512   : > { %v6399_v14 = vpop.eup %6398  ;;  %v4103_v34 = vpop.trf.xlu0  ;;  %6420 = vrcp.f32 %v3512_v1 }
 0x513   : > { %v6401_v56 = vpop.eup %6400  ;;  %v3740_v48 = vmul.f32 %v6399_v14, %v9376_v23  ;;  %v3742_v28 = vmul.f32 %v6399_v14, %v9382_v16  ;;  %v3739_v60 = vmul.f32 %v6399_v14, %v9371_v55  ;;  %v3741_v50 = vmul.f32 %v6399_v14, %v9379_v58  ;;  %4175 = vmatprep.mubr.bf16.mxu1 %v4103_v34 }
 0x514   : > { %4448 = vmatprep.mubr.bf16.mxu0 %v4103_v34  ;;  %v6403_v7 = vpop.eup %6402  ;;  %v3731_v23 = vmul.f32 %v6393_v0, %v9399_v19  ;;  %v3733_v16 = vmul.f32 %v6393_v0, %v9405_v3  ;;  %v3724_v55 = vmul.f32 %v6401_v56, %v9428_v17  ;;  %v4040_v58 = vpack.c.bf16 %v3732_v33, %v3728_v53  ;;  %v11263_v53 = vld [vmem:[#allocation201_spill] sm:$0xff] }
 0x515   : > { %v4044_v35 = vpack.c.bf16 %v3740_v48, %v3736_v24  ;;  %v4046_v29 = vpack.c.bf16 %v3742_v28, %v3738_v4  ;;  %v4043_v21 = vpack.c.bf16 %v3739_v60, %v3735_v49  ;;  %v4045_v45 = vpack.c.bf16 %v3741_v50, %v3737_v20  ;;  %v6405_v13 = vpop.eup %6404  ;;  %v11260_v20 = vld [vmem:[#allocation210_spill] sm:$0xff]  ;;  %v11262_v28 = vld [vmem:[#allocation199_spill] sm:$0xff] }
 0x516   : > { %v4042_v10 = vpack.c.bf16 %v3734_v47, %v3730_v5  ;;  %v3726_v40 = vmul.f32 %v6401_v56, %v9434_v46  ;;  %v3720_v19 = vmul.f32 %v6405_v13, %v9415_v41  ;;  %v3722_v3 = vmul.f32 %v6405_v13, %v9422_v6  ;;  %v6407_v61 = vpop.eup %6406  ;;  %v11254_v41 = vld [vmem:[#allocation122_spill] sm:$0xff]  ;;  %v11255_v6 = vld [vmem:[#allocation124_spill] sm:$0xff] }
 0x517   : > { %4159 = vmatprep.subr.bf16.mxu1 %v4044_v35  ;;  %4432 = vmatprep.subr.bf16.mxu0 %v4046_v29  ;;  %v3716_v17 = vmul.f32 %v6403_v7, %v9456_v27  ;;  %v4039_v37 = vpack.c.bf16 %v3731_v23, %v3727_v12  ;;  %v4041_v54 = vpack.c.bf16 %v3733_v16, %v3729_v52  ;;  %v6409_v62 = vpop.eup %6408  ;;  %6422 = vrcp.f32 %v9829_v38  ;;  %v11259_v38 = vld [vmem:[#allocation115_spill] sm:$0xff] }
 0x518   : > { %4160 = vmatpush2.bf16.msra.mxu1 %v4043_v21  ;;  %4433 = vmatpush2.bf16.msra.mxu0 %v4045_v45  ;;  %v3723_v46 = vmul.f32 %v6401_v56, %v9425_v9  ;;  %v3725_v59 = vmul.f32 %v6401_v56, %v9431_v2  ;;  %v4036_v42 = vpack.c.bf16 %v3724_v55, %v3720_v19  ;;  %v6411_v27 = vpop.eup %6410  ;;  %v11256_v9 = vld [vmem:[#allocation116_spill] sm:$0xff]  ;;  %v11261_v56 = vld [vmem:[#allocation117_spill] sm:$0xff]  ;;  %v11265_v23 = vld [vmem:[#allocation159_spill] sm:$0xff] }
 0x519   : > { %4161 = vmatprep.subr.bf16.mxu1 %v4040_v58  ;;  %4434 = vmatprep.subr.bf16.mxu0 %v4042_v10  ;;  %v4038_v30 = vpack.c.bf16 %v3726_v40, %v3722_v3  ;;  %v3718_v25 = vmul.f32 %v6403_v7, %v9507_v11  ;;  %v3719_v31 = vmul.f32 %v6405_v13, %v11254_v41  ;;  %v6413_v51 = vpop.eup %6412  ;;  %v11257_v11 = vld [vmem:[#allocation191_spill] sm:$0xff]  ;;  %v11267_v19 = vld [vmem:[#allocation189_spill] sm:$0xff]  ;;  %v11268_v3 = vld [vmem:[#allocation190_spill] sm:$0xff] }
 0x51a   : > { %v3721_v0 = vmul.f32 %v6405_v13, %v11255_v6  ;;  %v3712_v57 = vmul.f32 %v6407_v61, %v11256_v9  ;;  %v3714_v2 = vmul.f32 %v6407_v61, %v9450_v26  ;;  %v3715_v18 = vmul.f32 %v6403_v7, %v11257_v11  ;;  %v6415_v26 = vpop.eup %6414  ;;  %v11266_v55 = vld [vmem:[#allocation119_spill] sm:$0xff] }
 0x51b   : > { %v4035_v43 = vpack.c.bf16 %v3723_v46, %v3719_v31  ;;  %v3717_v33 = vmul.f32 %v6403_v7, %v9496_v15  ;;  %v3708_v24 = vmul.f32 %v6409_v62, %v11258_v22  ;;  %v3710_v4 = vmul.f32 %v6409_v62, %v9512_v32  ;;  %v11264_v7 = vld [vmem:[#allocation114_spill] sm:$0xff]  ;;  %v6417_v13 = vpop.eup %6416  ;;  %v11270_v46 = vld [vmem:[#allocation172_spill] sm:$0xff] }
 0x51c   : > { %4162 = vmatpush2.bf16.msra.mxu1 %v4039_v37  ;;  %4435 = vmatpush2.bf16.msra.mxu0 %v4041_v54  ;;  %v4037_v8 = vpack.c.bf16 %v3725_v59, %v3721_v0  ;;  %v4032_v47 = vpack.c.bf16 %v3716_v17, %v3712_v57  ;;  %v4034_v14 = vpack.c.bf16 %v3718_v25, %v3714_v2  ;;  %v6419_v1 = vpop.eup %6418  ;;  %v11269_v37 = vld [vmem:[#allocation178_spill] sm:$0xff]  ;;  %v11272_v25 = vld [vmem:[#allocation196_spill] sm:$0xff]  ;;  %v11275_v57 = vld [vmem:[#allocation177_spill] sm:$0xff] }
 0x51d   : > { %4163 = vmatprep.subr.bf16.mxu1 %v4036_v42  ;;  %4436 = vmatprep.subr.bf16.mxu0 %v4038_v30  ;;  %v3711_v49 = vmul.f32 %v6407_v61, %v11259_v38  ;;  %v3713_v34 = vmul.f32 %v6407_v61, %v11260_v20  ;;  %v3704_v48 = vmul.f32 %v6411_v27, %v11261_v56  ;;  %v11271_v30 = vld [vmem:[#allocation194_spill] sm:$0xff]  ;;  %v11274_v31 = vld [vmem:[#allocation128_spill] sm:$0xff] }
 0x51e   : > { %v3706_v60 = vmul.f32 %v6411_v27, %v11262_v28  ;;  %v3707_v5 = vmul.f32 %v6409_v62, %v11263_v53  ;;  %v3709_v35 = vmul.f32 %v6409_v62, %v11264_v7  ;;  %v3700_v21 = vmul.f32 %v6413_v51, %v9544_v63  ;;  %v11273_v62 = vld [vmem:[#allocation181_spill] sm:$0xff]  ;;  %v11279_v22 = vld [vmem:[#allocation186_spill] sm:$0xff]  ;;  %v11285_v7 = vld [vmem:[#allocation163_spill] sm:$0xff] }
 0x51f   : > { %v4031_v15 = vpack.c.bf16 %v3715_v18, %v3711_v49  ;;  %v4033_v50 = vpack.c.bf16 %v3717_v33, %v3713_v34  ;;  %v4028_v32 = vpack.c.bf16 %v3708_v24, %v3704_v48  ;;  %v3702_v45 = vmul.f32 %v6413_v51, %v9550_v36  ;;  %v6421_v42 = vpop.eup %6420  ;;  %v11277_v18 = vld [vmem:[#allocation188_spill] sm:$0xff]  ;;  %v11281_v49 = vld [vmem:[#allocation202_spill] sm:$0xff]  ;;  %v11282_v34 = vld [vmem:[#allocation173_spill] sm:$0xff] }
 0x520   : > { %4164 = vmatpush2.bf16.msra.mxu1 %v4035_v43  ;;  %4437 = vmatpush2.bf16.msra.mxu0 %v4037_v8  ;;  %v4030_v29 = vpack.c.bf16 %v3710_v4, %v3706_v60  ;;  %v3703_v16 = vmul.f32 %v6411_v27, %v11265_v23  ;;  %v3705_v58 = vmul.f32 %v6411_v27, %v11266_v55  ;;  %v11280_v4 = vld [vmem:[#allocation182_spill] sm:$0xff]  ;;  %v11283_v28 = vld [vmem:[#allocation149_spill] sm:$0xff]  ;;  %v4104_v23 = vpop.trf.xlu0 }
 0x521   : > { %4165 = vmatprep.subr.bf16.mxu1 %v4032_v47  ;;  %4438 = vmatprep.subr.bf16.mxu0 %v4034_v14  ;;  %v3696_v10 = vmul.f32 %v6415_v26, %v9524_v39  ;;  %v3698_v40 = vmul.f32 %v6415_v26, %v9532_v44  ;;  %v3699_v63 = vmul.f32 %v6413_v51, %v11267_v19  ;;  %v11278_v47 = vld [vmem:[#allocation141_spill] sm:$0xff] }
 0x522   : > { %v4027_v12 = vpack.c.bf16 %v3707_v5, %v3703_v16  ;;  %v4029_v52 = vpack.c.bf16 %v3709_v35, %v3705_v58  ;;  %v3701_v36 = vmul.f32 %v6413_v51, %v11268_v3  ;;  %v3692_v54 = vmul.f32 %v6417_v13, %v11269_v37  ;;  %v11276_v51 = vld [vmem:[#allocation179_spill] sm:$0xff] }
 0x523   : > { %v4024_v17 = vpack.c.bf16 %v3700_v21, %v3696_v10  ;;  %v4026_v61 = vpack.c.bf16 %v3702_v45, %v3698_v40  ;;  %v3694_v59 = vmul.f32 %v6417_v13, %v11270_v46  ;;  %v3695_v39 = vmul.f32 %v6415_v26, %v11271_v30 }
 0x524   : > { %4166 = vmatpush2.bf16.msra.mxu1 %v4031_v15  ;;  %4439 = vmatpush2.bf16.msra.mxu0 %v4033_v50  ;;  %v3697_v44 = vmul.f32 %v6415_v26, %v11272_v25  ;;  %v3688_v41 = vmul.f32 %v6419_v1, %v11273_v62  ;;  %v3690_v6 = vmul.f32 %v6419_v1, %v11274_v31  ;;  %v6423_v0 = vpop.eup %6422  ;;  %v11284_v15 = vld [vmem:[#allocation192_spill] sm:$0xff]  ;;  %v4105_v55 = vpop.trf.xlu0 }
 0x525   : > { %4167 = vmatprep.subr.bf16.mxu1 %v4028_v32  ;;  %4440 = vmatprep.subr.bf16.mxu0 %v4030_v29  ;;  %v4023_v27 = vpack.c.bf16 %v3699_v63, %v3695_v39  ;;  %v3691_v2 = vmul.f32 %v6417_v13, %v11275_v57  ;;  %v3693_v43 = vmul.f32 %v6417_v13, %v11276_v51  ;;  %v11286_v32 = vld [vmem:[#allocation203_spill] sm:$0xff]  ;;  %v4055_v13 = vpop.trf.xlu1 }
 0x526   : > { %v4025_v9 = vpack.c.bf16 %v3701_v36, %v3697_v44  ;;  %v4020_v8 = vpack.c.bf16 %v3692_v54, %v3688_v41  ;;  %v4022_v11 = vpack.c.bf16 %v3694_v59, %v3690_v6  ;;  %v3684_v33 = vmul.f32 %v6421_v42, %v11277_v18 }
 0x527   : > { %v3686_v14 = vmul.f32 %v6421_v42, %v11278_v47  ;;  %v3687_v24 = vmul.f32 %v6419_v1, %v11279_v22  ;;  %v3689_v38 = vmul.f32 %v6419_v1, %v11280_v4  ;;  %v3680_v20 = vmul.f32 %v6423_v0, %v11281_v49 }
 0x528   : > { %4168 = vmatpush2.bf16.msra.mxu1 %v4027_v12  ;;  %4441 = vmatpush2.bf16.msra.mxu0 %v4029_v52  ;;  %v3682_v26 = vmul.f32 %v6423_v0, %v11282_v34  ;;  %v3683_v60 = vmul.f32 %v6421_v42, %v11283_v28  ;;  %v3685_v50 = vmul.f32 %v6421_v42, %v11284_v15  ;;  %v4106_v10 = vpop.trf.xlu0  ;;  %v3745_v34 = vld [vmem:[#allocation2 + $0x4d8] sm:$0xff] }
 0x529   : > { %4169 = vmatprep.subr.bf16.mxu1 %v4024_v17  ;;  %4442 = vmatprep.subr.bf16.mxu0 %v4026_v61  ;;  %v4019_v56 = vpack.c.bf16 %v3691_v2, %v3687_v24  ;;  %v4021_v48 = vpack.c.bf16 %v3693_v43, %v3689_v38  ;;  %v4016_v53 = vpack.c.bf16 %v3684_v33, %v3680_v20  ;;  %v4056_v16 = vpop.trf.xlu1  ;;  %v3743_v20 = vld [vmem:[#allocation2 + $0x2b0] sm:$0xff]  ;;  %v3746_v28 = vld [vmem:[#allocation2 + $0x18] sm:$0xff] }
 0x52a   : > { %v4018_v5 = vpack.c.bf16 %v3686_v14, %v3682_v26  ;;  %v3679_v35 = vmul.f32 %v6423_v0, %v11285_v7  ;;  %v3681_v29 = vmul.f32 %v6423_v0, %v11286_v32  ;;  %v3749_v7 = vld [vmem:[#allocation2 + $0x440] sm:$0xff] }
 0x52c   : > { %4170 = vmatpush2.bf16.msra.mxu1 %v4023_v27  ;;  %4443 = vmatpush2.bf16.msra.mxu0 %v4025_v9  ;;  %v4015_v21 = vpack.c.bf16 %v3683_v60, %v3679_v35  ;;  %v4017_v45 = vpack.c.bf16 %v3685_v50, %v3681_v29  ;;  %v4107_v1 = vpop.trf.xlu0 }
 0x52d   : > { %4171 = vmatprep.subr.bf16.mxu1 %v4020_v8  ;;  %4444 = vmatprep.subr.bf16.mxu0 %v4022_v11  ;;  %v4057_v58 = vpop.trf.xlu1 }
 0x530   : > { %4172 = vmatpush2.bf16.msra.mxu1 %v4019_v56  ;;  %4445 = vmatpush2.bf16.msra.mxu0 %v4021_v48  ;;  %v4108_v52 = vpop.trf.xlu0  ;;  %v3744_v48 = vld [vmem:[#allocation2 + $0x3b0] sm:$0xff] }
 0x531   : > { %4173 = vmatprep.subr.bf16.mxu1 %v4016_v53  ;;  %4446 = vmatprep.subr.bf16.mxu0 %v4018_v5  ;;  %v4058_v40 = vpop.trf.xlu1  ;;  %v3747_v5 = vld [vmem:[#allocation2 + $0x450] sm:$0xff] }
 0x534   : > { %4174 = vmatpush2.bf16.msra.mxu1 %v4015_v21  ;;  %4447 = vmatpush2.bf16.msra.mxu0 %v4017_v45  ;;  %v4109_v63 = vpop.trf.xlu0  ;;  %v3748_v45 = vld [vmem:[#allocation2 + $0x328] sm:$0xff] }
 0x535   : > { %v4059_v12 = vpop.trf.xlu1 }
 0x537   : > { %4176 = vmatmul.mubr.bf16.vlgmr.msra.gmra.mxu1 %v4055_v13  ;;  %4449 = vmatmul.mubr.bf16.vlgmr.msra.gmra.mxu0 %v4055_v13  ;;  %v3750_v13 = vld [vmem:[#allocation2 + $0x378] sm:$0xff] }
 0x538   : > { %4185 = vmatprep.mubr.bf16.mxu1 %v4104_v23  ;;  %4458 = vmatprep.mubr.bf16.mxu0 %v4104_v23  ;;  %v4110_v36 = vpop.trf.xlu0 }
 0x539   : > { %v4060_v19 = vpop.trf.xlu1 }
 0x53c   : > { %v4119_v61 = vpop.trf.xlu0 }
 0x53d   : > { %v4061_v3 = vpop.trf.xlu1 }
 0x53f   : > { %4186 = vmatmul.mubr.bf16.gmra.mxu1 %v4056_v16  ;;  %4459 = vmatmul.mubr.bf16.gmra.mxu0 %v4056_v16 }
 0x540   : > { %4195 = vmatprep.mubr.bf16.mxu1 %v4105_v55  ;;  %4468 = vmatprep.mubr.bf16.mxu0 %v4105_v55  ;;  %v4120_v54 = vpop.trf.xlu0 }
 0x541   : > { %v4062_v17 = vpop.trf.xlu1 }
 0x544   : > { %v4121_v59 = vpop.trf.xlu0 }
 0x545   : > { %v4071_v37 = vpop.trf.xlu1 }
 0x547   : > { %4196 = vmatmul.mubr.bf16.gmra.mxu1 %v4057_v58  ;;  %4469 = vmatmul.mubr.bf16.gmra.mxu0 %v4057_v58 }
 0x548   : > { %4205 = vmatprep.mubr.bf16.mxu1 %v4106_v10  ;;  %4478 = vmatprep.mubr.bf16.mxu0 %v4106_v10  ;;  %v4122_v30 = vpop.trf.xlu0  ;;  %v3751_v10 = vld [vmem:[#allocation2 + $0x108] sm:$0xff] }
 0x549   : > { %v4072_v46 = vpop.trf.xlu1 }
 0x54c   : > { %v4123_v25 = vpop.trf.xlu0 }
 0x54d   : > { %v4073_v42 = vpop.trf.xlu1 }
 0x54f   : > { %4206 = vmatmul.mubr.bf16.gmra.mxu1 %v4058_v40  ;;  %4479 = vmatmul.mubr.bf16.gmra.mxu0 %v4058_v40  ;;  %v3753_v40 = vld [vmem:[#allocation2 + $0x490] sm:$0xff] }
 0x550   : > { %4215 = vmatprep.mubr.bf16.mxu1 %v4107_v1  ;;  %4488 = vmatprep.mubr.bf16.mxu0 %v4107_v1  ;;  %v4124_v62 = vpop.trf.xlu0 }
 0x551   : > { %v4074_v39 = vpop.trf.xlu1 }
 0x554   : > { %v4125_v31 = vpop.trf.xlu0 }
 0x555   : > { %v4075_v44 = vpop.trf.xlu1 }
 0x557   : > { %4216 = vmatmul.mubr.bf16.gmra.mxu1 %v4059_v12  ;;  %4489 = vmatmul.mubr.bf16.gmra.mxu0 %v4059_v12 }
 0x558   : > { %4225 = vmatprep.mubr.bf16.mxu1 %v4108_v52  ;;  %4498 = vmatprep.mubr.bf16.mxu0 %v4108_v52  ;;  %v4126_v0 = vpop.trf.xlu0 }
 0x559   : > { %v4076_v41 = vpop.trf.xlu1 }
 0x55c   : > { %v4135_v9 = vpop.trf.xlu0 }
 0x55d   : > { %v4077_v6 = vpop.trf.xlu1 }
 0x55f   : > { %4226 = vmatmul.mubr.bf16.gmra.mxu1 %v4060_v19  ;;  %4499 = vmatmul.mubr.bf16.gmra.mxu0 %v4060_v19 }
 0x560   : > { %4235 = vmatprep.mubr.bf16.mxu1 %v4109_v63  ;;  %4508 = vmatprep.mubr.bf16.mxu0 %v4109_v63  ;;  %v4136_v2 = vpop.trf.xlu0  ;;  %v3752_v63 = vld [vmem:[#allocation2 + $0x510] sm:$0xff] }
 0x561   : > { %v4078_v27 = vpop.trf.xlu1 }
 0x564   : > { %v4137_v43 = vpop.trf.xlu0 }
 0x565   : > { %v4087_v57 = vpop.trf.xlu1 }
 0x567   : > { %4236 = vmatmul.mubr.bf16.gmra.mxu1 %v4061_v3  ;;  %4509 = vmatmul.mubr.bf16.gmra.mxu0 %v4061_v3  ;;  %v3754_v3 = vld [vmem:[#allocation2 + $0x318] sm:$0xff] }
 0x568   : > { %4245 = vmatprep.mubr.bf16.mxu1 %v4110_v36  ;;  %4518 = vmatprep.mubr.bf16.mxu0 %v4110_v36  ;;  %v4138_v11 = vpop.trf.xlu0 }
 0x569   : > { %v4088_v51 = vpop.trf.xlu1 }
 0x56c   : > { %v4139_v33 = vpop.trf.xlu0 }
 0x56d   : > { %v4089_v8 = vpop.trf.xlu1 }
 0x56f   : > { %4246 = vmatmul.mubr.bf16.gmra.mxu1 %v4062_v17  ;;  %4519 = vmatmul.mubr.bf16.gmra.mxu0 %v4062_v17 }
 0x570   : > { %4255 = vmatprep.mubr.bf16.mxu1 %v4119_v61  ;;  %4528 = vmatprep.mubr.bf16.mxu0 %v4119_v61  ;;  %v4140_v14 = vpop.trf.xlu0 }
 0x571   : > { %v4090_v18 = vpop.trf.xlu1 }
 0x574   : > { %v4141_v24 = vpop.trf.xlu0 }
 0x575   : > { %v4091_v47 = vpop.trf.xlu1 }
 0x577   : > { %4256 = vmatmul.mubr.bf16.gmra.mxu1 %v4071_v37  ;;  %4529 = vmatmul.mubr.bf16.gmra.mxu0 %v4071_v37 }
 0x578   : > { %4265 = vmatprep.mubr.bf16.mxu1 %v4120_v54  ;;  %4538 = vmatprep.mubr.bf16.mxu0 %v4120_v54  ;;  %v4142_v38 = vpop.trf.xlu0  ;;  %v3755_v54 = vld [vmem:[#allocation2 + $0x548] sm:$0xff] }
 0x579   : > { %v4092_v22 = vpop.trf.xlu1 }
 0x57d   : > { %v4093_v4 = vpop.trf.xlu1 }
 0x57f   : > { %4266 = vmatmul.mubr.bf16.gmra.mxu1 %v4072_v46  ;;  %4539 = vmatmul.mubr.bf16.gmra.mxu0 %v4072_v46  ;;  %v3757_v46 = vld [vmem:[#allocation2 + $0x58] sm:$0xff] }
 0x580   : > { %4275 = vmatprep.mubr.bf16.mxu1 %v4121_v59  ;;  %4548 = vmatprep.mubr.bf16.mxu0 %v4121_v59 }
 0x581   : > { %v4094_v49 = vpop.trf.xlu1 }
 0x587   : > { %4276 = vmatmul.mubr.bf16.gmra.mxu1 %v4073_v42  ;;  %4549 = vmatmul.mubr.bf16.gmra.mxu0 %v4073_v42 }
 0x588   : > { %4285 = vmatprep.mubr.bf16.mxu1 %v4122_v30  ;;  %4558 = vmatprep.mubr.bf16.mxu0 %v4122_v30 }
 0x58f   : > { %4286 = vmatmul.mubr.bf16.gmra.mxu1 %v4074_v39  ;;  %4559 = vmatmul.mubr.bf16.gmra.mxu0 %v4074_v39 }
 0x590   : > { %4295 = vmatprep.mubr.bf16.mxu1 %v4123_v25  ;;  %4568 = vmatprep.mubr.bf16.mxu0 %v4123_v25  ;;  %v3756_v25 = vld [vmem:[#allocation2 + $0x500] sm:$0xff] }
 0x597   : > { %4296 = vmatmul.mubr.bf16.gmra.mxu1 %v4075_v44  ;;  %4569 = vmatmul.mubr.bf16.gmra.mxu0 %v4075_v44  ;;  %v3758_v44 = vld [vmem:[#allocation2 + $0x2b8] sm:$0xff] }
 0x598   : > { %4305 = vmatprep.mubr.bf16.mxu1 %v4124_v62  ;;  %4578 = vmatprep.mubr.bf16.mxu0 %v4124_v62 }
 0x59f   : > { %4306 = vmatmul.mubr.bf16.gmra.mxu1 %v4076_v41  ;;  %4579 = vmatmul.mubr.bf16.gmra.mxu0 %v4076_v41 }
 0x5a0   : > { %4315 = vmatprep.mubr.bf16.mxu1 %v4125_v31  ;;  %4588 = vmatprep.mubr.bf16.mxu0 %v4125_v31 }
 0x5a7   : > { %4316 = vmatmul.mubr.bf16.gmra.mxu1 %v4077_v6  ;;  %4589 = vmatmul.mubr.bf16.gmra.mxu0 %v4077_v6 }
 0x5a8   : > { %4325 = vmatprep.mubr.bf16.mxu1 %v4126_v0  ;;  %4598 = vmatprep.mubr.bf16.mxu0 %v4126_v0  ;;  %v3759_v0 = vld [vmem:[#allocation2 + $0x580] sm:$0xff] }
 0x5af   : > { %4326 = vmatmul.mubr.bf16.gmra.mxu1 %v4078_v27  ;;  %4599 = vmatmul.mubr.bf16.gmra.mxu0 %v4078_v27  ;;  %v3761_v27 = vld [vmem:[#allocation2 + $0x540] sm:$0xff] }
 0x5b0   : > { %4335 = vmatprep.mubr.bf16.mxu1 %v4135_v9  ;;  %4608 = vmatprep.mubr.bf16.mxu0 %v4135_v9 }
 0x5b7   : > { %4336 = vmatmul.mubr.bf16.gmra.mxu1 %v4087_v57  ;;  %4609 = vmatmul.mubr.bf16.gmra.mxu0 %v4087_v57 }
 0x5b8   : > { %4345 = vmatprep.mubr.bf16.mxu1 %v4136_v2  ;;  %4618 = vmatprep.mubr.bf16.mxu0 %v4136_v2 }
 0x5bf   : > { %4346 = vmatmul.mubr.bf16.gmra.mxu1 %v4088_v51  ;;  %4619 = vmatmul.mubr.bf16.gmra.mxu0 %v4088_v51 }
 0x5c0   : > { %4355 = vmatprep.mubr.bf16.mxu1 %v4137_v43  ;;  %4628 = vmatprep.mubr.bf16.mxu0 %v4137_v43  ;;  %v3760_v43 = vld [vmem:[#allocation2 + $0x590] sm:$0xff] }
 0x5c7   : > { %4356 = vmatmul.mubr.bf16.gmra.mxu1 %v4089_v8  ;;  %4629 = vmatmul.mubr.bf16.gmra.mxu0 %v4089_v8  ;;  %v3762_v8 = vld [vmem:[#allocation2 + $0x3c0] sm:$0xff] }
 0x5c8   : > { %4365 = vmatprep.mubr.bf16.mxu1 %v4138_v11  ;;  %4638 = vmatprep.mubr.bf16.mxu0 %v4138_v11 }
 0x5cf   : > { %4366 = vmatmul.mubr.bf16.gmra.mxu1 %v4090_v18  ;;  %4639 = vmatmul.mubr.bf16.gmra.mxu0 %v4090_v18 }
 0x5d0   : > { %4375 = vmatprep.mubr.bf16.mxu1 %v4139_v33  ;;  %4648 = vmatprep.mubr.bf16.mxu0 %v4139_v33 }
 0x5d7   : > { %4376 = vmatmul.mubr.bf16.gmra.mxu1 %v4091_v47  ;;  %4649 = vmatmul.mubr.bf16.gmra.mxu0 %v4091_v47 }
 0x5d8   : > { %4385 = vmatprep.mubr.bf16.mxu1 %v4140_v14  ;;  %4658 = vmatprep.mubr.bf16.mxu0 %v4140_v14  ;;  %v3763_v14 = vld [vmem:[#allocation2 + $0x330] sm:$0xff] }
 0x5df   : > { %4386 = vmatmul.mubr.bf16.gmra.mxu1 %v4092_v22  ;;  %4659 = vmatmul.mubr.bf16.gmra.mxu0 %v4092_v22  ;;  %v3765_v22 = vld [vmem:[#allocation2 + $0x8] sm:$0xff] }
 0x5e0   : > { %4395 = vmatprep.mubr.bf16.mxu1 %v4141_v24  ;;  %4668 = vmatprep.mubr.bf16.mxu0 %v4141_v24 }
 0x5e7   : > { %4396 = vmatmul.mubr.bf16.gmra.mxu1 %v4093_v4  ;;  %4669 = vmatmul.mubr.bf16.gmra.mxu0 %v4093_v4 }
 0x5e8   : > { %4405 = vmatprep.mubr.bf16.mxu1 %v4142_v38  ;;  %4678 = vmatprep.mubr.bf16.mxu0 %v4142_v38 }
 0x5ef   : > { %4406 = vmatmul.mubr.bf16.gmra.mxu1 %v4094_v49  ;;  %4679 = vmatmul.mubr.bf16.gmra.mxu0 %v4094_v49 }
 0x5f7   : > { %v4177_v26 = vpop.f32.mrf.mxu1  ;;  %v4450_v56 = vpop.f32.mrf.mxu0 }
 0x5f8   : > { %v4689_v60 = vadd.f32 %v4177_v26, %v3743_v20  ;;  %v4691_v15 = vadd.f32 %v4450_v56, %v3745_v34  ;;  %v3764_v20 = vld [vmem:[#allocation2 + $0x100] sm:$0xff]  ;;  %v3766_v34 = vld [vmem:[#allocation2 + $0x188] sm:$0xff] }
 0x5f9   : > { %v4179_v50 = vpop.f32.mrf.mxu1  ;;  %v4452_v53 = vpop.f32.mrf.mxu0 }
 0x5fa   : > { %4881 = vst [vmem:[#allocation2 + $0x2b0] sm:$0xff] %v4689_v60  ;;  %4883 = vst [vmem:[#allocation2 + $0x4d8] sm:$0xff] %v4691_v15  ;;  %v4690_v35 = vadd.f32 %v4179_v50, %v3744_v48  ;;  %v4692_v32 = vadd.f32 %v4452_v53, %v3746_v28  ;;  %v3767_v60 = vld [vmem:[#allocation2 + $0x248] sm:$0xff] }
 0x5fb   : > { %v4181_v29 = vpop.f32.mrf.mxu1  ;;  %v4454_v21 = vpop.f32.mrf.mxu0  ;;  %v3769_v15 = vld [vmem:[#allocation2 + $0x388] sm:$0xff] }
 0x5fc   : > { %4882 = vst [vmem:[#allocation2 + $0x3b0] sm:$0xff] %v4690_v35  ;;  %4884 = vst [vmem:[#allocation2 + $0x18] sm:$0xff] %v4692_v32  ;;  %v4693_v23 = vadd.f32 %v4181_v29, %v3747_v5  ;;  %v4695_v16 = vadd.f32 %v4454_v21, %v3749_v7  ;;  %v3768_v35 = vld [vmem:[#allocation2 + $0xc8] sm:$0xff]  ;;  %v3770_v32 = vld [vmem:[#allocation2 + $0x520] sm:$0xff] }
 0x5fd   : > { %v4183_v55 = vpop.f32.mrf.mxu1  ;;  %v4456_v58 = vpop.f32.mrf.mxu0 }
 0x5fe   : > { %4885 = vst [vmem:[#allocation2 + $0x450] sm:$0xff] %v4693_v23  ;;  %4887 = vst [vmem:[#allocation2 + $0x440] sm:$0xff] %v4695_v16  ;;  %v4694_v1 = vadd.f32 %v4183_v55, %v3748_v45  ;;  %v4696_v12 = vadd.f32 %v4456_v58, %v3750_v13  ;;  %v3771_v23 = vld [vmem:[#allocation2 + $0x3a8] sm:$0xff] }
 0x5ff   : > { %v4187_v52 = vpop.f32.mrf.mxu1  ;;  %v4460_v19 = vpop.f32.mrf.mxu0  ;;  %v3773_v16 = vld [vmem:[#allocation2 + $0x488] sm:$0xff] }
 0x600   : > { %4886 = vst [vmem:[#allocation2 + $0x328] sm:$0xff] %v4694_v1  ;;  %4888 = vst [vmem:[#allocation2 + $0x378] sm:$0xff] %v4696_v12  ;;  %v4697_v36 = vadd.f32 %v4187_v52, %v3751_v10  ;;  %v4699_v17 = vadd.f32 %v4460_v19, %v3753_v40  ;;  %v3772_v1 = vld [vmem:[#allocation2 + $0x5e0] sm:$0xff]  ;;  %v3774_v12 = vld [vmem:[#allocation2 + $0x4d0] sm:$0xff] }
 0x601   : > { %v4189_v61 = vpop.f32.mrf.mxu1  ;;  %v4462_v37 = vpop.f32.mrf.mxu0 }
 0x602   : > { %4889 = vst [vmem:[#allocation2 + $0x108] sm:$0xff] %v4697_v36  ;;  %4891 = vst [vmem:[#allocation2 + $0x490] sm:$0xff] %v4699_v17  ;;  %v4698_v59 = vadd.f32 %v4189_v61, %v3752_v63  ;;  %v4700_v42 = vadd.f32 %v4462_v37, %v3754_v3  ;;  %v3775_v36 = vld [vmem:[#allocation2 + $0x98] sm:$0xff]  ;;  %v3777_v17 = vld [vmem:[#allocation2 + $0x2a0] sm:$0xff] }
 0x603   : > { %v4191_v30 = vpop.f32.mrf.mxu1  ;;  %v4464_v39 = vpop.f32.mrf.mxu0 }
 0x604   : > { %4890 = vst [vmem:[#allocation2 + $0x510] sm:$0xff] %v4698_v59  ;;  %4892 = vst [vmem:[#allocation2 + $0x318] sm:$0xff] %v4700_v42  ;;  %v4701_v62 = vadd.f32 %v4191_v30, %v3755_v54  ;;  %v4703_v41 = vadd.f32 %v4464_v39, %v3757_v46  ;;  %v3776_v59 = vld [vmem:[#allocation2 + $0xb0] sm:$0xff] }
 0x605   : > { %v4193_v31 = vpop.f32.mrf.mxu1  ;;  %v4466_v6 = vpop.f32.mrf.mxu0  ;;  %v3778_v42 = vld [vmem:[#allocation2 + $0x570] sm:$0xff] }
 0x606   : > { %4893 = vst [vmem:[#allocation2 + $0x548] sm:$0xff] %v4701_v62  ;;  %4895 = vst [vmem:[#allocation2 + $0x58] sm:$0xff] %v4703_v41  ;;  %v4702_v9 = vadd.f32 %v4193_v31, %v3756_v25  ;;  %v4704_v57 = vadd.f32 %v4466_v6, %v3758_v44  ;;  %v3779_v62 = vld [vmem:[#allocation2 + $0x598] sm:$0xff]  ;;  %v3781_v41 = vld [vmem:[#allocation2 + $0x4c8] sm:$0xff] }
 0x607   : > { %v4197_v2 = vpop.f32.mrf.mxu1  ;;  %v4470_v51 = vpop.f32.mrf.mxu0 }
 0x608   : > { %4894 = vst [vmem:[#allocation2 + $0x500] sm:$0xff] %v4702_v9  ;;  %4896 = vst [vmem:[#allocation2 + $0x2b8] sm:$0xff] %v4704_v57  ;;  %v4705_v11 = vadd.f32 %v4197_v2, %v3759_v0  ;;  %v4707_v18 = vadd.f32 %v4470_v51, %v3761_v27  ;;  %v3780_v9 = vld [vmem:[#allocation2 + $0x5a8] sm:$0xff] }
 0x609   : > { %v4199_v33 = vpop.f32.mrf.mxu1  ;;  %v4472_v47 = vpop.f32.mrf.mxu0  ;;  %v3782_v57 = vld [vmem:[#allocation2 + $0x5e8] sm:$0xff] }
 0x60a   : > { %4897 = vst [vmem:[#allocation2 + $0x580] sm:$0xff] %v4705_v11  ;;  %4899 = vst [vmem:[#allocation2 + $0x540] sm:$0xff] %v4707_v18  ;;  %v4706_v24 = vadd.f32 %v4199_v33, %v3760_v43  ;;  %v4708_v4 = vadd.f32 %v4472_v47, %v3762_v8  ;;  %v3783_v11 = vld [vmem:[#allocation2 + $0x1f8] sm:$0xff]  ;;  %v3785_v18 = vld [vmem:[#allocation2 + $0x3c8] sm:$0xff] }
 0x60b   : > { %v4201_v38 = vpop.f32.mrf.mxu1  ;;  %v4474_v49 = vpop.f32.mrf.mxu0 }
 0x60c   : > { %4898 = vst [vmem:[#allocation2 + $0x590] sm:$0xff] %v4706_v24  ;;  %4900 = vst [vmem:[#allocation2 + $0x3c0] sm:$0xff] %v4708_v4  ;;  %v4709_v26 = vadd.f32 %v4201_v38, %v3763_v14  ;;  %v4711_v56 = vadd.f32 %v4474_v49, %v3765_v22  ;;  %v3784_v24 = vld [vmem:[#allocation2 + $0x2f0] sm:$0xff]  ;;  %v3786_v4 = vld [vmem:[#allocation2 + $0x5c0] sm:$0xff] }
 0x60d   : > { %v4203_v48 = vpop.f32.mrf.mxu1  ;;  %v4476_v28 = vpop.f32.mrf.mxu0 }
 0x60e   : > { %4901 = vst [vmem:[#allocation2 + $0x330] sm:$0xff] %v4709_v26  ;;  %4903 = vst [vmem:[#allocation2 + $0x8] sm:$0xff] %v4711_v56  ;;  %v4710_v50 = vadd.f32 %v4203_v48, %v3764_v20  ;;  %v4712_v53 = vadd.f32 %v4476_v28, %v3766_v34  ;;  %v3787_v26 = vld [vmem:[#allocation2 + $0x338] sm:$0xff]  ;;  %v3789_v56 = vld [vmem:[#allocation2 + $0x2a8] sm:$0xff] }
 0x60f   : > { %v4207_v5 = vpop.f32.mrf.mxu1  ;;  %v4480_v7 = vpop.f32.mrf.mxu0 }
 0x610   : > { %4902 = vst [vmem:[#allocation2 + $0x100] sm:$0xff] %v4710_v50  ;;  %4904 = vst [vmem:[#allocation2 + $0x188] sm:$0xff] %v4712_v53  ;;  %v4713_v29 = vadd.f32 %v4207_v5, %v3767_v60  ;;  %v4715_v21 = vadd.f32 %v4480_v7, %v3769_v15  ;;  %v3788_v50 = vld [vmem:[#allocation2 + $0x480] sm:$0xff] }
 0x611   : > { %v4209_v45 = vpop.f32.mrf.mxu1  ;;  %v4482_v13 = vpop.f32.mrf.mxu0  ;;  %v3790_v53 = vld [vmem:[#allocation2 + $0x3e0] sm:$0xff] }
 0x612   : > { %4905 = vst [vmem:[#allocation2 + $0x248] sm:$0xff] %v4713_v29  ;;  %4907 = vst [vmem:[#allocation2 + $0x388] sm:$0xff] %v4715_v21  ;;  %v4714_v55 = vadd.f32 %v4209_v45, %v3768_v35  ;;  %v4716_v58 = vadd.f32 %v4482_v13, %v3770_v32  ;;  %v3791_v29 = vld [vmem:[#allocation2 + $0x3d8] sm:$0xff]  ;;  %v3793_v21 = vld [vmem:[#allocation2 + $0x28] sm:$0xff] }
 0x613   : > { %v4211_v10 = vpop.f32.mrf.mxu1  ;;  %v4484_v40 = vpop.f32.mrf.mxu0 }
 0x614   : > { %4906 = vst [vmem:[#allocation2 + $0xc8] sm:$0xff] %v4714_v55  ;;  %4908 = vst [vmem:[#allocation2 + $0x520] sm:$0xff] %v4716_v58  ;;  %v4717_v52 = vadd.f32 %v4211_v10, %v3771_v23  ;;  %v4719_v19 = vadd.f32 %v4484_v40, %v3773_v16  ;;  %v3792_v55 = vld [vmem:[#allocation2 + $0x4b0] sm:$0xff]  ;;  %v3794_v58 = vld [vmem:[#allocation2 + $0xf8] sm:$0xff] }
 0x615   : > { %v4213_v63 = vpop.f32.mrf.mxu1  ;;  %v4486_v3 = vpop.f32.mrf.mxu0 }
 0x616   : > { %4909 = vst [vmem:[#allocation2 + $0x3a8] sm:$0xff] %v4717_v52  ;;  %4911 = vst [vmem:[#allocation2 + $0x488] sm:$0xff] %v4719_v19  ;;  %v4718_v61 = vadd.f32 %v4213_v63, %v3772_v1  ;;  %v4720_v37 = vadd.f32 %v4486_v3, %v3774_v12  ;;  %v3795_v52 = vld [vmem:[#allocation2 + $0x4e8] sm:$0xff]  ;;  %v3797_v19 = vld [vmem:[#allocation2 + $0x2f8] sm:$0xff] }
 0x617   : > { %v4217_v54 = vpop.f32.mrf.mxu1  ;;  %v4490_v46 = vpop.f32.mrf.mxu0 }
 0x618   : > { %4910 = vst [vmem:[#allocation2 + $0x5e0] sm:$0xff] %v4718_v61  ;;  %4912 = vst [vmem:[#allocation2 + $0x4d0] sm:$0xff] %v4720_v37  ;;  %v4721_v30 = vadd.f32 %v4217_v54, %v3775_v36  ;;  %v4723_v39 = vadd.f32 %v4490_v46, %v3777_v17  ;;  %v3796_v61 = vld [vmem:[#allocation2 + $0x120] sm:$0xff]  ;;  %v3798_v37 = vld [vmem:[#allocation2 + $0x268] sm:$0xff] }
 0x619   : > { %v4219_v25 = vpop.f32.mrf.mxu1  ;;  %v4492_v44 = vpop.f32.mrf.mxu0 }
 0x61a   : > { %4913 = vst [vmem:[#allocation2 + $0x98] sm:$0xff] %v4721_v30  ;;  %4915 = vst [vmem:[#allocation2 + $0x2a0] sm:$0xff] %v4723_v39  ;;  %v4722_v31 = vadd.f32 %v4219_v25, %v3776_v59  ;;  %v4724_v6 = vadd.f32 %v4492_v44, %v3778_v42  ;;  %v3799_v30 = vld [vmem:[#allocation2 + $0x560] sm:$0xff]  ;;  %v3801_v39 = vld [vmem:[#allocation2 + $0x2e8] sm:$0xff] }
 0x61b   : > { %v4221_v0 = vpop.f32.mrf.mxu1  ;;  %v4494_v27 = vpop.f32.mrf.mxu0 }
 0x61c   : > { %4914 = vst [vmem:[#allocation2 + $0xb0] sm:$0xff] %v4722_v31  ;;  %4916 = vst [vmem:[#allocation2 + $0x570] sm:$0xff] %v4724_v6  ;;  %v4725_v2 = vadd.f32 %v4221_v0, %v3779_v62  ;;  %v4727_v51 = vadd.f32 %v4494_v27, %v3781_v41  ;;  %v3800_v31 = vld [vmem:[#allocation2 + $0x4f8] sm:$0xff]  ;;  %v3802_v6 = vld [vmem:[#allocation2 + $0x370] sm:$0xff] }
 0x61d   : > { %v4223_v43 = vpop.f32.mrf.mxu1  ;;  %v4496_v8 = vpop.f32.mrf.mxu0 }
 0x61e   : > { %4917 = vst [vmem:[#allocation2 + $0x598] sm:$0xff] %v4725_v2  ;;  %4919 = vst [vmem:[#allocation2 + $0x4c8] sm:$0xff] %v4727_v51  ;;  %v4726_v33 = vadd.f32 %v4223_v43, %v3780_v9  ;;  %v4728_v47 = vadd.f32 %v4496_v8, %v3782_v57  ;;  %v3803_v2 = vld [vmem:[#allocation2 + $0x138] sm:$0xff]  ;;  %v3805_v51 = vld [vmem:[#allocation2 + $0x528] sm:$0xff] }
 0x61f   : > { %v4227_v14 = vpop.f32.mrf.mxu1  ;;  %v4500_v22 = vpop.f32.mrf.mxu0 }
 0x620   : > { %4918 = vst [vmem:[#allocation2 + $0x5a8] sm:$0xff] %v4726_v33  ;;  %4920 = vst [vmem:[#allocation2 + $0x5e8] sm:$0xff] %v4728_v47  ;;  %v4729_v38 = vadd.f32 %v4227_v14, %v3783_v11  ;;  %v4731_v49 = vadd.f32 %v4500_v22, %v3785_v18  ;;  %v3804_v33 = vld [vmem:[#allocation2 + $0x308] sm:$0xff]  ;;  %v3806_v47 = vld [vmem:[#allocation2 + $0x1c0] sm:$0xff] }
 0x621   : > { %v4229_v20 = vpop.f32.mrf.mxu1  ;;  %v4502_v34 = vpop.f32.mrf.mxu0 }
 0x622   : > { %4921 = vst [vmem:[#allocation2 + $0x1f8] sm:$0xff] %v4729_v38  ;;  %4923 = vst [vmem:[#allocation2 + $0x3c8] sm:$0xff] %v4731_v49  ;;  %v4730_v48 = vadd.f32 %v4229_v20, %v3784_v24  ;;  %v4732_v28 = vadd.f32 %v4502_v34, %v3786_v4  ;;  %v3807_v38 = vld [vmem:[#allocation2 + $0x5d0] sm:$0xff]  ;;  %v3809_v49 = vld [vmem:[#allocation2 + $0x438] sm:$0xff] }
 0x623   : > { %v4231_v60 = vpop.f32.mrf.mxu1  ;;  %v4504_v15 = vpop.f32.mrf.mxu0 }
 0x624   : > { %4922 = vst [vmem:[#allocation2 + $0x2f0] sm:$0xff] %v4730_v48  ;;  %4924 = vst [vmem:[#allocation2 + $0x5c0] sm:$0xff] %v4732_v28  ;;  %v4733_v5 = vadd.f32 %v4231_v60, %v3787_v26  ;;  %v4735_v7 = vadd.f32 %v4504_v15, %v3789_v56  ;;  %v3808_v48 = vld [vmem:[#allocation2 + $0x260] sm:$0xff]  ;;  %v3810_v28 = vld [vmem:[#allocation2 + $0xf0] sm:$0xff] }
 0x625   : > { %v4233_v35 = vpop.f32.mrf.mxu1  ;;  %v4506_v32 = vpop.f32.mrf.mxu0 }
 0x626   : > { %4925 = vst [vmem:[#allocation2 + $0x338] sm:$0xff] %v4733_v5  ;;  %4927 = vst [vmem:[#allocation2 + $0x2a8] sm:$0xff] %v4735_v7  ;;  %v4734_v45 = vadd.f32 %v4233_v35, %v3788_v50  ;;  %v4736_v13 = vadd.f32 %v4506_v32, %v3790_v53  ;;  %v3811_v5 = vld [vmem:[#allocation2 + $0x60] sm:$0xff] }
 0x627   : > { %v4237_v23 = vpop.f32.mrf.mxu1  ;;  %v4510_v16 = vpop.f32.mrf.mxu0  ;;  %v3813_v7 = vld [vmem:[#allocation2 + $0x80] sm:$0xff] }
 0x628   : > { %4926 = vst [vmem:[#allocation2 + $0x480] sm:$0xff] %v4734_v45  ;;  %4928 = vst [vmem:[#allocation2 + $0x3e0] sm:$0xff] %v4736_v13  ;;  %v4737_v10 = vadd.f32 %v4237_v23, %v3791_v29  ;;  %v4739_v40 = vadd.f32 %v4510_v16, %v3793_v21  ;;  %v3812_v45 = vld [vmem:[#allocation2 + $0x200] sm:$0xff] }
 0x629   : > { %v4239_v1 = vpop.f32.mrf.mxu1  ;;  %v4512_v12 = vpop.f32.mrf.mxu0  ;;  %v3814_v13 = vld [vmem:[#allocation2 + $0x5a0] sm:$0xff] }
 0x62a   : > { %4929 = vst [vmem:[#allocation2 + $0x3d8] sm:$0xff] %v4737_v10  ;;  %4931 = vst [vmem:[#allocation2 + $0x28] sm:$0xff] %v4739_v40  ;;  %v4738_v63 = vadd.f32 %v4239_v1, %v3792_v55  ;;  %v4740_v3 = vadd.f32 %v4512_v12, %v3794_v58  ;;  %v3815_v10 = vld [vmem:[#allocation2 + $0x4b8] sm:$0xff]  ;;  %v3817_v40 = vld [vmem:[#allocation2 + $0x1e8] sm:$0xff] }
 0x62b   : > { %v4241_v36 = vpop.f32.mrf.mxu1  ;;  %v4514_v17 = vpop.f32.mrf.mxu0 }
 0x62c   : > { %4930 = vst [vmem:[#allocation2 + $0x4b0] sm:$0xff] %v4738_v63  ;;  %4932 = vst [vmem:[#allocation2 + $0xf8] sm:$0xff] %v4740_v3  ;;  %v4741_v54 = vadd.f32 %v4241_v36, %v3795_v52  ;;  %v4743_v46 = vadd.f32 %v4514_v17, %v3797_v19  ;;  %v3816_v63 = vld [vmem:[#allocation2 + $0x310] sm:$0xff]  ;;  %v3818_v3 = vld [vmem:[#allocation2 + $0x258] sm:$0xff] }
 0x62d   : > { %v4243_v59 = vpop.f32.mrf.mxu1  ;;  %v4516_v42 = vpop.f32.mrf.mxu0 }
 0x62e   : > { %4933 = vst [vmem:[#allocation2 + $0x4e8] sm:$0xff] %v4741_v54  ;;  %4935 = vst [vmem:[#allocation2 + $0x2f8] sm:$0xff] %v4743_v46  ;;  %v4742_v25 = vadd.f32 %v4243_v59, %v3796_v61  ;;  %v4744_v44 = vadd.f32 %v4516_v42, %v3798_v37  ;;  %v3819_v54 = vld [vmem:[#allocation2 + $0x40] sm:$0xff]  ;;  %v3821_v46 = vld [vmem:[#allocation2 + $0x198] sm:$0xff] }
 0x62f   : > { %v4247_v62 = vpop.f32.mrf.mxu1  ;;  %v4520_v41 = vpop.f32.mrf.mxu0 }
 0x630   : > { %4934 = vst [vmem:[#allocation2 + $0x120] sm:$0xff] %v4742_v25  ;;  %4936 = vst [vmem:[#allocation2 + $0x268] sm:$0xff] %v4744_v44  ;;  %v4745_v0 = vadd.f32 %v4247_v62, %v3799_v30  ;;  %v4747_v27 = vadd.f32 %v4520_v41, %v3801_v39  ;;  %v3820_v25 = vld [vmem:[#allocation2 + $0x4e0] sm:$0xff]  ;;  %v3822_v44 = vld [vmem:[#allocation2 + $0x550] sm:$0xff] }
 0x631   : > { %v4249_v9 = vpop.f32.mrf.mxu1  ;;  %v4522_v57 = vpop.f32.mrf.mxu0 }
 0x632   : > { %4937 = vst [vmem:[#allocation2 + $0x560] sm:$0xff] %v4745_v0  ;;  %4939 = vst [vmem:[#allocation2 + $0x2e8] sm:$0xff] %v4747_v27  ;;  %v4746_v43 = vadd.f32 %v4249_v9, %v3800_v31  ;;  %v4748_v8 = vadd.f32 %v4522_v57, %v3802_v6  ;;  %v3823_v0 = vld [vmem:[#allocation2 + $0x418] sm:$0xff]  ;;  %v3825_v27 = vld [vmem:[#allocation2 + $0x340] sm:$0xff] }
 0x633   : > { %v4251_v11 = vpop.f32.mrf.mxu1  ;;  %v4524_v18 = vpop.f32.mrf.mxu0 }
 0x634   : > { %4938 = vst [vmem:[#allocation2 + $0x4f8] sm:$0xff] %v4746_v43  ;;  %4940 = vst [vmem:[#allocation2 + $0x370] sm:$0xff] %v4748_v8  ;;  %v4749_v14 = vadd.f32 %v4251_v11, %v3803_v2  ;;  %v4751_v22 = vadd.f32 %v4524_v18, %v3805_v51  ;;  %v3824_v43 = vld [vmem:[#allocation2 + $0x5c8] sm:$0xff]  ;;  %v3826_v8 = vld [vmem:[#allocation2 + $0x360] sm:$0xff] }
 0x635   : > { %v4253_v24 = vpop.f32.mrf.mxu1  ;;  %v4526_v4 = vpop.f32.mrf.mxu0 }
 0x636   : > { %4941 = vst [vmem:[#allocation2 + $0x138] sm:$0xff] %v4749_v14  ;;  %4943 = vst [vmem:[#allocation2 + $0x528] sm:$0xff] %v4751_v22  ;;  %v4750_v20 = vadd.f32 %v4253_v24, %v3804_v33  ;;  %v4752_v34 = vadd.f32 %v4526_v4, %v3806_v47  ;;  %v3827_v14 = vld [vmem:[#allocation2 + $0x3b8] sm:$0xff]  ;;  %v3829_v22 = vld [vmem:[#allocation2 + $0x1f0] sm:$0xff] }
 0x637   : > { %v4257_v26 = vpop.f32.mrf.mxu1  ;;  %v4530_v56 = vpop.f32.mrf.mxu0 }
 0x638   : > { %4942 = vst [vmem:[#allocation2 + $0x308] sm:$0xff] %v4750_v20  ;;  %4944 = vst [vmem:[#allocation2 + $0x1c0] sm:$0xff] %v4752_v34  ;;  %v4753_v60 = vadd.f32 %v4257_v26, %v3807_v38  ;;  %v4755_v15 = vadd.f32 %v4530_v56, %v3809_v49  ;;  %v3828_v20 = vld [vmem:[#allocation2 + $0x530] sm:$0xff]  ;;  %v3830_v34 = vld [vmem:[#allocation2 + $0x3a0] sm:$0xff] }
 0x639   : > { %v4259_v50 = vpop.f32.mrf.mxu1  ;;  %v4532_v53 = vpop.f32.mrf.mxu0 }
 0x63a   : > { %4945 = vst [vmem:[#allocation2 + $0x5d0] sm:$0xff] %v4753_v60  ;;  %4947 = vst [vmem:[#allocation2 + $0x438] sm:$0xff] %v4755_v15  ;;  %v4754_v35 = vadd.f32 %v4259_v50, %v3808_v48  ;;  %v4756_v32 = vadd.f32 %v4532_v53, %v3810_v28  ;;  %v3831_v60 = vld [vmem:[#allocation2 + $0x460] sm:$0xff]  ;;  %v3833_v15 = vld [vmem:[#allocation2 + $0x1d0] sm:$0xff] }
 0x63b   : > { %v4261_v29 = vpop.f32.mrf.mxu1  ;;  %v4534_v21 = vpop.f32.mrf.mxu0 }
 0x63c   : > { %4946 = vst [vmem:[#allocation2 + $0x260] sm:$0xff] %v4754_v35  ;;  %4948 = vst [vmem:[#allocation2 + $0xf0] sm:$0xff] %v4756_v32  ;;  %v4757_v23 = vadd.f32 %v4261_v29, %v3811_v5  ;;  %v4759_v16 = vadd.f32 %v4534_v21, %v3813_v7  ;;  %v3832_v35 = vld [vmem:[#allocation2 + $0x2c8] sm:$0xff]  ;;  %v3834_v32 = vld [vmem:[#allocation2 + $0x4f0] sm:$0xff] }
 0x63d   : > { %v4263_v55 = vpop.f32.mrf.mxu1  ;;  %v4536_v58 = vpop.f32.mrf.mxu0 }
 0x63e   : > { %4949 = vst [vmem:[#allocation2 + $0x60] sm:$0xff] %v4757_v23  ;;  %4951 = vst [vmem:[#allocation2 + $0x80] sm:$0xff] %v4759_v16  ;;  %v4758_v1 = vadd.f32 %v4263_v55, %v3812_v45  ;;  %v4760_v12 = vadd.f32 %v4536_v58, %v3814_v13  ;;  %v3835_v23 = vld [vmem:[#allocation2 + $0x50] sm:$0xff]  ;;  %v3837_v16 = vld [vmem:[#allocation2 + $0x468] sm:$0xff] }
 0x63f   : > { %v4267_v52 = vpop.f32.mrf.mxu1  ;;  %v4540_v19 = vpop.f32.mrf.mxu0 }
 0x640   : > { %4950 = vst [vmem:[#allocation2 + $0x200] sm:$0xff] %v4758_v1  ;;  %4952 = vst [vmem:[#allocation2 + $0x5a0] sm:$0xff] %v4760_v12  ;;  %v4761_v36 = vadd.f32 %v4267_v52, %v3815_v10  ;;  %v4763_v17 = vadd.f32 %v4540_v19, %v3817_v40  ;;  %v3836_v1 = vld [vmem:[#allocation2 + $0x4a0] sm:$0xff]  ;;  %v3838_v12 = vld [vmem:[#allocation2 + $0x278] sm:$0xff] }
 0x641   : > { %v4269_v61 = vpop.f32.mrf.mxu1  ;;  %v4542_v37 = vpop.f32.mrf.mxu0 }
 0x642   : > { %4953 = vst [vmem:[#allocation2 + $0x4b8] sm:$0xff] %v4761_v36  ;;  %4955 = vst [vmem:[#allocation2 + $0x1e8] sm:$0xff] %v4763_v17  ;;  %v4762_v59 = vadd.f32 %v4269_v61, %v3816_v63  ;;  %v4764_v42 = vadd.f32 %v4542_v37, %v3818_v3  ;;  %v3839_v36 = vld [vmem:[#allocation2 + $0x458] sm:$0xff]  ;;  %v3841_v17 = vld [vmem:[#allocation2 + $0x400] sm:$0xff] }
 0x643   : > { %v4271_v30 = vpop.f32.mrf.mxu1  ;;  %v4544_v39 = vpop.f32.mrf.mxu0 }
 0x644   : > { %4954 = vst [vmem:[#allocation2 + $0x310] sm:$0xff] %v4762_v59  ;;  %4956 = vst [vmem:[#allocation2 + $0x258] sm:$0xff] %v4764_v42  ;;  %v4765_v62 = vadd.f32 %v4271_v30, %v3819_v54  ;;  %v4767_v41 = vadd.f32 %v4544_v39, %v3821_v46  ;;  %v3840_v59 = vld [vmem:[#allocation2 + $0x498] sm:$0xff] }
 0x645   : > { %v4273_v31 = vpop.f32.mrf.mxu1  ;;  %v4546_v6 = vpop.f32.mrf.mxu0  ;;  %v3842_v42 = vld [vmem:[#allocation2 + $0x5d8] sm:$0xff] }
 0x646   : > { %4957 = vst [vmem:[#allocation2 + $0x40] sm:$0xff] %v4765_v62  ;;  %4959 = vst [vmem:[#allocation2 + $0x198] sm:$0xff] %v4767_v41  ;;  %v4766_v9 = vadd.f32 %v4273_v31, %v3820_v25  ;;  %v4768_v57 = vadd.f32 %v4546_v6, %v3822_v44  ;;  %v3843_v62 = vld [vmem:[#allocation2 + $0xe8] sm:$0xff]  ;;  %v3845_v41 = vld [vmem:[#allocation2 + $0x178] sm:$0xff] }
 0x647   : > { %v4277_v2 = vpop.f32.mrf.mxu1  ;;  %v4550_v51 = vpop.f32.mrf.mxu0 }
 0x648   : > { %4958 = vst [vmem:[#allocation2 + $0x4e0] sm:$0xff] %v4766_v9  ;;  %4960 = vst [vmem:[#allocation2 + $0x550] sm:$0xff] %v4768_v57  ;;  %v4769_v11 = vadd.f32 %v4277_v2, %v3823_v0  ;;  %v4771_v18 = vadd.f32 %v4550_v51, %v3825_v27  ;;  %v3844_v9 = vld [vmem:[#allocation2 + $0x160] sm:$0xff]  ;;  %v3846_v57 = vld [vmem:[#allocation2 + $0x538] sm:$0xff] }
 0x649   : > { %v4279_v33 = vpop.f32.mrf.mxu1  ;;  %v4552_v47 = vpop.f32.mrf.mxu0 }
 0x64a   : > { %4961 = vst [vmem:[#allocation2 + $0x418] sm:$0xff] %v4769_v11  ;;  %4963 = vst [vmem:[#allocation2 + $0x340] sm:$0xff] %v4771_v18  ;;  %v4770_v24 = vadd.f32 %v4279_v33, %v3824_v43  ;;  %v4772_v4 = vadd.f32 %v4552_v47, %v3826_v8  ;;  %v3847_v11 = vld [vmem:[#allocation2 + $0x1e0] sm:$0xff] }
 0x64b   : > { %v4281_v38 = vpop.f32.mrf.mxu1  ;;  %v4554_v49 = vpop.f32.mrf.mxu0  ;;  %v3849_v18 = vld [vmem:[#allocation2 + $0x2c0] sm:$0xff] }
 0x64c   : > { %4962 = vst [vmem:[#allocation2 + $0x5c8] sm:$0xff] %v4770_v24  ;;  %4964 = vst [vmem:[#allocation2 + $0x360] sm:$0xff] %v4772_v4  ;;  %v4773_v26 = vadd.f32 %v4281_v38, %v3827_v14  ;;  %v4775_v56 = vadd.f32 %v4554_v49, %v3829_v22  ;;  %v3848_v24 = vld [vmem:[#allocation2 + $0x390] sm:$0xff]  ;;  %v3850_v4 = vld [vmem:[#allocation2 + $0x228] sm:$0xff] }
 0x64d   : > { %v4283_v48 = vpop.f32.mrf.mxu1  ;;  %v4556_v28 = vpop.f32.mrf.mxu0 }
 0x64e   : > { %4965 = vst [vmem:[#allocation2 + $0x3b8] sm:$0xff] %v4773_v26  ;;  %4967 = vst [vmem:[#allocation2 + $0x1f0] sm:$0xff] %v4775_v56  ;;  %v4774_v50 = vadd.f32 %v4283_v48, %v3828_v20  ;;  %v4776_v53 = vadd.f32 %v4556_v28, %v3830_v34  ;;  %v3851_v26 = vld [vmem:[#allocation2 + $0x5b0] sm:$0xff]  ;;  %v3853_v56 = vld [vmem:[#allocation2 + $0xd8] sm:$0xff] }
 0x64f   : > { %v4287_v5 = vpop.f32.mrf.mxu1  ;;  %v4560_v7 = vpop.f32.mrf.mxu0 }
 0x650   : > { %4966 = vst [vmem:[#allocation2 + $0x530] sm:$0xff] %v4774_v50  ;;  %4968 = vst [vmem:[#allocation2 + $0x3a0] sm:$0xff] %v4776_v53  ;;  %v4777_v29 = vadd.f32 %v4287_v5, %v3831_v60  ;;  %v4779_v21 = vadd.f32 %v4560_v7, %v3833_v15  ;;  %v3852_v50 = vld [vmem:[#allocation2 + $0xc0] sm:$0xff]  ;;  %v3854_v53 = vld [vmem:[#allocation2 + $0x428] sm:$0xff] }
 0x651   : > { %v4289_v45 = vpop.f32.mrf.mxu1  ;;  %v4562_v13 = vpop.f32.mrf.mxu0 }
 0x652   : > { %4969 = vst [vmem:[#allocation2 + $0x460] sm:$0xff] %v4777_v29  ;;  %4971 = vst [vmem:[#allocation2 + $0x1d0] sm:$0xff] %v4779_v21  ;;  %v4778_v55 = vadd.f32 %v4289_v45, %v3832_v35  ;;  %v4780_v58 = vadd.f32 %v4562_v13, %v3834_v32  ;;  %v3855_v29 = vld [vmem:[#allocation2 + $0x30] sm:$0xff]  ;;  %v3857_v21 = vld [vmem:[#allocation2 + $0x208] sm:$0xff] }
 0x653   : > { %v4291_v10 = vpop.f32.mrf.mxu1  ;;  %v4564_v40 = vpop.f32.mrf.mxu0 }
 0x654   : > { %4970 = vst [vmem:[#allocation2 + $0x2c8] sm:$0xff] %v4778_v55  ;;  %4972 = vst [vmem:[#allocation2 + $0x4f0] sm:$0xff] %v4780_v58  ;;  %v4781_v52 = vadd.f32 %v4291_v10, %v3835_v23  ;;  %v4783_v19 = vadd.f32 %v4564_v40, %v3837_v16  ;;  %v3856_v55 = vld [vmem:[#allocation2 + $0x410] sm:$0xff]  ;;  %v3858_v58 = vld [vmem:[#allocation2 + $0x4a8] sm:$0xff] }
 0x655   : > { %v4293_v63 = vpop.f32.mrf.mxu1  ;;  %v4566_v3 = vpop.f32.mrf.mxu0 }
 0x656   : > { %4973 = vst [vmem:[#allocation2 + $0x50] sm:$0xff] %v4781_v52  ;;  %4975 = vst [vmem:[#allocation2 + $0x468] sm:$0xff] %v4783_v19  ;;  %v4782_v61 = vadd.f32 %v4293_v63, %v3836_v1  ;;  %v4784_v37 = vadd.f32 %v4566_v3, %v3838_v12  ;;  %v3859_v52 = vld [vmem:[#allocation2 + $0x5b8] sm:$0xff]  ;;  %v3861_v19 = vld [vmem:[#allocation2 + $0x368] sm:$0xff] }
 0x657   : > { %v4297_v54 = vpop.f32.mrf.mxu1  ;;  %v4570_v46 = vpop.f32.mrf.mxu0 }
 0x658   : > { %4974 = vst [vmem:[#allocation2 + $0x4a0] sm:$0xff] %v4782_v61  ;;  %4976 = vst [vmem:[#allocation2 + $0x278] sm:$0xff] %v4784_v37  ;;  %v4785_v30 = vadd.f32 %v4297_v54, %v3839_v36  ;;  %v4787_v39 = vadd.f32 %v4570_v46, %v3841_v17  ;;  %v3860_v61 = vld [vmem:[#allocation2 + $0x218] sm:$0xff] }
 0x659   : > { %v4299_v25 = vpop.f32.mrf.mxu1  ;;  %v4572_v44 = vpop.f32.mrf.mxu0  ;;  %v3862_v37 = vld [vmem:[#allocation2 + $0x298] sm:$0xff] }
 0x65a   : > { %4977 = vst [vmem:[#allocation2 + $0x458] sm:$0xff] %v4785_v30  ;;  %4979 = vst [vmem:[#allocation2 + $0x400] sm:$0xff] %v4787_v39  ;;  %v4786_v31 = vadd.f32 %v4299_v25, %v3840_v59  ;;  %v4788_v6 = vadd.f32 %v4572_v44, %v3842_v42  ;;  %v3863_v30 = vld [vmem:[#allocation2 + $0x420] sm:$0xff]  ;;  %v3865_v39 = vld [vmem:[#allocation2 + $0x130] sm:$0xff] }
 0x65b   : > { %v4301_v0 = vpop.f32.mrf.mxu1  ;;  %v4574_v27 = vpop.f32.mrf.mxu0 }
 0x65c   : > { %4978 = vst [vmem:[#allocation2 + $0x498] sm:$0xff] %v4786_v31  ;;  %4980 = vst [vmem:[#allocation2 + $0x5d8] sm:$0xff] %v4788_v6  ;;  %v4789_v2 = vadd.f32 %v4301_v0, %v3843_v62  ;;  %v4791_v51 = vadd.f32 %v4574_v27, %v3845_v41  ;;  %v3864_v31 = vld [vmem:[#allocation2 + $0x88] sm:$0xff]  ;;  %v3866_v6 = vld [vmem:[#allocation2 + $0x5f0] sm:$0xff] }
 0x65d   : > { %v4303_v43 = vpop.f32.mrf.mxu1  ;;  %v4576_v8 = vpop.f32.mrf.mxu0 }
 0x65e   : > { %4981 = vst [vmem:[#allocation2 + $0xe8] sm:$0xff] %v4789_v2  ;;  %4983 = vst [vmem:[#allocation2 + $0x178] sm:$0xff] %v4791_v51  ;;  %v4790_v33 = vadd.f32 %v4303_v43, %v3844_v9  ;;  %v4792_v47 = vadd.f32 %v4576_v8, %v3846_v57  ;;  %v3867_v2 = vld [vmem:[#allocation2 + $0x230] sm:$0xff] }
 0x65f   : > { %v4307_v14 = vpop.f32.mrf.mxu1  ;;  %v4580_v22 = vpop.f32.mrf.mxu0  ;;  %v3869_v51 = vld [vmem:[#allocation2 + $0x110] sm:$0xff] }
 0x660   : > { %4982 = vst [vmem:[#allocation2 + $0x160] sm:$0xff] %v4790_v33  ;;  %4984 = vst [vmem:[#allocation2 + $0x538] sm:$0xff] %v4792_v47  ;;  %v4793_v38 = vadd.f32 %v4307_v14, %v3847_v11  ;;  %v4795_v49 = vadd.f32 %v4580_v22, %v3849_v18  ;;  %v3868_v33 = vld [vmem:[#allocation2 + $0x2e0] sm:$0xff]  ;;  %v3870_v47 = vld [vmem:[#allocation2 + $0xa8] sm:$0xff] }
 0x661   : > { %v4309_v20 = vpop.f32.mrf.mxu1  ;;  %v4582_v34 = vpop.f32.mrf.mxu0 }
 0x662   : > { %4985 = vst [vmem:[#allocation2 + $0x1e0] sm:$0xff] %v4793_v38  ;;  %4987 = vst [vmem:[#allocation2 + $0x2c0] sm:$0xff] %v4795_v49  ;;  %v4794_v48 = vadd.f32 %v4309_v20, %v3848_v24  ;;  %v4796_v28 = vadd.f32 %v4582_v34, %v3850_v4  ;;  %v3871_v38 = vld [vmem:[#allocation2 + $0x190] sm:$0xff]  ;;  %v3873_v49 = vld [vmem:[#allocation2 + $0x398] sm:$0xff] }
 0x663   : > { %v4311_v60 = vpop.f32.mrf.mxu1  ;;  %v4584_v15 = vpop.f32.mrf.mxu0 }
 0x664   : > { %4986 = vst [vmem:[#allocation2 + $0x390] sm:$0xff] %v4794_v48  ;;  %4988 = vst [vmem:[#allocation2 + $0x228] sm:$0xff] %v4796_v28  ;;  %v4797_v5 = vadd.f32 %v4311_v60, %v3851_v26  ;;  %v4799_v7 = vadd.f32 %v4584_v15, %v3853_v56  ;;  %v3872_v48 = vld [vmem:[#allocation2 + $0x1a8] sm:$0xff]  ;;  %v3874_v28 = vld [vmem:[#allocation2 + $0x470] sm:$0xff] }
 0x665   : > { %v4313_v35 = vpop.f32.mrf.mxu1  ;;  %v4586_v32 = vpop.f32.mrf.mxu0 }
 0x666   : > { %4989 = vst [vmem:[#allocation2 + $0x5b0] sm:$0xff] %v4797_v5  ;;  %4991 = vst [vmem:[#allocation2 + $0xd8] sm:$0xff] %v4799_v7  ;;  %v4798_v45 = vadd.f32 %v4313_v35, %v3852_v50  ;;  %v4800_v13 = vadd.f32 %v4586_v32, %v3854_v53  ;;  %v3875_v5 = vld [vmem:[#allocation2 + $0xe0] sm:$0xff]  ;;  %v3877_v7 = vld [vmem:[#allocation2 + $0x38] sm:$0xff] }
 0x667   : > { %v4317_v23 = vpop.f32.mrf.mxu1  ;;  %v4590_v16 = vpop.f32.mrf.mxu0 }
 0x668   : > { %4990 = vst [vmem:[#allocation2 + $0xc0] sm:$0xff] %v4798_v45  ;;  %4992 = vst [vmem:[#allocation2 + $0x428] sm:$0xff] %v4800_v13  ;;  %v4801_v10 = vadd.f32 %v4317_v23, %v3855_v29  ;;  %v4803_v40 = vadd.f32 %v4590_v16, %v3857_v21  ;;  %v3876_v45 = vld [vmem:[#allocation2 + $0xd0] sm:$0xff]  ;;  %v3878_v13 = vld [vmem:[#allocation2 + $0x240] sm:$0xff] }
 0x669   : > { %v4319_v1 = vpop.f32.mrf.mxu1  ;;  %v4592_v12 = vpop.f32.mrf.mxu0 }
 0x66a   : > { %4993 = vst [vmem:[#allocation2 + $0x30] sm:$0xff] %v4801_v10  ;;  %4995 = vst [vmem:[#allocation2 + $0x208] sm:$0xff] %v4803_v40  ;;  %v4802_v63 = vadd.f32 %v4319_v1, %v3856_v55  ;;  %v4804_v3 = vadd.f32 %v4592_v12, %v3858_v58  ;;  %v3879_v10 = vld [vmem:[#allocation2 + $0x280] sm:$0xff]  ;;  %v3881_v40 = vld [vmem:[#allocation2 + $0x148] sm:$0xff] }
 0x66b   : > { %v4321_v36 = vpop.f32.mrf.mxu1  ;;  %v4594_v17 = vpop.f32.mrf.mxu0 }
 0x66c   : > { %4994 = vst [vmem:[#allocation2 + $0x410] sm:$0xff] %v4802_v63  ;;  %4996 = vst [vmem:[#allocation2 + $0x4a8] sm:$0xff] %v4804_v3  ;;  %v4805_v54 = vadd.f32 %v4321_v36, %v3859_v52  ;;  %v4807_v46 = vadd.f32 %v4594_v17, %v3861_v19  ;;  %v3880_v63 = vld [vmem:[#allocation2 + $0x518] sm:$0xff]  ;;  %v3882_v3 = vld [vmem:[#allocation2 + $0x508] sm:$0xff] }
 0x66d   : > { %v4323_v59 = vpop.f32.mrf.mxu1  ;;  %v4596_v42 = vpop.f32.mrf.mxu0 }
 0x66e   : > { %4997 = vst [vmem:[#allocation2 + $0x5b8] sm:$0xff] %v4805_v54  ;;  %4999 = vst [vmem:[#allocation2 + $0x368] sm:$0xff] %v4807_v46  ;;  %v4806_v25 = vadd.f32 %v4323_v59, %v3860_v61  ;;  %v4808_v44 = vadd.f32 %v4596_v42, %v3862_v37  ;;  %v3883_v54 = vld [vmem:[#allocation2 + $0x3d0] sm:$0xff]  ;;  %v3885_v46 = vld [vmem:[#allocation2 + $0x358] sm:$0xff] }
 0x66f   : > { %v4327_v62 = vpop.f32.mrf.mxu1  ;;  %v4600_v41 = vpop.f32.mrf.mxu0 }
 0x670   : > { %4998 = vst [vmem:[#allocation2 + $0x218] sm:$0xff] %v4806_v25  ;;  %5000 = vst [vmem:[#allocation2 + $0x298] sm:$0xff] %v4808_v44  ;;  %v4809_v0 = vadd.f32 %v4327_v62, %v3863_v30  ;;  %v4811_v27 = vadd.f32 %v4600_v41, %v3865_v39  ;;  %v3884_v25 = vld [vmem:[#allocation2 + $0x68] sm:$0xff]  ;;  %v3886_v44 = vld [vmem:[#allocation2 + $0x70] sm:$0xff] }
 0x671   : > { %v4329_v9 = vpop.f32.mrf.mxu1  ;;  %v4602_v57 = vpop.f32.mrf.mxu0 }
 0x672   : > { %5001 = vst [vmem:[#allocation2 + $0x420] sm:$0xff] %v4809_v0  ;;  %5003 = vst [vmem:[#allocation2 + $0x130] sm:$0xff] %v4811_v27  ;;  %v4810_v43 = vadd.f32 %v4329_v9, %v3864_v31  ;;  %v4812_v8 = vadd.f32 %v4602_v57, %v3866_v6  ;;  %v3887_v0 = vld [vmem:[#allocation2 + $0xb8] sm:$0xff]  ;;  %v3889_v27 = vld [vmem:[#allocation2 + $0x20] sm:$0xff] }
 0x673   : > { %v4331_v11 = vpop.f32.mrf.mxu1  ;;  %v4604_v18 = vpop.f32.mrf.mxu0 }
 0x674   : > { %5002 = vst [vmem:[#allocation2 + $0x88] sm:$0xff] %v4810_v43  ;;  %5004 = vst [vmem:[#allocation2 + $0x5f0] sm:$0xff] %v4812_v8  ;;  %v4813_v14 = vadd.f32 %v4331_v11, %v3867_v2  ;;  %v4815_v22 = vadd.f32 %v4604_v18, %v3869_v51  ;;  %v3888_v43 = vld [vmem:[#allocation2 + $0x10] sm:$0xff]  ;;  %v3890_v8 = vld [vmem:[#allocation2 + $0x78] sm:$0xff] }
 0x675   : > { %v4333_v24 = vpop.f32.mrf.mxu1  ;;  %v4606_v4 = vpop.f32.mrf.mxu0 }
 0x676   : > { %5005 = vst [vmem:[#allocation2 + $0x230] sm:$0xff] %v4813_v14  ;;  %5007 = vst [vmem:[#allocation2 + $0x110] sm:$0xff] %v4815_v22  ;;  %v4814_v20 = vadd.f32 %v4333_v24, %v3868_v33  ;;  %v4816_v34 = vadd.f32 %v4606_v4, %v3870_v47  ;;  %v3891_v14 = vld [vmem:[#allocation2 + $0x210] sm:$0xff]  ;;  %v3893_v22 = vld [vmem:[#allocation2 + $0x588] sm:$0xff] }
 0x677   : > { %v4337_v26 = vpop.f32.mrf.mxu1  ;;  %v4610_v56 = vpop.f32.mrf.mxu0 }
 0x678   : > { %5006 = vst [vmem:[#allocation2 + $0x2e0] sm:$0xff] %v4814_v20  ;;  %5008 = vst [vmem:[#allocation2 + $0xa8] sm:$0xff] %v4816_v34  ;;  %v4817_v60 = vadd.f32 %v4337_v26, %v3871_v38  ;;  %v4819_v15 = vadd.f32 %v4610_v56, %v3873_v49  ;;  %v3892_v20 = vld [vmem:[#allocation2 + $0x558] sm:$0xff]  ;;  %v3894_v34 = vld [vmem:[#allocation2 + $0x48] sm:$0xff] }
 0x679   : > { %v4339_v50 = vpop.f32.mrf.mxu1  ;;  %v4612_v53 = vpop.f32.mrf.mxu0 }
 0x67a   : > { %5009 = vst [vmem:[#allocation2 + $0x190] sm:$0xff] %v4817_v60  ;;  %5011 = vst [vmem:[#allocation2 + $0x398] sm:$0xff] %v4819_v15  ;;  %v4818_v35 = vadd.f32 %v4339_v50, %v3872_v48  ;;  %v4820_v32 = vadd.f32 %v4612_v53, %v3874_v28  ;;  %v3895_v60 = vld [vmem:[#allocation2 + $0x118] sm:$0xff] }
 0x67b   : > { %v4341_v29 = vpop.f32.mrf.mxu1  ;;  %v4614_v21 = vpop.f32.mrf.mxu0  ;;  %v3897_v15 = vld [vmem:[#allocation2 + $0x3f8] sm:$0xff] }
 0x67c   : > { %5010 = vst [vmem:[#allocation2 + $0x1a8] sm:$0xff] %v4818_v35  ;;  %5012 = vst [vmem:[#allocation2 + $0x470] sm:$0xff] %v4820_v32  ;;  %v4821_v23 = vadd.f32 %v4341_v29, %v3875_v5  ;;  %v4823_v16 = vadd.f32 %v4614_v21, %v3877_v7  ;;  %v3896_v35 = vld [vmem:[#allocation2 + $0x478] sm:$0xff]  ;;  %v3898_v32 = vld [vmem:[#allocation2 + $0x380] sm:$0xff] }
 0x67d   : > { %v4343_v55 = vpop.f32.mrf.mxu1  ;;  %v4616_v58 = vpop.f32.mrf.mxu0 }
 0x67e   : > { %5013 = vst [vmem:[#allocation2 + $0xe0] sm:$0xff] %v4821_v23  ;;  %5015 = vst [vmem:[#allocation2 + $0x38] sm:$0xff] %v4823_v16  ;;  %v4822_v1 = vadd.f32 %v4343_v55, %v3876_v45  ;;  %v4824_v12 = vadd.f32 %v4616_v58, %v3878_v13  ;;  %v3899_v23 = vld [vmem:[#allocation2 + $0x578] sm:$0xff]  ;;  %v3901_v16 = vld [vmem:[#allocation2 + $0x1a0] sm:$0xff] }
 0x67f   : > { %v4347_v52 = vpop.f32.mrf.mxu1  ;;  %v4620_v19 = vpop.f32.mrf.mxu0 }
 0x680   : > { %5014 = vst [vmem:[#allocation2 + $0xd0] sm:$0xff] %v4822_v1  ;;  %5016 = vst [vmem:[#allocation2 + $0x240] sm:$0xff] %v4824_v12  ;;  %v4825_v36 = vadd.f32 %v4347_v52, %v3879_v10  ;;  %v4827_v17 = vadd.f32 %v4620_v19, %v3881_v40  ;;  %v3900_v1 = vld [vmem:[#allocation2 + $0x170] sm:$0xff]  ;;  %v3902_v12 = vld [vmem:[#allocation2 + $0x288] sm:$0xff] }
 0x681   : > { %v4349_v61 = vpop.f32.mrf.mxu1  ;;  %v4622_v37 = vpop.f32.mrf.mxu0 }
 0x682   : > { %5017 = vst [vmem:[#allocation2 + $0x280] sm:$0xff] %v4825_v36  ;;  %5019 = vst [vmem:[#allocation2 + $0x148] sm:$0xff] %v4827_v17  ;;  %v4826_v59 = vadd.f32 %v4349_v61, %v3880_v63  ;;  %v4828_v42 = vadd.f32 %v4622_v37, %v3882_v3  ;;  %v3903_v36 = vld [vmem:[#allocation2 + $0x140] sm:$0xff] }
 0x683   : > { %v4351_v30 = vpop.f32.mrf.mxu1  ;;  %v4624_v39 = vpop.f32.mrf.mxu0  ;;  %v3905_v17 = vld [vmem:[#allocation2] sm:$0xff] }
 0x684   : > { %5018 = vst [vmem:[#allocation2 + $0x518] sm:$0xff] %v4826_v59  ;;  %5020 = vst [vmem:[#allocation2 + $0x508] sm:$0xff] %v4828_v42  ;;  %v4829_v62 = vadd.f32 %v4351_v30, %v3883_v54  ;;  %v4831_v41 = vadd.f32 %v4624_v39, %v3885_v46  ;;  %v3904_v59 = vld [vmem:[#allocation2 + $0x300] sm:$0xff] }
 0x685   : > { %v4353_v31 = vpop.f32.mrf.mxu1  ;;  %v4626_v6 = vpop.f32.mrf.mxu0  ;;  %v3906_v42 = vld [vmem:[#allocation2 + $0x320] sm:$0xff] }
 0x686   : > { %5021 = vst [vmem:[#allocation2 + $0x3d0] sm:$0xff] %v4829_v62  ;;  %5023 = vst [vmem:[#allocation2 + $0x358] sm:$0xff] %v4831_v41  ;;  %v4830_v9 = vadd.f32 %v4353_v31, %v3884_v25  ;;  %v4832_v57 = vadd.f32 %v4626_v6, %v3886_v44  ;;  %v3907_v62 = vld [vmem:[#allocation2 + $0x158] sm:$0xff] }
 0x687   : > { %v4357_v2 = vpop.f32.mrf.mxu1  ;;  %v4630_v51 = vpop.f32.mrf.mxu0  ;;  %v3909_v41 = vld [vmem:[#allocation2 + $0x2d8] sm:$0xff] }
 0x688   : > { %5022 = vst [vmem:[#allocation2 + $0x68] sm:$0xff] %v4830_v9  ;;  %5024 = vst [vmem:[#allocation2 + $0x70] sm:$0xff] %v4832_v57  ;;  %v4833_v11 = vadd.f32 %v4357_v2, %v3887_v0  ;;  %v4835_v18 = vadd.f32 %v4630_v51, %v3889_v27  ;;  %v3908_v9 = vld [vmem:[#allocation2 + $0x348] sm:$0xff] }
 0x689   : > { %v4359_v33 = vpop.f32.mrf.mxu1  ;;  %v4632_v47 = vpop.f32.mrf.mxu0  ;;  %v3910_v57 = vld [vmem:[#allocation2 + $0x168] sm:$0xff] }
 0x68a   : > { %5025 = vst [vmem:[#allocation2 + $0xb8] sm:$0xff] %v4833_v11  ;;  %5027 = vst [vmem:[#allocation2 + $0x20] sm:$0xff] %v4835_v18  ;;  %v4834_v24 = vadd.f32 %v4359_v33, %v3888_v43  ;;  %v4836_v4 = vadd.f32 %v4632_v47, %v3890_v8  ;;  %v3911_v11 = vld [vmem:[#allocation2 + $0x1c8] sm:$0xff] }
 0x68b   : > { %v4361_v38 = vpop.f32.mrf.mxu1  ;;  %v4634_v49 = vpop.f32.mrf.mxu0  ;;  %v3913_v18 = vld [vmem:[#allocation2 + $0x408] sm:$0xff] }
 0x68c   : > { %5026 = vst [vmem:[#allocation2 + $0x10] sm:$0xff] %v4834_v24  ;;  %5028 = vst [vmem:[#allocation2 + $0x78] sm:$0xff] %v4836_v4  ;;  %v4837_v26 = vadd.f32 %v4361_v38, %v3891_v14  ;;  %v4839_v56 = vadd.f32 %v4634_v49, %v3893_v22  ;;  %v3912_v24 = vld [vmem:[#allocation2 + $0xa0] sm:$0xff]  ;;  %v3914_v4 = vld [vmem:[#allocation2 + $0x5f8] sm:$0xff] }
 0x68d   : > { %v4363_v48 = vpop.f32.mrf.mxu1  ;;  %v4636_v28 = vpop.f32.mrf.mxu0 }
 0x68e   : > { %5029 = vst [vmem:[#allocation2 + $0x210] sm:$0xff] %v4837_v26  ;;  %5031 = vst [vmem:[#allocation2 + $0x588] sm:$0xff] %v4839_v56  ;;  %v4838_v50 = vadd.f32 %v4363_v48, %v3892_v20  ;;  %v4840_v53 = vadd.f32 %v4636_v28, %v3894_v34  ;;  %v3915_v26 = vld [vmem:[#allocation2 + $0x270] sm:$0xff] }
 0x68f   : > { %v4367_v5 = vpop.f32.mrf.mxu1  ;;  %v4640_v7 = vpop.f32.mrf.mxu0  ;;  %v3917_v56 = vld [vmem:[#allocation2 + $0x2d0] sm:$0xff] }
 0x690   : > { %5030 = vst [vmem:[#allocation2 + $0x558] sm:$0xff] %v4838_v50  ;;  %5032 = vst [vmem:[#allocation2 + $0x48] sm:$0xff] %v4840_v53  ;;  %v4841_v29 = vadd.f32 %v4367_v5, %v3895_v60  ;;  %v4843_v21 = vadd.f32 %v4640_v7, %v3897_v15  ;;  %v3916_v50 = vld [vmem:[#allocation2 + $0x250] sm:$0xff]  ;;  %v3918_v53 = vld [vmem:[#allocation2 + $0x1b8] sm:$0xff] }
 0x691   : > { %v4369_v45 = vpop.f32.mrf.mxu1  ;;  %v4642_v13 = vpop.f32.mrf.mxu0 }
 0x692   : > { %5033 = vst [vmem:[#allocation2 + $0x118] sm:$0xff] %v4841_v29  ;;  %5035 = vst [vmem:[#allocation2 + $0x3f8] sm:$0xff] %v4843_v21  ;;  %v4842_v55 = vadd.f32 %v4369_v45, %v3896_v35  ;;  %v4844_v58 = vadd.f32 %v4642_v13, %v3898_v32  ;;  %v3919_v29 = vld [vmem:[#allocation2 + $0x150] sm:$0xff]  ;;  %v3921_v21 = vld [vmem:[#allocation2 + $0x220] sm:$0xff] }
 0x693   : > { %v4371_v10 = vpop.f32.mrf.mxu1  ;;  %v4644_v40 = vpop.f32.mrf.mxu0 }
 0x694   : > { %5034 = vst [vmem:[#allocation2 + $0x478] sm:$0xff] %v4842_v55  ;;  %5036 = vst [vmem:[#allocation2 + $0x380] sm:$0xff] %v4844_v58  ;;  %v4845_v52 = vadd.f32 %v4371_v10, %v3899_v23  ;;  %v4847_v19 = vadd.f32 %v4644_v40, %v3901_v16  ;;  %v3920_v55 = vld [vmem:[#allocation2 + $0x1b0] sm:$0xff]  ;;  %v3922_v58 = vld [vmem:[#allocation2 + $0x1d8] sm:$0xff] }
 0x695   : > { %v4373_v63 = vpop.f32.mrf.mxu1  ;;  %v4646_v3 = vpop.f32.mrf.mxu0 }
 0x696   : > { %5037 = vst [vmem:[#allocation2 + $0x578] sm:$0xff] %v4845_v52  ;;  %5039 = vst [vmem:[#allocation2 + $0x1a0] sm:$0xff] %v4847_v19  ;;  %v4846_v61 = vadd.f32 %v4373_v63, %v3900_v1  ;;  %v4848_v37 = vadd.f32 %v4646_v3, %v3902_v12  ;;  %v3923_v52 = vld [vmem:[#allocation2 + $0x3e8] sm:$0xff]  ;;  %v3925_v19 = vld [vmem:[#allocation2 + $0x430] sm:$0xff] }
 0x697   : > { %v4377_v54 = vpop.f32.mrf.mxu1  ;;  %v4650_v46 = vpop.f32.mrf.mxu0 }
 0x698   : > { %5038 = vst [vmem:[#allocation2 + $0x170] sm:$0xff] %v4846_v61  ;;  %5040 = vst [vmem:[#allocation2 + $0x288] sm:$0xff] %v4848_v37  ;;  %v4849_v30 = vadd.f32 %v4377_v54, %v3903_v36  ;;  %v4851_v39 = vadd.f32 %v4650_v46, %v3905_v17  ;;  %v3924_v61 = vld [vmem:[#allocation2 + $0x448] sm:$0xff]  ;;  %v3926_v37 = vld [vmem:[#allocation2 + $0x180] sm:$0xff] }
 0x699   : > { %v4379_v25 = vpop.f32.mrf.mxu1  ;;  %v4652_v44 = vpop.f32.mrf.mxu0 }
 0x69a   : > { %5041 = vst [vmem:[#allocation2 + $0x140] sm:$0xff] %v4849_v30  ;;  %5043 = vst [vmem:[#allocation2] sm:$0xff] %v4851_v39  ;;  %v4850_v31 = vadd.f32 %v4379_v25, %v3904_v59  ;;  %v4852_v6 = vadd.f32 %v4652_v44, %v3906_v42  ;;  %v3927_v30 = vld [vmem:[#allocation2 + $0x350] sm:$0xff]  ;;  %v3929_v39 = vld [vmem:[#allocation2 + $0x128] sm:$0xff] }
 0x69b   : > { %v4381_v0 = vpop.f32.mrf.mxu1  ;;  %v4654_v27 = vpop.f32.mrf.mxu0 }
 0x69c   : > { %5042 = vst [vmem:[#allocation2 + $0x300] sm:$0xff] %v4850_v31  ;;  %5044 = vst [vmem:[#allocation2 + $0x320] sm:$0xff] %v4852_v6  ;;  %v4853_v2 = vadd.f32 %v4381_v0, %v3907_v62  ;;  %v4855_v51 = vadd.f32 %v4654_v27, %v3909_v41  ;;  %v3928_v31 = vld [vmem:[#allocation2 + $0x4c0] sm:$0xff]  ;;  %v3930_v6 = vld [vmem:[#allocation2 + $0x3f0] sm:$0xff] }
 0x69d   : > { %v4383_v43 = vpop.f32.mrf.mxu1  ;;  %v4656_v8 = vpop.f32.mrf.mxu0 }
 0x69e   : > { %5045 = vst [vmem:[#allocation2 + $0x158] sm:$0xff] %v4853_v2  ;;  %5047 = vst [vmem:[#allocation2 + $0x2d8] sm:$0xff] %v4855_v51  ;;  %v4854_v33 = vadd.f32 %v4383_v43, %v3908_v9  ;;  %v4856_v47 = vadd.f32 %v4656_v8, %v3910_v57  ;;  %v3931_v2 = vld [vmem:[#allocation2 + $0x238] sm:$0xff]  ;;  %v3933_v51 = vld [vmem:[#allocation2 + $0x568] sm:$0xff] }
 0x69f   : > { %v4387_v14 = vpop.f32.mrf.mxu1  ;;  %v4660_v22 = vpop.f32.mrf.mxu0 }
 0x6a0   : > { %5046 = vst [vmem:[#allocation2 + $0x348] sm:$0xff] %v4854_v33  ;;  %5048 = vst [vmem:[#allocation2 + $0x168] sm:$0xff] %v4856_v47  ;;  %v4857_v38 = vadd.f32 %v4387_v14, %v3911_v11  ;;  %v4859_v49 = vadd.f32 %v4660_v22, %v3913_v18  ;;  %v3932_v33 = vld [vmem:[#allocation2 + $0x290] sm:$0xff] }
 0x6a1   : > { %v4389_v20 = vpop.f32.mrf.mxu1  ;;  %v4662_v34 = vpop.f32.mrf.mxu0  ;;  %v3934_v47 = vld [vmem:[#allocation2 + $0x90] sm:$0xff] }
 0x6a2   : > { %5049 = vst [vmem:[#allocation2 + $0x1c8] sm:$0xff] %v4857_v38  ;;  %5051 = vst [vmem:[#allocation2 + $0x408] sm:$0xff] %v4859_v49  ;;  %v4858_v48 = vadd.f32 %v4389_v20, %v3912_v24  ;;  %v4860_v28 = vadd.f32 %v4662_v34, %v3914_v4 }
 0x6a3   : > { %v4391_v60 = vpop.f32.mrf.mxu1  ;;  %v4664_v15 = vpop.f32.mrf.mxu0 }
 0x6a4   : > { %5050 = vst [vmem:[#allocation2 + $0xa0] sm:$0xff] %v4858_v48  ;;  %5052 = vst [vmem:[#allocation2 + $0x5f8] sm:$0xff] %v4860_v28  ;;  %v4861_v5 = vadd.f32 %v4391_v60, %v3915_v26  ;;  %v4863_v7 = vadd.f32 %v4664_v15, %v3917_v56 }
 0x6a5   : > { %v4393_v35 = vpop.f32.mrf.mxu1  ;;  %v4666_v32 = vpop.f32.mrf.mxu0 }
 0x6a6   : > { %5053 = vst [vmem:[#allocation2 + $0x270] sm:$0xff] %v4861_v5  ;;  %5055 = vst [vmem:[#allocation2 + $0x2d0] sm:$0xff] %v4863_v7  ;;  %v4862_v45 = vadd.f32 %v4393_v35, %v3916_v50  ;;  %v4864_v13 = vadd.f32 %v4666_v32, %v3918_v53 }
 0x6a7   : > { %v4397_v23 = vpop.f32.mrf.mxu1  ;;  %v4670_v16 = vpop.f32.mrf.mxu0 }
 0x6a8   : > { %5054 = vst [vmem:[#allocation2 + $0x250] sm:$0xff] %v4862_v45  ;;  %5056 = vst [vmem:[#allocation2 + $0x1b8] sm:$0xff] %v4864_v13  ;;  %v4865_v10 = vadd.f32 %v4397_v23, %v3919_v29  ;;  %v4867_v40 = vadd.f32 %v4670_v16, %v3921_v21 }
 0x6a9   : > { %v4399_v1 = vpop.f32.mrf.mxu1  ;;  %v4672_v12 = vpop.f32.mrf.mxu0 }
 0x6aa   : > { %5057 = vst [vmem:[#allocation2 + $0x150] sm:$0xff] %v4865_v10  ;;  %5059 = vst [vmem:[#allocation2 + $0x220] sm:$0xff] %v4867_v40  ;;  %v4866_v63 = vadd.f32 %v4399_v1, %v3920_v55  ;;  %v4868_v3 = vadd.f32 %v4672_v12, %v3922_v58 }
 0x6ab   : > { %v4401_v36 = vpop.f32.mrf.mxu1  ;;  %v4674_v17 = vpop.f32.mrf.mxu0 }
 0x6ac   : > { %5058 = vst [vmem:[#allocation2 + $0x1b0] sm:$0xff] %v4866_v63  ;;  %5060 = vst [vmem:[#allocation2 + $0x1d8] sm:$0xff] %v4868_v3  ;;  %v4869_v54 = vadd.f32 %v4401_v36, %v3923_v52  ;;  %v4871_v46 = vadd.f32 %v4674_v17, %v3925_v19 }
 0x6ad   : > { %v4403_v59 = vpop.f32.mrf.mxu1  ;;  %v4676_v42 = vpop.f32.mrf.mxu0 }
 0x6ae   : > { %5061 = vst [vmem:[#allocation2 + $0x3e8] sm:$0xff] %v4869_v54  ;;  %5063 = vst [vmem:[#allocation2 + $0x430] sm:$0xff] %v4871_v46  ;;  %v4870_v25 = vadd.f32 %v4403_v59, %v3924_v61  ;;  %v4872_v44 = vadd.f32 %v4676_v42, %v3926_v37 }
 0x6af   : > { %v4407_v62 = vpop.f32.mrf.mxu1  ;;  %v4680_v41 = vpop.f32.mrf.mxu0 }
 0x6b0   : > { %5062 = vst [vmem:[#allocation2 + $0x448] sm:$0xff] %v4870_v25  ;;  %5064 = vst [vmem:[#allocation2 + $0x180] sm:$0xff] %v4872_v44  ;;  %v4873_v0 = vadd.f32 %v4407_v62, %v3927_v30  ;;  %v4875_v27 = vadd.f32 %v4680_v41, %v3929_v39 }
 0x6b1   : > { %v4409_v9 = vpop.f32.mrf.mxu1  ;;  %v4682_v57 = vpop.f32.mrf.mxu0 }
 0x6b2   : > { %5065 = vst [vmem:[#allocation2 + $0x350] sm:$0xff] %v4873_v0  ;;  %5067 = vst [vmem:[#allocation2 + $0x128] sm:$0xff] %v4875_v27  ;;  %v4874_v43 = vadd.f32 %v4409_v9, %v3928_v31  ;;  %v4876_v8 = vadd.f32 %v4682_v57, %v3930_v6 }
 0x6b3   : > { %v4411_v11 = vpop.f32.mrf.mxu1  ;;  %v4684_v18 = vpop.f32.mrf.mxu0 }
 0x6b4   : > { %5066 = vst [vmem:[#allocation2 + $0x4c0] sm:$0xff] %v4874_v43  ;;  %5068 = vst [vmem:[#allocation2 + $0x3f0] sm:$0xff] %v4876_v8  ;;  %v4877_v14 = vadd.f32 %v4411_v11, %v3931_v2  ;;  %v4879_v22 = vadd.f32 %v4684_v18, %v3933_v51  ;;  %5076 = sbr.rel (%p5790_p9) target bundleno = 1818 (0x71a), region = 64 }
 0x6b5   : > { %v4413_v24 = vpop.f32.mrf.mxu1  ;;  %v4686_v4 = vpop.f32.mrf.mxu0 }
 0x6b6   : > { %5069 = vst [vmem:[#allocation2 + $0x238] sm:$0xff] %v4877_v14  ;;  %5071 = vst [vmem:[#allocation2 + $0x568] sm:$0xff] %v4879_v22  ;;  %v4878_v38 = vadd.f32 %v4413_v24, %v3932_v33  ;;  %v4880_v49 = vadd.f32 %v4686_v4, %v3934_v47 }
 0x6b8   : > { %5070 = vst [vmem:[#allocation2 + $0x290] sm:$0xff] %v4878_v38  ;;  %5072 = vst [vmem:[#allocation2 + $0x90] sm:$0xff] %v4880_v49 }
 0x6b9   : > { %v5077_v20 = vld [vmem:[#allocation2 + $0x2b0] sm:$0xff]  ;;  %v5079_v26 = vld [vmem:[#allocation2 + $0x4d8] sm:$0xff]  ;;  %v5082_v28 = vld [vmem:[#allocation2 + $0x328] sm:$0xff] }
 0x6ba   : > { %v5078_v34 = vld [vmem:[#allocation2 + $0x3b0] sm:$0xff]  ;;  %5269 = vst [vmem:[%s6849_s28] sm:$0xff] %v5077_v20  ;;  %5271 = vst [vmem:[%s6849_s28 + $0x10] sm:$0xff] %v5079_v26  ;;  %v5080_v56 = vld [vmem:[#allocation2 + $0x18] sm:$0xff] }
 0x6bb   : > { %5270 = vst [vmem:[%s6849_s28 + $0x8] sm:$0xff] %v5078_v34  ;;  %v5081_v48 = vld [vmem:[#allocation2 + $0x450] sm:$0xff]  ;;  %5272 = vst [vmem:[%s6849_s28 + $0x18] sm:$0xff] %v5080_v56  ;;  %v5083_v60 = vld [vmem:[#allocation2 + $0x440] sm:$0xff] }
 0x6bc   : > { %5273 = vst [vmem:[%s6849_s28 + $0x20] sm:$0xff] %v5081_v48  ;;  %5274 = vst [vmem:[%s6849_s28 + $0x28] sm:$0xff] %v5082_v28  ;;  %v5084_v15 = vld [vmem:[#allocation2 + $0x378] sm:$0xff]  ;;  %v5085_v50 = vld [vmem:[#allocation2 + $0x108] sm:$0xff] }
 0x6bd   : > { %5275 = vst [vmem:[%s6849_s28 + $0x30] sm:$0xff] %v5083_v60  ;;  %5276 = vst [vmem:[%s6849_s28 + $0x38] sm:$0xff] %v5084_v15  ;;  %v5086_v53 = vld [vmem:[#allocation2 + $0x510] sm:$0xff]  ;;  %v5088_v7 = vld [vmem:[#allocation2 + $0x318] sm:$0xff] }
 0x6be   : > { %5277 = vst [vmem:[%s6849_s28 + $0x40] sm:$0xff] %v5085_v50  ;;  %v5087_v5 = vld [vmem:[#allocation2 + $0x490] sm:$0xff]  ;;  %5278 = vst [vmem:[%s6849_s28 + $0x48] sm:$0xff] %v5086_v53  ;;  %v5089_v35 = vld [vmem:[#allocation2 + $0x548] sm:$0xff] }
 0x6bf   : > { %5279 = vst [vmem:[%s6849_s28 + $0x50] sm:$0xff] %v5087_v5  ;;  %5280 = vst [vmem:[%s6849_s28 + $0x58] sm:$0xff] %v5088_v7  ;;  %v5090_v32 = vld [vmem:[#allocation2 + $0x500] sm:$0xff]  ;;  %v5091_v29 = vld [vmem:[#allocation2 + $0x58] sm:$0xff] }
 0x6c0   : > { %5281 = vst [vmem:[%s6849_s28 + $0x60] sm:$0xff] %v5089_v35  ;;  %5282 = vst [vmem:[%s6849_s28 + $0x68] sm:$0xff] %v5090_v32  ;;  %v5092_v21 = vld [vmem:[#allocation2 + $0x2b8] sm:$0xff]  ;;  %v5093_v45 = vld [vmem:[#allocation2 + $0x580] sm:$0xff] }
 0x6c1   : > { %5283 = vst [vmem:[%s6849_s28 + $0x70] sm:$0xff] %v5091_v29  ;;  %v5094_v13 = vld [vmem:[#allocation2 + $0x590] sm:$0xff]  ;;  %5284 = vst [vmem:[%s6849_s28 + $0x78] sm:$0xff] %v5092_v21  ;;  %v5095_v23 = vld [vmem:[#allocation2 + $0x540] sm:$0xff] }
 0x6c2   : > { %5285 = vst [vmem:[%s6849_s28 + $0x80] sm:$0xff] %v5093_v45  ;;  %5286 = vst [vmem:[%s6849_s28 + $0x88] sm:$0xff] %v5094_v13  ;;  %v5096_v16 = vld [vmem:[#allocation2 + $0x3c0] sm:$0xff]  ;;  %v5097_v55 = vld [vmem:[#allocation2 + $0x330] sm:$0xff] }
 0x6c3   : > { %5287 = vst [vmem:[%s6849_s28 + $0x90] sm:$0xff] %v5095_v23  ;;  %5288 = vst [vmem:[%s6849_s28 + $0x98] sm:$0xff] %v5096_v16  ;;  %v5098_v58 = vld [vmem:[#allocation2 + $0x100] sm:$0xff]  ;;  %v5099_v10 = vld [vmem:[#allocation2 + $0x8] sm:$0xff] }
 0x6c4   : > { %5289 = vst [vmem:[%s6849_s28 + $0xa0] sm:$0xff] %v5097_v55  ;;  %v5100_v40 = vld [vmem:[#allocation2 + $0x188] sm:$0xff]  ;;  %5290 = vst [vmem:[%s6849_s28 + $0xa8] sm:$0xff] %v5098_v58  ;;  %v5104_v19 = vld [vmem:[#allocation2 + $0x520] sm:$0xff] }
 0x6c5   : > { %5291 = vst [vmem:[%s6849_s28 + $0xb0] sm:$0xff] %v5099_v10  ;;  %5292 = vst [vmem:[%s6849_s28 + $0xb8] sm:$0xff] %v5100_v40  ;;  %v5101_v1 = vld [vmem:[#allocation2 + $0x248] sm:$0xff]  ;;  %v5106_v3 = vld [vmem:[#allocation2 + $0x5e0] sm:$0xff] }
 0x6c6   : > { %v5102_v12 = vld [vmem:[#allocation2 + $0xc8] sm:$0xff]  ;;  %5293 = vst [vmem:[%s6849_s28 + $0xc0] sm:$0xff] %v5101_v1  ;;  %5296 = vst [vmem:[%s6849_s28 + $0xd8] sm:$0xff] %v5104_v19  ;;  %v5108_v17 = vld [vmem:[#allocation2 + $0x4d0] sm:$0xff] }
 0x6c7   : > { %v5103_v52 = vld [vmem:[#allocation2 + $0x388] sm:$0xff]  ;;  %5294 = vst [vmem:[%s6849_s28 + $0xc8] sm:$0xff] %v5102_v12  ;;  %5298 = vst [vmem:[%s6849_s28 + $0xe8] sm:$0xff] %v5106_v3  ;;  %v5109_v61 = vld [vmem:[#allocation2 + $0x98] sm:$0xff] }
 0x6c8   : > { %5295 = vst [vmem:[%s6849_s28 + $0xd0] sm:$0xff] %v5103_v52  ;;  %v5105_v63 = vld [vmem:[#allocation2 + $0x3a8] sm:$0xff]  ;;  %5300 = vst [vmem:[%s6849_s28 + $0xf8] sm:$0xff] %v5108_v17  ;;  %v5110_v37 = vld [vmem:[#allocation2 + $0xb0] sm:$0xff] }
 0x6c9   : > { %5297 = vst [vmem:[%s6849_s28 + $0xe0] sm:$0xff] %v5105_v63  ;;  %v5107_v36 = vld [vmem:[#allocation2 + $0x488] sm:$0xff]  ;;  %5301 = vst [vmem:[%s6849_s28 + $0x100] sm:$0xff] %v5109_v61  ;;  %v5111_v54 = vld [vmem:[#allocation2 + $0x2a0] sm:$0xff] }
 0x6ca   : > { %5299 = vst [vmem:[%s6849_s28 + $0xf0] sm:$0xff] %v5107_v36  ;;  %v5112_v46 = vld [vmem:[#allocation2 + $0x570] sm:$0xff]  ;;  %5302 = vst [vmem:[%s6849_s28 + $0x108] sm:$0xff] %v5110_v37  ;;  %v5113_v59 = vld [vmem:[#allocation2 + $0x598] sm:$0xff] }
 0x6cb   : > { %5303 = vst [vmem:[%s6849_s28 + $0x110] sm:$0xff] %v5111_v54  ;;  %5304 = vst [vmem:[%s6849_s28 + $0x118] sm:$0xff] %v5112_v46  ;;  %v5114_v42 = vld [vmem:[#allocation2 + $0x5a8] sm:$0xff]  ;;  %v5117_v25 = vld [vmem:[#allocation2 + $0x1f8] sm:$0xff] }
 0x6cc   : > { %v5115_v30 = vld [vmem:[#allocation2 + $0x4c8] sm:$0xff]  ;;  %5305 = vst [vmem:[%s6849_s28 + $0x120] sm:$0xff] %v5113_v59  ;;  %5306 = vst [vmem:[%s6849_s28 + $0x128] sm:$0xff] %v5114_v42  ;;  %v5118_v44 = vld [vmem:[#allocation2 + $0x2f0] sm:$0xff] }
 0x6cd   : > { %5307 = vst [vmem:[%s6849_s28 + $0x130] sm:$0xff] %v5115_v30  ;;  %v5116_v39 = vld [vmem:[#allocation2 + $0x5e8] sm:$0xff]  ;;  %5309 = vst [vmem:[%s6849_s28 + $0x140] sm:$0xff] %v5117_v25  ;;  %v5120_v41 = vld [vmem:[#allocation2 + $0x5c0] sm:$0xff] }
 0x6ce   : > { %5308 = vst [vmem:[%s6849_s28 + $0x138] sm:$0xff] %v5116_v39  ;;  %5310 = vst [vmem:[%s6849_s28 + $0x148] sm:$0xff] %v5118_v44  ;;  %v5119_v62 = vld [vmem:[#allocation2 + $0x3c8] sm:$0xff]  ;;  %v5121_v31 = vld [vmem:[#allocation2 + $0x338] sm:$0xff] }
 0x6cf   : > { %5311 = vst [vmem:[%s6849_s28 + $0x150] sm:$0xff] %v5119_v62  ;;  %5312 = vst [vmem:[%s6849_s28 + $0x158] sm:$0xff] %v5120_v41  ;;  %v5122_v6 = vld [vmem:[#allocation2 + $0x480] sm:$0xff]  ;;  %v5123_v0 = vld [vmem:[#allocation2 + $0x2a8] sm:$0xff] }
 0x6d0   : > { %5313 = vst [vmem:[%s6849_s28 + $0x160] sm:$0xff] %v5121_v31  ;;  %v5124_v27 = vld [vmem:[#allocation2 + $0x3e0] sm:$0xff]  ;;  %5314 = vst [vmem:[%s6849_s28 + $0x168] sm:$0xff] %v5122_v6  ;;  %v5125_v9 = vld [vmem:[#allocation2 + $0x3d8] sm:$0xff] }
 0x6d1   : > { %5315 = vst [vmem:[%s6849_s28 + $0x170] sm:$0xff] %v5123_v0  ;;  %5316 = vst [vmem:[%s6849_s28 + $0x178] sm:$0xff] %v5124_v27  ;;  %v5126_v57 = vld [vmem:[#allocation2 + $0x4b0] sm:$0xff]  ;;  %v5127_v2 = vld [vmem:[#allocation2 + $0x28] sm:$0xff] }
 0x6d2   : > { %5317 = vst [vmem:[%s6849_s28 + $0x180] sm:$0xff] %v5125_v9  ;;  %5318 = vst [vmem:[%s6849_s28 + $0x188] sm:$0xff] %v5126_v57  ;;  %v5128_v51 = vld [vmem:[#allocation2 + $0xf8] sm:$0xff]  ;;  %v5129_v43 = vld [vmem:[#allocation2 + $0x4e8] sm:$0xff] }
 0x6d3   : > { %5319 = vst [vmem:[%s6849_s28 + $0x190] sm:$0xff] %v5127_v2  ;;  %v5130_v8 = vld [vmem:[#allocation2 + $0x120] sm:$0xff]  ;;  %5320 = vst [vmem:[%s6849_s28 + $0x198] sm:$0xff] %v5128_v51  ;;  %v5131_v11 = vld [vmem:[#allocation2 + $0x2f8] sm:$0xff] }
 0x6d4   : > { %5321 = vst [vmem:[%s6849_s28 + $0x1a0] sm:$0xff] %v5129_v43  ;;  %5322 = vst [vmem:[%s6849_s28 + $0x1a8] sm:$0xff] %v5130_v8  ;;  %v5132_v18 = vld [vmem:[#allocation2 + $0x268] sm:$0xff]  ;;  %v5133_v33 = vld [vmem:[#allocation2 + $0x560] sm:$0xff] }
 0x6d5   : > { %5323 = vst [vmem:[%s6849_s28 + $0x1b0] sm:$0xff] %v5131_v11  ;;  %5324 = vst [vmem:[%s6849_s28 + $0x1b8] sm:$0xff] %v5132_v18  ;;  %v5134_v47 = vld [vmem:[#allocation2 + $0x4f8] sm:$0xff]  ;;  %v5135_v14 = vld [vmem:[#allocation2 + $0x2e8] sm:$0xff] }
 0x6d6   : > { %5325 = vst [vmem:[%s6849_s28 + $0x1c0] sm:$0xff] %v5133_v33  ;;  %v5136_v22 = vld [vmem:[#allocation2 + $0x370] sm:$0xff]  ;;  %5326 = vst [vmem:[%s6849_s28 + $0x1c8] sm:$0xff] %v5134_v47  ;;  %v5137_v24 = vld [vmem:[#allocation2 + $0x138] sm:$0xff] }
 0x6d7   : > { %5327 = vst [vmem:[%s6849_s28 + $0x1d0] sm:$0xff] %v5135_v14  ;;  %5328 = vst [vmem:[%s6849_s28 + $0x1d8] sm:$0xff] %v5136_v22  ;;  %v5138_v4 = vld [vmem:[#allocation2 + $0x308] sm:$0xff]  ;;  %v5140_v49 = vld [vmem:[#allocation2 + $0x1c0] sm:$0xff] }
 0x6d8   : > { %v5139_v38 = vld [vmem:[#allocation2 + $0x528] sm:$0xff]  ;;  %5329 = vst [vmem:[%s6849_s28 + $0x1e0] sm:$0xff] %v5137_v24  ;;  %5330 = vst [vmem:[%s6849_s28 + $0x1e8] sm:$0xff] %v5138_v4  ;;  %v5141_v20 = vld [vmem:[#allocation2 + $0x5d0] sm:$0xff] }
 0x6d9   : > { %5331 = vst [vmem:[%s6849_s28 + $0x1f0] sm:$0xff] %v5139_v38  ;;  %v5142_v34 = vld [vmem:[#allocation2 + $0x260] sm:$0xff]  ;;  %5332 = vst [vmem:[%s6849_s28 + $0x1f8] sm:$0xff] %v5140_v49  ;;  %v5143_v26 = vld [vmem:[#allocation2 + $0x438] sm:$0xff] }
 0x6da   : > { %5333 = vst [vmem:[%s6849_s28 + $0x200] sm:$0xff] %v5141_v20  ;;  %5334 = vst [vmem:[%s6849_s28 + $0x208] sm:$0xff] %v5142_v34  ;;  %v5144_v56 = vld [vmem:[#allocation2 + $0xf0] sm:$0xff]  ;;  %v5145_v48 = vld [vmem:[#allocation2 + $0x60] sm:$0xff] }
 0x6db   : > { %5335 = vst [vmem:[%s6849_s28 + $0x210] sm:$0xff] %v5143_v26  ;;  %5336 = vst [vmem:[%s6849_s28 + $0x218] sm:$0xff] %v5144_v56  ;;  %v5146_v28 = vld [vmem:[#allocation2 + $0x200] sm:$0xff]  ;;  %v5149_v50 = vld [vmem:[#allocation2 + $0x4b8] sm:$0xff] }
 0x6dc   : > { %5337 = vst [vmem:[%s6849_s28 + $0x220] sm:$0xff] %v5145_v48  ;;  %v5147_v60 = vld [vmem:[#allocation2 + $0x80] sm:$0xff]  ;;  %5338 = vst [vmem:[%s6849_s28 + $0x228] sm:$0xff] %v5146_v28  ;;  %v5150_v53 = vld [vmem:[#allocation2 + $0x310] sm:$0xff] }
 0x6dd   : > { %v5148_v15 = vld [vmem:[#allocation2 + $0x5a0] sm:$0xff]  ;;  %5339 = vst [vmem:[%s6849_s28 + $0x230] sm:$0xff] %v5147_v60  ;;  %v5151_v5 = vld [vmem:[#allocation2 + $0x1e8] sm:$0xff]  ;;  %5341 = vst [vmem:[%s6849_s28 + $0x240] sm:$0xff] %v5149_v50 }
 0x6de   : > { %5340 = vst [vmem:[%s6849_s28 + $0x238] sm:$0xff] %v5148_v15  ;;  %5342 = vst [vmem:[%s6849_s28 + $0x248] sm:$0xff] %v5150_v53  ;;  %v5152_v7 = vld [vmem:[#allocation2 + $0x258] sm:$0xff]  ;;  %v5153_v35 = vld [vmem:[#allocation2 + $0x40] sm:$0xff] }
 0x6df   : > { %5343 = vst [vmem:[%s6849_s28 + $0x250] sm:$0xff] %v5151_v5  ;;  %v5154_v32 = vld [vmem:[#allocation2 + $0x4e0] sm:$0xff]  ;;  %5344 = vst [vmem:[%s6849_s28 + $0x258] sm:$0xff] %v5152_v7  ;;  %v5155_v29 = vld [vmem:[#allocation2 + $0x198] sm:$0xff] }
 0x6e0   : > { %5345 = vst [vmem:[%s6849_s28 + $0x260] sm:$0xff] %v5153_v35  ;;  %5346 = vst [vmem:[%s6849_s28 + $0x268] sm:$0xff] %v5154_v32  ;;  %v5156_v21 = vld [vmem:[#allocation2 + $0x550] sm:$0xff]  ;;  %v5157_v45 = vld [vmem:[#allocation2 + $0x418] sm:$0xff] }
 0x6e1   : > { %5347 = vst [vmem:[%s6849_s28 + $0x270] sm:$0xff] %v5155_v29  ;;  %5348 = vst [vmem:[%s6849_s28 + $0x278] sm:$0xff] %v5156_v21  ;;  %v5158_v13 = vld [vmem:[#allocation2 + $0x5c8] sm:$0xff]  ;;  %v5159_v23 = vld [vmem:[#allocation2 + $0x340] sm:$0xff] }
 0x6e2   : > { %5349 = vst [vmem:[%s6849_s28 + $0x280] sm:$0xff] %v5157_v45  ;;  %v5160_v16 = vld [vmem:[#allocation2 + $0x360] sm:$0xff]  ;;  %5350 = vst [vmem:[%s6849_s28 + $0x288] sm:$0xff] %v5158_v13  ;;  %v5161_v55 = vld [vmem:[#allocation2 + $0x3b8] sm:$0xff] }
 0x6e3   : > { %5351 = vst [vmem:[%s6849_s28 + $0x290] sm:$0xff] %v5159_v23  ;;  %5352 = vst [vmem:[%s6849_s28 + $0x298] sm:$0xff] %v5160_v16  ;;  %v5162_v58 = vld [vmem:[#allocation2 + $0x530] sm:$0xff]  ;;  %v5164_v40 = vld [vmem:[#allocation2 + $0x3a0] sm:$0xff] }
 0x6e4   : > { %v5163_v10 = vld [vmem:[#allocation2 + $0x1f0] sm:$0xff]  ;;  %5353 = vst [vmem:[%s6849_s28 + $0x2a0] sm:$0xff] %v5161_v55  ;;  %5354 = vst [vmem:[%s6849_s28 + $0x2a8] sm:$0xff] %v5162_v58  ;;  %v5165_v1 = vld [vmem:[#allocation2 + $0x460] sm:$0xff] }
 0x6e5   : > { %5355 = vst [vmem:[%s6849_s28 + $0x2b0] sm:$0xff] %v5163_v10  ;;  %v5166_v12 = vld [vmem:[#allocation2 + $0x2c8] sm:$0xff]  ;;  %5356 = vst [vmem:[%s6849_s28 + $0x2b8] sm:$0xff] %v5164_v40  ;;  %v5167_v52 = vld [vmem:[#allocation2 + $0x1d0] sm:$0xff] }
 0x6e6   : > { %5357 = vst [vmem:[%s6849_s28 + $0x2c0] sm:$0xff] %v5165_v1  ;;  %5358 = vst [vmem:[%s6849_s28 + $0x2c8] sm:$0xff] %v5166_v12  ;;  %v5168_v19 = vld [vmem:[#allocation2 + $0x4f0] sm:$0xff]  ;;  %v5170_v3 = vld [vmem:[#allocation2 + $0x4a0] sm:$0xff] }
 0x6e7   : > { %v5169_v63 = vld [vmem:[#allocation2 + $0x50] sm:$0xff]  ;;  %5359 = vst [vmem:[%s6849_s28 + $0x2d0] sm:$0xff] %v5167_v52  ;;  %5360 = vst [vmem:[%s6849_s28 + $0x2d8] sm:$0xff] %v5168_v19  ;;  %v5171_v36 = vld [vmem:[#allocation2 + $0x468] sm:$0xff] }
 0x6e8   : > { %5361 = vst [vmem:[%s6849_s28 + $0x2e0] sm:$0xff] %v5169_v63  ;;  %v5172_v17 = vld [vmem:[#allocation2 + $0x278] sm:$0xff]  ;;  %5362 = vst [vmem:[%s6849_s28 + $0x2e8] sm:$0xff] %v5170_v3  ;;  %v5175_v54 = vld [vmem:[#allocation2 + $0x400] sm:$0xff] }
 0x6e9   : > { %5363 = vst [vmem:[%s6849_s28 + $0x2f0] sm:$0xff] %v5171_v36  ;;  %5364 = vst [vmem:[%s6849_s28 + $0x2f8] sm:$0xff] %v5172_v17  ;;  %v5173_v61 = vld [vmem:[#allocation2 + $0x458] sm:$0xff]  ;;  %v5177_v59 = vld [vmem:[#allocation2 + $0xe8] sm:$0xff] }
 0x6ea   : > { %v5174_v37 = vld [vmem:[#allocation2 + $0x498] sm:$0xff]  ;;  %5365 = vst [vmem:[%s6849_s28 + $0x300] sm:$0xff] %v5173_v61  ;;  %5367 = vst [vmem:[%s6849_s28 + $0x310] sm:$0xff] %v5175_v54  ;;  %v5178_v42 = vld [vmem:[#allocation2 + $0x160] sm:$0xff] }
 0x6eb   : > { %5366 = vst [vmem:[%s6849_s28 + $0x308] sm:$0xff] %v5174_v37  ;;  %v5176_v46 = vld [vmem:[#allocation2 + $0x5d8] sm:$0xff]  ;;  %5369 = vst [vmem:[%s6849_s28 + $0x320] sm:$0xff] %v5177_v59  ;;  %v5181_v25 = vld [vmem:[#allocation2 + $0x1e0] sm:$0xff] }
 0x6ec   : > { %5368 = vst [vmem:[%s6849_s28 + $0x318] sm:$0xff] %v5176_v46  ;;  %5370 = vst [vmem:[%s6849_s28 + $0x328] sm:$0xff] %v5178_v42  ;;  %v5179_v30 = vld [vmem:[#allocation2 + $0x178] sm:$0xff]  ;;  %v5182_v44 = vld [vmem:[#allocation2 + $0x390] sm:$0xff] }
 0x6ed   : > { %v5180_v39 = vld [vmem:[#allocation2 + $0x538] sm:$0xff]  ;;  %5371 = vst [vmem:[%s6849_s28 + $0x330] sm:$0xff] %v5179_v30  ;;  %5373 = vst [vmem:[%s6849_s28 + $0x340] sm:$0xff] %v5181_v25  ;;  %v5183_v62 = vld [vmem:[#allocation2 + $0x2c0] sm:$0xff] }
 0x6ee   : > { %5372 = vst [vmem:[%s6849_s28 + $0x338] sm:$0xff] %v5180_v39  ;;  %v5184_v41 = vld [vmem:[#allocation2 + $0x228] sm:$0xff]  ;;  %5374 = vst [vmem:[%s6849_s28 + $0x348] sm:$0xff] %v5182_v44  ;;  %v5185_v31 = vld [vmem:[#allocation2 + $0x5b0] sm:$0xff] }
 0x6ef   : > { %5375 = vst [vmem:[%s6849_s28 + $0x350] sm:$0xff] %v5183_v62  ;;  %5376 = vst [vmem:[%s6849_s28 + $0x358] sm:$0xff] %v5184_v41  ;;  %v5186_v6 = vld [vmem:[#allocation2 + $0xc0] sm:$0xff]  ;;  %v5187_v0 = vld [vmem:[#allocation2 + $0xd8] sm:$0xff] }
 0x6f0   : > { %5377 = vst [vmem:[%s6849_s28 + $0x360] sm:$0xff] %v5185_v31  ;;  %5378 = vst [vmem:[%s6849_s28 + $0x368] sm:$0xff] %v5186_v6  ;;  %v5188_v27 = vld [vmem:[#allocation2 + $0x428] sm:$0xff]  ;;  %v5189_v9 = vld [vmem:[#allocation2 + $0x30] sm:$0xff] }
 0x6f1   : > { %5379 = vst [vmem:[%s6849_s28 + $0x370] sm:$0xff] %v5187_v0  ;;  %v5190_v57 = vld [vmem:[#allocation2 + $0x410] sm:$0xff]  ;;  %5380 = vst [vmem:[%s6849_s28 + $0x378] sm:$0xff] %v5188_v27  ;;  %v5191_v2 = vld [vmem:[#allocation2 + $0x208] sm:$0xff] }
 0x6f2   : > { %5381 = vst [vmem:[%s6849_s28 + $0x380] sm:$0xff] %v5189_v9  ;;  %5382 = vst [vmem:[%s6849_s28 + $0x388] sm:$0xff] %v5190_v57  ;;  %v5192_v51 = vld [vmem:[#allocation2 + $0x4a8] sm:$0xff]  ;;  %v5193_v43 = vld [vmem:[#allocation2 + $0x5b8] sm:$0xff] }
 0x6f3   : > { %5383 = vst [vmem:[%s6849_s28 + $0x390] sm:$0xff] %v5191_v2  ;;  %5384 = vst [vmem:[%s6849_s28 + $0x398] sm:$0xff] %v5192_v51  ;;  %v5194_v8 = vld [vmem:[#allocation2 + $0x218] sm:$0xff]  ;;  %v5195_v11 = vld [vmem:[#allocation2 + $0x368] sm:$0xff] }
 0x6f4   : > { %5385 = vst [vmem:[%s6849_s28 + $0x3a0] sm:$0xff] %v5193_v43  ;;  %v5196_v18 = vld [vmem:[#allocation2 + $0x298] sm:$0xff]  ;;  %5386 = vst [vmem:[%s6849_s28 + $0x3a8] sm:$0xff] %v5194_v8  ;;  %v5197_v33 = vld [vmem:[#allocation2 + $0x420] sm:$0xff] }
 0x6f5   : > { %5387 = vst [vmem:[%s6849_s28 + $0x3b0] sm:$0xff] %v5195_v11  ;;  %5388 = vst [vmem:[%s6849_s28 + $0x3b8] sm:$0xff] %v5196_v18  ;;  %v5198_v47 = vld [vmem:[#allocation2 + $0x88] sm:$0xff]  ;;  %v5199_v14 = vld [vmem:[#allocation2 + $0x130] sm:$0xff] }
 0x6f6   : > { %5389 = vst [vmem:[%s6849_s28 + $0x3c0] sm:$0xff] %v5197_v33  ;;  %5390 = vst [vmem:[%s6849_s28 + $0x3c8] sm:$0xff] %v5198_v47  ;;  %v5200_v22 = vld [vmem:[#allocation2 + $0x5f0] sm:$0xff]  ;;  %v5202_v4 = vld [vmem:[#allocation2 + $0x2e0] sm:$0xff] }
 0x6f7   : > { %5391 = vst [vmem:[%s6849_s28 + $0x3d0] sm:$0xff] %v5199_v14  ;;  %v5201_v24 = vld [vmem:[#allocation2 + $0x230] sm:$0xff]  ;;  %5392 = vst [vmem:[%s6849_s28 + $0x3d8] sm:$0xff] %v5200_v22  ;;  %v5204_v49 = vld [vmem:[#allocation2 + $0xa8] sm:$0xff] }
 0x6f8   : > { %5393 = vst [vmem:[%s6849_s28 + $0x3e0] sm:$0xff] %v5201_v24  ;;  %5394 = vst [vmem:[%s6849_s28 + $0x3e8] sm:$0xff] %v5202_v4  ;;  %v5203_v38 = vld [vmem:[#allocation2 + $0x110] sm:$0xff]  ;;  %v5206_v34 = vld [vmem:[#allocation2 + $0x1a8] sm:$0xff] }
 0x6f9   : > { %v5205_v20 = vld [vmem:[#allocation2 + $0x190] sm:$0xff]  ;;  %5395 = vst [vmem:[%s6849_s28 + $0x3f0] sm:$0xff] %v5203_v38  ;;  %5396 = vst [vmem:[%s6849_s28 + $0x3f8] sm:$0xff] %v5204_v49  ;;  %v5207_v26 = vld [vmem:[#allocation2 + $0x398] sm:$0xff] }
 0x6fa   : > { %5397 = vst [vmem:[%s6849_s28 + $0x400] sm:$0xff] %v5205_v20  ;;  %v5208_v56 = vld [vmem:[#allocation2 + $0x470] sm:$0xff]  ;;  %5398 = vst [vmem:[%s6849_s28 + $0x408] sm:$0xff] %v5206_v34  ;;  %v5209_v48 = vld [vmem:[#allocation2 + $0xe0] sm:$0xff] }
 0x6fb   : > { %5399 = vst [vmem:[%s6849_s28 + $0x410] sm:$0xff] %v5207_v26  ;;  %5400 = vst [vmem:[%s6849_s28 + $0x418] sm:$0xff] %v5208_v56  ;;  %v5210_v28 = vld [vmem:[#allocation2 + $0xd0] sm:$0xff]  ;;  %v5211_v60 = vld [vmem:[#allocation2 + $0x38] sm:$0xff] }
 0x6fc   : > { %5401 = vst [vmem:[%s6849_s28 + $0x420] sm:$0xff] %v5209_v48  ;;  %5402 = vst [vmem:[%s6849_s28 + $0x428] sm:$0xff] %v5210_v28  ;;  %v5212_v15 = vld [vmem:[#allocation2 + $0x240] sm:$0xff]  ;;  %v5214_v53 = vld [vmem:[#allocation2 + $0x518] sm:$0xff] }
 0x6fd   : > { %5403 = vst [vmem:[%s6849_s28 + $0x430] sm:$0xff] %v5211_v60  ;;  %v5213_v50 = vld [vmem:[#allocation2 + $0x280] sm:$0xff]  ;;  %5404 = vst [vmem:[%s6849_s28 + $0x438] sm:$0xff] %v5212_v15  ;;  %v5215_v5 = vld [vmem:[#allocation2 + $0x148] sm:$0xff] }
 0x6fe   : > { %5405 = vst [vmem:[%s6849_s28 + $0x440] sm:$0xff] %v5213_v50  ;;  %5406 = vst [vmem:[%s6849_s28 + $0x448] sm:$0xff] %v5214_v53  ;;  %v5216_v7 = vld [vmem:[#allocation2 + $0x508] sm:$0xff]  ;;  %v5217_v35 = vld [vmem:[#allocation2 + $0x3d0] sm:$0xff] }
 0x6ff   : > { %5407 = vst [vmem:[%s6849_s28 + $0x450] sm:$0xff] %v5215_v5  ;;  %5408 = vst [vmem:[%s6849_s28 + $0x458] sm:$0xff] %v5216_v7  ;;  %v5218_v32 = vld [vmem:[#allocation2 + $0x68] sm:$0xff]  ;;  %v5219_v29 = vld [vmem:[#allocation2 + $0x358] sm:$0xff] }
 0x700   : > { %5409 = vst [vmem:[%s6849_s28 + $0x460] sm:$0xff] %v5217_v35  ;;  %v5220_v21 = vld [vmem:[#allocation2 + $0x70] sm:$0xff]  ;;  %5410 = vst [vmem:[%s6849_s28 + $0x468] sm:$0xff] %v5218_v32  ;;  %v5221_v45 = vld [vmem:[#allocation2 + $0xb8] sm:$0xff] }
 0x701   : > { %5411 = vst [vmem:[%s6849_s28 + $0x470] sm:$0xff] %v5219_v29  ;;  %5412 = vst [vmem:[%s6849_s28 + $0x478] sm:$0xff] %v5220_v21  ;;  %v5222_v13 = vld [vmem:[#allocation2 + $0x10] sm:$0xff]  ;;  %v5223_v23 = vld [vmem:[#allocation2 + $0x20] sm:$0xff] }
 0x702   : > { %5413 = vst [vmem:[%s6849_s28 + $0x480] sm:$0xff] %v5221_v45  ;;  %5414 = vst [vmem:[%s6849_s28 + $0x488] sm:$0xff] %v5222_v13  ;;  %v5224_v16 = vld [vmem:[#allocation2 + $0x78] sm:$0xff]  ;;  %v5225_v55 = vld [vmem:[#allocation2 + $0x210] sm:$0xff] }
 0x703   : > { %5415 = vst [vmem:[%s6849_s28 + $0x490] sm:$0xff] %v5223_v23  ;;  %v5226_v58 = vld [vmem:[#allocation2 + $0x558] sm:$0xff]  ;;  %5416 = vst [vmem:[%s6849_s28 + $0x498] sm:$0xff] %v5224_v16  ;;  %v5227_v10 = vld [vmem:[#allocation2 + $0x588] sm:$0xff] }
 0x704   : > { %5417 = vst [vmem:[%s6849_s28 + $0x4a0] sm:$0xff] %v5225_v55  ;;  %5418 = vst [vmem:[%s6849_s28 + $0x4a8] sm:$0xff] %v5226_v58  ;;  %v5228_v40 = vld [vmem:[#allocation2 + $0x48] sm:$0xff]  ;;  %v5229_v1 = vld [vmem:[#allocation2 + $0x118] sm:$0xff] }
 0x705   : > { %5419 = vst [vmem:[%s6849_s28 + $0x4b0] sm:$0xff] %v5227_v10  ;;  %5420 = vst [vmem:[%s6849_s28 + $0x4b8] sm:$0xff] %v5228_v40  ;;  %v5230_v12 = vld [vmem:[#allocation2 + $0x478] sm:$0xff]  ;;  %v5232_v19 = vld [vmem:[#allocation2 + $0x380] sm:$0xff] }
 0x706   : > { %5421 = vst [vmem:[%s6849_s28 + $0x4c0] sm:$0xff] %v5229_v1  ;;  %v5231_v52 = vld [vmem:[#allocation2 + $0x3f8] sm:$0xff]  ;;  %5422 = vst [vmem:[%s6849_s28 + $0x4c8] sm:$0xff] %v5230_v12  ;;  %v5234_v3 = vld [vmem:[#allocation2 + $0x170] sm:$0xff] }
 0x707   : > { %5423 = vst [vmem:[%s6849_s28 + $0x4d0] sm:$0xff] %v5231_v52  ;;  %5424 = vst [vmem:[%s6849_s28 + $0x4d8] sm:$0xff] %v5232_v19  ;;  %v5233_v63 = vld [vmem:[#allocation2 + $0x578] sm:$0xff]  ;;  %v5235_v36 = vld [vmem:[#allocation2 + $0x1a0] sm:$0xff] }
 0x708   : > { %5425 = vst [vmem:[%s6849_s28 + $0x4e0] sm:$0xff] %v5233_v63  ;;  %5426 = vst [vmem:[%s6849_s28 + $0x4e8] sm:$0xff] %v5234_v3  ;;  %v5236_v17 = vld [vmem:[#allocation2 + $0x288] sm:$0xff]  ;;  %v5237_v61 = vld [vmem:[#allocation2 + $0x140] sm:$0xff] }
 0x709   : > { %5427 = vst [vmem:[%s6849_s28 + $0x4f0] sm:$0xff] %v5235_v36  ;;  %v5238_v37 = vld [vmem:[#allocation2 + $0x300] sm:$0xff]  ;;  %5428 = vst [vmem:[%s6849_s28 + $0x4f8] sm:$0xff] %v5236_v17  ;;  %v5241_v59 = vld [vmem:[#allocation2 + $0x158] sm:$0xff] }
 0x70a   : > { %5429 = vst [vmem:[%s6849_s28 + $0x500] sm:$0xff] %v5237_v61  ;;  %5430 = vst [vmem:[%s6849_s28 + $0x508] sm:$0xff] %v5238_v37  ;;  %v5239_v54 = vld [vmem:[#allocation2] sm:$0xff]  ;;  %v5242_v42 = vld [vmem:[#allocation2 + $0x348] sm:$0xff] }
 0x70b   : > { %v5240_v46 = vld [vmem:[#allocation2 + $0x320] sm:$0xff]  ;;  %5431 = vst [vmem:[%s6849_s28 + $0x510] sm:$0xff] %v5239_v54  ;;  %5433 = vst [vmem:[%s6849_s28 + $0x520] sm:$0xff] %v5241_v59  ;;  %v5243_v30 = vld [vmem:[#allocation2 + $0x2d8] sm:$0xff] }
 0x70c   : > { %5432 = vst [vmem:[%s6849_s28 + $0x518] sm:$0xff] %v5240_v46  ;;  %v5244_v39 = vld [vmem:[#allocation2 + $0x168] sm:$0xff]  ;;  %5434 = vst [vmem:[%s6849_s28 + $0x528] sm:$0xff] %v5242_v42  ;;  %v5246_v44 = vld [vmem:[#allocation2 + $0xa0] sm:$0xff] }
 0x70d   : > { %5435 = vst [vmem:[%s6849_s28 + $0x530] sm:$0xff] %v5243_v30  ;;  %5436 = vst [vmem:[%s6849_s28 + $0x538] sm:$0xff] %v5244_v39  ;;  %v5245_v25 = vld [vmem:[#allocation2 + $0x1c8] sm:$0xff]  ;;  %v5248_v41 = vld [vmem:[#allocation2 + $0x5f8] sm:$0xff] }
 0x70e   : > { %v5247_v62 = vld [vmem:[#allocation2 + $0x408] sm:$0xff]  ;;  %5437 = vst [vmem:[%s6849_s28 + $0x540] sm:$0xff] %v5245_v25  ;;  %5438 = vst [vmem:[%s6849_s28 + $0x548] sm:$0xff] %v5246_v44  ;;  %v5249_v31 = vld [vmem:[#allocation2 + $0x270] sm:$0xff] }
 0x70f   : > { %5439 = vst [vmem:[%s6849_s28 + $0x550] sm:$0xff] %v5247_v62  ;;  %v5250_v6 = vld [vmem:[#allocation2 + $0x250] sm:$0xff]  ;;  %5440 = vst [vmem:[%s6849_s28 + $0x558] sm:$0xff] %v5248_v41  ;;  %v5252_v27 = vld [vmem:[#allocation2 + $0x1b8] sm:$0xff] }
 0x710   : > { %5441 = vst [vmem:[%s6849_s28 + $0x560] sm:$0xff] %v5249_v31  ;;  %5442 = vst [vmem:[%s6849_s28 + $0x568] sm:$0xff] %v5250_v6  ;;  %v5251_v0 = vld [vmem:[#allocation2 + $0x2d0] sm:$0xff]  ;;  %v5255_v2 = vld [vmem:[#allocation2 + $0x220] sm:$0xff] }
 0x711   : > { %v5253_v9 = vld [vmem:[#allocation2 + $0x150] sm:$0xff]  ;;  %5443 = vst [vmem:[%s6849_s28 + $0x570] sm:$0xff] %v5251_v0  ;;  %5444 = vst [vmem:[%s6849_s28 + $0x578] sm:$0xff] %v5252_v27  ;;  %v5256_v51 = vld [vmem:[#allocation2 + $0x1d8] sm:$0xff] }
 0x712   : > { %5445 = vst [vmem:[%s6849_s28 + $0x580] sm:$0xff] %v5253_v9  ;;  %v5254_v57 = vld [vmem:[#allocation2 + $0x1b0] sm:$0xff]  ;;  %5447 = vst [vmem:[%s6849_s28 + $0x590] sm:$0xff] %v5255_v2  ;;  %v5257_v43 = vld [vmem:[#allocation2 + $0x3e8] sm:$0xff] }
 0x713   : > { %5446 = vst [vmem:[%s6849_s28 + $0x588] sm:$0xff] %v5254_v57  ;;  %5448 = vst [vmem:[%s6849_s28 + $0x598] sm:$0xff] %v5256_v51  ;;  %v5258_v8 = vld [vmem:[#allocation2 + $0x448] sm:$0xff]  ;;  %v5259_v11 = vld [vmem:[#allocation2 + $0x430] sm:$0xff] }
 0x714   : > { %5449 = vst [vmem:[%s6849_s28 + $0x5a0] sm:$0xff] %v5257_v43  ;;  %5450 = vst [vmem:[%s6849_s28 + $0x5a8] sm:$0xff] %v5258_v8  ;;  %v5260_v18 = vld [vmem:[#allocation2 + $0x180] sm:$0xff]  ;;  %v5261_v33 = vld [vmem:[#allocation2 + $0x350] sm:$0xff] }
 0x715   : > { %5451 = vst [vmem:[%s6849_s28 + $0x5b0] sm:$0xff] %v5259_v11  ;;  %v5262_v47 = vld [vmem:[#allocation2 + $0x4c0] sm:$0xff]  ;;  %5452 = vst [vmem:[%s6849_s28 + $0x5b8] sm:$0xff] %v5260_v18  ;;  %v5263_v14 = vld [vmem:[#allocation2 + $0x128] sm:$0xff] }
 0x716   : > { %5453 = vst [vmem:[%s6849_s28 + $0x5c0] sm:$0xff] %v5261_v33  ;;  %5454 = vst [vmem:[%s6849_s28 + $0x5c8] sm:$0xff] %v5262_v47  ;;  %v5264_v22 = vld [vmem:[#allocation2 + $0x3f0] sm:$0xff]  ;;  %v5265_v24 = vld [vmem:[#allocation2 + $0x238] sm:$0xff] }
 0x717   : > { %5455 = vst [vmem:[%s6849_s28 + $0x5d0] sm:$0xff] %v5263_v14  ;;  %5456 = vst [vmem:[%s6849_s28 + $0x5d8] sm:$0xff] %v5264_v22  ;;  %v5266_v4 = vld [vmem:[#allocation2 + $0x290] sm:$0xff]  ;;  %v5267_v38 = vld [vmem:[#allocation2 + $0x568] sm:$0xff] }
 0x718   : > { %5457 = vst [vmem:[%s6849_s28 + $0x5e0] sm:$0xff] %v5265_v24  ;;  %v5268_v49 = vld [vmem:[#allocation2 + $0x90] sm:$0xff]  ;;  %5458 = vst [vmem:[%s6849_s28 + $0x5e8] sm:$0xff] %v5266_v4 }
 0x719   : > { %5459 = vst [vmem:[%s6849_s28 + $0x5f0] sm:$0xff] %v5267_v38  ;;  %5460 = vst [vmem:[%s6849_s28 + $0x5f8] sm:$0xff] %v5268_v49 }
 0x71a PF: > { %s5806_s21 = smul.u32 24576, %s6622_s22  ;;  %s5475_s10 = sshll.u32 %s6849_s28, 4  ;;  %s10099_s10 = int_to_ptr.vmem [resolvable:$true] %s5475_s10 }
 0x71b   : > { %s5462_s26 = scalar_lea.sflag [#allocation5], %s6822_s14  ;;  %s6530_s3 = scalar_lea.vmem %s10099_s10, 24576 }
 0x71c   : > { %s10097_s16 = scalar_lea.hbm %s10157_s5, %s5806_s21  ;;  %p6531_p12 = scmp.ne.s32.totalorder %s10099_s10, %s6530_s3 }
 0x71d   : > { %s6646_s4 = smov [#allocation11]  }
 0x71e   : > { %p6532_p1 = pnand %p6531_p12, %p6792_p0  ;;  %s6534_s30 = sshll.u32 %s6646_s4, 4  ;;  %s6535_s30 = int_to_ptr.vmem [resolvable:$false] %s6534_s30 }
 0x71f   : > { %s6536_s22 = scalar_lea.vmem %s6535_s30, 49152  ;;  %p6537_p11 = scmp.lt.s32.totalorder %s10099_s10, %s6535_s30 }
 0x720   : > { %p6533_p4 = pneg %p6532_p1  ;;  %p6538_p13 = scmp.lt.s32.totalorder %s6536_s22, %s6530_s3 }
 0x722   : > { %p6539_p3 = por %p6538_p13, %p6537_p11 }
 0x724   : > { %p6540_p5 = pnand %p6539_p3, %p6533_p4 }
 0x726   : > { %6543 = shalt.err (!%p6540_p5)
}
 0x727   : > { %s6544_s7 = scalar_lea.hbm %s10097_s16, 24576  ;;  %s6548_s11 = scalar_lea.hbm %s10157_s5, 49152 }
 0x728   : > { %p6545_p10 = scmp.ne.s32.totalorder %s10097_s16, %s6544_s7  ;;  %p6549_p6 = scmp.lt.s32.totalorder %s10097_s16, %s10157_s5 }
 0x729   : > { %p6550_p2 = scmp.lt.s32.totalorder %s6548_s11, %s6544_s7 }
 0x72a   : > { %p6546_p7 = pnand %p6545_p10, %p6792_p0 }
 0x72b   : > { %p6551_p9 = por %p6550_p2, %p6549_p6 }
 0x72c   : > { %p6547_p8 = pneg %p6546_p7 }
 0x72e   : > { %p6552_p12 = pnand %p6551_p9, %p6547_p8 }
 0x730   : > { %6555 = shalt.err (!%p6552_p12)
}
 0x731   : > { %s6647_s28 = smov 512   ;;  %s6648_s21 = smov 32  }
 0x732   : > { %5821 = dma.vmem_to_hbm [thread:$0]  (%p6792_p0), %s10099_s10, 24576, %s10097_s16, %s5462_s26, %s6647_s28, %s6647_s28, %s6648_s21  }
 0x733 PF: > { %p5848_p1 = scmp.ge.s32.totalorder %s6634_s25, 2  ;;  %s5490_s9 = sand.u32 1, %s6606_s18  }
 0x734   : > { %p11287_p4 = scmp.ne.s32.totalorder %s10476_s6, 0  ;;  %s5491_s15 = scalar_lea.sflag [#allocation5], %s5490_s9 }
 0x736   : > { %p5838_p11 = pnand %p5848_p1, %p11287_p4 }
 0x738   : > { %p5839_p13 = pneg %p5838_p11 }
 0x73a   : > { %6601 = dma.done.wait (%p5839_p13), %s5491_s15, 24576  }
 0x73b   : > { %6603 = vsyncadd (%p5839_p13), %s5491_s15, 4294942720  ;;  %s23_s25 = sadd.s32 1, %s6634_s25   ;;  %s11288_s27 = sld [smem:[#allocation16_spill]] }
 0x73c   : > { %p20_p3 = scmp.ge.s32.totalorder %s23_s25, 6   ;;  %s11289_s18 = smov %s6610_s19 }
 0x73d   : > { %s11290_s19 = smov %s6614_s20  ;;  %s11291_s20 = smov %s6807_s2 }
 0x73e   : > { %s11292_s21 = smov %s6626_s23  ;;  %s11293_s22 = smov %s6630_s24 }
 0x73f   : > { %s11294_s23 = smov %s11297_s12  ;;  %22 = sbr.rel (!%p20_p3) target bundleno = 13 (0xd), region = 108 }
 0x741   : > { %s11295_s24 = smov %s11288_s27 }
 0x744   :  { %5496 = vsyncpa [#allocation4], 1 }
 0x745   :  { %5498 = vsyncpa [#allocation4 + $0x1], 1 }
 0x746   :  { %5499 = vsyncpa [#allocation7], 1 }
 0x747   :  { %5500 = vsyncpa [#allocation10], 1 }
 0x748   :  { %5501 = vsyncpa [#allocation5], 1 }
 0x749   :  { %5503 = vsyncpa [#allocation5 + $0x1], 1 }

</bundles_post_ra>
